<compile_context>
chip_gen: v6e
topology: v6e:2x2x1
jax: 0.10.0
libtpu: 0.0.40
codegen_flags: <defaults>
</compile_context>

<pallas_src>
import functools
import math

import numpy as np
import jax
import jax.numpy as jnp
from jax import lax
from jax.experimental import pallas as pl
from jax.experimental.pallas import tpu as pltpu

F32 = jnp.float32
BF16 = jnp.bfloat16
_LN_EPS = 1e-5

# ---- packed small-vector table (one DMA instead of 16) ------------------------
V_LN_W, V_LN_B = 0, 1                    # self.ln
V_QLN_W, V_QLN_B = 2, 3                  # fc_q[0] LayerNorm
V_BM, V_BMC = 4, 5                       # mlp / mlp_c biases
V_BE1, V_ELN1_W, V_ELN1_B = 6, 7, 8      # genQureyToken encode stage 1
V_BE2, V_ELN2_W, V_ELN2_B = 9, 10, 11    # encode stage 2 (D//2 rows, zero padded)
V_BD1, V_DLN_W, V_DLN_B = 12, 13, 14     # decode stage 1
V_BD2 = 15                               # decode stage 2 bias
N_VEC = 16

# ---- packed (D, D) f32 weight stack (step-0 / last-step use only) ---------------
W_Q, W_M, W_MC, W_E1, W_D2 = 0, 1, 2, 3, 4
N_WBIG = 5


def _round_up(n, m):
    return ((n + m - 1) // m) * m


def _ln(x, w, b):
    mu = jnp.mean(x, axis=-1, keepdims=True)
    var = jnp.mean(jnp.square(x - mu), axis=-1, keepdims=True)
    return (x - mu) * lax.rsqrt(var + _LN_EPS) * w + b


def _kernel(np_ref, x_ref, tok_ref, wkv_ref, wbig_ref, we2_ref, wd1_ref, vec_ref,
            outq_ref, outc_ref, outtok_ref,
            qc_scr, acc_scr,
            *, d, hd, t, tile):
    step = pl.program_id(0)
    last = pl.num_programs(0) - 1
    inv_d = 1.0 / d                                       # d_k = model_dim

    def row(i, width=d):                                  # lazy: only touched rows load
        return vec_ref[i:i + 1, :width]

    # ---------------- step 0: Np-independent token-side prologue ----------------
    @pl.when(step == 0)
    def _init():
        tok = tok_ref[...]                                # (T, D) f32
        # fc_q = LayerNorm -> Linear(no bias)
        q = jnp.dot(_ln(tok, row(V_QLN_W), row(V_QLN_B)), wbig_ref[W_Q],
                    preferred_element_type=F32)           # (T, D)

        # genQureyToken(Q_share)  (Dropout layers are identity in eval mode)
        h1 = jnp.maximum(
            _ln(jnp.dot(q, wbig_ref[W_E1], preferred_element_type=F32) + row(V_BE1),
                row(V_ELN1_W), row(V_ELN1_B)), 0.0)                          # (T, D)
        h2 = jnp.maximum(
            _ln(jnp.dot(h1, we2_ref[...], preferred_element_type=F32) + row(V_BE2, hd),
                row(V_ELN2_W, hd), row(V_ELN2_B, hd)), 0.0)                  # (T, D/2)
        g = jnp.mean(h2, axis=0, keepdims=True)           # AdaptiveAvgPool1d(1)
        gt = jnp.broadcast_to(g, (t, hd))                 # .expand(-1, T).t()
        d1 = jnp.maximum(
            _ln(jnp.dot(gt, wd1_ref[...], preferred_element_type=F32) + row(V_BD1),
                row(V_DLN_W), row(V_DLN_B)), 0.0)                            # (T, D)
        comp = jnp.dot(d1, wbig_ref[W_D2],
                       preferred_element_type=F32) + row(V_BD2)              # (T, D)

        outtok_ref[...] = comp                            # resident output block
        # Fused query block [Q_share ; complementaryToken], 1/d_k folded in, bf16.
        qc_scr[...] = (jnp.concatenate([q, comp], axis=0) * inv_d).astype(BF16)
        acc_scr[...] = jnp.zeros_like(acc_scr)

    # ---------------- every step: one Np tile ----------------
    x = x_ref[...].astype(F32)                            # bf16 stream -> f32 LN stats
    sfb = _ln(x, row(V_LN_W), row(V_LN_B)).astype(BF16)   # shared self.ln, bf16 out
    k = jnp.dot(sfb, wkv_ref[0], preferred_element_type=F32).astype(BF16)   # (tile, D)
    v = jnp.dot(sfb, wkv_ref[1], preferred_element_type=F32).astype(BF16)   # (tile, D)

    # mask for the zero-padded tail of the last tile (np_actual from SMEM prefetch)
    col = step * tile + lax.broadcasted_iota(jnp.int32, (1, tile), 1)
    valid = col < np_ref[0]

    # S^T kept (2T, tile): big axis lane-dense; one score dot for both paths.
    st = lax.dot_general(qc_scr[...], k, (((1,), (1,)), ((), ())),
                         preferred_element_type=F32)      # (2T, tile)

    def _softmax_tok(s):                                  # softmax over token axis
        s = s - jnp.max(s, axis=0, keepdims=True)
        p = jnp.exp(s)
        return p * pl.reciprocal(jnp.sum(p, axis=0, keepdims=True), approx=True)

    a = jnp.concatenate([_softmax_tok(st[:t]), _softmax_tok(st[t:])], axis=0)
    a = jnp.where(valid, a, 0.0).astype(BF16)             # zero padded columns
    acc_scr[...] += lax.dot_general(a, v, (((1,), (0,)), ((), ())),
                                    preferred_element_type=F32)   # (2T, D) fused acc

    # ---------------- last step: mlp / mlp_c epilogues ----------------
    @pl.when(step == last)
    def _fin():
        acc = acc_scr[...] * inv_d
        outq_ref[...] = jnp.dot(acc[:t], wbig_ref[W_M],
                                preferred_element_type=F32) + row(V_BM)
        outc_ref[...] = jnp.dot(acc[t:], wbig_ref[W_MC],
                                preferred_element_type=F32) + row(V_BMC)


# ------------------------------ parameters -------------------------------------
def build_params(key, *, model_dim):
    """Synthetic eval-mode parameters, Linear weights stored as (fan_in, fan_out)."""
    d, hd = model_dim, model_dim // 2
    keys = iter(jax.random.split(key, 40))

    def nrm(shape, scale):
        return (scale * jax.random.normal(next(keys), shape)).astype(F32)

    def lin(fi, fo, bias=True):
        w = nrm((fi, fo), 1.0 / math.sqrt(fi))
        b = nrm((fo,), 0.02) if bias else None
        return w, b

    def ln_affine(n):
        return (1.0 + nrm((n,), 0.1)), nrm((n,), 0.05)

    p = {}
    p["ln_w"], p["ln_b"] = ln_affine(d)            # self.ln
    p["qln_w"], p["qln_b"] = ln_affine(d)          # fc_q[0]
    p["w_q"], _ = lin(d, d, bias=False)            # fc_q[1] (no bias)
    p["w_k"], _ = lin(d, d, bias=False)            # fc_k
    p["w_v"], _ = lin(d, d, bias=False)            # fc_v
    p["w_m"], p["b_m"] = lin(d, d)                 # mlp
    p["w_mc"], p["b_mc"] = lin(d, d)               # mlp_c
    # genQureyToken
    p["w_e1"], p["b_e1"] = lin(d, d)
    p["eln1_w"], p["eln1_b"] = ln_affine(d)
    p["w_e2"], p["b_e2"] = lin(d, hd)
    p["eln2_w"], p["eln2_b"] = ln_affine(hd)
    p["w_d1"], p["b_d1"] = lin(hd, d)
    p["dln_w"], p["dln_b"] = ln_affine(d)
    p["w_d2"], p["b_d2"] = lin(d, d)
    return p


def _pack_params(p, d):
    def row(v):
        v = jnp.asarray(v, F32).reshape(1, -1)
        if v.shape[1] < d:
            v = jnp.pad(v, ((0, 0), (0, d - v.shape[1])))
        return v

    vec = jnp.concatenate([
        row(p["ln_w"]), row(p["ln_b"]),
        row(p["qln_w"]), row(p["qln_b"]),
        row(p["b_m"]), row(p["b_mc"]),
        row(p["b_e1"]), row(p["eln1_w"]), row(p["eln1_b"]),
        row(p["b_e2"]), row(p["eln2_w"]), row(p["eln2_b"]),
        row(p["b_d1"]), row(p["dln_w"]), row(p["dln_b"]),
        row(p["b_d2"]),
    ], axis=0)                                                   # (N_VEC, D)
    wbig = jnp.stack([p["w_q"], p["w_m"], p["w_mc"],
                      p["w_e1"], p["w_d2"]]).astype(F32)         # (5, D, D)
    wkv = jnp.stack([p["w_k"], p["w_v"]]).astype(BF16)           # (2, D, D) bf16
    return wkv, wbig, p["w_e2"].astype(F32), p["w_d1"].astype(F32), vec


# ------------------------------ wrapper -----------------------------------------
def share_split_complement_forward(share_feature, tokens, params, *,
                                   tile_np=1024,
                                   bucket_grid=False,
                                   vmem_limit_bytes=None):
    """Mirrors ShareFeatureSplitComplementBlock.forward (eval mode)."""
    n_p, d = share_feature.shape
    t = tokens.shape[0]
    hd = d // 2
    wkv, wbig, we2, wd1, vec = _pack_params(params, d)
    tokens_f32 = jnp.asarray(tokens, F32)

    # Np tile: as large as requested (amortises per-step overhead + redundant Wk/Wv
    # MXU weight pushes); clamp only to the 16-row-aligned data size (bf16 packing).
    tile = _round_up(min(int(tile_np), _round_up(max(n_p, 1), 16)), 16)
    num_tiles = max(1, -(-n_p // tile))
    if bucket_grid:                       # shape-stable grid buckets across slides
        num_tiles = int(pl.next_power_of_2(num_tiles))
    np_pad = num_tiles * tile

    x = share_feature.astype(BF16)        # halve the only O(Np) HBM stream
    if np_pad != n_p:
        x = jnp.pad(x, ((0, np_pad - n_p), (0, 0)))
    np_arr = jnp.array([n_p], jnp.int32)  # scalar-prefetch: real length -> SMEM

    grid = (num_tiles,)
    kern = functools.partial(_kernel, d=d, hd=hd, t=t, tile=tile)

    def const(shape):
        zeros = (0,) * len(shape)
        return pl.BlockSpec(shape, lambda i, n, z=zeros: z)

    out_sds = jax.ShapeDtypeStruct((t, d), F32)

    # Right-sized VMEM request (double-buffered x tile + constants + scratch/outs).
    const_bytes = sum(int(a.size) * a.dtype.itemsize
                      for a in (tokens_f32, wkv, wbig, we2, wd1, vec))
    if vmem_limit_bytes is None:
        need = 2 * (tile * d * 2 + const_bytes) + (2 * t * d) * 6 + 3 * t * d * 4
        vmem_limit_bytes = int(min(64 << 20, max(16 << 20, 2 * need)))

    flops = int(4 * np_pad * d * d + 8 * np_pad * t * d + 12 * t * d * d)
    transcendentals = int(2 * t * np_pad)
    bytes_accessed = int(np_pad * d * 2 + const_bytes + 3 * t * d * 4)

    share_q, share_q_c, comp = pl.pallas_call(
        kern,
        out_shape=(out_sds, out_sds, out_sds),
        grid_spec=pltpu.PrefetchScalarGridSpec(
            num_scalar_prefetch=1,
            grid=grid,
            in_specs=[
                pl.BlockSpec((tile, d), lambda i, n: (i, 0)),  # share_feature tiles
                const((t, d)),                                 # FeatureExtractTokens
                const((2, d, d)),                              # Wk / Wv (bf16)
                const((N_WBIG, d, d)),                         # Wq, Wm, Wmc, We1, Wd2
                const((d, hd)),                                # We2
                const((hd, d)),                                # Wd1
                const((N_VEC, d)),                             # packed biases / LN affines
            ],
            out_specs=(const((t, d)), const((t, d)), const((t, d))),
            scratch_shapes=[pltpu.VMEM((2 * t, d), BF16),      # fused scaled queries
                            pltpu.VMEM((2 * t, d), F32)],      # fused accumulator
        ),
        compiler_params=pltpu.CompilerParams(
            dimension_semantics=("arbitrary",),                # Np axis is a reduction
            vmem_limit_bytes=vmem_limit_bytes),
        cost_estimate=pl.CostEstimate(flops=flops,
                                      transcendentals=transcendentals,
                                      bytes_accessed=bytes_accessed),
    )(np_arr, x, tokens_f32, wkv, wbig, we2, wd1, vec)

    # complementaryToken.unsqueeze(0)
    return share_q, share_q_c, comp[None, :, :]


# ------------------------------ pure-JAX reference -------------------------------
def _reference(share_feature, tokens, p):
    d = share_feature.shape[1]

    def ln(x, w, b):
        mu = x.mean(-1, keepdims=True)
        var = ((x - mu) ** 2).mean(-1, keepdims=True)
        return (x - mu) / jnp.sqrt(var + _LN_EPS) * w + b

    sf = ln(share_feature, p["ln_w"], p["ln_b"])
    q = ln(tokens, p["qln_w"], p["qln_b"]) @ p["w_q"]
    k = sf @ p["w_k"]
    v = sf @ p["w_v"]
    a = jax.nn.softmax(k @ q.T / d, axis=-1)
    share_q = ((a.T @ v) / d) @ p["w_m"] + p["b_m"]
    # genQureyToken
    h1 = jax.nn.relu(ln(q @ p["w_e1"] + p["b_e1"], p["eln1_w"], p["eln1_b"]))
    h2 = jax.nn.relu(ln(h1 @ p["w_e2"] + p["b_e2"], p["eln2_w"], p["eln2_b"]))
    gt = jnp.broadcast_to(h2.mean(axis=0, keepdims=True), h2.shape)
    d1 = jax.nn.relu(ln(gt @ p["w_d1"] + p["b_d1"], p["dln_w"], p["dln_b"]))
    comp = d1 @ p["w_d2"] + p["b_d2"]
    ca = jax.nn.softmax(k @ comp.T / d, axis=-1)
    share_q_c = ((ca.T @ v) / d) @ p["w_mc"] + p["b_mc"]
    return share_q, share_q_c, comp[None]


if __name__ == "__main__":
    D = 256        # model_dim (D // 2 = 128 keeps the encoder bottleneck lane-dense)
    T = 8          # FeatureExtractTokens rows
    NP = 500       # WSI patch rows (not a tile multiple -> exercises padding/masking)

    key = jax.random.PRNGKey(0)
    kx, kt, kp = jax.random.split(key, 3)
    share_feature = jax.random.normal(kx, (NP, D), dtype=F32)
    tokens = 0.5 * jax.random.normal(kt, (T, D), dtype=F32)
    params = build_params(kp, model_dim=D)

    outs = share_split_complement_forward(share_feature, tokens, params)
    outs = jax.block_until_ready(outs)
    share_q, share_q_c, comp = outs

    assert share_q.shape == (T, D)
    assert share_q_c.shape == (T, D)
    assert comp.shape == (1, T, D)

    ref_q, ref_qc, ref_comp = _reference(share_feature, tokens, params)
    # Loose tolerances cover the sanctioned bf16 stream / bf16 attention matmuls
    # and the approx softmax reciprocal.
    np.testing.assert_allclose(np.asarray(share_q), np.asarray(ref_q),
                               rtol=5e-2, atol=2e-2)
    np.testing.assert_allclose(np.asarray(share_q_c), np.asarray(ref_qc),
                               rtol=5e-2, atol=2e-2)
    np.testing.assert_allclose(np.asarray(comp), np.asarray(ref_comp),
                               rtol=5e-2, atol=2e-2)
    print("KERNEL_OK")
</pallas_src>

<mosaic_0001>
module attributes {stable_mosaic.version = 11 : i64} {
  func.func @_kernel(%arg0: i32, %arg1: memref<1xi32, #tpu.memory_space<smem>>, %arg2: memref<512x256xbf16, #tpu.memory_space<vmem>>, %arg3: memref<8x256xf32, #tpu.memory_space<vmem>>, %arg4: memref<2x256x256xbf16, #tpu.memory_space<vmem>>, %arg5: memref<5x256x256xf32, #tpu.memory_space<vmem>>, %arg6: memref<256x128xf32, #tpu.memory_space<vmem>>, %arg7: memref<128x256xf32, #tpu.memory_space<vmem>>, %arg8: memref<16x256xf32, #tpu.memory_space<vmem>>, %arg9: memref<8x256xf32, #tpu.memory_space<vmem>>, %arg10: memref<8x256xf32, #tpu.memory_space<vmem>>, %arg11: memref<8x256xf32, #tpu.memory_space<vmem>>, %arg12: memref<16x256xbf16, #tpu.memory_space<vmem>>, %arg13: memref<16x256xf32, #tpu.memory_space<vmem>>) attributes {dimension_semantics = [#tpu.dimension_semantics<arbitrary>], iteration_bounds = array<i64: 1>, scalar_prefetch = 1 : i64, scratch_operands = 2 : i64, tpu.core_type = #tpu.core_type<tc>, window_params = [{transform_indices = @transform_0, window_bounds = array<i64: 512, 256>}, {pipeline_mode = #tpu.pipeline_mode<synchronous>, transform_indices = @transform_1, window_bounds = array<i64: 8, 256>}, {pipeline_mode = #tpu.pipeline_mode<synchronous>, transform_indices = @transform_2, window_bounds = array<i64: 2, 256, 256>}, {pipeline_mode = #tpu.pipeline_mode<synchronous>, transform_indices = @transform_3, window_bounds = array<i64: 5, 256, 256>}, {pipeline_mode = #tpu.pipeline_mode<synchronous>, transform_indices = @transform_4, window_bounds = array<i64: 256, 128>}, {pipeline_mode = #tpu.pipeline_mode<synchronous>, transform_indices = @transform_5, window_bounds = array<i64: 128, 256>}, {pipeline_mode = #tpu.pipeline_mode<synchronous>, transform_indices = @transform_6, window_bounds = array<i64: 16, 256>}, {pipeline_mode = #tpu.pipeline_mode<synchronous>, transform_indices = @transform_7, window_bounds = array<i64: 8, 256>}, {pipeline_mode = #tpu.pipeline_mode<synchronous>, transform_indices = @transform_8, window_bounds = array<i64: 8, 256>}, {pipeline_mode = #tpu.pipeline_mode<synchronous>, transform_indices = @transform_9, window_bounds = array<i64: 8, 256>}]} {
    %c0_i32 = arith.constant 0 : i32
    %0 = arith.cmpi eq, %arg0, %c0_i32 : i32
    %1 = arith.extui %0 : i1 to i32
    %c0_i32_0 = arith.constant 0 : i32
    %2 = arith.cmpi ne, %1, %c0_i32_0 : i32
    scf.if %2 {
      %c0_33 = arith.constant 0 : index
      %c0_34 = arith.constant 0 : index
      %82 = vector.load %arg3[%c0_33, %c0_34] : memref<8x256xf32, #tpu.memory_space<vmem>>, vector<8x256xf32>
      %c2 = arith.constant 2 : index
      %c0_35 = arith.constant 0 : index
      %83 = vector.load %arg8[%c2, %c0_35] : memref<16x256xf32, #tpu.memory_space<vmem>>, vector<1x256xf32>
      %c3 = arith.constant 3 : index
      %c0_36 = arith.constant 0 : index
      %84 = vector.load %arg8[%c3, %c0_36] : memref<16x256xf32, #tpu.memory_space<vmem>>, vector<1x256xf32>
      %cst_37 = arith.constant dense<0.000000e+00> : vector<8xf32>
      %85 = vector.multi_reduction <add>, %82, %cst_37 [1] : vector<8x256xf32> to vector<8xf32>
      %86 = vector.shape_cast %85 : vector<8xf32> to vector<8x1xf32>
      %cst_38 = arith.constant 2.560000e+02 : f32
      %87 = vector.broadcast %cst_38 : f32 to vector<8x1xf32>
      %88 = arith.divf %86, %87 : vector<8x1xf32>
      %89 = vector.broadcast %88 : vector<8x1xf32> to vector<8x256xf32>
      %90 = arith.subf %82, %89 : vector<8x256xf32>
      %91 = arith.mulf %90, %90 : vector<8x256xf32>
      %cst_39 = arith.constant dense<0.000000e+00> : vector<8xf32>
      %92 = vector.multi_reduction <add>, %91, %cst_39 [1] : vector<8x256xf32> to vector<8xf32>
      %93 = vector.shape_cast %92 : vector<8xf32> to vector<8x1xf32>
      %cst_40 = arith.constant 2.560000e+02 : f32
      %94 = vector.broadcast %cst_40 : f32 to vector<8x1xf32>
      %95 = arith.divf %93, %94 : vector<8x1xf32>
      %96 = vector.broadcast %88 : vector<8x1xf32> to vector<8x256xf32>
      %97 = arith.subf %82, %96 : vector<8x256xf32>
      %cst_41 = arith.constant 9.99999974E-6 : f32
      %98 = vector.broadcast %cst_41 : f32 to vector<8x1xf32>
      %99 = arith.addf %95, %98 : vector<8x1xf32>
      %100 = math.rsqrt %99 : vector<8x1xf32>
      %101 = vector.broadcast %100 : vector<8x1xf32> to vector<8x256xf32>
      %102 = arith.mulf %97, %101 : vector<8x256xf32>
      %103 = vector.broadcast %83 : vector<1x256xf32> to vector<8x256xf32>
      %104 = arith.mulf %102, %103 : vector<8x256xf32>
      %105 = vector.broadcast %84 : vector<1x256xf32> to vector<8x256xf32>
      %106 = arith.addf %104, %105 : vector<8x256xf32>
      %c0_42 = arith.constant 0 : index
      %c0_43 = arith.constant 0 : index
      %c0_44 = arith.constant 0 : index
      %107 = vector.load %arg5[%c0_42, %c0_43, %c0_44] : memref<5x256x256xf32, #tpu.memory_space<vmem>>, vector<1x256x256xf32>
      %108 = vector.shape_cast %107 : vector<1x256x256xf32> to vector<256x256xf32>
      %cst_45 = arith.constant dense<0.000000e+00> : vector<8x256xf32>
      %109 = tpu.matmul %106, %108, %cst_45 {dimension_numbers = #tpu.dot_dimension_numbers<[1], [0], [0], [1], [0, 0, 1, 1], [], []>} : vector<8x256xf32>, vector<256x256xf32>, vector<8x256xf32> -> vector<8x256xf32>
      %c3_46 = arith.constant 3 : index
      %c0_47 = arith.constant 0 : index
      %c0_48 = arith.constant 0 : index
      %110 = vector.load %arg5[%c3_46, %c0_47, %c0_48] : memref<5x256x256xf32, #tpu.memory_space<vmem>>, vector<1x256x256xf32>
      %111 = vector.shape_cast %110 : vector<1x256x256xf32> to vector<256x256xf32>
      %cst_49 = arith.constant dense<0.000000e+00> : vector<8x256xf32>
      %112 = tpu.matmul %109, %111, %cst_49 {dimension_numbers = #tpu.dot_dimension_numbers<[1], [0], [0], [1], [0, 0, 1, 1], [], []>} : vector<8x256xf32>, vector<256x256xf32>, vector<8x256xf32> -> vector<8x256xf32>
      %c6 = arith.constant 6 : index
      %c0_50 = arith.constant 0 : index
      %113 = vector.load %arg8[%c6, %c0_50] : memref<16x256xf32, #tpu.memory_space<vmem>>, vector<1x256xf32>
      %114 = vector.broadcast %113 : vector<1x256xf32> to vector<8x256xf32>
      %115 = arith.addf %112, %114 : vector<8x256xf32>
      %c7 = arith.constant 7 : index
      %c0_51 = arith.constant 0 : index
      %116 = vector.load %arg8[%c7, %c0_51] : memref<16x256xf32, #tpu.memory_space<vmem>>, vector<1x256xf32>
      %c8 = arith.constant 8 : index
      %c0_52 = arith.constant 0 : index
      %117 = vector.load %arg8[%c8, %c0_52] : memref<16x256xf32, #tpu.memory_space<vmem>>, vector<1x256xf32>
      %cst_53 = arith.constant dense<0.000000e+00> : vector<8xf32>
      %118 = vector.multi_reduction <add>, %115, %cst_53 [1] : vector<8x256xf32> to vector<8xf32>
      %119 = vector.shape_cast %118 : vector<8xf32> to vector<8x1xf32>
      %cst_54 = arith.constant 2.560000e+02 : f32
      %120 = vector.broadcast %cst_54 : f32 to vector<8x1xf32>
      %121 = arith.divf %119, %120 : vector<8x1xf32>
      %122 = vector.broadcast %121 : vector<8x1xf32> to vector<8x256xf32>
      %123 = arith.subf %115, %122 : vector<8x256xf32>
      %124 = arith.mulf %123, %123 : vector<8x256xf32>
      %cst_55 = arith.constant dense<0.000000e+00> : vector<8xf32>
      %125 = vector.multi_reduction <add>, %124, %cst_55 [1] : vector<8x256xf32> to vector<8xf32>
      %126 = vector.shape_cast %125 : vector<8xf32> to vector<8x1xf32>
      %cst_56 = arith.constant 2.560000e+02 : f32
      %127 = vector.broadcast %cst_56 : f32 to vector<8x1xf32>
      %128 = arith.divf %126, %127 : vector<8x1xf32>
      %129 = vector.broadcast %121 : vector<8x1xf32> to vector<8x256xf32>
      %130 = arith.subf %115, %129 : vector<8x256xf32>
      %cst_57 = arith.constant 9.99999974E-6 : f32
      %131 = vector.broadcast %cst_57 : f32 to vector<8x1xf32>
      %132 = arith.addf %128, %131 : vector<8x1xf32>
      %133 = math.rsqrt %132 : vector<8x1xf32>
      %134 = vector.broadcast %133 : vector<8x1xf32> to vector<8x256xf32>
      %135 = arith.mulf %130, %134 : vector<8x256xf32>
      %136 = vector.broadcast %116 : vector<1x256xf32> to vector<8x256xf32>
      %137 = arith.mulf %135, %136 : vector<8x256xf32>
      %138 = vector.broadcast %117 : vector<1x256xf32> to vector<8x256xf32>
      %139 = arith.addf %137, %138 : vector<8x256xf32>
      %cst_58 = arith.constant 0.000000e+00 : f32
      %140 = vector.broadcast %cst_58 : f32 to vector<8x256xf32>
      %141 = arith.maximumf %139, %140 : vector<8x256xf32>
      %c0_59 = arith.constant 0 : index
      %c0_60 = arith.constant 0 : index
      %142 = vector.load %arg6[%c0_59, %c0_60] : memref<256x128xf32, #tpu.memory_space<vmem>>, vector<256x128xf32>
      %cst_61 = arith.constant dense<0.000000e+00> : vector<8x128xf32>
      %143 = tpu.matmul %141, %142, %cst_61 {dimension_numbers = #tpu.dot_dimension_numbers<[1], [0], [0], [1], [0, 0, 1, 1], [], []>} : vector<8x256xf32>, vector<256x128xf32>, vector<8x128xf32> -> vector<8x128xf32>
      %c9 = arith.constant 9 : index
      %c0_62 = arith.constant 0 : index
      %144 = vector.load %arg8[%c9, %c0_62] : memref<16x256xf32, #tpu.memory_space<vmem>>, vector<1x128xf32>
      %145 = vector.broadcast %144 : vector<1x128xf32> to vector<8x128xf32>
      %146 = arith.addf %143, %145 : vector<8x128xf32>
      %c10 = arith.constant 10 : index
      %c0_63 = arith.constant 0 : index
      %147 = vector.load %arg8[%c10, %c0_63] : memref<16x256xf32, #tpu.memory_space<vmem>>, vector<1x128xf32>
      %c11 = arith.constant 11 : index
      %c0_64 = arith.constant 0 : index
      %148 = vector.load %arg8[%c11, %c0_64] : memref<16x256xf32, #tpu.memory_space<vmem>>, vector<1x128xf32>
      %cst_65 = arith.constant dense<0.000000e+00> : vector<8xf32>
      %149 = vector.multi_reduction <add>, %146, %cst_65 [1] : vector<8x128xf32> to vector<8xf32>
      %150 = vector.shape_cast %149 : vector<8xf32> to vector<8x1xf32>
      %cst_66 = arith.constant 1.280000e+02 : f32
      %151 = vector.broadcast %cst_66 : f32 to vector<8x1xf32>
      %152 = arith.divf %150, %151 : vector<8x1xf32>
      %153 = vector.broadcast %152 : vector<8x1xf32> to vector<8x128xf32>
      %154 = arith.subf %146, %153 : vector<8x128xf32>
      %155 = arith.mulf %154, %154 : vector<8x128xf32>
      %cst_67 = arith.constant dense<0.000000e+00> : vector<8xf32>
      %156 = vector.multi_reduction <add>, %155, %cst_67 [1] : vector<8x128xf32> to vector<8xf32>
      %157 = vector.shape_cast %156 : vector<8xf32> to vector<8x1xf32>
      %cst_68 = arith.constant 1.280000e+02 : f32
      %158 = vector.broadcast %cst_68 : f32 to vector<8x1xf32>
      %159 = arith.divf %157, %158 : vector<8x1xf32>
      %160 = vector.broadcast %152 : vector<8x1xf32> to vector<8x128xf32>
      %161 = arith.subf %146, %160 : vector<8x128xf32>
      %cst_69 = arith.constant 9.99999974E-6 : f32
      %162 = vector.broadcast %cst_69 : f32 to vector<8x1xf32>
      %163 = arith.addf %159, %162 : vector<8x1xf32>
      %164 = math.rsqrt %163 : vector<8x1xf32>
      %165 = vector.broadcast %164 : vector<8x1xf32> to vector<8x128xf32>
      %166 = arith.mulf %161, %165 : vector<8x128xf32>
      %167 = vector.broadcast %147 : vector<1x128xf32> to vector<8x128xf32>
      %168 = arith.mulf %166, %167 : vector<8x128xf32>
      %169 = vector.broadcast %148 : vector<1x128xf32> to vector<8x128xf32>
      %170 = arith.addf %168, %169 : vector<8x128xf32>
      %cst_70 = arith.constant 0.000000e+00 : f32
      %171 = vector.broadcast %cst_70 : f32 to vector<8x128xf32>
      %172 = arith.maximumf %170, %171 : vector<8x128xf32>
      %cst_71 = arith.constant dense<0.000000e+00> : vector<128xf32>
      %173 = vector.multi_reduction <add>, %172, %cst_71 [0] : vector<8x128xf32> to vector<128xf32>
      %174 = vector.shape_cast %173 : vector<128xf32> to vector<1x128xf32>
      %cst_72 = arith.constant 8.000000e+00 : f32
      %175 = vector.broadcast %cst_72 : f32 to vector<1x128xf32>
      %176 = arith.divf %174, %175 : vector<1x128xf32>
      %177 = vector.shape_cast %176 : vector<1x128xf32> to vector<1x128xf32>
      %178 = vector.broadcast %177 : vector<1x128xf32> to vector<8x128xf32>
      %c0_73 = arith.constant 0 : index
      %c0_74 = arith.constant 0 : index
      %179 = vector.load %arg7[%c0_73, %c0_74] : memref<128x256xf32, #tpu.memory_space<vmem>>, vector<128x256xf32>
      %cst_75 = arith.constant dense<0.000000e+00> : vector<8x256xf32>
      %180 = tpu.matmul %178, %179, %cst_75 {dimension_numbers = #tpu.dot_dimension_numbers<[1], [0], [0], [1], [0, 0, 1, 1], [], []>} : vector<8x128xf32>, vector<128x256xf32>, vector<8x256xf32> -> vector<8x256xf32>
      %c12 = arith.constant 12 : index
      %c0_76 = arith.constant 0 : index
      %181 = vector.load %arg8[%c12, %c0_76] : memref<16x256xf32, #tpu.memory_space<vmem>>, vector<1x256xf32>
      %182 = vector.broadcast %181 : vector<1x256xf32> to vector<8x256xf32>
      %183 = arith.addf %180, %182 : vector<8x256xf32>
      %c13 = arith.constant 13 : index
      %c0_77 = arith.constant 0 : index
      %184 = vector.load %arg8[%c13, %c0_77] : memref<16x256xf32, #tpu.memory_space<vmem>>, vector<1x256xf32>
      %c14 = arith.constant 14 : index
      %c0_78 = arith.constant 0 : index
      %185 = vector.load %arg8[%c14, %c0_78] : memref<16x256xf32, #tpu.memory_space<vmem>>, vector<1x256xf32>
      %cst_79 = arith.constant dense<0.000000e+00> : vector<8xf32>
      %186 = vector.multi_reduction <add>, %183, %cst_79 [1] : vector<8x256xf32> to vector<8xf32>
      %187 = vector.shape_cast %186 : vector<8xf32> to vector<8x1xf32>
      %cst_80 = arith.constant 2.560000e+02 : f32
      %188 = vector.broadcast %cst_80 : f32 to vector<8x1xf32>
      %189 = arith.divf %187, %188 : vector<8x1xf32>
      %190 = vector.broadcast %189 : vector<8x1xf32> to vector<8x256xf32>
      %191 = arith.subf %183, %190 : vector<8x256xf32>
      %192 = arith.mulf %191, %191 : vector<8x256xf32>
      %cst_81 = arith.constant dense<0.000000e+00> : vector<8xf32>
      %193 = vector.multi_reduction <add>, %192, %cst_81 [1] : vector<8x256xf32> to vector<8xf32>
      %194 = vector.shape_cast %193 : vector<8xf32> to vector<8x1xf32>
      %cst_82 = arith.constant 2.560000e+02 : f32
      %195 = vector.broadcast %cst_82 : f32 to vector<8x1xf32>
      %196 = arith.divf %194, %195 : vector<8x1xf32>
      %197 = vector.broadcast %189 : vector<8x1xf32> to vector<8x256xf32>
      %198 = arith.subf %183, %197 : vector<8x256xf32>
      %cst_83 = arith.constant 9.99999974E-6 : f32
      %199 = vector.broadcast %cst_83 : f32 to vector<8x1xf32>
      %200 = arith.addf %196, %199 : vector<8x1xf32>
      %201 = math.rsqrt %200 : vector<8x1xf32>
      %202 = vector.broadcast %201 : vector<8x1xf32> to vector<8x256xf32>
      %203 = arith.mulf %198, %202 : vector<8x256xf32>
      %204 = vector.broadcast %184 : vector<1x256xf32> to vector<8x256xf32>
      %205 = arith.mulf %203, %204 : vector<8x256xf32>
      %206 = vector.broadcast %185 : vector<1x256xf32> to vector<8x256xf32>
      %207 = arith.addf %205, %206 : vector<8x256xf32>
      %cst_84 = arith.constant 0.000000e+00 : f32
      %208 = vector.broadcast %cst_84 : f32 to vector<8x256xf32>
      %209 = arith.maximumf %207, %208 : vector<8x256xf32>
      %c4 = arith.constant 4 : index
      %c0_85 = arith.constant 0 : index
      %c0_86 = arith.constant 0 : index
      %210 = vector.load %arg5[%c4, %c0_85, %c0_86] : memref<5x256x256xf32, #tpu.memory_space<vmem>>, vector<1x256x256xf32>
      %211 = vector.shape_cast %210 : vector<1x256x256xf32> to vector<256x256xf32>
      %cst_87 = arith.constant dense<0.000000e+00> : vector<8x256xf32>
      %212 = tpu.matmul %209, %211, %cst_87 {dimension_numbers = #tpu.dot_dimension_numbers<[1], [0], [0], [1], [0, 0, 1, 1], [], []>} : vector<8x256xf32>, vector<256x256xf32>, vector<8x256xf32> -> vector<8x256xf32>
      %c15 = arith.constant 15 : index
      %c0_88 = arith.constant 0 : index
      %213 = vector.load %arg8[%c15, %c0_88] : memref<16x256xf32, #tpu.memory_space<vmem>>, vector<1x256xf32>
      %214 = vector.broadcast %213 : vector<1x256xf32> to vector<8x256xf32>
      %215 = arith.addf %212, %214 : vector<8x256xf32>
      %c0_89 = arith.constant 0 : index
      %c0_90 = arith.constant 0 : index
      %216 = vector.load %arg11[%c0_89, %c0_90] : memref<8x256xf32, #tpu.memory_space<vmem>>, vector<8x256xf32>
      tpu.vector_store %arg11[%c0_89, %c0_90], %215 {strides = array<i32>} : memref<8x256xf32, #tpu.memory_space<vmem>>, vector<8x256xf32>,
      %217 = tpu.concatenate %109, %215 in 0 : vector<8x256xf32>, vector<8x256xf32> -> vector<16x256xf32>
      %cst_91 = arith.constant 3.906250e-03 : f32
      %218 = vector.broadcast %cst_91 : f32 to vector<16x256xf32>
      %219 = arith.mulf %217, %218 : vector<16x256xf32>
      %220 = arith.truncf %219 : vector<16x256xf32> to vector<16x256xbf16>
      %c0_92 = arith.constant 0 : index
      %c0_93 = arith.constant 0 : index
      %221 = vector.load %arg12[%c0_92, %c0_93] : memref<16x256xbf16, #tpu.memory_space<vmem>>, vector<16x256xbf16>
      tpu.vector_store %arg12[%c0_92, %c0_93], %220 {strides = array<i32>} : memref<16x256xbf16, #tpu.memory_space<vmem>>, vector<16x256xbf16>,
      %cst_94 = arith.constant 0.000000e+00 : f32
      %222 = vector.broadcast %cst_94 : f32 to vector<16x256xf32>
      %c0_95 = arith.constant 0 : index
      %c0_96 = arith.constant 0 : index
      %223 = vector.load %arg13[%c0_95, %c0_96] : memref<16x256xf32, #tpu.memory_space<vmem>>, vector<16x256xf32>
      tpu.vector_store %arg13[%c0_95, %c0_96], %222 {strides = array<i32>} : memref<16x256xf32, #tpu.memory_space<vmem>>, vector<16x256xf32>,
    } else {
    }
    %c0 = arith.constant 0 : index
    %c0_1 = arith.constant 0 : index
    %3 = vector.load %arg2[%c0, %c0_1] : memref<512x256xbf16, #tpu.memory_space<vmem>>, vector<512x256xbf16>
    %4 = arith.extf %3 : vector<512x256xbf16> to vector<512x256xf32>
    %c0_2 = arith.constant 0 : index
    %c0_3 = arith.constant 0 : index
    %5 = vector.load %arg8[%c0_2, %c0_3] : memref<16x256xf32, #tpu.memory_space<vmem>>, vector<1x256xf32>
    %c1 = arith.constant 1 : index
    %c0_4 = arith.constant 0 : index
    %6 = vector.load %arg8[%c1, %c0_4] : memref<16x256xf32, #tpu.memory_space<vmem>>, vector<1x256xf32>
    %cst = arith.constant dense<0.000000e+00> : vector<512xf32>
    %7 = vector.multi_reduction <add>, %4, %cst [1] : vector<512x256xf32> to vector<512xf32>
    %8 = vector.shape_cast %7 : vector<512xf32> to vector<512x1xf32>
    %cst_5 = arith.constant 2.560000e+02 : f32
    %9 = vector.broadcast %cst_5 : f32 to vector<512x1xf32>
    %10 = arith.divf %8, %9 : vector<512x1xf32>
    %11 = vector.broadcast %10 : vector<512x1xf32> to vector<512x256xf32>
    %12 = arith.subf %4, %11 : vector<512x256xf32>
    %13 = arith.mulf %12, %12 : vector<512x256xf32>
    %cst_6 = arith.constant dense<0.000000e+00> : vector<512xf32>
    %14 = vector.multi_reduction <add>, %13, %cst_6 [1] : vector<512x256xf32> to vector<512xf32>
    %15 = vector.shape_cast %14 : vector<512xf32> to vector<512x1xf32>
    %cst_7 = arith.constant 2.560000e+02 : f32
    %16 = vector.broadcast %cst_7 : f32 to vector<512x1xf32>
    %17 = arith.divf %15, %16 : vector<512x1xf32>
    %18 = vector.broadcast %10 : vector<512x1xf32> to vector<512x256xf32>
    %19 = arith.subf %4, %18 : vector<512x256xf32>
    %cst_8 = arith.constant 9.99999974E-6 : f32
    %20 = vector.broadcast %cst_8 : f32 to vector<512x1xf32>
    %21 = arith.addf %17, %20 : vector<512x1xf32>
    %22 = math.rsqrt %21 : vector<512x1xf32>
    %23 = vector.broadcast %22 : vector<512x1xf32> to vector<512x256xf32>
    %24 = arith.mulf %19, %23 : vector<512x256xf32>
    %25 = vector.broadcast %5 : vector<1x256xf32> to vector<512x256xf32>
    %26 = arith.mulf %24, %25 : vector<512x256xf32>
    %27 = vector.broadcast %6 : vector<1x256xf32> to vector<512x256xf32>
    %28 = arith.addf %26, %27 : vector<512x256xf32>
    %29 = arith.truncf %28 : vector<512x256xf32> to vector<512x256xbf16>
    %c0_9 = arith.constant 0 : index
    %c0_10 = arith.constant 0 : index
    %c0_11 = arith.constant 0 : index
    %30 = vector.load %arg4[%c0_9, %c0_10, %c0_11] : memref<2x256x256xbf16, #tpu.memory_space<vmem>>, vector<1x256x256xbf16>
    %31 = vector.shape_cast %30 : vector<1x256x256xbf16> to vector<256x256xbf16>
    %cst_12 = arith.constant dense<0.000000e+00> : vector<512x256xf32>
    %32 = tpu.matmul %29, %31, %cst_12 {dimension_numbers = #tpu.dot_dimension_numbers<[1], [0], [0], [1], [0, 0, 1, 1], [], []>} : vector<512x256xbf16>, vector<256x256xbf16>, vector<512x256xf32> -> vector<512x256xf32>
    %33 = arith.truncf %32 : vector<512x256xf32> to vector<512x256xbf16>
    %c1_13 = arith.constant 1 : index
    %c0_14 = arith.constant 0 : index
    %c0_15 = arith.constant 0 : index
    %34 = vector.load %arg4[%c1_13, %c0_14, %c0_15] : memref<2x256x256xbf16, #tpu.memory_space<vmem>>, vector<1x256x256xbf16>
    %35 = vector.shape_cast %34 : vector<1x256x256xbf16> to vector<256x256xbf16>
    %cst_16 = arith.constant dense<0.000000e+00> : vector<512x256xf32>
    %36 = tpu.matmul %29, %35, %cst_16 {dimension_numbers = #tpu.dot_dimension_numbers<[1], [0], [0], [1], [0, 0, 1, 1], [], []>} : vector<512x256xbf16>, vector<256x256xbf16>, vector<512x256xf32> -> vector<512x256xf32>
    %37 = arith.truncf %36 : vector<512x256xf32> to vector<512x256xbf16>
    %c512_i32 = arith.constant 512 : i32
    %38 = arith.muli %arg0, %c512_i32 : i32
    %39 = tpu.iota {dimensions = array<i32: 1>} : vector<1x512xi32>
    %40 = vector.broadcast %38 : i32 to vector<1x512xi32>
    %41 = arith.addi %40, %39 : vector<1x512xi32>
    %c0_17 = arith.constant 0 : index
    %42 = memref.load %arg1[%c0_17] : memref<1xi32, #tpu.memory_space<smem>>
    %43 = vector.broadcast %42 : i32 to vector<1x512xi32>
    %44 = arith.cmpi slt, %41, %43 : vector<1x512xi32>
    %c0_18 = arith.constant 0 : index
    %c0_19 = arith.constant 0 : index
    %45 = vector.load %arg12[%c0_18, %c0_19] : memref<16x256xbf16, #tpu.memory_space<vmem>>, vector<16x256xbf16>
    %cst_20 = arith.constant dense<0.000000e+00> : vector<16x512xf32>
    %46 = tpu.matmul %45, %33, %cst_20 {dimension_numbers = #tpu.dot_dimension_numbers<[1], [1], [0], [0], [0, 0, 1, 0], [], []>} : vector<16x256xbf16>, vector<512x256xbf16>, vector<16x512xf32> -> vector<16x512xf32>
    %47 = vector.extract_strided_slice %46 {offsets = [0, 0], sizes = [8, 512], strides = [1, 1]} : vector<16x512xf32> to vector<8x512xf32>
    %cst_21 = arith.constant dense<0xFF800000> : vector<512xf32>
    %48 = vector.multi_reduction <maximumf>, %47, %cst_21 [0] : vector<8x512xf32> to vector<512xf32>
    %49 = vector.shape_cast %48 : vector<512xf32> to vector<1x512xf32>
    %50 = vector.broadcast %49 : vector<1x512xf32> to vector<8x512xf32>
    %51 = arith.subf %47, %50 : vector<8x512xf32>
    %52 = math.exp %51 : vector<8x512xf32>
    %cst_22 = arith.constant dense<0.000000e+00> : vector<512xf32>
    %53 = vector.multi_reduction <add>, %52, %cst_22 [0] : vector<8x512xf32> to vector<512xf32>
    %54 = vector.shape_cast %53 : vector<512xf32> to vector<1x512xf32>
    %55 = tpu.reciprocal %54 {approx = true} : vector<1x512xf32> -> vector<1x512xf32>
    %56 = vector.broadcast %55 : vector<1x512xf32> to vector<8x512xf32>
    %57 = arith.mulf %52, %56 : vector<8x512xf32>
    %58 = vector.extract_strided_slice %46 {offsets = [8, 0], sizes = [8, 512], strides = [1, 1]} : vector<16x512xf32> to vector<8x512xf32>
    %cst_23 = arith.constant dense<0xFF800000> : vector<512xf32>
    %59 = vector.multi_reduction <maximumf>, %58, %cst_23 [0] : vector<8x512xf32> to vector<512xf32>
    %60 = vector.shape_cast %59 : vector<512xf32> to vector<1x512xf32>
    %61 = vector.broadcast %60 : vector<1x512xf32> to vector<8x512xf32>
    %62 = arith.subf %58, %61 : vector<8x512xf32>
    %63 = math.exp %62 : vector<8x512xf32>
    %cst_24 = arith.constant dense<0.000000e+00> : vector<512xf32>
    %64 = vector.multi_reduction <add>, %63, %cst_24 [0] : vector<8x512xf32> to vector<512xf32>
    %65 = vector.shape_cast %64 : vector<512xf32> to vector<1x512xf32>
    %66 = tpu.reciprocal %65 {approx = true} : vector<1x512xf32> -> vector<1x512xf32>
    %67 = vector.broadcast %66 : vector<1x512xf32> to vector<8x512xf32>
    %68 = arith.mulf %63, %67 : vector<8x512xf32>
    %69 = tpu.concatenate %57, %68 in 0 : vector<8x512xf32>, vector<8x512xf32> -> vector<16x512xf32>
    %cst_25 = arith.constant 0.000000e+00 : f32
    %70 = vector.shape_cast %44 : vector<1x512xi1> to vector<1x512xi1>
    %71 = vector.broadcast %70 : vector<1x512xi1> to vector<16x512xi1>
    %72 = vector.broadcast %cst_25 : f32 to vector<16x512xf32>
    %73 = arith.select %71, %69, %72 : vector<16x512xi1>, vector<16x512xf32>
    %74 = arith.truncf %73 : vector<16x512xf32> to vector<16x512xbf16>
    %c0_26 = arith.constant 0 : index
    %c0_27 = arith.constant 0 : index
    %75 = vector.load %arg13[%c0_26, %c0_27] : memref<16x256xf32, #tpu.memory_space<vmem>>, vector<16x256xf32>
    %cst_28 = arith.constant dense<0.000000e+00> : vector<16x256xf32>
    %76 = tpu.matmul %74, %37, %cst_28 {dimension_numbers = #tpu.dot_dimension_numbers<[1], [0], [0], [1], [0, 0, 1, 1], [], []>} : vector<16x512xbf16>, vector<512x256xbf16>, vector<16x256xf32> -> vector<16x256xf32>
    %77 = arith.addf %75, %76 : vector<16x256xf32>
    %c0_29 = arith.constant 0 : index
    %c0_30 = arith.constant 0 : index
    %78 = vector.load %arg13[%c0_29, %c0_30] : memref<16x256xf32, #tpu.memory_space<vmem>>, vector<16x256xf32>
    tpu.vector_store %arg13[%c0_29, %c0_30], %77 {strides = array<i32>} : memref<16x256xf32, #tpu.memory_space<vmem>>, vector<16x256xf32>,
    %c0_i32_31 = arith.constant 0 : i32
    %79 = arith.cmpi eq, %arg0, %c0_i32_31 : i32
    %80 = arith.extui %79 : i1 to i32
    %c0_i32_32 = arith.constant 0 : i32
    %81 = arith.cmpi ne, %80, %c0_i32_32 : i32
    scf.if %81 {
      %c0_33 = arith.constant 0 : index
      %c0_34 = arith.constant 0 : index
      %82 = vector.load %arg13[%c0_33, %c0_34] : memref<16x256xf32, #tpu.memory_space<vmem>>, vector<16x256xf32>
      %cst_35 = arith.constant 3.906250e-03 : f32
      %83 = vector.broadcast %cst_35 : f32 to vector<16x256xf32>
      %84 = arith.mulf %82, %83 : vector<16x256xf32>
      %85 = vector.extract_strided_slice %84 {offsets = [0, 0], sizes = [8, 256], strides = [1, 1]} : vector<16x256xf32> to vector<8x256xf32>
      %c1_36 = arith.constant 1 : index
      %c0_37 = arith.constant 0 : index
      %c0_38 = arith.constant 0 : index
      %86 = vector.load %arg5[%c1_36, %c0_37, %c0_38] : memref<5x256x256xf32, #tpu.memory_space<vmem>>, vector<1x256x256xf32>
      %87 = vector.shape_cast %86 : vector<1x256x256xf32> to vector<256x256xf32>
      %cst_39 = arith.constant dense<0.000000e+00> : vector<8x256xf32>
      %88 = tpu.matmul %85, %87, %cst_39 {dimension_numbers = #tpu.dot_dimension_numbers<[1], [0], [0], [1], [0, 0, 1, 1], [], []>} : vector<8x256xf32>, vector<256x256xf32>, vector<8x256xf32> -> vector<8x256xf32>
      %c4 = arith.constant 4 : index
      %c0_40 = arith.constant 0 : index
      %89 = vector.load %arg8[%c4, %c0_40] : memref<16x256xf32, #tpu.memory_space<vmem>>, vector<1x256xf32>
      %90 = vector.broadcast %89 : vector<1x256xf32> to vector<8x256xf32>
      %91 = arith.addf %88, %90 : vector<8x256xf32>
      %c0_41 = arith.constant 0 : index
      %c0_42 = arith.constant 0 : index
      %92 = vector.load %arg9[%c0_41, %c0_42] : memref<8x256xf32, #tpu.memory_space<vmem>>, vector<8x256xf32>
      tpu.vector_store %arg9[%c0_41, %c0_42], %91 {strides = array<i32>} : memref<8x256xf32, #tpu.memory_space<vmem>>, vector<8x256xf32>,
      %93 = vector.extract_strided_slice %84 {offsets = [8, 0], sizes = [8, 256], strides = [1, 1]} : vector<16x256xf32> to vector<8x256xf32>
      %c2 = arith.constant 2 : index
      %c0_43 = arith.constant 0 : index
      %c0_44 = arith.constant 0 : index
      %94 = vector.load %arg5[%c2, %c0_43, %c0_44] : memref<5x256x256xf32, #tpu.memory_space<vmem>>, vector<1x256x256xf32>
      %95 = vector.shape_cast %94 : vector<1x256x256xf32> to vector<256x256xf32>
      %cst_45 = arith.constant dense<0.000000e+00> : vector<8x256xf32>
      %96 = tpu.matmul %93, %95, %cst_45 {dimension_numbers = #tpu.dot_dimension_numbers<[1], [0], [0], [1], [0, 0, 1, 1], [], []>} : vector<8x256xf32>, vector<256x256xf32>, vector<8x256xf32> -> vector<8x256xf32>
      %c5 = arith.constant 5 : index
      %c0_46 = arith.constant 0 : index
      %97 = vector.load %arg8[%c5, %c0_46] : memref<16x256xf32, #tpu.memory_space<vmem>>, vector<1x256xf32>
      %98 = vector.broadcast %97 : vector<1x256xf32> to vector<8x256xf32>
      %99 = arith.addf %96, %98 : vector<8x256xf32>
      %c0_47 = arith.constant 0 : index
      %c0_48 = arith.constant 0 : index
      %100 = vector.load %arg10[%c0_47, %c0_48] : memref<8x256xf32, #tpu.memory_space<vmem>>, vector<8x256xf32>
      tpu.vector_store %arg10[%c0_47, %c0_48], %99 {strides = array<i32>} : memref<8x256xf32, #tpu.memory_space<vmem>>, vector<8x256xf32>,
    } else {
    }
    return
  }
  func.func @transform_0(%arg0: i32, %arg1: memref<1xi32, #tpu.memory_space<smem>>) -> (i32, i32) {
    %c0_i32 = arith.constant 0 : i32
    %c0_i32_0 = arith.constant 0 : i32
    return %arg0, %c0_i32 : i32, i32
  }
  func.func @transform_1(%arg0: i32, %arg1: memref<1xi32, #tpu.memory_space<smem>>) -> (i32, i32) {
    %c0_i32 = arith.constant 0 : i32
    %c0_i32_0 = arith.constant 0 : i32
    %c0_i32_1 = arith.constant 0 : i32
    return %c0_i32, %c0_i32_0 : i32, i32
  }
  func.func @transform_2(%arg0: i32, %arg1: memref<1xi32, #tpu.memory_space<smem>>) -> (i32, i32, i32) {
    %c0_i32 = arith.constant 0 : i32
    %c0_i32_0 = arith.constant 0 : i32
    %c0_i32_1 = arith.constant 0 : i32
    %c0_i32_2 = arith.constant 0 : i32
    return %c0_i32, %c0_i32_0, %c0_i32_1 : i32, i32, i32
  }
  func.func @transform_3(%arg0: i32, %arg1: memref<1xi32, #tpu.memory_space<smem>>) -> (i32, i32, i32) {
    %c0_i32 = arith.constant 0 : i32
    %c0_i32_0 = arith.constant 0 : i32
    %c0_i32_1 = arith.constant 0 : i32
    %c0_i32_2 = arith.constant 0 : i32
    return %c0_i32, %c0_i32_0, %c0_i32_1 : i32, i32, i32
  }
  func.func @transform_4(%arg0: i32, %arg1: memref<1xi32, #tpu.memory_space<smem>>) -> (i32, i32) {
    %c0_i32 = arith.constant 0 : i32
    %c0_i32_0 = arith.constant 0 : i32
    %c0_i32_1 = arith.constant 0 : i32
    return %c0_i32, %c0_i32_0 : i32, i32
  }
  func.func @transform_5(%arg0: i32, %arg1: memref<1xi32, #tpu.memory_space<smem>>) -> (i32, i32) {
    %c0_i32 = arith.constant 0 : i32
    %c0_i32_0 = arith.constant 0 : i32
    %c0_i32_1 = arith.constant 0 : i32
    return %c0_i32, %c0_i32_0 : i32, i32
  }
  func.func @transform_6(%arg0: i32, %arg1: memref<1xi32, #tpu.memory_space<smem>>) -> (i32, i32) {
    %c0_i32 = arith.constant 0 : i32
    %c0_i32_0 = arith.constant 0 : i32
    %c0_i32_1 = arith.constant 0 : i32
    return %c0_i32, %c0_i32_0 : i32, i32
  }
  func.func @transform_7(%arg0: i32, %arg1: memref<1xi32, #tpu.memory_space<smem>>) -> (i32, i32) {
    %c0_i32 = arith.constant 0 : i32
    %c0_i32_0 = arith.constant 0 : i32
    %c0_i32_1 = arith.constant 0 : i32
    return %c0_i32, %c0_i32_0 : i32, i32
  }
  func.func @transform_8(%arg0: i32, %arg1: memref<1xi32, #tpu.memory_space<smem>>) -> (i32, i32) {
    %c0_i32 = arith.constant 0 : i32
    %c0_i32_0 = arith.constant 0 : i32
    %c0_i32_1 = arith.constant 0 : i32
    return %c0_i32, %c0_i32_0 : i32, i32
  }
  func.func @transform_9(%arg0: i32, %arg1: memref<1xi32, #tpu.memory_space<smem>>) -> (i32, i32) {
    %c0_i32 = arith.constant 0 : i32
    %c0_i32_0 = arith.constant 0 : i32
    %c0_i32_1 = arith.constant 0 : i32
    return %c0_i32, %c0_i32_0 : i32, i32
  }
}

</mosaic_0001>

<bundles_post_ra>
// kernel: tpu_custom_call.1
= control target key start
LH: loop header
LB: loop body
LE: loop exit
PB: predicated region body
PF: predicated region fallthrough
CT: control target
= control target key end

     0   :  { %17 = vsyncpa [#allocation7], 0  ;;  %s7939_s0 = inlined_call_operand.<no memory space> [shape: s32[1], index: 0, kind: input, shape index: {}]   ;;  %s7940_s1 = inlined_call_operand.hbm [shape: bf16[512,256], index: 1, kind: input, shape index: {}]   ;;  %s7941_s2 = inlined_call_operand.hbm [shape: f32[8,256], index: 2, kind: input, shape index: {}]   ;;  %s7942_s3 = inlined_call_operand.hbm [shape: bf16[2,256,256], index: 3, kind: input, shape index: {}]   ;;  %s7943_s4 = inlined_call_operand.hbm [shape: f32[5,256,256], index: 4, kind: input, shape index: {}]   ;;  %s7944_s5 = inlined_call_operand.hbm [shape: f32[256,128], index: 5, kind: input, shape index: {}]   ;;  %s7945_s6 = inlined_call_operand.hbm [shape: f32[128,256], index: 6, kind: input, shape index: {}]   ;;  %s7946_s7 = inlined_call_operand.hbm [shape: f32[16,256], index: 7, kind: input, shape index: {}]   ;;  %s7947_s8 = inlined_call_operand.hbm [shape: f32[8,256], index: 8, kind: output, shape index: {0}]   ;;  %s7948_s9 = inlined_call_operand.hbm [shape: f32[8,256], index: 9, kind: output, shape index: {1}]   ;;  %s7949_s10 = inlined_call_operand.hbm [shape: f32[8,256], index: 10, kind: output, shape index: {2}]  }
   0x1   :  { %18 = vsyncpa [#allocation10], 0 }
   0x2   :  { %19 = vsyncpa [#allocation13], 0 }
   0x3   :  { %20 = vsyncpa [#allocation16], 0 }
   0x4   :  { %21 = vsyncpa [#allocation8], 0 }
   0x5   :  { %22 = vsyncpa [#allocation20], 0  ;;  %s5094_s13 = smov [#allocation9]   ;;  %s5095_s15 = smov [#allocation12]  }
   0x6   :  { %s41_s14 = sshll.u32 %s5094_s13, 4  ;;  %s62_s16 = sshll.u32 %s5095_s15, 4  ;;  %s42_s14 = int_to_ptr.vmem [resolvable:$true] %s41_s14  ;;  %s63_s16 = int_to_ptr.vmem [resolvable:$true] %s62_s16 }
   0x7   :  { %s4890_s17 = scalar_lea.vmem %s42_s14, 256  ;;  %p4895_p1 = scmp.lt.s32.totalorder %s42_s14, %s42_s14 }
   0x8   :  { %p4891_p0 = scmp.ne.s32.totalorder %s42_s14, %s4890_s17  ;;  %p4896_p2 = scmp.lt.s32.totalorder %s4890_s17, %s4890_s17 }
   0xa   :  { %p4897_p3 = por %p4896_p2, %p4895_p1 }
   0xc   :  { %p4898_p4 = pnand %p4897_p3, %p4891_p0 }
   0xe   :  { %4901 = shalt.err (!%p4898_p4)
}
   0xf   :  { %44 = dma.hbm_to_vmem [thread:$0]  %s7941_s2, 256, %s42_s14, [#allocation10]  }
  0x10   :  { %s4910_s20 = scalar_lea.vmem %s63_s16, 40960  ;;  %p4915_p6 = scmp.lt.s32.totalorder %s63_s16, %s63_s16 }
  0x11   :  { %p4911_p5 = scmp.ne.s32.totalorder %s63_s16, %s4910_s20  ;;  %p4916_p7 = scmp.lt.s32.totalorder %s4910_s20, %s4910_s20 }
  0x13   :  { %p4917_p8 = por %p4916_p7, %p4915_p6 }
  0x15   :  { %p4918_p9 = pnand %p4917_p8, %p4911_p5 }
  0x17   :  { %4921 = shalt.err (!%p4918_p9)
}
  0x18   :  { %s5096_s21 = smov 256   ;;  %s5097_s22 = smov 16  }
  0x19   :  { %68 = dma.hbm_to_vmem [thread:$0]  %s7943_s4, 40960, %s63_s16, [#allocation13], %s5096_s21, %s5096_s21, %s5097_s22  }
  0x1a   :  { %s5098_s25 = smov [#allocation15]   ;;  %s5099_s27 = smov [#allocation6]  }
  0x1b   :  { %s86_s26 = sshll.u32 %s5098_s25, 4  ;;  %s28_s2 = sshll.u32 %s5099_s27, 4  ;;  %s87_s26 = int_to_ptr.vmem [resolvable:$true] %s86_s26  ;;  %s29_s2 = int_to_ptr.vmem [resolvable:$true] %s28_s2 }
  0x1c   :  { %s4930_s28 = scalar_lea.vmem %s87_s26, 4096  ;;  %p4935_p11 = scmp.lt.s32.totalorder %s87_s26, %s87_s26 }
  0x1d   :  { %p4931_p10 = scmp.ne.s32.totalorder %s87_s26, %s4930_s28  ;;  %p4936_p12 = scmp.lt.s32.totalorder %s4930_s28, %s4930_s28 }
  0x1f   :  { %p4937_p13 = por %p4936_p12, %p4935_p11 }
  0x21   :  { %p4938_p0 = pnand %p4937_p13, %p4931_p10 }
  0x23   :  { %4941 = shalt.err (!%p4938_p0)
}
  0x24   :  { %92 = dma.hbm_to_vmem [thread:$0]  %s7945_s6, 4096, %s87_s26, [#allocation16], %s5096_s21, %s5096_s21, %s5097_s22  }
  0x25   :  { %s4950_s4 = scalar_lea.vmem %s29_s2, 8192  ;;  %p4955_p2 = scmp.lt.s32.totalorder %s29_s2, %s29_s2 }
  0x26   :  { %p4951_p1 = scmp.ne.s32.totalorder %s29_s2, %s4950_s4  ;;  %p4956_p3 = scmp.lt.s32.totalorder %s4950_s4, %s4950_s4 }
  0x28   :  { %p4957_p4 = por %p4956_p3, %p4955_p2 }
  0x2a   :  { %p4958_p5 = pnand %p4957_p4, %p4951_p1 }
  0x2c   :  { %4961 = shalt.err (!%p4958_p5)
}
  0x2d   :  { %s5100_s11 = smov 128   ;;  %s5101_s12 = smov 8  }
  0x2e   :  { %34 = dma.hbm_to_vmem [thread:$0]  %s7940_s1, 8192, %s29_s2, [#allocation7], %s5100_s11, %s5100_s11, %s5101_s12  }
  0x2f   :  { %s5102_s15 = smov [#allocation11]   ;;  %s5103_s17 = smov [#allocation14]  }
  0x30   :  { %s50_s16 = sshll.u32 %s5102_s15, 4  ;;  %s74_s18 = sshll.u32 %s5103_s17, 4  ;;  %s51_s16 = int_to_ptr.vmem [resolvable:$true] %s50_s16  ;;  %s75_s18 = int_to_ptr.vmem [resolvable:$true] %s74_s18 }
  0x31   :  { %s4970_s6 = scalar_lea.vmem %s51_s16, 8192  ;;  %p4975_p7 = scmp.lt.s32.totalorder %s51_s16, %s51_s16 }
  0x32   :  { %p4971_p6 = scmp.ne.s32.totalorder %s51_s16, %s4970_s6  ;;  %p4976_p8 = scmp.lt.s32.totalorder %s4970_s6, %s4970_s6 }
  0x34   :  { %p4977_p9 = por %p4976_p8, %p4975_p7 }
  0x36   :  { %p4978_p10 = pnand %p4977_p9, %p4971_p6 }
  0x38   :  { %4981 = shalt.err (!%p4978_p10)
}
  0x39   :  { %56 = dma.hbm_to_vmem [thread:$0]  %s7942_s3, 8192, %s51_s16, [#allocation10], %s5100_s11, %s5100_s11, %s5101_s12  }
  0x3a   :  { %s4990_s23 = scalar_lea.vmem %s75_s18, 4096  ;;  %p4995_p12 = scmp.lt.s32.totalorder %s75_s18, %s75_s18 }
  0x3b   :  { %p4991_p11 = scmp.ne.s32.totalorder %s75_s18, %s4990_s23  ;;  %p4996_p13 = scmp.lt.s32.totalorder %s4990_s23, %s4990_s23 }
  0x3d   :  { %p4997_p0 = por %p4996_p13, %p4995_p12 }
  0x3f   :  { %p4998_p1 = pnand %p4997_p0, %p4991_p11 }
  0x41   :  { %5001 = shalt.err (!%p4998_p1)
}
  0x42   :  { %80 = dma.hbm_to_vmem [thread:$0]  %s7944_s5, 4096, %s75_s18, [#allocation13], %s5100_s11, %s5100_s11, %s5101_s12  }
  0x43   :  { %s5104_s25 = smov [#allocation17]  }
  0x44   :  { %s98_s26 = sshll.u32 %s5104_s25, 4  ;;  %s99_s26 = int_to_ptr.vmem [resolvable:$true] %s98_s26 }
  0x45   :  { %s5010_s27 = scalar_lea.vmem %s99_s26, 512  ;;  %p5015_p3 = scmp.lt.s32.totalorder %s99_s26, %s99_s26 }
  0x46   :  { %p5011_p2 = scmp.ne.s32.totalorder %s99_s26, %s5010_s27  ;;  %p5016_p4 = scmp.lt.s32.totalorder %s5010_s27, %s5010_s27 }
  0x48   :  { %p5017_p5 = por %p5016_p4, %p5015_p3 }
  0x4a   :  { %p5018_p6 = pnand %p5017_p5, %p5011_p2 }
  0x4c   :  { %5021 = shalt.err (!%p5018_p6)
}
  0x4d   :  { %104 = dma.hbm_to_vmem [thread:$0]  %s7946_s7, 512, %s99_s26, [#allocation16], %s5096_s21, %s5096_s21, %s5097_s22  }
  0x4e   :  { %5082 = dma.done.wait [#allocation7], 8192  }
  0x4f   :  { %5083 = vsyncadd [#allocation7], 4294959104 }
  0x50   :  { %5084 = dma.done.wait [#allocation10], 8448  }
  0x51   :  { %5085 = vsyncadd [#allocation10], 4294958848 }
  0x52   :  { %5086 = dma.done.wait [#allocation13], 45056  }
  0x53   :  { %5087 = vsyncadd [#allocation13], 4294922240 }
  0x54   :  { %5088 = dma.done.wait [#allocation16], 4608  }
  0x55   :  { %5089 = vsyncadd [#allocation16], 4294962688  ;;  %v5194_v0 = vld [vmem:[#allocation9] sm:$0xff]  ;;  %v5196_v1 = vld [vmem:[#allocation9 + $0x8] sm:$0xff]  ;;  %s5107_s22 = smov [#allocation19]   ;;  %s5108_s29 = smov [#allocation21]  }
  0x56   :  { %v136_v2 = vadd.f32 %v5196_v1, %v5194_v0  ;;  %v210_v3 = vld [vmem:[#allocation12 + $0xf8] sm:$0xff]  ;;  %v209_v4 = vld [vmem:[#allocation12 + $0xf0] sm:$0xff]  ;;  %v208_v5 = vld [vmem:[#allocation12 + $0xe8] sm:$0xff]  ;;  %s4455_s28 = sshll.u32 %s5107_s22, 4  ;;  %s4465_s30 = sshll.u32 %s5108_s29, 4  ;;  %s4456_s28 = int_to_ptr.vmem [resolvable:$true] %s4455_s28  ;;  %s4466_s30 = int_to_ptr.vmem [resolvable:$true] %s4465_s30 }
  0x57   :  { %243 = vmatprep.subr.mxu0 %v210_v3  ;;  %v207_v6 = vld [vmem:[#allocation12 + $0xe0] sm:$0xff]  ;;  %v206_v7 = vld [vmem:[#allocation12 + $0xd8] sm:$0xff]  ;;  %v205_v8 = vld [vmem:[#allocation12 + $0xd0] sm:$0xff] }
  0x58   :  { %137 = vadd.xlane.f32.xlu0 %v136_v2  ;;  %244 = vmatpush1.msra.mxu0 %v209_v4  ;;  %v204_v9 = vld [vmem:[#allocation12 + $0xc8] sm:$0xff]  ;;  %v203_v10 = vld [vmem:[#allocation12 + $0xc0] sm:$0xff]  ;;  %v202_v11 = vld [vmem:[#allocation12 + $0xb8] sm:$0xff] }
  0x59   :  { %245 = vmatprep.subr.mxu0 %v208_v5  ;;  %v201_v12 = vld [vmem:[#allocation12 + $0xb0] sm:$0xff]  ;;  %v200_v13 = vld [vmem:[#allocation12 + $0xa8] sm:$0xff]  ;;  %v199_v14 = vld [vmem:[#allocation12 + $0xa0] sm:$0xff] }
  0x5a   :  { %246 = vmatpush1.msra.mxu0 %v207_v6  ;;  %v198_v15 = vld [vmem:[#allocation12 + $0x98] sm:$0xff]  ;;  %v197_v16 = vld [vmem:[#allocation12 + $0x90] sm:$0xff]  ;;  %v196_v17 = vld [vmem:[#allocation12 + $0x88] sm:$0xff] }
  0x5b   :  { %247 = vmatprep.subr.mxu0 %v206_v7  ;;  %v195_v18 = vld [vmem:[#allocation12 + $0x80] sm:$0xff]  ;;  %v194_v19 = vld [vmem:[#allocation12 + $0x78] sm:$0xff]  ;;  %v193_v20 = vld [vmem:[#allocation12 + $0x70] sm:$0xff] }
  0x5c   :  { %248 = vmatpush1.msra.mxu0 %v205_v8  ;;  %v192_v21 = vld [vmem:[#allocation12 + $0x68] sm:$0xff]  ;;  %v191_v22 = vld [vmem:[#allocation12 + $0x60] sm:$0xff]  ;;  %v190_v23 = vld [vmem:[#allocation12 + $0x58] sm:$0xff] }
  0x5d   :  { %249 = vmatprep.subr.mxu0 %v204_v9  ;;  %v189_v24 = vld [vmem:[#allocation12 + $0x50] sm:$0xff]  ;;  %v188_v25 = vld [vmem:[#allocation12 + $0x48] sm:$0xff]  ;;  %v187_v26 = vld [vmem:[#allocation12 + $0x40] sm:$0xff] }
  0x5e   :  { %250 = vmatpush1.msra.mxu0 %v203_v10  ;;  %v186_v27 = vld [vmem:[#allocation12 + $0x38] sm:$0xff]  ;;  %v185_v28 = vld [vmem:[#allocation12 + $0x30] sm:$0xff]  ;;  %v184_v29 = vld [vmem:[#allocation12 + $0x28] sm:$0xff] }
  0x5f   :  { %251 = vmatprep.subr.mxu0 %v202_v11  ;;  %v183_v30 = vld [vmem:[#allocation12 + $0x20] sm:$0xff]  ;;  %v182_v31 = vld [vmem:[#allocation12 + $0x18] sm:$0xff]  ;;  %v181_v32 = vld [vmem:[#allocation12 + $0x10] sm:$0xff] }
  0x60   :  { %252 = vmatpush1.msra.mxu0 %v201_v12  ;;  %v180_v33 = vld [vmem:[#allocation12 + $0x8] sm:$0xff]  ;;  %v179_v34 = vld [vmem:[#allocation12] sm:$0xff]  ;;  %v242_v35 = vld [vmem:[#allocation12 + $0x1f8] sm:$0xff] }
  0x61   :  { %253 = vmatprep.subr.mxu0 %v200_v13  ;;  %v241_v36 = vld [vmem:[#allocation12 + $0x1f0] sm:$0xff]  ;;  %v240_v37 = vld [vmem:[#allocation12 + $0x1e8] sm:$0xff]  ;;  %v239_v38 = vld [vmem:[#allocation12 + $0x1e0] sm:$0xff] }
  0x62   :  { %254 = vmatpush1.msra.mxu0 %v199_v14  ;;  %v238_v39 = vld [vmem:[#allocation12 + $0x1d8] sm:$0xff]  ;;  %v237_v40 = vld [vmem:[#allocation12 + $0x1d0] sm:$0xff]  ;;  %v236_v41 = vld [vmem:[#allocation12 + $0x1c8] sm:$0xff] }
  0x63   :  { %255 = vmatprep.subr.mxu0 %v198_v15  ;;  %v235_v49 = vld [vmem:[#allocation12 + $0x1c0] sm:$0xff]  ;;  %v234_v50 = vld [vmem:[#allocation12 + $0x1b8] sm:$0xff]  ;;  %v233_v51 = vld [vmem:[#allocation12 + $0x1b0] sm:$0xff] }
  0x64   :  { %256 = vmatpush1.msra.mxu0 %v197_v16  ;;  %v232_v52 = vld [vmem:[#allocation12 + $0x1a8] sm:$0xff]  ;;  %v231_v53 = vld [vmem:[#allocation12 + $0x1a0] sm:$0xff]  ;;  %v230_v54 = vld [vmem:[#allocation12 + $0x198] sm:$0xff] }
  0x65   :  { %257 = vmatprep.subr.mxu0 %v196_v17  ;;  %v229_v55 = vld [vmem:[#allocation12 + $0x190] sm:$0xff]  ;;  %v228_v56 = vld [vmem:[#allocation12 + $0x188] sm:$0xff]  ;;  %v227_v57 = vld [vmem:[#allocation12 + $0x180] sm:$0xff] }
  0x66   :  { %258 = vmatpush1.msra.mxu0 %v195_v18  ;;  %v226_v58 = vld [vmem:[#allocation12 + $0x178] sm:$0xff]  ;;  %v225_v59 = vld [vmem:[#allocation12 + $0x170] sm:$0xff]  ;;  %v224_v60 = vld [vmem:[#allocation12 + $0x168] sm:$0xff] }
  0x67   :  { %259 = vmatprep.subr.mxu0 %v194_v19  ;;  %v223_v61 = vld [vmem:[#allocation12 + $0x160] sm:$0xff]  ;;  %v222_v62 = vld [vmem:[#allocation12 + $0x158] sm:$0xff]  ;;  %v221_v63 = vld [vmem:[#allocation12 + $0x150] sm:$0xff] }
  0x68   :  { %260 = vmatpush1.msra.mxu0 %v193_v20  ;;  %v218_v2 = vld [vmem:[#allocation12 + $0x138] sm:$0xff]  ;;  %v217_v3 = vld [vmem:[#allocation12 + $0x130] sm:$0xff]  ;;  %v216_v4 = vld [vmem:[#allocation12 + $0x128] sm:$0xff] }
  0x69   :  { %261 = vmatprep.subr.mxu0 %v192_v21  ;;  %v215_v5 = vld [vmem:[#allocation12 + $0x120] sm:$0xff]  ;;  %v214_v6 = vld [vmem:[#allocation12 + $0x118] sm:$0xff]  ;;  %v213_v7 = vld [vmem:[#allocation12 + $0x110] sm:$0xff] }
  0x6a   :  { %262 = vmatpush1.msra.mxu0 %v191_v22  ;;  %v212_v8 = vld [vmem:[#allocation12 + $0x108] sm:$0xff]  ;;  %v211_v9 = vld [vmem:[#allocation12 + $0x100] sm:$0xff]  ;;  %v346_v10 = vld [vmem:[#allocation12 + $0x6f8] sm:$0xff] }
  0x6b   :  { %263 = vmatprep.subr.mxu0 %v190_v23  ;;  %v345_v11 = vld [vmem:[#allocation12 + $0x6f0] sm:$0xff]  ;;  %v344_v12 = vld [vmem:[#allocation12 + $0x6e8] sm:$0xff]  ;;  %392 = vmatprep.subr.mxu1 %v346_v10  ;;  %v343_v13 = vld [vmem:[#allocation12 + $0x6e0] sm:$0xff] }
  0x6c   :  { %264 = vmatpush1.msra.mxu0 %v189_v24  ;;  %393 = vmatpush1.msra.mxu1 %v345_v11  ;;  %v342_v14 = vld [vmem:[#allocation12 + $0x6d8] sm:$0xff]  ;;  %v341_v15 = vld [vmem:[#allocation12 + $0x6d0] sm:$0xff]  ;;  %v340_v16 = vld [vmem:[#allocation12 + $0x6c8] sm:$0xff]  ;;  %v7950_v11 = vlaneseq }
  0x6d   :  { %265 = vmatprep.subr.mxu0 %v188_v25  ;;  %394 = vmatprep.subr.mxu1 %v344_v12  ;;  %v339_v17 = vld [vmem:[#allocation12 + $0x6c0] sm:$0xff]  ;;  %v338_v18 = vld [vmem:[#allocation12 + $0x6b8] sm:$0xff]  ;;  %v337_v19 = vld [vmem:[#allocation12 + $0x6b0] sm:$0xff] }
  0x6e   :  { %266 = vmatpush1.msra.mxu0 %v187_v26  ;;  %395 = vmatpush1.msra.mxu1 %v343_v13  ;;  %v336_v20 = vld [vmem:[#allocation12 + $0x6a8] sm:$0xff]  ;;  %v335_v21 = vld [vmem:[#allocation12 + $0x6a0] sm:$0xff]  ;;  %v334_v22 = vld [vmem:[#allocation12 + $0x698] sm:$0xff]  ;;  %v155_v12 = vshrl.u32 %v7950_v11, 7 }
  0x6f   :  { %267 = vmatprep.subr.mxu0 %v186_v27  ;;  %396 = vmatprep.subr.mxu1 %v342_v14  ;;  %v333_v23 = vld [vmem:[#allocation12 + $0x690] sm:$0xff]  ;;  %v332_v24 = vld [vmem:[#allocation12 + $0x688] sm:$0xff]  ;;  %v331_v25 = vld [vmem:[#allocation12 + $0x680] sm:$0xff] }
  0x70   :  { %268 = vmatpush1.msra.mxu0 %v185_v28  ;;  %397 = vmatpush1.msra.mxu1 %v341_v15  ;;  %v330_v26 = vld [vmem:[#allocation12 + $0x678] sm:$0xff]  ;;  %v329_v27 = vld [vmem:[#allocation12 + $0x670] sm:$0xff]  ;;  %v328_v28 = vld [vmem:[#allocation12 + $0x668] sm:$0xff]  ;;  %v5211_v13 = vsub.s32 0, %v155_v12  ;;  %v5213_v14 = vsub.s32 1, %v155_v12 }
  0x71   :  { %269 = vmatprep.subr.mxu0 %v184_v29  ;;  %398 = vmatprep.subr.mxu1 %v340_v16  ;;  %v327_v29 = vld [vmem:[#allocation12 + $0x660] sm:$0xff]  ;;  %v529_v12 = vld [vmem:[#allocation14 + $0x90] sm:$0xff] }
  0x72   :  { %270 = vmatpush1.msra.mxu0 %v183_v30  ;;  %399 = vmatpush1.msra.mxu1 %v339_v17  ;;  %v326_v30 = vld [vmem:[#allocation12 + $0x658] sm:$0xff]  ;;  %8193 = vst [vmem:[#allocation28_spill] sm:$0xff] %v5211_v13  ;;  %8194 = vst [vmem:[#allocation29_spill] sm:$0xff] %v5213_v14  ;;  %v133_v15 = vld [vmem:[#allocation17 + $0x2] ss:$8 sm:$0x3] }
  0x73   :  { %271 = vmatprep.subr.mxu0 %v182_v31  ;;  %400 = vmatprep.subr.mxu1 %v338_v18  ;;  %v325_v31 = vld [vmem:[#allocation12 + $0x650] sm:$0xff]  ;;  %v135_v16 = vld [vmem:[#allocation17 + $0x3] ss:$8 sm:$0x3]  ;;  %v157_v17 = vrot.slane %v133_v15, %v5211_v13  ;;  %v161_v18 = vrot.slane %v133_v15, %v5213_v14 }
  0x74   :  { %272 = vmatpush1.msra.mxu0 %v181_v32  ;;  %401 = vmatpush1.msra.mxu1 %v337_v19  ;;  %v324_v32 = vld [vmem:[#allocation12 + $0x648] sm:$0xff]  ;;  %v513_v15 = vld [vmem:[#allocation14 + $0x10] sm:$0xff] }
  0x75   :  { %273 = vmatprep.subr.mxu0 %v180_v33  ;;  %402 = vmatprep.subr.mxu1 %v336_v20  ;;  %v323_v33 = vld [vmem:[#allocation12 + $0x640] sm:$0xff] }
  0x76   :  { %274 = vmatpush1.msra.mxu0 %v179_v34  ;;  %403 = vmatpush1.msra.mxu1 %v335_v21  ;;  %v322_v34 = vld [vmem:[#allocation12 + $0x638] sm:$0xff]  ;;  %v170_v21 = vrot.slane %v135_v16, %v5211_v13 }
  0x77   :  { %275 = vmatprep.subr.mxu0 %v242_v35  ;;  %404 = vmatprep.subr.mxu1 %v334_v22  ;;  %v321_v35 = vld [vmem:[#allocation12 + $0x630] sm:$0xff]  ;;  %v174_v22 = vrot.slane %v135_v16, %v5213_v14  ;;  %v528_v16 = vld [vmem:[#allocation14 + $0x88] sm:$0xff] }
  0x78   :  { %276 = vmatpush2.msra.mxu0 %v241_v36  ;;  %405 = vmatpush1.msra.mxu1 %v333_v23  ;;  %v320_v36 = vld [vmem:[#allocation12 + $0x628] sm:$0xff] }
  0x79   :  { %277 = vmatprep.subr.mxu0 %v240_v37  ;;  %406 = vmatprep.subr.mxu1 %v332_v24  ;;  %v319_v37 = vld [vmem:[#allocation12 + $0x620] sm:$0xff] }
  0x7a   :  { %278 = vmatpush2.msra.mxu0 %v239_v38  ;;  %407 = vmatpush1.msra.mxu1 %v331_v25  ;;  %v318_v38 = vld [vmem:[#allocation12 + $0x618] sm:$0xff] }
  0x7b   :  { %279 = vmatprep.subr.mxu0 %v238_v39  ;;  %408 = vmatprep.subr.mxu1 %v330_v26  ;;  %v317_v39 = vld [vmem:[#allocation12 + $0x610] sm:$0xff] }
  0x7c   :  { %280 = vmatpush2.msra.mxu0 %v237_v40  ;;  %409 = vmatpush1.msra.mxu1 %v329_v27  ;;  %v316_v40 = vld [vmem:[#allocation12 + $0x608] sm:$0xff] }
  0x7d   :  { %281 = vmatprep.subr.mxu0 %v236_v41  ;;  %410 = vmatprep.subr.mxu1 %v328_v28  ;;  %v315_v41 = vld [vmem:[#allocation12 + $0x600] sm:$0xff]  ;;  %v350_v28 = vld [vmem:[#allocation12 + $0x718] sm:$0xff] }
  0x7e   :  { %282 = vmatpush2.msra.mxu0 %v235_v49  ;;  %411 = vmatpush1.msra.mxu1 %v327_v29  ;;  %v373_v49 = vld [vmem:[#allocation12 + $0x7d0] sm:$0xff] }
  0x7f   :  { %283 = vmatprep.subr.mxu0 %v234_v50  ;;  %412 = vmatprep.subr.mxu1 %v326_v30  ;;  %v372_v50 = vld [vmem:[#allocation12 + $0x7c8] sm:$0xff]  ;;  %v349_v29 = vld [vmem:[#allocation12 + $0x710] sm:$0xff] }
  0x80   :  { %284 = vmatpush2.msra.mxu0 %v233_v51  ;;  %413 = vmatpush1.msra.mxu1 %v325_v31  ;;  %v371_v51 = vld [vmem:[#allocation12 + $0x7c0] sm:$0xff]  ;;  %v348_v30 = vld [vmem:[#allocation12 + $0x708] sm:$0xff] }
  0x81   :  { %285 = vmatprep.subr.mxu0 %v232_v52  ;;  %414 = vmatprep.subr.mxu1 %v324_v32  ;;  %v370_v52 = vld [vmem:[#allocation12 + $0x7b8] sm:$0xff]  ;;  %v347_v31 = vld [vmem:[#allocation12 + $0x700] sm:$0xff] }
  0x82   :  { %286 = vmatpush2.msra.mxu0 %v231_v53  ;;  %415 = vmatpush1.msra.mxu1 %v323_v33  ;;  %v369_v53 = vld [vmem:[#allocation12 + $0x7b0] sm:$0xff] }
  0x83   :  { %287 = vmatprep.subr.mxu0 %v230_v54  ;;  %416 = vmatprep.subr.mxu1 %v322_v34  ;;  %v368_v54 = vld [vmem:[#allocation12 + $0x7a8] sm:$0xff] }
  0x84   :  { %288 = vmatpush2.msra.mxu0 %v229_v55  ;;  %417 = vmatpush1.msra.mxu1 %v321_v35  ;;  %v367_v55 = vld [vmem:[#allocation12 + $0x7a0] sm:$0xff] }
  0x85   :  { %289 = vmatprep.subr.mxu0 %v228_v56  ;;  %418 = vmatprep.subr.mxu1 %v320_v36  ;;  %v366_v56 = vld [vmem:[#allocation12 + $0x798] sm:$0xff] }
  0x86   :  { %290 = vmatpush2.msra.mxu0 %v227_v57  ;;  %419 = vmatpush1.msra.mxu1 %v319_v37  ;;  %v365_v57 = vld [vmem:[#allocation12 + $0x790] sm:$0xff] }
  0x87   :  { %291 = vmatprep.subr.mxu0 %v226_v58  ;;  %420 = vmatprep.subr.mxu1 %v318_v38  ;;  %v364_v58 = vld [vmem:[#allocation12 + $0x788] sm:$0xff] }
  0x88   :  { %292 = vmatpush2.msra.mxu0 %v225_v59  ;;  %421 = vmatpush1.msra.mxu1 %v317_v39  ;;  %v363_v59 = vld [vmem:[#allocation12 + $0x780] sm:$0xff] }
  0x89   :  { %293 = vmatprep.subr.mxu0 %v224_v60  ;;  %422 = vmatprep.subr.mxu1 %v316_v40  ;;  %v362_v60 = vld [vmem:[#allocation12 + $0x778] sm:$0xff] }
  0x8a   :  { %294 = vmatpush2.msra.mxu0 %v223_v61  ;;  %423 = vmatpush1.msra.mxu1 %v315_v41  ;;  %v361_v61 = vld [vmem:[#allocation12 + $0x770] sm:$0xff]  ;;  %v542_v40 = vld [vmem:[#allocation14 + $0xf8] sm:$0xff] }
  0x8b   :  { %295 = vmatprep.subr.mxu0 %v222_v62  ;;  %v360_v62 = vld [vmem:[#allocation12 + $0x768] sm:$0xff]  ;;  %v526_v41 = vld [vmem:[#allocation14 + $0x78] sm:$0xff] }
  0x8c   :  { %296 = vmatpush2.msra.mxu0 %v221_v63  ;;  %v359_v63 = vld [vmem:[#allocation12 + $0x760] sm:$0xff] }
  0xe1   :  { %v138_v42 = vpop.xlane.xlu0 %137 }
  0xe2   :  { %v140_v43 = vmul.f32 0.00390625, %v138_v42  ;;  %v378_v42 = vld [vmem:[#allocation12 + $0x7f8] sm:$0xff] }
  0xe3   :  { %424 = vmatprep.subr.mxu1 %v378_v42  ;;  %v541_v42 = vld [vmem:[#allocation14 + $0xf0] sm:$0xff] }
  0xe4   :  { %v5201_v44 = vsub.f32 %v5194_v0, %v140_v43  ;;  %v5204_v45 = vsub.f32 %v5196_v1, %v140_v43  ;;  %v220_v0 = vld [vmem:[#allocation12 + $0x148] sm:$0xff]  ;;  %v219_v1 = vld [vmem:[#allocation12 + $0x140] sm:$0xff]  ;;  %v377_v43 = vld [vmem:[#allocation12 + $0x7f0] sm:$0xff] }
  0xe5   :  { %297 = vmatprep.subr.mxu0 %v220_v0  ;;  %425 = vmatpush2.msra.mxu1 %v377_v43  ;;  %v358_v0 = vld [vmem:[#allocation12 + $0x758] sm:$0xff]  ;;  %v525_v43 = vld [vmem:[#allocation14 + $0x70] sm:$0xff] }
  0xe6   :  { %v143_v46 = vmul.f32 %v5201_v44, %v5201_v44  ;;  %v144_v47 = vmul.f32 %v5204_v45, %v5204_v45  ;;  %298 = vmatpush2.msra.mxu0 %v219_v1  ;;  %v357_v1 = vld [vmem:[#allocation12 + $0x750] sm:$0xff] }
  0xe7   :  { %299 = vmatprep.subr.mxu0 %v218_v2  ;;  %v356_v2 = vld [vmem:[#allocation12 + $0x748] sm:$0xff] }
  0xe8   :  { %v145_v48 = vadd.f32 %v144_v47, %v143_v46  ;;  %300 = vmatpush2.msra.mxu0 %v217_v3  ;;  %v376_v46 = vld [vmem:[#allocation12 + $0x7e8] sm:$0xff]  ;;  %v375_v47 = vld [vmem:[#allocation12 + $0x7e0] sm:$0xff] }
  0xe9   :  { %301 = vmatprep.subr.mxu0 %v216_v4  ;;  %426 = vmatprep.subr.mxu1 %v376_v46  ;;  %v355_v3 = vld [vmem:[#allocation12 + $0x740] sm:$0xff]  ;;  %v354_v4 = vld [vmem:[#allocation12 + $0x738] sm:$0xff]  ;;  %v540_v46 = vld [vmem:[#allocation14 + $0xe8] sm:$0xff] }
  0xea   :  { %146 = vadd.xlane.f32.xlu0 %v145_v48  ;;  %302 = vmatpush2.msra.mxu0 %v215_v5  ;;  %v374_v48 = vld [vmem:[#allocation12 + $0x7d8] sm:$0xff]  ;;  %v353_v5 = vld [vmem:[#allocation12 + $0x730] sm:$0xff] }
  0xeb   :  { %303 = vmatprep.subr.mxu0 %v214_v6  ;;  %427 = vmatpush2.msra.mxu1 %v375_v47  ;;  %v352_v6 = vld [vmem:[#allocation12 + $0x728] sm:$0xff] }
  0xec   :  { %304 = vmatpush2.msra.mxu0 %v213_v7  ;;  %428 = vmatprep.subr.mxu1 %v374_v48  ;;  %v351_v7 = vld [vmem:[#allocation12 + $0x720] sm:$0xff] }
  0xed   :  { %305 = vmatprep.subr.mxu0 %v212_v8  ;;  %429 = vmatpush2.msra.mxu1 %v373_v49 }
  0xee   :  { %306 = vmatpush2.msra.mxu0 %v211_v9  ;;  %430 = vmatprep.subr.mxu1 %v372_v50 }
  0xef   :  { %431 = vmatpush2.msra.mxu1 %v371_v51 }
  0xf0   :  { %432 = vmatprep.subr.mxu1 %v370_v52 }
  0xf1   :  { %433 = vmatpush2.msra.mxu1 %v369_v53 }
  0xf2   :  { %434 = vmatprep.subr.mxu1 %v368_v54  ;;  %v524_v54 = vld [vmem:[#allocation14 + $0x68] sm:$0xff] }
  0xf3   :  { %435 = vmatpush2.msra.mxu1 %v367_v55  ;;  %v539_v55 = vld [vmem:[#allocation14 + $0xe0] sm:$0xff] }
  0xf4   :  { %436 = vmatprep.subr.mxu1 %v366_v56  ;;  %v523_v56 = vld [vmem:[#allocation14 + $0x60] sm:$0xff] }
  0xf5   :  { %437 = vmatpush2.msra.mxu1 %v365_v57  ;;  %v538_v57 = vld [vmem:[#allocation14 + $0xd8] sm:$0xff] }
  0xf6   :  { %438 = vmatprep.subr.mxu1 %v364_v58  ;;  %v522_v58 = vld [vmem:[#allocation14 + $0x58] sm:$0xff] }
  0xf7   :  { %439 = vmatpush2.msra.mxu1 %v363_v59  ;;  %v537_v59 = vld [vmem:[#allocation14 + $0xd0] sm:$0xff] }
  0xf8   :  { %440 = vmatprep.subr.mxu1 %v362_v60  ;;  %v521_v60 = vld [vmem:[#allocation14 + $0x50] sm:$0xff] }
  0xf9   :  { %441 = vmatpush2.msra.mxu1 %v361_v61  ;;  %v536_v61 = vld [vmem:[#allocation14 + $0xc8] sm:$0xff] }
  0xfa   :  { %442 = vmatprep.subr.mxu1 %v360_v62  ;;  %v520_v62 = vld [vmem:[#allocation14 + $0x48] sm:$0xff] }
  0xfb   :  { %443 = vmatpush2.msra.mxu1 %v359_v63  ;;  %v535_v63 = vld [vmem:[#allocation14 + $0xc0] sm:$0xff] }
  0xfc   :  { %444 = vmatprep.subr.mxu1 %v358_v0  ;;  %v519_v0 = vld [vmem:[#allocation14 + $0x40] sm:$0xff] }
  0xfd   :  { %445 = vmatpush2.msra.mxu1 %v357_v1  ;;  %v534_v1 = vld [vmem:[#allocation14 + $0xb8] sm:$0xff] }
  0xfe   :  { %446 = vmatprep.subr.mxu1 %v356_v2  ;;  %v518_v2 = vld [vmem:[#allocation14 + $0x38] sm:$0xff] }
  0xff   :  { %447 = vmatpush2.msra.mxu1 %v355_v3  ;;  %v533_v3 = vld [vmem:[#allocation14 + $0xb0] sm:$0xff] }
 0x100   :  { %448 = vmatprep.subr.mxu1 %v354_v4  ;;  %v517_v4 = vld [vmem:[#allocation14 + $0x30] sm:$0xff] }
 0x101   :  { %449 = vmatpush2.msra.mxu1 %v353_v5  ;;  %v532_v5 = vld [vmem:[#allocation14 + $0xa8] sm:$0xff] }
 0x102   :  { %450 = vmatprep.subr.mxu1 %v352_v6  ;;  %v516_v6 = vld [vmem:[#allocation14 + $0x28] sm:$0xff] }
 0x103   :  { %451 = vmatpush2.msra.mxu1 %v351_v7  ;;  %v531_v7 = vld [vmem:[#allocation14 + $0xa0] sm:$0xff] }
 0x104   :  { %452 = vmatprep.subr.mxu1 %v350_v28 }
 0x105   :  { %453 = vmatpush2.msra.mxu1 %v349_v29 }
 0x106   :  { %454 = vmatprep.subr.mxu1 %v348_v30 }
 0x107   :  { %455 = vmatpush2.msra.mxu1 %v347_v31 }
 0x108   :  { %4568 = vmatprep.subr.mxu1 %v542_v40 }
 0x173   :  { %v147_v8 = vpop.xlane.xlu0 %146 }
 0x174   :  { %v148_v9 = vmul.f32 0.00390625, %v147_v8  ;;  %v515_v8 = vld [vmem:[#allocation14 + $0x20] sm:$0xff] }
 0x176   :  { %v149_v10 = vadd.f32 1e-05, %v148_v9  ;;  %v530_v9 = vld [vmem:[#allocation14 + $0x98] sm:$0xff] }
 0x178   :  { %4714 = vrsqrt.f32 %v149_v10  ;;  %v514_v10 = vld [vmem:[#allocation14 + $0x18] sm:$0xff] }
 0x185   :  { %v4715_v19 = vpop.eup %4714 }
 0x186   :  { %v152_v20 = vmul.f32 %v4715_v19, %v5204_v45  ;;  %v151_v23 = vmul.f32 %v4715_v19, %v5201_v44  ;;  %v380_v44 = vld [vmem:[#allocation17 + $0x6] ss:$8 sm:$0x3] }
 0x187   :  { %v385_v33 = vrot.slane %v380_v44, %v5211_v13  ;;  %v389_v34 = vrot.slane %v380_v44, %v5213_v14  ;;  %v511_v19 = vld [vmem:[#allocation14] sm:$0xff] }
 0x188   :  { %v165_v24 = vmul.f32 %v161_v18, %v152_v20  ;;  %v164_v25 = vmul.f32 %v157_v17, %v151_v23  ;;  %v512_v17 = vld [vmem:[#allocation14 + $0x8] sm:$0xff]  ;;  %v527_v18 = vld [vmem:[#allocation14 + $0x80] sm:$0xff] }
 0x189   :  { %v464_v23 = vld [vmem:[#allocation17 + $0x7] ss:$8 sm:$0x3] }
 0x18a   :  { %v178_v26 = vadd.f32 %v174_v22, %v165_v24  ;;  %v177_v27 = vadd.f32 %v170_v21, %v164_v25  ;;  %v466_v24 = vld [vmem:[#allocation17 + $0x10] ss:$8 sm:$0x3]  ;;  %v487_v25 = vrot.slane %v464_v23, %v5211_v13 }
 0x18b   :  { %v500_v29 = vrot.slane %v466_v24, %v5211_v13  ;;  %v504_v30 = vrot.slane %v466_v24, %v5213_v14 }
 0x18c   :  { %307 = vmatprep.mubr.f32.mxu0 %v178_v26  ;;  %v491_v26 = vrot.slane %v464_v23, %v5213_v14 }
 0x18d   :  { %308 = vmatmul.mubr.f32.vlgmr.msra.gmra.mxu0 %v177_v27 }
 0x24d   :  { %v5221_v45 = vpop.f32.mrf.mxu0 }
 0x24e   :  { %8195 = vst [vmem:[#allocation30_spill] sm:$0xff] %v5221_v45 }
 0x24f   :  { %v5223_v32 = vpop.f32.mrf.mxu0 }
 0x250   :  { %8196 = vst [vmem:[#allocation31_spill] sm:$0xff] %v5223_v32  ;;  %456 = vmatprep.mubr.f32.mxu1 %v5223_v32 }
 0x251   :  { %457 = vmatmul.mubr.f32.vlgmr.msra.gmra.mxu1 %v5221_v45 }
 0x252   :  { %4569 = vmatpush3.msra.mxu1 %v526_v41  ;;  %v543_v41 = vld [vmem:[#allocation17 + $0x11] ss:$0 sm:$0xff] }
 0x253   :  { %4570 = vmatprep.subr.mxu1 %v541_v42 }
 0x254   :  { %4571 = vmatpush3.msra.mxu1 %v525_v43 }
 0x255   :  { %4572 = vmatprep.subr.mxu1 %v540_v46 }
 0x256   :  { %4573 = vmatpush3.msra.mxu1 %v524_v54 }
 0x257   :  { %4574 = vmatprep.subr.mxu1 %v539_v55 }
 0x258   :  { %4575 = vmatpush3.msra.mxu1 %v523_v56  ;;  %v5263_v56 = vld [vmem:[#allocation6 + $0x30] sm:$0xff] }
 0x259   :  { %4576 = vmatprep.subr.mxu1 %v538_v57 }
 0x25a   :  { %4577 = vmatpush3.msra.mxu1 %v522_v58  ;;  %v1052_v58 = vunpack.c.l.bf16 %v5263_v56 }
 0x25b   :  { %4578 = vmatprep.subr.mxu1 %v537_v59  ;;  %v1053_v59 = vunpack.c.h.bf16 %v5263_v56 }
 0x25c   :  { %4579 = vmatpush3.msra.mxu1 %v521_v60  ;;  %v5271_v60 = vld [vmem:[#allocation6 + $0x40] sm:$0xff] }
 0x25d   :  { %4580 = vmatprep.subr.mxu1 %v536_v61  ;;  %v1189_v61 = vadd.f32 %v1053_v59, %v1052_v58 }
 0x25e   :  { %4581 = vmatpush3.msra.mxu1 %v520_v62  ;;  %v1056_v62 = vunpack.c.l.bf16 %v5271_v60 }
 0x25f   :  { %4582 = vmatprep.subr.mxu1 %v535_v63  ;;  %v1057_v63 = vunpack.c.h.bf16 %v5271_v60  ;;  %v5479_v60 = vld [vmem:[#allocation6 + $0x98] sm:$0xff] }
 0x260   :  { %4583 = vmatpush3.msra.mxu1 %v519_v0  ;;  %v5279_v0 = vld [vmem:[#allocation6 + $0x50] sm:$0xff] }
 0x261   :  { %4584 = vmatprep.subr.mxu1 %v534_v1  ;;  %v1195_v1 = vadd.f32 %v1057_v63, %v1056_v62 }
 0x262   :  { %4585 = vmatpush3.msra.mxu1 %v518_v2  ;;  %v1060_v2 = vunpack.c.l.bf16 %v5279_v0 }
 0x263   :  { %4586 = vmatprep.subr.mxu1 %v533_v3  ;;  %v1061_v3 = vunpack.c.h.bf16 %v5279_v0 }
 0x264   :  { %4587 = vmatpush3.msra.mxu1 %v517_v4  ;;  %v5287_v4 = vld [vmem:[#allocation6 + $0x60] sm:$0xff] }
 0x265   :  { %4588 = vmatprep.subr.mxu1 %v532_v5  ;;  %v1201_v5 = vadd.f32 %v1061_v3, %v1060_v2 }
 0x266   :  { %4589 = vmatpush3.msra.mxu1 %v516_v6  ;;  %v1064_v6 = vunpack.c.l.bf16 %v5287_v4 }
 0x267   :  { %4590 = vmatprep.subr.mxu1 %v531_v7  ;;  %v1065_v7 = vunpack.c.h.bf16 %v5287_v4 }
 0x268   :  { %4591 = vmatpush3.msra.mxu1 %v515_v8  ;;  %v5295_v8 = vld [vmem:[#allocation6 + $0x70] sm:$0xff] }
 0x269   :  { %4592 = vmatprep.subr.mxu1 %v530_v9  ;;  %v1207_v9 = vadd.f32 %v1065_v7, %v1064_v6 }
 0x26a   :  { %4593 = vmatpush3.msra.mxu1 %v514_v10  ;;  %v1068_v10 = vunpack.c.l.bf16 %v5295_v8 }
 0x26b   :  { %4594 = vmatprep.subr.mxu1 %v529_v12  ;;  %v1069_v12 = vunpack.c.h.bf16 %v5295_v8 }
 0x26c   :  { %4595 = vmatpush3.msra.mxu1 %v513_v15  ;;  %v5303_v15 = vld [vmem:[#allocation6 + $0x80] sm:$0xff] }
 0x26d   :  { %4596 = vmatprep.subr.mxu1 %v528_v16  ;;  %v1213_v16 = vadd.f32 %v1069_v12, %v1068_v10 }
 0x26e   :  { %4597 = vmatpush3.msra.mxu1 %v512_v17  ;;  %v1072_v17 = vunpack.c.l.bf16 %v5303_v15 }
 0x26f   :  { %4598 = vmatprep.subr.mxu1 %v527_v18  ;;  %v1073_v18 = vunpack.c.h.bf16 %v5303_v15  ;;  %v5579_v15 = vld [vmem:[#allocation6 + $0x120] sm:$0xff] }
 0x270   :  { %4599 = vmatpush3.msra.mxu1 %v511_v19  ;;  %v5311_v19 = vld [vmem:[#allocation6 + $0x90] sm:$0xff]  ;;  %8203 = vst [vmem:[#allocation38_spill] sm:$0xff] %v5579_v15 }
 0x311   :  { %v458_v35 = vpop.f32.mrf.mxu1 }
 0x312   :  { %v459_v37 = vadd.f32 %v458_v35, %v385_v33 }
 0x313   :  { %v460_v36 = vpop.f32.mrf.mxu1 }
 0x314   :  { %v461_v38 = vadd.f32 %v460_v36, %v389_v34 }
 0x316   :  { %v467_v39 = vadd.f32 %v461_v38, %v459_v37 }
 0x318   :  { %468 = vadd.xlane.f32.xlu1 %v467_v39  ;;  %v5243_v39 = vld [vmem:[#allocation6] sm:$0xff] }
 0x319   :  { %v1040_v43 = vunpack.c.l.bf16 %v5243_v39  ;;  %v1041_v46 = vunpack.c.h.bf16 %v5243_v39 }
 0x3a1   :  { %v469_v47 = vpop.xlane.xlu1 %468 }
 0x3a2   :  { %v470_v48 = vmul.f32 0.00390625, %v469_v47  ;;  %v5247_v47 = vld [vmem:[#allocation6 + $0x10] sm:$0xff] }
 0x3a4   :  { %v5229_v49 = vsub.f32 %v459_v37, %v470_v48  ;;  %v5231_v50 = vsub.f32 %v461_v38, %v470_v48 }
 0x3a6   :  { %v473_v51 = vmul.f32 %v5229_v49, %v5229_v49  ;;  %v474_v52 = vmul.f32 %v5231_v50, %v5231_v50 }
 0x3a8   :  { %v475_v53 = vadd.f32 %v474_v52, %v473_v51  ;;  %v1045_v51 = vunpack.c.h.bf16 %v5247_v47  ;;  %v5255_v52 = vld [vmem:[#allocation6 + $0x20] sm:$0xff] }
 0x3a9   :  { %v1048_v54 = vunpack.c.l.bf16 %v5255_v52  ;;  %v1049_v55 = vunpack.c.h.bf16 %v5255_v52 }
 0x3aa   :  { %476 = vadd.xlane.f32.xlu1 %v475_v53 }
 0x3ab   :  { %v1183_v57 = vadd.f32 %v1049_v55, %v1048_v54 }
 0x433   :  { %v477_v20 = vpop.xlane.xlu1 %476 }
 0x434   :  { %v478_v21 = vmul.f32 0.00390625, %v477_v20  ;;  %v1219_v20 = vadd.f32 %v1073_v18, %v1072_v17 }
 0x436   :  { %v479_v22 = vadd.f32 1e-05, %v478_v21  ;;  %v1076_v21 = vunpack.c.l.bf16 %v5311_v19 }
 0x438   :  { %4716 = vrsqrt.f32 %v479_v22  ;;  %v1077_v22 = vunpack.c.h.bf16 %v5311_v19 }
 0x43a   :  { %v1225_v23 = vadd.f32 %v1077_v22, %v1076_v21 }
 0x445   :  { %v4717_v27 = vpop.eup %4716 }
 0x446   :  { %v482_v28 = vmul.f32 %v4717_v27, %v5231_v50  ;;  %v481_v31 = vmul.f32 %v4717_v27, %v5229_v49  ;;  %v1171_v49 = vadd.f32 %v1041_v46, %v1040_v43  ;;  %v1044_v50 = vunpack.c.l.bf16 %v5247_v47 }
 0x448   :  { %v495_v44 = vmul.f32 %v491_v26, %v482_v28  ;;  %v494_v33 = vmul.f32 %v487_v25, %v481_v31  ;;  %v1177_v53 = vadd.f32 %v1045_v51, %v1044_v50  ;;  %v5323_v25 = vld [vmem:[#allocation6 + $0x8] sm:$0xff] }
 0x449   :  { %v1042_v28 = vunpack.c.l.bf16 %v5323_v25 }
 0x44a   :  { %v508_v34 = vadd.f32 %v504_v30, %v495_v44  ;;  %v507_v35 = vadd.f32 %v500_v29, %v494_v33  ;;  %v1043_v29 = vunpack.c.h.bf16 %v5323_v25  ;;  %v5329_v30 = vld [vmem:[#allocation6 + $0x18] sm:$0xff] }
 0x44b   :  { %v8207_v25 = vunpack.c.l.bf16 %v5329_v30 }
 0x44c   :  { %v510_v36 = vmax.f32 %v508_v34, 0.0  ;;  %v509_v37 = vmax.f32 %v507_v35, 0.0  ;;  %v5333_v34 = vld [vmem:[#allocation6 + $0xa0] sm:$0xff]  ;;  %v7974_v35 = vunpack.c.l.bf16 %v5329_v30 }
 0x44e   :  { %608 = vmatprep.mubr.f32.mxu1 %v510_v36  ;;  %v7967_v36 = vunpack.c.h.bf16 %v5329_v30 }
 0x44f   :  { %609 = vmatmul.mubr.f32.vlgmr.msra.gmra.mxu1 %v509_v37 }
 0x50f   :  { %v4600_v38 = vpop.f32.mrf.mxu1 }
 0x511   :  { %v4601_v40 = vpop.f32.mrf.mxu1 }
 0x512   :  { %v4602_v42 = vadd.f32 %v4601_v40, %v4600_v38  ;;  %v1174_v40 = vadd.f32 %v1043_v29, %v1042_v28 }
 0x514   :  { %v611_v48 = vadd.f32 %v4602_v42, %v543_v41  ;;  %v5349_v41 = vld [vmem:[#allocation6 + $0x28] sm:$0xff] }
 0x516   :  { %616 = vadd.xlane.f32.xlu0 %v611_v48 }
 0x51a   :  { %1172 = vadd.xlane.f32.xlu0 %v1171_v49 }
 0x51e   :  { %1178 = vadd.xlane.f32.xlu0 %v1177_v53  ;;  %v1180_v53 = vadd.f32 %v7967_v36, %v7974_v35  ;;  %v661_v36 = vld [vmem:[#allocation15 + $0xb0] sm:$0xff] }
 0x51f   :  { %v653_v35 = vld [vmem:[#allocation15 + $0x70] sm:$0xff] }
 0x522   :  { %1184 = vadd.xlane.f32.xlu0 %v1183_v57  ;;  %v7958_v57 = vunpack.c.l.bf16 %v5349_v41 }
 0x526   :  { %1190 = vadd.xlane.f32.xlu0 %v1189_v61 }
 0x52a   :  { %1196 = vadd.xlane.f32.xlu0 %v1195_v1 }
 0x52e   :  { %1202 = vadd.xlane.f32.xlu0 %v1201_v5 }
 0x532   :  { %1208 = vadd.xlane.f32.xlu0 %v1207_v9  ;;  %v7957_v9 = vunpack.c.h.bf16 %v5349_v41 }
 0x536   :  { %1214 = vadd.xlane.f32.xlu0 %v1213_v16 }
 0x53a   :  { %1220 = vadd.xlane.f32.xlu0 %v1219_v20  ;;  %v5371_v20 = vld [vmem:[#allocation6 + $0x38] sm:$0xff] }
 0x53e   :  { %1226 = vadd.xlane.f32.xlu0 %v1225_v23 }
 0x59f   :  { %v617_v24 = vpop.xlane.xlu0 %616 }
 0x5a0   :  { %v619_v26 = vmul.f32 0.0078125, %v617_v24 }
 0x5a2   :  { %v5325_v27 = vsub.f32 %v611_v48, %v619_v26  ;;  %v7964_v48 = vunpack.c.l.bf16 %v5333_v34  ;;  %v1186_v26 = vadd.f32 %v7957_v9, %v7958_v57  ;;  %v668_v57 = vld [vmem:[#allocation15 + $0xe8] sm:$0xff] }
 0x5a3   :  { %v1173_v31 = vpop.xlane.xlu0 %1172 }
 0x5a4   :  { %v1364_v44 = vmul.f32 0.00390625, %v1173_v31  ;;  %v621_v33 = vmul.f32 %v5325_v27, %v5325_v27  ;;  %v7952_v31 = vunpack.c.l.bf16 %v5371_v20 }
 0x5a6   :  { %v5339_v37 = vsub.f32 %v1040_v43, %v1364_v44  ;;  %v5343_v38 = vsub.f32 %v1041_v46, %v1364_v44  ;;  %622 = vadd.xlane.f32.xlu1 %v621_v33  ;;  %v7963_v46 = vunpack.c.h.bf16 %v5333_v34  ;;  %v7951_v44 = vunpack.c.h.bf16 %v5371_v20 }
 0x5a7   :  { %v1179_v42 = vpop.xlane.xlu0 %1178 }
 0x5a8   :  { %v1366_v49 = vmul.f32 0.00390625, %v1179_v42  ;;  %v1556_v43 = vmul.f32 %v5339_v37, %v5339_v37  ;;  %v1557_v39 = vmul.f32 %v5343_v38, %v5343_v38  ;;  %v1231_v23 = vadd.f32 %v7963_v46, %v7964_v48  ;;  %v5462_v46 = vld [vmem:[#allocation6 + $0x88] sm:$0xff] }
 0x5aa   :  { %1175 = vadd.xlane.f32.xlu1 %v1174_v40  ;;  %v5364_v61 = vsub.f32 %v1044_v50, %v1366_v49  ;;  %v5368_v1 = vsub.f32 %v1045_v51, %v1366_v49  ;;  %v1684_v5 = vadd.f32 %v1557_v39, %v1556_v43  ;;  %v5381_v51 = vld [vmem:[#allocation6 + $0xb0] sm:$0xff]  ;;  %v5390_v40 = vld [vmem:[#allocation6 + $0x48] sm:$0xff] }
 0x5ab   :  { %v1185_v16 = vpop.xlane.xlu0 %1184  ;;  %v7954_v33 = vunpack.c.l.bf16 %v5381_v51  ;;  %v7953_v39 = vunpack.c.h.bf16 %v5381_v51 }
 0x5ac   :  { %1685 = vadd.xlane.f32.xlu0 %v1684_v5  ;;  %v1368_v24 = vmul.f32 0.00390625, %v1185_v16  ;;  %v1560_v50 = vmul.f32 %v5364_v61, %v5364_v61  ;;  %v1561_v47 = vmul.f32 %v5368_v1, %v5368_v1  ;;  %v1192_v5 = vadd.f32 %v7951_v44, %v7952_v31  ;;  %v5426_v44 = vld [vmem:[#allocation6 + $0x68] sm:$0xff] }
 0x5ad   :  { %v7956_v16 = vunpack.c.l.bf16 %v5390_v40  ;;  %v1237_v52 = vadd.f32 %v7953_v39, %v7954_v33  ;;  %v670_v31 = vld [vmem:[#allocation15 + $0xf8] sm:$0xff]  ;;  %v7965_v56 = vunpack.c.h.bf16 %v5426_v44 }
 0x5ae   :  { %1181 = vadd.xlane.f32.xlu1 %v1180_v53  ;;  %v5394_v42 = vsub.f32 %v1048_v54, %v1368_v24  ;;  %v5398_v49 = vsub.f32 %v1049_v55, %v1368_v24  ;;  %v1690_v43 = vadd.f32 %v1561_v47, %v1560_v50  ;;  %v5407_v54 = vld [vmem:[#allocation6 + $0x58] sm:$0xff]  ;;  %v5417_v47 = vld [vmem:[#allocation6 + $0xc0] sm:$0xff]  ;;  %684 = vmatprep.subr.mxu1 %v670_v31  ;;  %v666_v31 = vld [vmem:[#allocation15 + $0xd8] sm:$0xff] }
 0x5af   :  { %v1191_v53 = vpop.xlane.xlu0 %1190  ;;  %v7959_v11 = vunpack.c.h.bf16 %v5407_v54 }
 0x5b0   :  { %1232 = vadd.xlane.f32.xlu0 %v1231_v23  ;;  %v7955_v23 = vunpack.c.h.bf16 %v5390_v40  ;;  %v1370_v55 = vmul.f32 0.00390625, %v1191_v53  ;;  %v1564_v24 = vmul.f32 %v5394_v42, %v5394_v42  ;;  %v1565_v50 = vmul.f32 %v5398_v49, %v5398_v49 }
 0x5b1   :  { %v7962_v53 = vunpack.c.l.bf16 %v5417_v47 }
 0x5b2   :  { %1187 = vadd.xlane.f32.xlu1 %v1186_v26  ;;  %v1198_v26 = vadd.f32 %v7955_v23, %v7956_v16  ;;  %v5430_v39 = vsub.f32 %v1052_v58, %v1370_v55  ;;  %v1696_v33 = vadd.f32 %v1565_v50, %v1564_v24  ;;  %v7961_v23 = vunpack.c.h.bf16 %v5417_v47  ;;  %v669_v16 = vld [vmem:[#allocation15 + $0xf0] sm:$0xff] }
 0x5b3   :  { %v1197_v9 = vpop.xlane.xlu0 %1196  ;;  %685 = vmatpush1.msra.mxu1 %v669_v16  ;;  %v7966_v58 = vunpack.c.l.bf16 %v5426_v44 }
 0x5b4   :  { %1691 = vadd.xlane.f32.xlu0 %v1690_v43  ;;  %v7960_v43 = vunpack.c.l.bf16 %v5407_v54  ;;  %686 = vmatprep.subr.mxu1 %v668_v57  ;;  %v1243_v16 = vadd.f32 %v7961_v23, %v7962_v53  ;;  %v1568_v24 = vmul.f32 %v5430_v39, %v5430_v39  ;;  %v1372_v57 = vmul.f32 0.00390625, %v1197_v9  ;;  %v664_v23 = vld [vmem:[#allocation15 + $0xc8] sm:$0xff]  ;;  %v663_v9 = vld [vmem:[#allocation15 + $0xc0] sm:$0xff] }
 0x5b6   :  { %1193 = vadd.xlane.f32.xlu1 %v1192_v5  ;;  %v5434_v5 = vsub.f32 %v1053_v59, %v1370_v55  ;;  %v667_v59 = vld [vmem:[#allocation15 + $0xe0] sm:$0xff]  ;;  %v5443_v55 = vld [vmem:[#allocation6 + $0x78] sm:$0xff]  ;;  %v5467_v48 = vsub.f32 %v1056_v62, %v1372_v57  ;;  %v7972_v62 = vunpack.c.h.bf16 %v5462_v46 }
 0x5b7   :  { %687 = vmatpush1.msra.mxu1 %v667_v59  ;;  %v7969_v59 = vunpack.c.l.bf16 %v5443_v55 }
 0x5b8   :  { %1238 = vadd.xlane.f32.xlu0 %v1237_v52  ;;  %v1204_v52 = vadd.f32 %v7959_v11, %v7960_v43  ;;  %v1569_v50 = vmul.f32 %v5434_v5, %v5434_v5  ;;  %688 = vmatprep.subr.mxu1 %v666_v31  ;;  %v665_v11 = vld [vmem:[#allocation15 + $0xd0] sm:$0xff]  ;;  %v7968_v43 = vunpack.c.h.bf16 %v5443_v55 }
 0x5b9   :  { %689 = vmatpush1.msra.mxu1 %v665_v11  ;;  %v662_v11 = vld [vmem:[#allocation15 + $0xb8] sm:$0xff] }
 0x5ba   :  { %1199 = vadd.xlane.f32.xlu1 %v1198_v26  ;;  %v5453_v26 = vld [vmem:[#allocation6 + $0xd0] sm:$0xff]  ;;  %690 = vmatprep.subr.mxu1 %v664_v23  ;;  %v1702_v31 = vadd.f32 %v1569_v50, %v1568_v24  ;;  %v1216_v23 = vadd.f32 %v7968_v43, %v7969_v59  ;;  %v660_v24 = vld [vmem:[#allocation15 + $0xa8] sm:$0xff]  ;;  %v7986_v43 = vunpack.c.l.bf16 %v5479_v60  ;;  %v7975_v59 = vunpack.c.h.bf16 %v5479_v60 }
 0x5bb   :  { %v7971_v53 = vunpack.c.l.bf16 %v5453_v26  ;;  %691 = vmatpush1.msra.mxu1 %v663_v9 }
 0x5bc   :  { %1697 = vadd.xlane.f32.xlu0 %v1696_v33  ;;  %v1210_v33 = vadd.f32 %v7965_v56, %v7966_v58  ;;  %v5471_v56 = vsub.f32 %v1057_v63, %v1372_v57  ;;  %v1203_v58 = vpop.xlane.xlu0 %1202  ;;  %692 = vmatprep.subr.mxu1 %v662_v11  ;;  %v659_v63 = vld [vmem:[#allocation15 + $0xa0] sm:$0xff]  ;;  %v1572_v57 = vmul.f32 %v5467_v48, %v5467_v48  ;;  %v5489_v11 = vld [vmem:[#allocation6 + $0xe0] sm:$0xff] }
 0x5bd   :  { %693 = vmatpush1.msra.mxu1 %v661_v36  ;;  %v1374_v9 = vmul.f32 0.00390625, %v1203_v58  ;;  %v658_v36 = vld [vmem:[#allocation15 + $0x98] sm:$0xff]  ;;  %v7988_v58 = vunpack.c.l.bf16 %v5489_v11 }
 0x5be   :  { %1205 = vadd.xlane.f32.xlu1 %v1204_v52  ;;  %v7970_v52 = vunpack.c.h.bf16 %v5453_v26  ;;  %694 = vmatprep.subr.mxu1 %v660_v24  ;;  %v657_v24 = vld [vmem:[#allocation15 + $0x90] sm:$0xff] }
 0x5bf   :  { %695 = vmatpush1.msra.mxu1 %v659_v63 }
 0x5c0   :  { %1244 = vadd.xlane.f32.xlu0 %v1243_v16  ;;  %v7973_v16 = vunpack.c.l.bf16 %v5462_v46  ;;  %v1249_v50 = vadd.f32 %v7970_v52, %v7971_v53  ;;  %696 = vmatprep.subr.mxu1 %v658_v36  ;;  %v656_v52 = vld [vmem:[#allocation15 + $0x88] sm:$0xff]  ;;  %v655_v53 = vld [vmem:[#allocation15 + $0x80] sm:$0xff]  ;;  %v5504_v36 = vsub.f32 %v1061_v3, %v1374_v9 }
 0x5c1   :  { %697 = vmatpush1.msra.mxu1 %v657_v24  ;;  %v1209_v24 = vpop.xlane.xlu0 %1208 }
 0x5c2   :  { %1211 = vadd.xlane.f32.xlu1 %v1210_v33  ;;  %v1573_v33 = vmul.f32 %v5471_v56, %v5471_v56  ;;  %698 = vmatprep.subr.mxu1 %v656_v52  ;;  %v1228_v52 = vadd.f32 %v7975_v59, %v7986_v43  ;;  %v1376_v3 = vmul.f32 0.00390625, %v1209_v24  ;;  %v645_v59 = vld [vmem:[#allocation15 + $0x30] sm:$0xff] }
 0x5c3   :  { %699 = vmatpush1.msra.mxu1 %v655_v53  ;;  %v5633_v43 = vld [vmem:[#allocation6 + $0x140] sm:$0xff] }
 0x5c4   :  { %1703 = vadd.xlane.f32.xlu0 %v1702_v31  ;;  %v1222_v31 = vadd.f32 %v7972_v62, %v7973_v16  ;;  %v1708_v63 = vadd.f32 %v1573_v33, %v1572_v57  ;;  %v7987_v62 = vunpack.c.h.bf16 %v5489_v11  ;;  %v654_v16 = vld [vmem:[#allocation15 + $0x78] sm:$0xff]  ;;  %v5519_v57 = vld [vmem:[#allocation6 + $0xf0] sm:$0xff]  ;;  %v649_v33 = vld [vmem:[#allocation15 + $0x50] sm:$0xff]  ;;  %v5524_v24 = vsub.f32 %v1064_v6, %v1376_v3  ;;  %8209 = vst [vmem:[#allocation42_spill] sm:$0xff] %v5633_v43 }
 0x5c5   :  { %700 = vmatprep.subr.mxu1 %v654_v16  ;;  %v1577_v16 = vmul.f32 %v5504_v36, %v5504_v36 }
 0x5c6   :  { %1217 = vadd.xlane.f32.xlu1 %v1216_v23  ;;  %v5500_v23 = vsub.f32 %v1060_v2, %v1374_v9  ;;  %701 = vmatpush1.msra.mxu1 %v653_v35  ;;  %v652_v2 = vld [vmem:[#allocation15 + $0x68] sm:$0xff]  ;;  %v1255_v0 = vadd.f32 %v7987_v62, %v7988_v58  ;;  %v650_v35 = vld [vmem:[#allocation15 + $0x58] sm:$0xff]  ;;  %8197 = vst [vmem:[#allocation32_spill] sm:$0xff] %v5524_v24  ;;  %v8210_v62 = vunpack.c.l.bf16 %v5333_v34 }
 0x5c7   :  { %702 = vmatprep.subr.mxu1 %v652_v2  ;;  %v648_v9 = vld [vmem:[#allocation15 + $0x48] sm:$0xff]  ;;  %v5528_v2 = vsub.f32 %v1065_v7, %v1376_v3  ;;  %v1580_v7 = vmul.f32 %v5524_v24, %v5524_v24 }
 0x5c8   :  { %1250 = vadd.xlane.f32.xlu0 %v1249_v50  ;;  %v651_v50 = vld [vmem:[#allocation15 + $0x60] sm:$0xff]  ;;  %v1576_v53 = vmul.f32 %v5500_v23, %v5500_v23 }
 0x5c9   :  { %703 = vmatpush1.msra.mxu1 %v651_v50  ;;  %8198 = vst [vmem:[#allocation33_spill] sm:$0xff] %v5528_v2  ;;  %v1581_v3 = vmul.f32 %v5528_v2, %v5528_v2 }
 0x5ca   :  { %1223 = vadd.xlane.f32.xlu1 %v1222_v31  ;;  %704 = vmatprep.subr.mxu1 %v650_v35  ;;  %v7985_v31 = vunpack.c.l.bf16 %v5519_v57  ;;  %v1714_v50 = vadd.f32 %v1577_v16, %v1576_v53  ;;  %v7976_v35 = vunpack.c.h.bf16 %v5519_v57  ;;  %v5539_v53 = vld [vmem:[#allocation6 + $0x100] sm:$0xff] }
 0x5cb   :  { %705 = vmatpush1.msra.mxu1 %v649_v33  ;;  %v1215_v33 = vpop.xlane.xlu0 %1214  ;;  %v641_v16 = vld [vmem:[#allocation15 + $0x10] sm:$0xff] }
 0x5cc   :  { %1709 = vadd.xlane.f32.xlu0 %v1708_v63  ;;  %706 = vmatprep.subr.mxu1 %v648_v9  ;;  %v647_v63 = vld [vmem:[#allocation15 + $0x40] sm:$0xff]  ;;  %v644_v9 = vld [vmem:[#allocation15 + $0x28] sm:$0xff]  ;;  %v1261_v4 = vadd.f32 %v7976_v35, %v7985_v31  ;;  %v1378_v6 = vmul.f32 0.00390625, %v1215_v33 }
 0x5cd   :  { %707 = vmatpush1.msra.mxu1 %v647_v63  ;;  %v640_v63 = vld [vmem:[#allocation15 + $0x8] sm:$0xff] }
 0x5ce   :  { %1229 = vadd.xlane.f32.xlu1 %v1228_v52  ;;  %v646_v52 = vld [vmem:[#allocation15 + $0x38] sm:$0xff]  ;;  %v5544_v33 = vsub.f32 %v1068_v10, %v1378_v6  ;;  %v5548_v35 = vsub.f32 %v1069_v12, %v1378_v6  ;;  %v5559_v12 = vld [vmem:[#allocation6 + $0x110] sm:$0xff] }
 0x5cf   :  { %708 = vmatprep.subr.mxu1 %v646_v52  ;;  %v7984_v52 = vunpack.c.l.bf16 %v5539_v53  ;;  %v7981_v6 = vunpack.c.l.bf16 %v5559_v12 }
 0x5d0   :  { %1256 = vadd.xlane.f32.xlu0 %v1255_v0  ;;  %709 = vmatpush1.msra.mxu1 %v645_v59  ;;  %v643_v0 = vld [vmem:[#allocation15 + $0x20] sm:$0xff]  ;;  %v642_v59 = vld [vmem:[#allocation15 + $0x18] sm:$0xff]  ;;  %8199 = vst [vmem:[#allocation34_spill] sm:$0xff] %v5544_v33  ;;  %8200 = vst [vmem:[#allocation35_spill] sm:$0xff] %v5548_v35  ;;  %v1584_v10 = vmul.f32 %v5544_v33, %v5544_v33  ;;  %v1585_v8 = vmul.f32 %v5548_v35, %v5548_v35 }
 0x5d1   :  { %710 = vmatprep.subr.mxu1 %v644_v9  ;;  %v5105_v9 = vmov 0.0  }
 0x5d2   :  { %711 = vmatpush1.msra.mxu1 %v643_v0  ;;  %748 = vmatprep.mubr.f32.mxu1 %v5105_v9  ;;  %v1720_v0 = vadd.f32 %v1581_v3, %v1580_v7  ;;  %v7978_v9 = vunpack.c.h.bf16 %v5559_v12 }
 0x5d3   :  { %712 = vmatprep.subr.mxu1 %v642_v59  ;;  %v7977_v59 = vunpack.c.h.bf16 %v5539_v53 }
 0x5d4   :  { %1715 = vadd.xlane.f32.xlu0 %v1714_v50  ;;  %713 = vmatpush1.msra.mxu1 %v641_v16  ;;  %v639_v50 = vld [vmem:[#allocation15] sm:$0xff]  ;;  %v1221_v16 = vpop.xlane.xlu0 %1220 }
 0x5d5   :  { %714 = vmatprep.subr.mxu1 %v640_v63  ;;  %v1267_v63 = vadd.f32 %v7977_v59, %v7984_v52 }
 0x5d6   :  { %715 = vmatpush1.msra.mxu1 %v639_v50  ;;  %v1726_v50 = vadd.f32 %v1585_v8, %v1584_v10 }
 0x5d8   :  { %1262 = vadd.xlane.f32.xlu0 %v1261_v4  ;;  %v1380_v4 = vmul.f32 0.00390625, %v1221_v16  ;;  %v1273_v16 = vadd.f32 %v7978_v9, %v7981_v6  ;;  %v5599_v9 = vld [vmem:[#allocation6 + $0x130] sm:$0xff] }
 0x5d9   :  { %8206 = vst [vmem:[#allocation41_spill] sm:$0xff] %v5599_v9 }
 0x5da   :  { %v5564_v7 = vsub.f32 %v1072_v17, %v1380_v4  ;;  %v5568_v3 = vsub.f32 %v1073_v18, %v1380_v4  ;;  %v7980_v18 = vunpack.c.l.bf16 %v5579_v15 }
 0x5dc   :  { %1721 = vadd.xlane.f32.xlu0 %v1720_v0  ;;  %8201 = vst [vmem:[#allocation36_spill] sm:$0xff] %v5564_v7  ;;  %8202 = vst [vmem:[#allocation37_spill] sm:$0xff] %v5568_v3  ;;  %v1227_v0 = vpop.xlane.xlu0 %1226  ;;  %v1589_v17 = vmul.f32 %v5568_v3, %v5568_v3 }
 0x5dd   :  { %v1382_v59 = vmul.f32 0.00390625, %v1227_v0 }
 0x5df   :  { %v5584_v4 = vsub.f32 %v1076_v21, %v1382_v59  ;;  %v5588_v10 = vsub.f32 %v1077_v22, %v1382_v59  ;;  %v7983_v22 = vunpack.c.l.bf16 %v5599_v9  ;;  %v7982_v59 = vunpack.c.h.bf16 %v5599_v9  ;;  %v5676_v9 = vld [vmem:[#allocation6 + $0x150] sm:$0xff] }
 0x5e0   :  { %1268 = vadd.xlane.f32.xlu0 %v1267_v63  ;;  %v1588_v63 = vmul.f32 %v5564_v7, %v5564_v7  ;;  %8220 = vst [vmem:[#allocation45_spill] sm:$0xff] %v5676_v9 }
 0x5e1   :  { %8204 = vst [vmem:[#allocation39_spill] sm:$0xff] %v5584_v4  ;;  %8205 = vst [vmem:[#allocation40_spill] sm:$0xff] %v5588_v10  ;;  %v1593_v21 = vmul.f32 %v5588_v10, %v5588_v10 }
 0x5e2   :  { %v1732_v8 = vadd.f32 %v1589_v17, %v1588_v63  ;;  %v1285_v63 = vadd.f32 %v7982_v59, %v7983_v22  ;;  %v4620_v17 = vld [vmem:[#allocation11 + $0x74] ss:$8 sps:$4 sm:$0xff]  }
 0x5e3   :  { %2730 = vmatprep.subr.bf16.mxu1 %v4620_v17  ;;  %v5617_v59 = vld [vmem:[#allocation6 + $0xa8] sm:$0xff] }
 0x5e4   :  { %1727 = vadd.xlane.f32.xlu0 %v1726_v50  ;;  %v7979_v50 = vunpack.c.h.bf16 %v5579_v15 }
 0x5e6   :  { %v1279_v0 = vadd.f32 %v7979_v50, %v7980_v18 }
 0x5e8   :  { %1274 = vadd.xlane.f32.xlu0 %v1273_v16  ;;  %v1592_v16 = vmul.f32 %v5584_v4, %v5584_v4  ;;  %v8216_v4 = vunpack.c.l.bf16 %v5349_v41 }
 0x5ea   :  { %v1738_v19 = vadd.f32 %v1593_v21, %v1592_v16 }
 0x5ec   :  { %1733 = vadd.xlane.f32.xlu0 %v1732_v8 }
 0x5f0   :  { %1280 = vadd.xlane.f32.xlu0 %v1279_v0 }
 0x5f4   :  { %1739 = vadd.xlane.f32.xlu0 %v1738_v19 }
 0x5f8   :  { %1286 = vadd.xlane.f32.xlu0 %v1285_v63 }
 0x62f   :  { %v623_v8 = vpop.xlane.xlu1 %622 }
 0x630   :  { %v624_v50 = vmul.f32 0.0078125, %v623_v8  ;;  %v8212_v8 = vunpack.c.h.bf16 %v5333_v34 }
 0x632   :  { %v625_v18 = vadd.f32 1e-05, %v624_v50 }
 0x633   :  { %v1176_v6 = vpop.xlane.xlu1 %1175 }
 0x634   :  { %4718 = vrsqrt.f32 %v625_v18  ;;  %v1365_v0 = vmul.f32 0.00390625, %v1176_v6 }
 0x635   :  { %v5607_v16 = vpop.xlane.xlu0 %1685 }
 0x636   :  { %v5611_v21 = vsub.f32 %v1042_v28, %v1365_v0  ;;  %v5615_v19 = vsub.f32 %v1043_v29, %v1365_v0  ;;  %v8208_v0 = vunpack.c.h.bf16 %v5329_v30  ;;  %v8215_v30 = vunpack.c.h.bf16 %v5617_v59 }
 0x637   :  { %v1182_v63 = vpop.xlane.xlu1 %1181 }
 0x638   :  { %v1367_v17 = vmul.f32 0.00390625, %v1182_v63  ;;  %v1558_v50 = vmul.f32 %v5611_v21, %v5611_v21  ;;  %v1559_v6 = vmul.f32 %v5615_v19, %v5615_v19 }
 0x639   :  { %v1233_v18 = vpop.xlane.xlu0 %1232 }
 0x63a   :  { %v1384_v22 = vmul.f32 0.00390625, %v1233_v18  ;;  %v5627_v29 = vsub.f32 %v8207_v25, %v1367_v17  ;;  %v5631_v52 = vsub.f32 %v8208_v0, %v1367_v17  ;;  %v1687_v63 = vadd.f32 %v1559_v6, %v1558_v50  ;;  %v5653_v0 = vld [vmem:[#allocation6 + $0xb8] sm:$0xff] }
 0x63b   :  { %v1188_v31 = vpop.xlane.xlu1 %1187  ;;  %v8214_v25 = vunpack.c.l.bf16 %v5617_v59 }
 0x63c   :  { %v5637_v58 = vsub.f32 %v8210_v62, %v1384_v22  ;;  %v5641_v28 = vsub.f32 %v8212_v8, %v1384_v22  ;;  %1688 = vadd.xlane.f32.xlu1 %v1687_v63  ;;  %v1369_v50 = vmul.f32 0.00390625, %v1188_v31  ;;  %v1562_v6 = vmul.f32 %v5627_v29, %v5627_v29  ;;  %v614_v31 = vld [vmem:[#allocation17 + $0x12] ss:$0 sm:$0xff] }
 0x63d   :  { %v5643_v18 = vpop.xlane.xlu0 %1691  ;;  %v1234_v17 = vadd.f32 %v8215_v30, %v8214_v25  ;;  %v1563_v62 = vmul.f32 %v5631_v52, %v5631_v52 }
 0x63e   :  { %8211 = vst [vmem:[#allocation43_spill] sm:$0xff] %v5637_v58  ;;  %8213 = vst [vmem:[#allocation44_spill] sm:$0xff] %v5641_v28  ;;  %v1596_v34 = vmul.f32 %v5637_v58, %v5637_v58  ;;  %v1597_v22 = vmul.f32 %v5641_v28, %v5641_v28  ;;  %v5665_v10 = vsub.f32 %v8216_v4, %v1369_v50  ;;  %v8217_v58 = vunpack.c.h.bf16 %v5349_v41 }
 0x63f   :  { %v1693_v28 = vadd.f32 %v1563_v62, %v1562_v6  ;;  %v8221_v4 = vunpack.c.l.bf16 %v5381_v51  ;;  %v8223_v41 = vunpack.c.h.bf16 %v5381_v51 }
 0x640   :  { %v1744_v25 = vadd.f32 %v1597_v22, %v1596_v34  ;;  %1235 = vadd.xlane.f32.xlu1 %v1234_v17  ;;  %v5669_v7 = vsub.f32 %v8217_v58, %v1369_v50  ;;  %v8218_v34 = vunpack.c.l.bf16 %v5633_v43  ;;  %v8219_v22 = vunpack.c.h.bf16 %v5633_v43  ;;  %v1194_v17 = vpop.xlane.xlu1 %1193  ;;  %v615_v50 = vld [vmem:[#allocation17 + $0x13] ss:$0 sm:$0xff] }
 0x641   :  { %v4719_v45 = vpop.eup %4718  ;;  %v1239_v32 = vpop.xlane.xlu0 %1238  ;;  %v1371_v62 = vmul.f32 0.00390625, %v1194_v17  ;;  %v8005_v17 = vunpack.c.h.bf16 %v5676_v9 }
 0x642   :  { %v627_v8 = vmul.f32 %v4719_v45, %v5325_v27  ;;  %v1386_v63 = vmul.f32 0.00390625, %v1239_v32  ;;  %1745 = vadd.xlane.f32.xlu0 %v1744_v25  ;;  %v1291_v30 = vadd.f32 %v8219_v22, %v8218_v34  ;;  %v8225_v45 = vunpack.c.l.bf16 %v5653_v0  ;;  %v5696_v22 = vld [vmem:[#allocation6 + $0xc8] sm:$0xff] }
 0x643   :  { %v8226_v32 = vunpack.c.h.bf16 %v5653_v0  ;;  %v1566_v25 = vmul.f32 %v5665_v10, %v5665_v10  ;;  %v1567_v34 = vmul.f32 %v5669_v7, %v5669_v7 }
 0x644   :  { %v5680_v3 = vsub.f32 %v8221_v4, %v1386_v63  ;;  %v5684_v58 = vsub.f32 %v8223_v41, %v1386_v63  ;;  %1694 = vadd.xlane.f32.xlu1 %v1693_v28  ;;  %v628_v51 = vmul.f32 %v627_v8, %v614_v31  ;;  %v8227_v8 = vunpack.c.l.bf16 %v5371_v20 }
 0x645   :  { %v1240_v27 = vadd.f32 %v8226_v32, %v8225_v45  ;;  %v5690_v6 = vpop.xlane.xlu0 %1697  ;;  %v8006_v32 = vunpack.c.l.bf16 %v5696_v22 }
 0x646   :  { %8222 = vst [vmem:[#allocation46_spill] sm:$0xff] %v5680_v3  ;;  %8224 = vst [vmem:[#allocation47_spill] sm:$0xff] %v5684_v58  ;;  %1292 = vadd.xlane.f32.xlu0 %v1291_v30  ;;  %v1600_v63 = vmul.f32 %v5680_v3, %v5680_v3  ;;  %v1601_v4 = vmul.f32 %v5684_v58, %v5684_v58  ;;  %v629_v41 = vadd.f32 %v628_v51, %v615_v50 }
 0x647   :  { %v5708_v31 = vsub.f32 %v8227_v8, %v1371_v62  ;;  %v8228_v30 = vunpack.c.h.bf16 %v5371_v20  ;;  %v1699_v58 = vadd.f32 %v1567_v34, %v1566_v25  ;;  %v8229_v50 = vunpack.c.l.bf16 %v5676_v9 }
 0x648   :  { %v1750_v45 = vadd.f32 %v1601_v4, %v1600_v63  ;;  %1241 = vadd.xlane.f32.xlu1 %v1240_v27  ;;  %v630_v28 = vmax.f32 %v629_v41, 0.0  ;;  %v1200_v63 = vpop.xlane.xlu1 %1199  ;;  %v5718_v27 = vld [vmem:[#allocation6 + $0x160] sm:$0xff]  ;;  %v8231_v8 = vunpack.c.l.bf16 %v5417_v47  ;;  %v8233_v20 = vunpack.c.h.bf16 %v5417_v47 }
 0x649   :  { %v1245_v33 = vpop.xlane.xlu0 %1244  ;;  %v5712_v3 = vsub.f32 %v8228_v30, %v1371_v62  ;;  %v1297_v51 = vadd.f32 %v8005_v17, %v8229_v50  ;;  %8230 = vst [vmem:[#allocation48_spill] sm:$0xff] %v5718_v27  ;;  %v1373_v41 = vmul.f32 0.00390625, %v1200_v63  ;;  %v8014_v63 = vunpack.c.h.bf16 %v5718_v27  ;;  %v5760_v17 = vld [vmem:[#allocation6 + $0x170] sm:$0xff] }
 0x64a   :  { %v1388_v35 = vmul.f32 0.00390625, %v1245_v33  ;;  %1751 = vadd.xlane.f32.xlu0 %v1750_v45  ;;  %v631_v4 = vrot.slane %v630_v28, 4  ;;  %v8235_v33 = vunpack.c.h.bf16 %v5696_v22  ;;  %v1570_v45 = vmul.f32 %v5708_v31, %v5708_v31  ;;  %8239 = vst [vmem:[#allocation51_spill] sm:$0xff] %v5760_v17 }
 0x64b   :  { %v1571_v30 = vmul.f32 %v5712_v3, %v5712_v3 }
 0x64c   :  { %v5722_v43 = vsub.f32 %v8231_v8, %v1388_v35  ;;  %v5726_v62 = vsub.f32 %v8233_v20, %v1388_v35  ;;  %v1246_v25 = vadd.f32 %v8235_v33, %v8006_v32  ;;  %1700 = vadd.xlane.f32.xlu1 %v1699_v58  ;;  %v632_v50 = vadd.f32 %v631_v4, %v630_v28  ;;  %v5738_v8 = vld [vmem:[#allocation6 + $0xd8] sm:$0xff]  ;;  %v1206_v32 = vpop.xlane.xlu1 %1205 }
 0x64d   :  { %v5732_v34 = vpop.xlane.xlu0 %1703 }
 0x64e   :  { %8232 = vst [vmem:[#allocation49_spill] sm:$0xff] %v5722_v43  ;;  %8234 = vst [vmem:[#allocation50_spill] sm:$0xff] %v5726_v62  ;;  %1298 = vadd.xlane.f32.xlu0 %v1297_v51  ;;  %v1604_v47 = vmul.f32 %v5722_v43, %v5722_v43  ;;  %v1605_v35 = vmul.f32 %v5726_v62, %v5726_v62  ;;  %v633_v20 = vrot.slane %v632_v50, 2  ;;  %v8236_v51 = vunpack.c.l.bf16 %v5390_v40 }
 0x64f   :  { %v8237_v43 = vunpack.c.h.bf16 %v5390_v40  ;;  %v1705_v62 = vadd.f32 %v1571_v30, %v1570_v45  ;;  %v8242_v40 = vunpack.c.h.bf16 %v5453_v26  ;;  %v8245_v45 = vunpack.c.h.bf16 %v5738_v8 }
 0x650   :  { %v1756_v33 = vadd.f32 %v1605_v35, %v1604_v47  ;;  %1247 = vadd.xlane.f32.xlu1 %v1246_v25  ;;  %v5750_v4 = vsub.f32 %v8236_v51, %v1373_v41  ;;  %v634_v58 = vadd.f32 %v633_v20, %v632_v50  ;;  %v8238_v47 = vunpack.c.l.bf16 %v5718_v27 }
 0x651   :  { %v1251_v28 = vpop.xlane.xlu0 %1250  ;;  %v5754_v9 = vsub.f32 %v8237_v43, %v1373_v41  ;;  %v8240_v51 = vunpack.c.l.bf16 %v5453_v26  ;;  %v8244_v41 = vunpack.c.l.bf16 %v5738_v8  ;;  %v1375_v20 = vmul.f32 0.00390625, %v1206_v32 }
 0x652   :  { %v1390_v15 = vmul.f32 0.00390625, %v1251_v28  ;;  %1757 = vadd.xlane.f32.xlu0 %v1756_v33  ;;  %v1303_v35 = vadd.f32 %v8014_v63, %v8238_v47  ;;  %v635_v25 = vrot.slane %v634_v58, 1  ;;  %v1574_v33 = vmul.f32 %v5750_v4, %v5750_v4  ;;  %v5778_v47 = vld [vmem:[#allocation6 + $0xe8] sm:$0xff] }
 0x653   :  { %v1252_v30 = vadd.f32 %v8245_v45, %v8244_v41  ;;  %v1575_v28 = vmul.f32 %v5754_v9, %v5754_v9  ;;  %v8021_v45 = vunpack.c.l.bf16 %v5778_v47 }
 0x654   :  { %v5764_v24 = vsub.f32 %v8240_v51, %v1390_v15  ;;  %v5768_v43 = vsub.f32 %v8242_v40, %v1390_v15  ;;  %1706 = vadd.xlane.f32.xlu1 %v1705_v62  ;;  %v636_v50 = vadd.f32 %v635_v25, %v634_v58  ;;  %v4618_v58 = vld [vmem:[#allocation11 + $0x70] ss:$8 sps:$4 sm:$0xff]   ;;  %v4623_v40 = vld [vmem:[#allocation11 + $0x64] ss:$8 sps:$4 sm:$0xff]   ;;  %v8020_v62 = vunpack.c.h.bf16 %v5778_v47 }
 0x655   :  { %v5780_v51 = vpop.xlane.xlu0 %1709 }
 0x656   :  { %8241 = vst [vmem:[#allocation52_spill] sm:$0xff] %v5764_v24  ;;  %8243 = vst [vmem:[#allocation53_spill] sm:$0xff] %v5768_v43  ;;  %1304 = vadd.xlane.f32.xlu0 %v1303_v35  ;;  %v1608_v26 = vmul.f32 %v5764_v24, %v5764_v24  ;;  %v1609_v15 = vmul.f32 %v5768_v43, %v5768_v43  ;;  %v638_v25 = vmul.f32 0.125, %v636_v50  ;;  %v8246_v35 = vunpack.c.l.bf16 %v5407_v54  ;;  %v1212_v50 = vpop.xlane.xlu1 %1211 }
 0x657   :  { %v8247_v24 = vunpack.c.h.bf16 %v5407_v54  ;;  %v1711_v43 = vadd.f32 %v1575_v28, %v1574_v33  ;;  %v4626_v54 = vld [vmem:[#allocation11 + $0x54] ss:$8 sps:$4 sm:$0xff]   ;;  %v8253_v33 = vunpack.c.h.bf16 %v5489_v11 }
 0x658   :  { %v1762_v41 = vadd.f32 %v1609_v15, %v1608_v26  ;;  %749 = vmatmul.mubr.f32.vlgmr.msra.gmra.mxu1 %v638_v25  ;;  %1253 = vadd.xlane.f32.xlu1 %v1252_v30  ;;  %v5791_v63 = vsub.f32 %v8246_v35, %v1375_v20  ;;  %v8248_v26 = vunpack.c.l.bf16 %v5760_v17  ;;  %v8249_v15 = vunpack.c.h.bf16 %v5760_v17  ;;  %v4621_v25 = vld [vmem:[#allocation11 + $0x60] ss:$8 sps:$4 sm:$0xff]   ;;  %v5802_v35 = vld [vmem:[#allocation6 + $0x180] sm:$0xff] }
 0x659   :  { %v5795_v27 = vsub.f32 %v8247_v24, %v1375_v20  ;;  %v1257_v32 = vpop.xlane.xlu0 %1256  ;;  %2731 = vmatpush1.bf16.msra.mxu1 %v4618_v58  ;;  %8250 = vst [vmem:[#allocation54_spill] sm:$0xff] %v5802_v35  ;;  %v8251_v24 = vunpack.c.l.bf16 %v5489_v11  ;;  %v1377_v58 = vmul.f32 0.00390625, %v1212_v50  ;;  %v8026_v50 = vunpack.c.h.bf16 %v5802_v35 }
 0x65a   :  { %1763 = vadd.xlane.f32.xlu0 %v1762_v41  ;;  %v1392_v2 = vmul.f32 0.00390625, %v1257_v32  ;;  %v1309_v30 = vadd.f32 %v8249_v15, %v8248_v26  ;;  %2732 = vmatprep.subr.bf16.mxu1 %v4623_v40  ;;  %v1258_v32 = vadd.f32 %v8020_v62, %v8021_v45  ;;  %v1578_v40 = vmul.f32 %v5791_v63, %v5791_v63  ;;  %v5820_v26 = vld [vmem:[#allocation6 + $0xf8] sm:$0xff]  ;;  %v4624_v15 = vld [vmem:[#allocation11 + $0x50] ss:$8 sps:$4 sm:$0xff]  }
 0x65b   :  { %v1579_v41 = vmul.f32 %v5795_v27, %v5795_v27 }
 0x65c   :  { %v5806_v20 = vsub.f32 %v8251_v24, %v1392_v2  ;;  %v5810_v28 = vsub.f32 %v8253_v33, %v1392_v2  ;;  %1712 = vadd.xlane.f32.xlu1 %v1711_v43  ;;  %v4629_v24 = vld [vmem:[#allocation11 + $0x44] ss:$8 sps:$4 sm:$0xff]   ;;  %v8027_v43 = vunpack.c.h.bf16 %v5820_v26 }
 0x65d   :  { %2733 = vmatpush1.bf16.msra.mxu1 %v4621_v25  ;;  %v1717_v25 = vadd.f32 %v1579_v41, %v1578_v40  ;;  %v5850_v40 = vld [vmem:[#allocation6 + $0x108] sm:$0xff] }
 0x65e   :  { %8252 = vst [vmem:[#allocation55_spill] sm:$0xff] %v5806_v20  ;;  %8254 = vst [vmem:[#allocation56_spill] sm:$0xff] %v5810_v28  ;;  %1310 = vadd.xlane.f32.xlu0 %v1309_v30  ;;  %v1612_v11 = vmul.f32 %v5806_v20, %v5806_v20  ;;  %v1613_v2 = vmul.f32 %v5810_v28, %v5810_v28  ;;  %2734 = vmatprep.subr.bf16.mxu1 %v4626_v54  ;;  %v8255_v30 = vunpack.c.l.bf16 %v5426_v44  ;;  %v1218_v28 = vpop.xlane.xlu1 %1217  ;;  %v4630_v41 = vld [vmem:[#allocation11 + $0x30] ss:$8 sps:$4 sm:$0xff]  }
 0x65f   :  { %v8256_v20 = vunpack.c.h.bf16 %v5426_v44  ;;  %v8257_v54 = vunpack.c.l.bf16 %v5802_v35  ;;  %8259 = vst [vmem:[#allocation57_spill] sm:$0xff] %v5850_v40 }
 0x660   :  { %v1768_v62 = vadd.f32 %v1613_v2, %v1612_v11  ;;  %1259 = vadd.xlane.f32.xlu1 %v1258_v32  ;;  %v5831_v45 = vsub.f32 %v8255_v30, %v1377_v58  ;;  %v4627_v32 = vld [vmem:[#allocation11 + $0x40] ss:$8 sps:$4 sm:$0xff]   ;;  %v4632_v11 = vld [vmem:[#allocation11 + $0x34] ss:$8 sps:$4 sm:$0xff]   ;;  %v8258_v2 = vunpack.c.l.bf16 %v5820_v26  ;;  %v8260_v30 = vunpack.c.l.bf16 %v5443_v55 }
 0x661   :  { %v5835_v17 = vsub.f32 %v8256_v20, %v1377_v58  ;;  %v1315_v33 = vadd.f32 %v8026_v50, %v8257_v54  ;;  %2735 = vmatpush1.bf16.msra.mxu1 %v4624_v15  ;;  %v1379_v20 = vmul.f32 0.00390625, %v1218_v28  ;;  %v4635_v15 = vld [vmem:[#allocation11 + $0x24] ss:$8 sps:$4 sm:$0xff]   ;;  %v8261_v28 = vunpack.c.h.bf16 %v5443_v55 }
 0x662   :  { %1769 = vadd.xlane.f32.xlu0 %v1768_v62  ;;  %2736 = vmatprep.subr.bf16.mxu1 %v4629_v24  ;;  %v1264_v44 = vadd.f32 %v8027_v43, %v8258_v2  ;;  %v1582_v58 = vmul.f32 %v5831_v45, %v5831_v45  ;;  %v8029_v24 = vunpack.c.l.bf16 %v5850_v40  ;;  %v8028_v50 = vunpack.c.h.bf16 %v5850_v40  ;;  %v1224_v43 = vpop.xlane.xlu1 %1223  ;;  %v4645_v40 = vld [vmem:[#allocation11 + $0xe0] ss:$8 sps:$4 sm:$0xff]  }
 0x663   :  { %v1583_v62 = vmul.f32 %v5835_v17, %v5835_v17  ;;  %v5859_v54 = vsub.f32 %v8261_v28, %v1379_v20 }
 0x664   :  { %1718 = vadd.xlane.f32.xlu1 %v1717_v25  ;;  %v5855_v25 = vsub.f32 %v8260_v30, %v1379_v20  ;;  %v8263_v30 = vunpack.c.l.bf16 %v5462_v46 }
 0x665   :  { %2737 = vmatpush1.bf16.msra.mxu1 %v4627_v32  ;;  %v1723_v2 = vadd.f32 %v1583_v62, %v1582_v58  ;;  %v4638_v32 = vld [vmem:[#allocation11 + $0x14] ss:$8 sps:$4 sm:$0xff]   ;;  %v1587_v20 = vmul.f32 %v5859_v54, %v5859_v54  ;;  %v5870_v58 = vld [vmem:[#allocation6 + $0x118] sm:$0xff]  ;;  %v4636_v62 = vld [vmem:[#allocation11 + $0x10] ss:$8 sps:$4 sm:$0xff]  }
 0x666   :  { %1316 = vadd.xlane.f32.xlu0 %v1315_v33  ;;  %2738 = vmatprep.subr.bf16.mxu1 %v4632_v11  ;;  %v4633_v33 = vld [vmem:[#allocation11 + $0x20] ss:$8 sps:$4 sm:$0xff]   ;;  %v1270_v11 = vadd.f32 %v8028_v50, %v8029_v24  ;;  %v1586_v55 = vmul.f32 %v5855_v25, %v5855_v25  ;;  %8262 = vst [vmem:[#allocation58_spill] sm:$0xff] %v5870_v58  ;;  %v8032_v24 = vunpack.c.h.bf16 %v5870_v58  ;;  %v1230_v35 = vpop.xlane.xlu1 %1229 }
 0x668   :  { %1265 = vadd.xlane.f32.xlu1 %v1264_v44  ;;  %v1381_v44 = vmul.f32 0.00390625, %v1224_v43  ;;  %v8265_v43 = vunpack.c.h.bf16 %v5462_v46  ;;  %v1729_v50 = vadd.f32 %v1587_v20, %v1586_v55  ;;  %v5890_v55 = vld [vmem:[#allocation6 + $0x128] sm:$0xff] }
 0x669   :  { %2739 = vmatpush1.bf16.msra.mxu1 %v4630_v41  ;;  %v4641_v41 = vld [vmem:[#allocation11 + $0x4] ss:$8 sps:$4 sm:$0xff]   ;;  %8267 = vst [vmem:[#allocation61_spill] sm:$0xff] %v5890_v55  ;;  %v4642_v20 = vld [vmem:[#allocation11 + $0xf0] ss:$8 sps:$4 sm:$0xff]  }
 0x66a   :  { %2740 = vmatprep.subr.bf16.mxu1 %v4635_v15  ;;  %v8033_v15 = vunpack.c.l.bf16 %v5870_v58  ;;  %v5875_v28 = vsub.f32 %v8263_v30, %v1381_v44  ;;  %v1383_v30 = vmul.f32 0.00390625, %v1230_v35  ;;  %v8270_v35 = vunpack.c.h.bf16 %v5479_v60 }
 0x66b   :  { %v8038_v58 = vunpack.c.h.bf16 %v5890_v55 }
 0x66c   :  { %1724 = vadd.xlane.f32.xlu1 %v1723_v2  ;;  %8264 = vst [vmem:[#allocation59_spill] sm:$0xff] %v5875_v28  ;;  %v5879_v2 = vsub.f32 %v8265_v43, %v1381_v44  ;;  %v1590_v46 = vmul.f32 %v5875_v28, %v5875_v28 }
 0x66d   :  { %2741 = vmatpush1.bf16.msra.mxu1 %v4633_v33  ;;  %v4639_v33 = vld [vmem:[#allocation11] ss:$8 sps:$4 sm:$0xff]  }
 0x66e   :  { %2742 = vmatprep.subr.bf16.mxu1 %v4638_v32  ;;  %8266 = vst [vmem:[#allocation60_spill] sm:$0xff] %v5879_v2  ;;  %v4644_v32 = vld [vmem:[#allocation11 + $0xf4] ss:$8 sps:$4 sm:$0xff]   ;;  %v1591_v44 = vmul.f32 %v5879_v2, %v5879_v2 }
 0x670   :  { %1271 = vadd.xlane.f32.xlu1 %v1270_v11  ;;  %v1276_v11 = vadd.f32 %v8032_v24, %v8033_v15  ;;  %v5899_v24 = vsub.f32 %v8270_v35, %v1383_v30  ;;  %v1735_v15 = vadd.f32 %v1591_v44, %v1590_v46  ;;  %v4648_v46 = vld [vmem:[#allocation11 + $0xd0] ss:$8 sps:$4 sm:$0xff]   ;;  %v4653_v44 = vld [vmem:[#allocation11 + $0xc4] ss:$8 sps:$4 sm:$0xff]   ;;  %v4656_v35 = vld [vmem:[#allocation11 + $0xb4] ss:$8 sps:$4 sm:$0xff]  }
 0x671   :  { %2743 = vmatpush1.bf16.msra.mxu1 %v4636_v62  ;;  %v4647_v62 = vld [vmem:[#allocation11 + $0xe4] ss:$8 sps:$4 sm:$0xff]  }
 0x672   :  { %2744 = vmatprep.subr.bf16.mxu1 %v4641_v41  ;;  %v8268_v41 = vunpack.c.l.bf16 %v5479_v60  ;;  %8271 = vst [vmem:[#allocation63_spill] sm:$0xff] %v5899_v24  ;;  %v1595_v60 = vmul.f32 %v5899_v24, %v5899_v24  ;;  %v1170_v24 = vld [vmem:[#allocation17 + $0x1] ss:$8 sm:$0x3] }
 0x673   :  { %v5973_v28 = vrot.slane %v1170_v24, %v5211_v13 }
 0x674   :  { %1730 = vadd.xlane.f32.xlu1 %v1729_v50  ;;  %v8041_v50 = vunpack.c.l.bf16 %v5890_v55  ;;  %v5895_v43 = vsub.f32 %v8268_v41, %v1383_v30  ;;  %v5910_v30 = vld [vmem:[#allocation6 + $0x138] sm:$0xff] }
 0x675   :  { %2745 = vmatpush1.bf16.msra.mxu1 %v4639_v33  ;;  %v4650_v33 = vld [vmem:[#allocation11 + $0xd4] ss:$8 sps:$4 sm:$0xff]   ;;  %8272 = vst [vmem:[#allocation64_spill] sm:$0xff] %v5910_v30  ;;  %v4651_v41 = vld [vmem:[#allocation11 + $0xc0] ss:$8 sps:$4 sm:$0xff]  }
 0x676   :  { %2746 = vmatprep.subr.bf16.mxu1 %v4644_v32  ;;  %8269 = vst [vmem:[#allocation62_spill] sm:$0xff] %v5895_v43  ;;  %v1282_v32 = vadd.f32 %v8038_v58, %v8041_v50 }
 0x678   :  { %1277 = vadd.xlane.f32.xlu1 %v1276_v11  ;;  %v1594_v11 = vmul.f32 %v5895_v43, %v5895_v43 }
 0x679   :  { %2747 = vmatpush2.bf16.msra.mxu1 %v4642_v20 }
 0x67a   :  { %2748 = vmatprep.subr.bf16.mxu1 %v4647_v62  ;;  %v1741_v20 = vadd.f32 %v1595_v60, %v1594_v11  ;;  %v8039_v62 = vunpack.c.h.bf16 %v5910_v30  ;;  %v4662_v11 = vld [vmem:[#allocation11 + $0x94] ss:$8 sps:$4 sm:$0xff]   ;;  %v4660_v60 = vld [vmem:[#allocation11 + $0x90] ss:$8 sps:$4 sm:$0xff]  }
 0x67c   :  { %1736 = vadd.xlane.f32.xlu1 %v1735_v15  ;;  %v8040_v15 = vunpack.c.l.bf16 %v5910_v30  ;;  %v1168_v30 = vld [vmem:[#allocation17] ss:$8 sm:$0x3] }
 0x67d   :  { %2749 = vmatpush2.bf16.msra.mxu1 %v4645_v40  ;;  %v4654_v40 = vld [vmem:[#allocation11 + $0xb0] ss:$8 sps:$4 sm:$0xff]   ;;  %v5947_v43 = vrot.slane %v1168_v30, %v5211_v13 }
 0x67e   :  { %2750 = vmatprep.subr.bf16.mxu1 %v4650_v33  ;;  %v1288_v58 = vadd.f32 %v8039_v62, %v8040_v15  ;;  %v4659_v33 = vld [vmem:[#allocation11 + $0xa4] ss:$8 sps:$4 sm:$0xff]   ;;  %v5919_v62 = vpop.xlane.xlu0 %1715 }
 0x680   :  { %1283 = vadd.xlane.f32.xlu1 %v1282_v32  ;;  %v4657_v32 = vld [vmem:[#allocation11 + $0xa0] ss:$8 sps:$4 sm:$0xff]  }
 0x681   :  { %2751 = vmatpush2.bf16.msra.mxu1 %v4648_v46  ;;  %v4665_v46 = vld [vmem:[#allocation11 + $0x84] ss:$8 sps:$4 sm:$0xff]  }
 0x682   :  { %2752 = vmatprep.subr.bf16.mxu1 %v4653_v44  ;;  %v4663_v44 = vld [vmem:[#allocation11 + $0x80] ss:$8 sps:$4 sm:$0xff]  }
 0x684   :  { %1742 = vadd.xlane.f32.xlu1 %v1741_v20  ;;  %v1876_v20 = vmul.f32 0.00390625, %v5607_v16 }
 0x685   :  { %2753 = vmatpush2.bf16.msra.mxu1 %v4651_v41 }
 0x686   :  { %2754 = vmatprep.subr.bf16.mxu1 %v4656_v35  ;;  %v1940_v41 = vadd.f32 1e-05, %v1876_v20  ;;  %v1878_v35 = vmul.f32 0.00390625, %v5643_v18  ;;  %v8274_v20 = vunpack.c.l.bf16 %v5617_v59 }
 0x688   :  { %1289 = vadd.xlane.f32.xlu1 %v1288_v58  ;;  %v5922_v58 = vpop.xlane.xlu0 %1262  ;;  %4720 = vrsqrt.f32 %v1940_v41  ;;  %v8276_v41 = vunpack.c.h.bf16 %v5617_v59  ;;  %v1882_v59 = vmul.f32 0.00390625, %v5732_v34  ;;  %v5956_v34 = vrot.slane %v1168_v30, %v5213_v14 }
 0x689   :  { %2755 = vmatpush2.bf16.msra.mxu1 %v4654_v40  ;;  %v1942_v40 = vadd.f32 1e-05, %v1878_v35 }
 0x68a   :  { %2756 = vmatprep.subr.bf16.mxu1 %v4659_v33 }
 0x68b   :  { %4722 = vrsqrt.f32 %v1942_v40 }
 0x68c   :  { %v5924_v15 = vpop.xlane.xlu0 %1721 }
 0x68d   :  { %2757 = vmatpush2.bf16.msra.mxu1 %v4657_v32 }
 0x68e   :  { %2758 = vmatprep.subr.bf16.mxu1 %v4662_v11 }
 0x690   :  { %v5937_v50 = vpop.xlane.xlu0 %1268 }
 0x691   :  { %2759 = vmatpush2.bf16.msra.mxu1 %v4660_v60  ;;  %v1880_v60 = vmul.f32 0.00390625, %v5690_v6 }
 0x692   :  { %2760 = vmatprep.subr.bf16.mxu1 %v4665_v46 }
 0x695   :  { %2761 = vmatpush2.bf16.msra.mxu1 %v4663_v44  ;;  %v5927_v44 = vld [vmem:[#allocation6 + $0x148] sm:$0xff] }
 0x696   :  { %8273 = vst [vmem:[#allocation65_spill] sm:$0xff] %v5927_v44  ;;  %v8051_v40 = vunpack.c.l.bf16 %v5927_v44 }
 0x6c5   :  { %v1689_v33 = vpop.xlane.xlu1 %1688 }
 0x6c6   :  { %v1877_v32 = vmul.f32 0.00390625, %v1689_v33  ;;  %v1944_v33 = vadd.f32 1e-05, %v1880_v60 }
 0x6c8   :  { %v1941_v11 = vadd.f32 1e-05, %v1877_v32 }
 0x6c9   :  { %v1236_v46 = vpop.xlane.xlu1 %1235 }
 0x6ca   :  { %4724 = vrsqrt.f32 %v1941_v11  ;;  %v1385_v16 = vmul.f32 0.00390625, %v1236_v46 }
 0x6cb   :  { %4726 = vrsqrt.f32 %v1944_v33  ;;  %v5958_v33 = vpop.xlane.xlu0 %1727 }
 0x6cc   :  { %v5931_v18 = vsub.f32 %v8274_v20, %v1385_v16  ;;  %v5935_v35 = vsub.f32 %v8276_v41, %v1385_v16  ;;  %v8050_v20 = vunpack.c.h.bf16 %v5927_v44  ;;  %v4721_v16 = vpop.eup %4720 }
 0x6cd   :  { %v1695_v32 = vpop.xlane.xlu1 %1694 }
 0x6ce   :  { %8275 = vst [vmem:[#allocation66_spill] sm:$0xff] %v5931_v18  ;;  %8277 = vst [vmem:[#allocation67_spill] sm:$0xff] %v5935_v35  ;;  %v1879_v6 = vmul.f32 0.00390625, %v1695_v32  ;;  %v1598_v11 = vmul.f32 %v5931_v18, %v5931_v18  ;;  %v1599_v46 = vmul.f32 %v5935_v35, %v5935_v35  ;;  %v1294_v18 = vadd.f32 %v8050_v20, %v8051_v40  ;;  %v5953_v35 = vld [vmem:[#allocation6 + $0x158] sm:$0xff] }
 0x6cf   :  { %v5987_v2 = vpop.xlane.xlu0 %1274  ;;  %v8282_v13 = vunpack.c.l.bf16 %v5953_v35 }
 0x6d0   :  { %v1943_v41 = vadd.f32 1e-05, %v1879_v6  ;;  %v1747_v60 = vadd.f32 %v1599_v46, %v1598_v11  ;;  %v1946_v6 = vadd.f32 1e-05, %v1882_v59  ;;  %v2069_v11 = vmul.f32 %v4721_v16, %v5343_v38  ;;  %v4723_v59 = vpop.eup %4722 }
 0x6d1   :  { %v1242_v55 = vpop.xlane.xlu1 %1241  ;;  %v2068_v46 = vmul.f32 %v4721_v16, %v5339_v37 }
 0x6d2   :  { %4728 = vrsqrt.f32 %v1943_v41  ;;  %v1387_v32 = vmul.f32 0.00390625, %v1242_v55  ;;  %1748 = vadd.xlane.f32.xlu1 %v1747_v60  ;;  %v8278_v55 = vunpack.c.l.bf16 %v5653_v0  ;;  %v8280_v60 = vunpack.c.h.bf16 %v5653_v0 }
 0x6d3   :  { %4730 = vrsqrt.f32 %v1946_v6 }
 0x6d4   :  { %v5964_v41 = vsub.f32 %v8278_v55, %v1387_v32  ;;  %v5968_v20 = vsub.f32 %v8280_v60, %v1387_v32  ;;  %v5980_v32 = vrot.slane %v1170_v24, %v5213_v14  ;;  %v2208_v55 = vmul.f32 %v5956_v34, %v2069_v11 }
 0x6d5   :  { %v1701_v40 = vpop.xlane.xlu1 %1700  ;;  %v2207_v60 = vmul.f32 %v5947_v43, %v2068_v46  ;;  %v8283_v24 = vunpack.c.h.bf16 %v5953_v35  ;;  %v2073_v11 = vmul.f32 %v4723_v59, %v5368_v1 }
 0x6d6   :  { %8279 = vst [vmem:[#allocation68_spill] sm:$0xff] %v5964_v41  ;;  %8281 = vst [vmem:[#allocation69_spill] sm:$0xff] %v5968_v20  ;;  %v1881_v38 = vmul.f32 0.00390625, %v1701_v40  ;;  %1295 = vadd.xlane.f32.xlu1 %v1294_v18  ;;  %v1602_v37 = vmul.f32 %v5964_v41, %v5964_v41  ;;  %v1603_v16 = vmul.f32 %v5968_v20, %v5968_v20  ;;  %v1884_v41 = vmul.f32 0.00390625, %v5780_v51 }
 0x6d7   :  { %v4725_v0 = vpop.eup %4724  ;;  %v1300_v6 = vadd.f32 %v8283_v24, %v8282_v13  ;;  %v2346_v51 = vadd.f32 %v5973_v28, %v2207_v60  ;;  %v8285_v13 = vunpack.c.h.bf16 %v5696_v22  ;;  %v2212_v60 = vmul.f32 %v5956_v34, %v2073_v11 }
 0x6d8   :  { %v1945_v30 = vadd.f32 1e-05, %v1881_v38  ;;  %v1753_v44 = vadd.f32 %v1603_v16, %v1602_v37  ;;  %v2071_v40 = vmul.f32 %v4725_v0, %v5615_v19  ;;  %v2070_v18 = vmul.f32 %v4725_v0, %v5611_v21 }
 0x6d9   :  { %v1248_v20 = vpop.xlane.xlu1 %1247  ;;  %v2347_v21 = vadd.f32 %v5980_v32, %v2208_v55  ;;  %v2072_v37 = vmul.f32 %v4723_v59, %v5364_v61  ;;  %v8284_v16 = vunpack.c.l.bf16 %v5696_v22 }
 0x6da   :  { %4732 = vrsqrt.f32 %v1945_v30  ;;  %v1389_v46 = vmul.f32 0.00390625, %v1248_v20  ;;  %1754 = vadd.xlane.f32.xlu1 %v1753_v44  ;;  %v2210_v38 = vmul.f32 %v5956_v34, %v2071_v40  ;;  %v2209_v19 = vmul.f32 %v5947_v43, %v2070_v18  ;;  %v6009_v30 = vld [vmem:[#allocation6 + $0x168] sm:$0xff]  ;;  %v4727_v18 = vpop.eup %4726 }
 0x6db   :  { %v1948_v40 = vadd.f32 1e-05, %v1884_v41  ;;  %v8060_v41 = vunpack.c.l.bf16 %v6009_v30 }
 0x6dc   :  { %v6001_v0 = vsub.f32 %v8284_v16, %v1389_v46  ;;  %v6005_v1 = vsub.f32 %v8285_v13, %v1389_v46  ;;  %v2349_v44 = vadd.f32 %v5980_v32, %v2210_v38  ;;  %v2348_v20 = vadd.f32 %v5973_v28, %v2209_v19  ;;  %v6018_v38 = vpop.xlane.xlu0 %1733 }
 0x6dd   :  { %v1707_v55 = vpop.xlane.xlu1 %1706  ;;  %v2211_v16 = vmul.f32 %v5947_v43, %v2072_v37  ;;  %4734 = vrsqrt.f32 %v1948_v40  ;;  %v1886_v13 = vmul.f32 0.00390625, %v5919_v62  ;;  %v2351_v62 = vadd.f32 %v5980_v32, %v2212_v60 }
 0x6de   :  { %v1883_v61 = vmul.f32 0.00390625, %v1707_v55  ;;  %1301 = vadd.xlane.f32.xlu1 %v1300_v6  ;;  %v6012_v59 = vpack.c.bf16 %v2349_v44, %v2347_v21  ;;  %v6014_v24 = vpack.c.bf16 %v2348_v20, %v2346_v51  ;;  %v1606_v22 = vmul.f32 %v6001_v0, %v6001_v0 }
 0x6df   :  { %v4729_v46 = vpop.eup %4728  ;;  %v1607_v19 = vmul.f32 %v6005_v1, %v6005_v1  ;;  %v2077_v55 = vmul.f32 %v4727_v18, %v5398_v49  ;;  %v2350_v40 = vadd.f32 %v5973_v28, %v2211_v16  ;;  %v8289_v49 = vunpack.c.l.bf16 %v5738_v8 }
 0x6e0   :  { %8286 = vst [vmem:[#allocation70_spill] sm:$0xff] %v6012_v59  ;;  %8287 = vst [vmem:[#allocation71_spill] sm:$0xff] %v6014_v24  ;;  %v1947_v6 = vadd.f32 1e-05, %v1883_v61  ;;  %2762 = vmatprep.mubr.bf16.mxu1 %v6012_v59  ;;  %v2075_v21 = vmul.f32 %v4729_v46, %v5631_v52  ;;  %v2074_v51 = vmul.f32 %v4729_v46, %v5627_v29  ;;  %v8288_v52 = vunpack.c.h.bf16 %v6009_v30  ;;  %v4731_v46 = vpop.eup %4730 }
 0x6e1   :  { %v1254_v44 = vpop.xlane.xlu1 %1253  ;;  %2763 = vmatmul.mubr.bf16.vlgmr.msra.gmra.mxu1 %v6014_v24  ;;  %v1759_v20 = vadd.f32 %v1607_v19, %v1606_v22  ;;  %v2076_v22 = vmul.f32 %v4727_v18, %v5394_v42  ;;  %v1950_v60 = vadd.f32 1e-05, %v1886_v13  ;;  %v2216_v42 = vmul.f32 %v5956_v34, %v2077_v55 }
 0x6e2   :  { %4736 = vrsqrt.f32 %v1947_v6  ;;  %v1391_v11 = vmul.f32 0.00390625, %v1254_v44  ;;  %v2214_v37 = vmul.f32 %v5956_v34, %v2075_v21  ;;  %v2213_v61 = vmul.f32 %v5947_v43, %v2074_v51 }
 0x6e3   :  { %1760 = vadd.xlane.f32.xlu1 %v1759_v20  ;;  %v1306_v29 = vadd.f32 %v8288_v52, %v8060_v41  ;;  %v8290_v6 = vunpack.c.h.bf16 %v5738_v8  ;;  %v6050_v20 = vld [vmem:[#allocation6 + $0x178] sm:$0xff]  ;;  %v6052_v52 = vpop.xlane.xlu0 %1280  ;;  %4738 = vrsqrt.f32 %v1950_v60 }
 0x6e4   :  { %v6042_v19 = vsub.f32 %v8289_v49, %v1391_v11  ;;  %v2353_v51 = vadd.f32 %v5980_v32, %v2214_v37  ;;  %v2352_v44 = vadd.f32 %v5973_v28, %v2213_v61 }
 0x6e5   :  { %v6046_v21 = vsub.f32 %v8290_v6, %v1391_v11  ;;  %v1713_v16 = vpop.xlane.xlu1 %1712  ;;  %v2215_v6 = vmul.f32 %v5947_v43, %v2076_v22 }
 0x6e6   :  { %v1885_v18 = vmul.f32 0.00390625, %v1713_v16  ;;  %v6055_v41 = vpack.c.bf16 %v2353_v51, %v2351_v62  ;;  %v6057_v49 = vpack.c.bf16 %v2352_v44, %v2350_v40  ;;  %v1610_v8 = vmul.f32 %v6042_v19, %v6042_v19 }
 0x6e7   :  { %v4733_v11 = vpop.eup %4732  ;;  %1307 = vadd.xlane.f32.xlu1 %v1306_v29  ;;  %v1611_v37 = vmul.f32 %v6046_v21, %v6046_v21  ;;  %v2081_v51 = vmul.f32 %v4731_v46, %v5434_v5  ;;  %v1394_v29 = vmul.f32 0.00390625, %v5922_v58  ;;  %v1888_v44 = vmul.f32 0.00390625, %v5924_v15 }
 0x6e8   :  { %8291 = vst [vmem:[#allocation72_spill] sm:$0xff] %v6055_v41  ;;  %8292 = vst [vmem:[#allocation73_spill] sm:$0xff] %v6057_v49  ;;  %v1949_v55 = vadd.f32 1e-05, %v1885_v18  ;;  %2772 = vmatprep.mubr.bf16.mxu1 %v6055_v41  ;;  %v2079_v62 = vmul.f32 %v4733_v11, %v5669_v7  ;;  %v2078_v40 = vmul.f32 %v4733_v11, %v5665_v10  ;;  %v6075_v7 = vpop.xlane.xlu0 %1739  ;;  %v8293_v5 = vunpack.c.l.bf16 %v6050_v20 }
 0x6e9   :  { %v1260_v16 = vpop.xlane.xlu1 %1259  ;;  %2773 = vmatmul.mubr.bf16.gmra.mxu1 %v6057_v49  ;;  %v1765_v61 = vadd.f32 %v1611_v37, %v1610_v8  ;;  %v8294_v10 = vunpack.c.h.bf16 %v6050_v20  ;;  %v2355_v15 = vadd.f32 %v5980_v32, %v2216_v42  ;;  %v2354_v60 = vadd.f32 %v5973_v28, %v2215_v6 }
 0x6ea   :  { %4740 = vrsqrt.f32 %v1949_v55  ;;  %v1393_v22 = vmul.f32 0.00390625, %v1260_v16  ;;  %v2218_v18 = vmul.f32 %v5956_v34, %v2079_v62  ;;  %v2217_v13 = vmul.f32 %v5947_v43, %v2078_v40  ;;  %v6094_v16 = vld [vmem:[#allocation6 + $0x188] sm:$0xff] }
 0x6eb   :  { %1766 = vadd.xlane.f32.xlu1 %v1765_v61  ;;  %v1312_v58 = vadd.f32 %v8294_v10, %v8293_v5  ;;  %v2080_v8 = vmul.f32 %v4731_v46, %v5430_v39  ;;  %v8295_v11 = vunpack.c.l.bf16 %v5778_v47  ;;  %v8296_v55 = vunpack.c.h.bf16 %v5778_v47  ;;  %v4735_v10 = vpop.eup %4734 }
 0x6ec   :  { %v2357_v61 = vadd.f32 %v5980_v32, %v2218_v18  ;;  %v2356_v40 = vadd.f32 %v5973_v28, %v2217_v13  ;;  %v8297_v42 = vunpack.c.l.bf16 %v5519_v57  ;;  %v1952_v6 = vadd.f32 1e-05, %v1888_v44 }
 0x6ed   :  { %v6086_v37 = vsub.f32 %v8295_v11, %v1393_v22  ;;  %v6090_v62 = vsub.f32 %v8296_v55, %v1393_v22  ;;  %v1719_v39 = vpop.xlane.xlu1 %1718  ;;  %v2220_v46 = vmul.f32 %v5956_v34, %v2081_v51  ;;  %v8300_v18 = vunpack.c.h.bf16 %v5519_v57 }
 0x6ee   :  { %v6098_v5 = vsub.f32 %v8297_v42, %v1394_v29  ;;  %v1887_v11 = vmul.f32 0.00390625, %v1719_v39  ;;  %v6101_v49 = vpack.c.bf16 %v2357_v61, %v2355_v15  ;;  %v6103_v47 = vpack.c.bf16 %v2356_v40, %v2354_v60  ;;  %v6111_v42 = vpop.xlane.xlu0 %1286 }
 0x6ef   :  { %v1614_v22 = vmul.f32 %v6086_v37, %v6086_v37  ;;  %v4737_v13 = vpop.eup %4736  ;;  %v6109_v55 = vsub.f32 %v8300_v18, %v1394_v29  ;;  %1313 = vadd.xlane.f32.xlu1 %v1312_v58  ;;  %v1615_v51 = vmul.f32 %v6090_v62, %v6090_v62  ;;  %v8062_v44 = vunpack.c.l.bf16 %v6094_v16 }
 0x6f0   :  { %8298 = vst [vmem:[#allocation74_spill] sm:$0xff] %v6101_v49  ;;  %8299 = vst [vmem:[#allocation75_spill] sm:$0xff] %v6103_v47  ;;  %v1951_v60 = vadd.f32 1e-05, %v1887_v11  ;;  %2782 = vmatprep.mubr.bf16.mxu1 %v6101_v49  ;;  %v2083_v61 = vmul.f32 %v4737_v13, %v5712_v3  ;;  %v2082_v40 = vmul.f32 %v4737_v13, %v5708_v31  ;;  %4742 = vrsqrt.f32 %v1952_v6 }
 0x6f1   :  { %v2219_v57 = vmul.f32 %v5947_v43, %v2080_v8  ;;  %v1890_v29 = vmul.f32 0.00390625, %v5958_v33  ;;  %v6122_v58 = vpop.xlane.xlu1 %1265  ;;  %2783 = vmatmul.mubr.bf16.gmra.mxu1 %v6103_v47  ;;  %v1771_v39 = vadd.f32 %v1615_v51, %v1614_v22  ;;  %v2085_v18 = vmul.f32 %v4735_v10, %v5471_v56  ;;  %v6141_v51 = vld [vmem:[#allocation6 + $0x190] sm:$0xff] }
 0x6f2   :  { %v1396_v11 = vmul.f32 0.00390625, %v5937_v50  ;;  %4744 = vrsqrt.f32 %v1951_v60  ;;  %v2222_v15 = vmul.f32 %v5956_v34, %v2083_v61  ;;  %v2221_v3 = vmul.f32 %v5947_v43, %v2082_v40 }
 0x6f3   :  { %1772 = vadd.xlane.f32.xlu1 %v1771_v39  ;;  %v8301_v31 = vunpack.c.h.bf16 %v6094_v16  ;;  %v2359_v8 = vadd.f32 %v5980_v32, %v2220_v46  ;;  %v1616_v6 = vmul.f32 %v6098_v5, %v6098_v5  ;;  %v1617_v56 = vmul.f32 %v6109_v55, %v6109_v55  ;;  %v6145_v46 = vpop.xlane.xlu0 %1745 }
 0x6f4   :  { %v2361_v50 = vadd.f32 %v5980_v32, %v2222_v15  ;;  %v2358_v22 = vadd.f32 %v5973_v28, %v2219_v57  ;;  %v2360_v13 = vadd.f32 %v5973_v28, %v2221_v3  ;;  %v2084_v60 = vmul.f32 %v4735_v10, %v5467_v48 }
 0x6f5   :  { %v1318_v33 = vadd.f32 %v8301_v31, %v8062_v44  ;;  %v1954_v61 = vadd.f32 1e-05, %v1890_v29  ;;  %v1892_v40 = vmul.f32 0.00390625, %v6018_v38  ;;  %v1725_v39 = vpop.xlane.xlu1 %1724  ;;  %v2224_v31 = vmul.f32 %v5956_v34, %v2085_v18  ;;  %v4739_v44 = vpop.eup %4738 }
 0x6f6   :  { %v8302_v47 = vunpack.c.l.bf16 %v5539_v53  ;;  %v1889_v57 = vmul.f32 0.00390625, %v1725_v39  ;;  %v6152_v49 = vpack.c.bf16 %v2361_v50, %v2359_v8  ;;  %v6154_v3 = vpack.c.bf16 %v2360_v13, %v2358_v22 }
 0x6f7   :  { %v4741_v41 = vpop.eup %4740  ;;  %v8306_v48 = vunpack.c.h.bf16 %v5539_v53  ;;  %1319 = vadd.xlane.f32.xlu1 %v1318_v33  ;;  %v1774_v38 = vadd.f32 %v1617_v56, %v1616_v6  ;;  %v8070_v29 = vunpack.c.l.bf16 %v6141_v51  ;;  %v8067_v18 = vunpack.c.h.bf16 %v6141_v51 }
 0x6f8   :  { %v6150_v15 = vsub.f32 %v8302_v47, %v1396_v11  ;;  %8304 = vst [vmem:[#allocation77_spill] sm:$0xff] %v6152_v49  ;;  %8305 = vst [vmem:[#allocation78_spill] sm:$0xff] %v6154_v3  ;;  %v1953_v24 = vadd.f32 1e-05, %v1889_v57  ;;  %2792 = vmatprep.mubr.bf16.mxu1 %v6152_v49  ;;  %v2087_v47 = vmul.f32 %v4741_v41, %v5754_v9  ;;  %4746 = vrsqrt.f32 %v1954_v61 }
 0x6f9   :  { %v6158_v10 = vsub.f32 %v8306_v48, %v1396_v11  ;;  %v2086_v8 = vmul.f32 %v4741_v41, %v5750_v4  ;;  %v2223_v50 = vmul.f32 %v5947_v43, %v2084_v60  ;;  %v1956_v22 = vadd.f32 1e-05, %v1892_v40  ;;  %v6166_v53 = vpop.xlane.xlu1 %1271  ;;  %2793 = vmatmul.mubr.bf16.gmra.mxu1 %v6154_v3  ;;  %v6174_v4 = vpop.xlane.xlu0 %1292  ;;  %v6188_v60 = vld [vmem:[#allocation6 + $0x1a0] sm:$0xff] }
 0x6fa   :  { %8303 = vst [vmem:[#allocation76_spill] sm:$0xff] %v6150_v15  ;;  %v2089_v11 = vmul.f32 %v4739_v44, %v5504_v36  ;;  %v2088_v33 = vmul.f32 %v4739_v44, %v5500_v23  ;;  %v1398_v6 = vmul.f32 0.00390625, %v5987_v2  ;;  %4748 = vrsqrt.f32 %v1953_v24 }
 0x6fb   :  { %v2226_v56 = vmul.f32 %v5956_v34, %v2087_v47  ;;  %v2225_v9 = vmul.f32 %v5947_v43, %v2086_v8  ;;  %1775 = vadd.xlane.f32.xlu1 %v1774_v38  ;;  %v1321_v41 = vadd.f32 %v8067_v18, %v8070_v29  ;;  %v1620_v36 = vmul.f32 %v6150_v15, %v6150_v15 }
 0x6fc   :  { %v1621_v23 = vmul.f32 %v6158_v10, %v6158_v10  ;;  %v2363_v2 = vadd.f32 %v5980_v32, %v2224_v31  ;;  %v2362_v44 = vadd.f32 %v5973_v28, %v2223_v50  ;;  %4750 = vrsqrt.f32 %v1956_v22 }
 0x6fd   :  { %v2365_v24 = vadd.f32 %v5980_v32, %v2226_v56  ;;  %v2364_v13 = vadd.f32 %v5973_v28, %v2225_v9  ;;  %v1731_v61 = vpop.xlane.xlu1 %1730  ;;  %v2228_v40 = vmul.f32 %v5956_v34, %v2089_v11  ;;  %v2227_v39 = vmul.f32 %v5947_v43, %v2088_v33  ;;  %v4743_v57 = vpop.eup %4742 }
 0x6fe   :  { %v8307_v48 = vunpack.c.l.bf16 %v5559_v12  ;;  %v1891_v31 = vmul.f32 0.00390625, %v1731_v61  ;;  %v8311_v56 = vunpack.c.h.bf16 %v5559_v12  ;;  %v1780_v22 = vadd.f32 %v1621_v23, %v1620_v36 }
 0x6ff   :  { %v6196_v47 = vpack.c.bf16 %v2365_v24, %v2363_v2  ;;  %v6198_v8 = vpack.c.bf16 %v2364_v13, %v2362_v44  ;;  %v4745_v50 = vpop.eup %4744  ;;  %1322 = vadd.xlane.f32.xlu1 %v1321_v41  ;;  %v8069_v11 = vunpack.c.l.bf16 %v6188_v60  ;;  %v8068_v33 = vunpack.c.h.bf16 %v6188_v60  ;;  %v6210_v44 = vpop.xlane.xlu0 %1751 }
 0x700   :  { %v6194_v38 = vsub.f32 %v8307_v48, %v1398_v6  ;;  %v6202_v9 = vsub.f32 %v8311_v56, %v1398_v6  ;;  %v1894_v18 = vmul.f32 0.00390625, %v6075_v7  ;;  %v1955_v48 = vadd.f32 1e-05, %v1891_v31  ;;  %v8313_v6 = vld [vmem:[#allocation33_spill] sm:$0xff] }
 0x701   :  { %8309 = vst [vmem:[#allocation80_spill] sm:$0xff] %v6196_v47  ;;  %8310 = vst [vmem:[#allocation81_spill] sm:$0xff] %v6198_v8  ;;  %2802 = vmatprep.mubr.bf16.mxu1 %v6196_v47  ;;  %v2091_v2 = vmul.f32 %v4745_v50, %v5795_v27  ;;  %v2090_v24 = vmul.f32 %v4745_v50, %v5791_v63  ;;  %v6212_v12 = vpop.xlane.xlu1 %1277  ;;  %v2093_v41 = vmul.f32 %v4743_v57, %v8313_v6 }
 0x702   :  { %8308 = vst [vmem:[#allocation79_spill] sm:$0xff] %v6194_v38  ;;  %8312 = vst [vmem:[#allocation82_spill] sm:$0xff] %v6202_v9  ;;  %2803 = vmatmul.mubr.bf16.gmra.mxu1 %v6198_v8  ;;  %v1400_v36 = vmul.f32 0.00390625, %v6052_v52  ;;  %4752 = vrsqrt.f32 %v1955_v48  ;;  %v1327_v27 = vadd.f32 %v8068_v33, %v8069_v11  ;;  %v2367_v63 = vadd.f32 %v5980_v32, %v2228_v40  ;;  %v8315_v11 = vld [vmem:[#allocation38_spill] sm:$0xff] }
 0x703   :  { %v2230_v7 = vmul.f32 %v5956_v34, %v2091_v2  ;;  %v2229_v23 = vmul.f32 %v5947_v43, %v2090_v24  ;;  %1781 = vadd.xlane.f32.xlu1 %v1780_v22  ;;  %v1624_v13 = vmul.f32 %v6194_v38, %v6194_v38  ;;  %v1625_v61 = vmul.f32 %v6202_v9, %v6202_v9  ;;  %v6231_v22 = vld [vmem:[#allocation6 + $0x1b0] sm:$0xff]  ;;  %v6233_v48 = vpop.xlane.xlu0 %1298  ;;  %v8314_v24 = vld [vmem:[#allocation32_spill] sm:$0xff]  ;;  %v8356_v38 = vld [vmem:[#allocation57_spill] sm:$0xff] }
 0x704   :  { %v1958_v52 = vadd.f32 1e-05, %v1894_v18  ;;  %v2366_v50 = vadd.f32 %v5973_v28, %v2227_v39  ;;  %v2232_v40 = vmul.f32 %v5956_v34, %v2093_v41  ;;  %v2092_v6 = vmul.f32 %v4743_v57, %v8314_v24 }
 0x705   :  { %v2369_v31 = vadd.f32 %v5980_v32, %v2230_v7  ;;  %v2368_v56 = vadd.f32 %v5973_v28, %v2229_v23  ;;  %v1737_v2 = vpop.xlane.xlu1 %1736  ;;  %v4747_v33 = vpop.eup %4746  ;;  %v8316_v29 = vunpack.c.l.bf16 %v8315_v11  ;;  %v8320_v47 = vunpack.c.h.bf16 %v8315_v11  ;;  %v8322_v11 = vld [vmem:[#allocation35_spill] sm:$0xff] }
 0x706   :  { %v1893_v18 = vmul.f32 0.00390625, %v1737_v2  ;;  %v1786_v49 = vadd.f32 %v1625_v61, %v1624_v13  ;;  %v8078_v41 = vunpack.c.l.bf16 %v6231_v22  ;;  %v8077_v57 = vunpack.c.h.bf16 %v6231_v22 }
 0x707   :  { %v6239_v8 = vsub.f32 %v8316_v29, %v1400_v36  ;;  %v6241_v7 = vpack.c.bf16 %v2369_v31, %v2367_v63  ;;  %v6243_v39 = vpack.c.bf16 %v2368_v56, %v2366_v50  ;;  %v4749_v23 = vpop.eup %4748  ;;  %v6247_v3 = vsub.f32 %v8320_v47, %v1400_v36  ;;  %1328 = vadd.xlane.f32.xlu1 %v1327_v27  ;;  %v8323_v27 = vld [vmem:[#allocation34_spill] sm:$0xff]  ;;  %v6267_v2 = vpop.xlane.xlu0 %1757 }
 0x708   :  { %4754 = vrsqrt.f32 %v1958_v52  ;;  %v1957_v24 = vadd.f32 1e-05, %v1893_v18  ;;  %v2095_v29 = vmul.f32 %v4749_v23, %v5835_v17  ;;  %v2094_v63 = vmul.f32 %v4749_v23, %v5831_v45  ;;  %v6276_v23 = vld [vmem:[#allocation6 + $0x1c0] sm:$0xff] }
 0x709   :  { %8317 = vst [vmem:[#allocation33_spill] sm:$0xff] %v6239_v8  ;;  %8318 = vst [vmem:[#allocation32_spill] sm:$0xff] %v6241_v7  ;;  %2812 = vmatprep.mubr.bf16.mxu1 %v6241_v7  ;;  %v6254_v31 = vpop.xlane.xlu1 %1283  ;;  %v2231_v47 = vmul.f32 %v5947_v43, %v2092_v6  ;;  %v2097_v36 = vmul.f32 %v4747_v33, %v8322_v11  ;;  %v2096_v13 = vmul.f32 %v4747_v33, %v8323_v27  ;;  %v4751_v61 = vpop.eup %4750  ;;  %v8324_v11 = vld [vmem:[#allocation37_spill] sm:$0xff] }
 0x70a   :  { %8319 = vst [vmem:[#allocation38_spill] sm:$0xff] %v6243_v39  ;;  %8321 = vst [vmem:[#allocation83_spill] sm:$0xff] %v6247_v3  ;;  %2813 = vmatmul.mubr.bf16.gmra.mxu1 %v6243_v39  ;;  %v1402_v52 = vmul.f32 0.00390625, %v6111_v42  ;;  %4756 = vrsqrt.f32 %v1957_v24  ;;  %v2234_v50 = vmul.f32 %v5956_v34, %v2095_v29  ;;  %v2233_v17 = vmul.f32 %v5947_v43, %v2094_v63  ;;  %v8325_v39 = vld [vmem:[#allocation41_spill] sm:$0xff] }
 0x70b   :  { %v1628_v45 = vmul.f32 %v6239_v8, %v6239_v8  ;;  %v1629_v56 = vmul.f32 %v6247_v3, %v6247_v3  ;;  %1787 = vadd.xlane.f32.xlu1 %v1786_v49  ;;  %v1333_v33 = vadd.f32 %v8077_v57, %v8078_v41  ;;  %v2371_v42 = vadd.f32 %v5980_v32, %v2232_v40 }
 0x70c   :  { %v2373_v6 = vadd.f32 %v5980_v32, %v2234_v50  ;;  %v2372_v18 = vadd.f32 %v5973_v28, %v2233_v17  ;;  %v2370_v29 = vadd.f32 %v5973_v28, %v2231_v47  ;;  %v2236_v63 = vmul.f32 %v5956_v34, %v2097_v36 }
 0x70d   :  { %v1743_v24 = vpop.xlane.xlu1 %1742  ;;  %v2235_v49 = vmul.f32 %v5947_v43, %v2096_v13  ;;  %v2101_v27 = vmul.f32 %v4751_v61, %v8324_v11  ;;  %v8326_v7 = vunpack.c.l.bf16 %v8325_v39  ;;  %v8328_v40 = vunpack.c.h.bf16 %v8325_v39 }
 0x70e   :  { %v1895_v17 = vmul.f32 0.00390625, %v1743_v24  ;;  %v6290_v41 = vpack.c.bf16 %v2373_v6, %v2371_v42  ;;  %v6292_v47 = vpack.c.bf16 %v2372_v18, %v2370_v29  ;;  %v1792_v36 = vadd.f32 %v1629_v56, %v1628_v45  ;;  %v6301_v6 = vpop.xlane.xlu0 %1304 }
 0x70f   :  { %v6284_v57 = vsub.f32 %v8326_v7, %v1402_v52  ;;  %v6288_v50 = vsub.f32 %v8328_v40, %v1402_v52  ;;  %v4753_v59 = vpop.eup %4752  ;;  %1334 = vadd.xlane.f32.xlu1 %v1333_v33  ;;  %v8083_v13 = vunpack.c.l.bf16 %v6276_v23  ;;  %v8082_v11 = vunpack.c.h.bf16 %v6276_v23  ;;  %v8332_v52 = vld [vmem:[#allocation36_spill] sm:$0xff] }
 0x710   :  { %8330 = vst [vmem:[#allocation37_spill] sm:$0xff] %v6290_v41  ;;  %8331 = vst [vmem:[#allocation41_spill] sm:$0xff] %v6292_v47  ;;  %v1959_v8 = vadd.f32 1e-05, %v1895_v17  ;;  %2822 = vmatprep.mubr.bf16.mxu1 %v6290_v41  ;;  %v2099_v7 = vmul.f32 %v4753_v59, %v5859_v54  ;;  %v2098_v39 = vmul.f32 %v4753_v59, %v5855_v25  ;;  %v1404_v42 = vmul.f32 0.00390625, %v6174_v4  ;;  %v6308_v54 = vld [vmem:[#allocation6 + $0x1d0] sm:$0xff] }
 0x711   :  { %8327 = vst [vmem:[#allocation35_spill] sm:$0xff] %v6284_v57  ;;  %8329 = vst [vmem:[#allocation34_spill] sm:$0xff] %v6288_v50  ;;  %v2100_v24 = vmul.f32 %v4751_v61, %v8332_v52  ;;  %v2240_v45 = vmul.f32 %v5956_v34, %v2101_v27  ;;  %v1395_v56 = vmul.f32 0.00390625, %v6122_v58  ;;  %v1632_v25 = vmul.f32 %v6284_v57, %v6284_v57 }
 0x712   :  { %2823 = vmatmul.mubr.bf16.gmra.mxu1 %v6292_v47  ;;  %4758 = vrsqrt.f32 %v1959_v8  ;;  %v2238_v33 = vmul.f32 %v5956_v34, %v2099_v7  ;;  %v2237_v18 = vmul.f32 %v5947_v43, %v2098_v39  ;;  %v1633_v59 = vmul.f32 %v6288_v50, %v6288_v50  ;;  %v672_v8 = vld [vmem:[#allocation17 + $0x14] ss:$8 sm:$0x3]  ;;  %v8333_v7 = vld [vmem:[#allocation42_spill] sm:$0xff]  ;;  %v6342_v41 = vpop.xlane.xlu0 %1763 }
 0x713   :  { %1793 = vadd.xlane.f32.xlu1 %v1792_v36  ;;  %v1339_v4 = vadd.f32 %v8082_v11, %v8083_v13  ;;  %v2375_v58 = vadd.f32 %v5980_v32, %v2236_v63  ;;  %v2374_v29 = vadd.f32 %v5973_v28, %v2235_v49  ;;  %v2239_v40 = vmul.f32 %v5947_v43, %v2100_v24  ;;  %v8345_v50 = vld [vmem:[#allocation40_spill] sm:$0xff] }
 0x714   :  { %v2377_v61 = vadd.f32 %v5980_v32, %v2238_v33  ;;  %v2376_v27 = vadd.f32 %v5973_v28, %v2237_v18  ;;  %v8334_v39 = vunpack.c.l.bf16 %v8333_v7  ;;  %v8336_v52 = vunpack.c.h.bf16 %v8333_v7 }
 0x715   :  { %v4755_v17 = vpop.eup %4754  ;;  %v8338_v33 = vunpack.c.l.bf16 %v5820_v26  ;;  %v2379_v13 = vadd.f32 %v5980_v32, %v2240_v45  ;;  %v681_v63 = vrot.slane %v672_v8, %v5213_v14  ;;  %v1397_v14 = vmul.f32 0.00390625, %v6166_v53 }
 0x716   :  { %v6325_v36 = vsub.f32 %v8334_v39, %v1404_v42  ;;  %v6329_v47 = vsub.f32 %v8336_v52, %v1404_v42  ;;  %v6337_v18 = vpack.c.bf16 %v2377_v61, %v2375_v58  ;;  %v6339_v24 = vpack.c.bf16 %v2376_v27, %v2374_v29  ;;  %v8342_v52 = vld [vmem:[#allocation28_spill] sm:$0xff]  ;;  %v8344_v29 = vld [vmem:[#allocation59_spill] sm:$0xff] }
 0x717   :  { %v6335_v49 = vsub.f32 %v8338_v33, %v1395_v56  ;;  %v4757_v39 = vpop.eup %4756  ;;  %v8341_v42 = vunpack.c.h.bf16 %v5820_v26  ;;  %1340 = vadd.xlane.f32.xlu1 %v1339_v4  ;;  %v677_v11 = vrot.slane %v672_v8, %v8342_v52  ;;  %v1798_v33 = vadd.f32 %v1633_v59, %v1632_v25  ;;  %v8343_v58 = vld [vmem:[#allocation60_spill] sm:$0xff] }
 0x718   :  { %8335 = vst [vmem:[#allocation36_spill] sm:$0xff] %v6325_v36  ;;  %8337 = vst [vmem:[#allocation42_spill] sm:$0xff] %v6329_v47  ;;  %v750_v57 = vpop.f32.mrf.mxu1  ;;  %2832 = vmatprep.mubr.bf16.mxu1 %v6337_v18  ;;  %v2103_v61 = vmul.f32 %v4757_v39, %v8343_v58  ;;  %v2102_v45 = vmul.f32 %v4757_v39, %v8344_v29  ;;  %v2378_v27 = vadd.f32 %v5973_v28, %v2239_v40  ;;  %v6364_v8 = vld [vmem:[#allocation6 + $0x1e0] sm:$0xff]  ;;  %v8348_v39 = vld [vmem:[#allocation39_spill] sm:$0xff] }
 0x719   :  { %8339 = vst [vmem:[#allocation84_spill] sm:$0xff] %v6337_v18  ;;  %8340 = vst [vmem:[#allocation85_spill] sm:$0xff] %v6339_v24  ;;  %v6346_v7 = vsub.f32 %v8341_v42, %v1395_v56  ;;  %v2105_v3 = vmul.f32 %v4755_v17, %v8345_v50  ;;  %v1636_v26 = vmul.f32 %v6325_v36, %v6325_v36  ;;  %v8346_v25 = vunpack.c.l.bf16 %v6308_v54 }
 0x71a   :  { %v1637_v56 = vmul.f32 %v6329_v47, %v6329_v47  ;;  %2833 = vmatmul.mubr.bf16.gmra.mxu1 %v6339_v24  ;;  %v8347_v59 = vunpack.c.h.bf16 %v6308_v54  ;;  %v2104_v42 = vmul.f32 %v4755_v17, %v8348_v39  ;;  %v1406_v40 = vmul.f32 0.00390625, %v6233_v48  ;;  %v752_v50 = vpop.f32.mrf.mxu1  ;;  %v6372_v24 = vld [vmem:[#allocation6 + $0x198] sm:$0xff]  ;;  %v1311_v39 = vpop.xlane.xlu0 %1310 }
 0x71b   :  { %v2242_v58 = vmul.f32 %v5956_v34, %v2103_v61  ;;  %v2241_v29 = vmul.f32 %v5947_v43, %v2102_v45  ;;  %v1618_v18 = vmul.f32 %v6335_v49, %v6335_v49  ;;  %v6375_v52 = vadd.f32 %v750_v57, %v677_v11  ;;  %1799 = vadd.xlane.f32.xlu1 %v1798_v33  ;;  %v8349_v33 = vld [vmem:[#allocation45_spill] sm:$0xff] }
 0x71c   :  { %v1345_v4 = vadd.f32 %v8347_v59, %v8346_v25  ;;  %v6377_v25 = vadd.f32 %v752_v50, %v681_v63  ;;  %v1619_v48 = vmul.f32 %v6346_v7, %v6346_v7  ;;  %v2244_v59 = vmul.f32 %v5956_v34, %v2105_v3 }
 0x71d   :  { %v2381_v17 = vadd.f32 %v5980_v32, %v2242_v58  ;;  %v2380_v61 = vadd.f32 %v5973_v28, %v2241_v29  ;;  %v1804_v57 = vadd.f32 %v1637_v56, %v1636_v26  ;;  %v8096_v11 = vunpack.c.h.bf16 %v6364_v8 }
 0x71e   :  { %v759_v53 = vadd.f32 %v6377_v25, %v6375_v52  ;;  %v8350_v50 = vunpack.c.l.bf16 %v8349_v33  ;;  %v8352_v58 = vunpack.c.h.bf16 %v8349_v33  ;;  %v8357_v9 = vunpack.c.l.bf16 %v8356_v38 }
 0x71f   :  { %v6397_v45 = vpack.c.bf16 %v2381_v17, %v2379_v13  ;;  %v6399_v3 = vpack.c.bf16 %v2380_v61, %v2378_v27  ;;  %v4759_v47 = vpop.eup %4758  ;;  %v8359_v56 = vunpack.c.h.bf16 %v8356_v38  ;;  %1346 = vadd.xlane.f32.xlu1 %v1345_v4  ;;  %v8098_v33 = vunpack.c.h.bf16 %v6372_v24  ;;  %v8361_v13 = vld [vmem:[#allocation63_spill] sm:$0xff]  ;;  %v8362_v27 = vld [vmem:[#allocation62_spill] sm:$0xff] }
 0x720   :  { %v6391_v36 = vsub.f32 %v8350_v50, %v1406_v40  ;;  %v6395_v29 = vsub.f32 %v8352_v58, %v1406_v40  ;;  %v6403_v26 = vsub.f32 %v8357_v9, %v1397_v14  ;;  %760 = vadd.xlane.f32.xlu0 %v759_v53  ;;  %v1777_v50 = vadd.f32 %v1619_v48, %v1618_v18  ;;  %v6421_v4 = vld [vmem:[#allocation6 + $0x1f0] sm:$0xff]  ;;  %v6429_v53 = vld [vmem:[#allocation6 + $0x1a8] sm:$0xff] }
 0x721   :  { %8354 = vst [vmem:[#allocation40_spill] sm:$0xff] %v6397_v45  ;;  %8355 = vst [vmem:[#allocation39_spill] sm:$0xff] %v6399_v3  ;;  %v6407_v63 = vsub.f32 %v8359_v56, %v1397_v14  ;;  %2842 = vmatprep.mubr.bf16.mxu1 %v6397_v45  ;;  %v2107_v40 = vmul.f32 %v4759_v47, %v8361_v13  ;;  %v2106_v17 = vmul.f32 %v4759_v47, %v8362_v27  ;;  %v6432_v56 = vpop.xlane.xlu0 %1769 }
 0x722   :  { %8351 = vst [vmem:[#allocation60_spill] sm:$0xff] %v6391_v36  ;;  %8353 = vst [vmem:[#allocation59_spill] sm:$0xff] %v6395_v29  ;;  %v2243_v61 = vmul.f32 %v5947_v43, %v2104_v42  ;;  %v1408_v9 = vmul.f32 0.00390625, %v6301_v6  ;;  %2843 = vmatmul.mubr.bf16.gmra.mxu1 %v6399_v3  ;;  %v8363_v14 = vunpack.c.l.bf16 %v6364_v8  ;;  %v2383_v18 = vadd.f32 %v5980_v32, %v2244_v59 }
 0x723   :  { %8358 = vst [vmem:[#allocation45_spill] sm:$0xff] %v6403_v26  ;;  %8360 = vst [vmem:[#allocation57_spill] sm:$0xff] %v6407_v63  ;;  %v1640_v48 = vmul.f32 %v6391_v36, %v6391_v36  ;;  %v1641_v47 = vmul.f32 %v6395_v29, %v6395_v29  ;;  %v2246_v42 = vmul.f32 %v5956_v34, %v2107_v40  ;;  %v1399_v58 = vmul.f32 0.00390625, %v6212_v12 }
 0x724   :  { %v1351_v38 = vadd.f32 %v8096_v11, %v8363_v14  ;;  %v2245_v6 = vmul.f32 %v5947_v43, %v2106_v17  ;;  %1805 = vadd.xlane.f32.xlu1 %v1804_v57  ;;  %1778 = vadd.xlane.f32.xlu0 %v1777_v50  ;;  %v8364_v59 = vunpack.c.l.bf16 %v6372_v24  ;;  %v1622_v27 = vmul.f32 %v6403_v26, %v6403_v26  ;;  %v8365_v50 = vld [vmem:[#allocation48_spill] sm:$0xff]  ;;  %v8372_v26 = vld [vmem:[#allocation58_spill] sm:$0xff] }
 0x725   :  { %v1623_v40 = vmul.f32 %v6407_v63, %v6407_v63  ;;  %v2385_v17 = vadd.f32 %v5980_v32, %v2246_v42  ;;  %v2382_v14 = vadd.f32 %v5973_v28, %v2243_v61  ;;  %v8366_v11 = vunpack.c.l.bf16 %v8365_v50 }
 0x726   :  { %v1324_v13 = vadd.f32 %v8098_v33, %v8364_v59  ;;  %v2384_v12 = vadd.f32 %v5973_v28, %v2245_v6  ;;  %v8368_v59 = vunpack.c.h.bf16 %v8365_v50  ;;  %v8107_v45 = vunpack.c.h.bf16 %v6421_v4 }
 0x727   :  { %v6448_v3 = vsub.f32 %v8366_v11, %v1408_v9  ;;  %v8106_v36 = vunpack.c.l.bf16 %v6429_v53  ;;  %v1410_v29 = vmul.f32 0.00390625, %v1311_v39  ;;  %v6456_v42 = vpack.c.bf16 %v2385_v17, %v2383_v18  ;;  %v6487_v17 = vld [vmem:[#allocation6 + $0x1b8] sm:$0xff] }
 0x728   :  { %v6452_v33 = vsub.f32 %v8368_v59, %v1408_v9  ;;  %v6458_v61 = vpack.c.bf16 %v2384_v12, %v2382_v14  ;;  %v1810_v6 = vadd.f32 %v1641_v47, %v1640_v48  ;;  %v8373_v57 = vunpack.c.l.bf16 %v8372_v26  ;;  %1352 = vadd.xlane.f32.xlu1 %v1351_v38  ;;  %1325 = vadd.xlane.f32.xlu0 %v1324_v13  ;;  %v1317_v59 = vpop.xlane.xlu0 %1316  ;;  %v8375_v48 = vld [vmem:[#allocation51_spill] sm:$0xff] }
 0x729   :  { %8367 = vst [vmem:[#allocation63_spill] sm:$0xff] %v6448_v3  ;;  %8370 = vst [vmem:[#allocation48_spill] sm:$0xff] %v6456_v42  ;;  %v8374_v11 = vunpack.c.h.bf16 %v8372_v26  ;;  %v1783_v9 = vadd.f32 %v1623_v40, %v1622_v27  ;;  %v8105_v50 = vunpack.c.h.bf16 %v6429_v53  ;;  %2852 = vmatprep.mubr.bf16.mxu1 %v6456_v42  ;;  %v1644_v39 = vmul.f32 %v6448_v3, %v6448_v3  ;;  %v8391_v42 = vld [vmem:[#allocation64_spill] sm:$0xff]  ;;  %v8405_v3 = vld [vmem:[#allocation66_spill] sm:$0xff] }
 0x72a   :  { %8369 = vst [vmem:[#allocation62_spill] sm:$0xff] %v6452_v33  ;;  %8371 = vst [vmem:[#allocation86_spill] sm:$0xff] %v6458_v61  ;;  %v6462_v63 = vsub.f32 %v8373_v57, %v1399_v58  ;;  %v1645_v18 = vmul.f32 %v6452_v33, %v6452_v33  ;;  %2853 = vmatmul.mubr.bf16.gmra.mxu1 %v6458_v61  ;;  %v8376_v26 = vunpack.c.l.bf16 %v8375_v48  ;;  %v8378_v38 = vunpack.c.h.bf16 %v8375_v48  ;;  %v1290_v61 = vpop.xlane.xlu1 %1289 }
 0x72b   :  { %v6466_v15 = vsub.f32 %v8374_v11, %v1399_v58  ;;  %v8380_v13 = vunpack.c.l.bf16 %v6421_v4  ;;  %v1412_v40 = vmul.f32 0.00390625, %v1317_v59  ;;  %v1401_v14 = vmul.f32 0.00390625, %v6254_v31 }
 0x72c   :  { %v6477_v47 = vsub.f32 %v8376_v26, %v1410_v29  ;;  %v6481_v58 = vsub.f32 %v8378_v38, %v1410_v29  ;;  %1811 = vadd.xlane.f32.xlu1 %v1810_v6  ;;  %1784 = vadd.xlane.f32.xlu0 %v1783_v9  ;;  %v1330_v12 = vadd.f32 %v8105_v50, %v8106_v36  ;;  %v8381_v9 = vld [vmem:[#allocation54_spill] sm:$0xff]  ;;  %v8386_v36 = vld [vmem:[#allocation61_spill] sm:$0xff] }
 0x72d   :  { %v1357_v27 = vadd.f32 %v8107_v45, %v8380_v13  ;;  %v1626_v29 = vmul.f32 %v6462_v63, %v6462_v63  ;;  %v1627_v57 = vmul.f32 %v6466_v15, %v6466_v15  ;;  %v1816_v11 = vadd.f32 %v1645_v18, %v1644_v39 }
 0x72e   :  { %8377 = vst [vmem:[#allocation58_spill] sm:$0xff] %v6477_v47  ;;  %8379 = vst [vmem:[#allocation51_spill] sm:$0xff] %v6481_v58  ;;  %v1648_v31 = vmul.f32 %v6477_v47, %v6477_v47  ;;  %v1649_v6 = vmul.f32 %v6481_v58, %v6481_v58  ;;  %v8382_v26 = vunpack.c.l.bf16 %v8381_v9  ;;  %v8384_v13 = vunpack.c.h.bf16 %v8381_v9  ;;  %v8399_v58 = vld [vmem:[#allocation43_spill] sm:$0xff] }
 0x72f   :  { %v8387_v39 = vunpack.c.l.bf16 %v8386_v36  ;;  %v8388_v45 = vunpack.c.h.bf16 %v8386_v36  ;;  %v1789_v59 = vadd.f32 %v1627_v57, %v1626_v29 }
 0x730   :  { %v6506_v38 = vsub.f32 %v8382_v26, %v1412_v40  ;;  %v6510_v50 = vsub.f32 %v8384_v13, %v1412_v40  ;;  %1358 = vadd.xlane.f32.xlu1 %v1357_v27  ;;  %1331 = vadd.xlane.f32.xlu0 %v1330_v12  ;;  %v8389_v40 = vunpack.c.l.bf16 %v6487_v17  ;;  %v8390_v13 = vunpack.c.h.bf16 %v6487_v17  ;;  %v6532_v12 = vld [vmem:[#allocation6 + $0x1c8] sm:$0xff] }
 0x731   :  { %v6514_v18 = vsub.f32 %v8387_v39, %v1401_v14  ;;  %v6518_v48 = vsub.f32 %v8388_v45, %v1401_v14  ;;  %v1822_v27 = vadd.f32 %v1649_v6, %v1648_v31  ;;  %v1403_v14 = vmul.f32 0.00390625, %v1290_v61  ;;  %v6552_v6 = vld [vmem:[#allocation6 + $0x1d8] sm:$0xff] }
 0x732   :  { %8383 = vst [vmem:[#allocation54_spill] sm:$0xff] %v6506_v38  ;;  %8385 = vst [vmem:[#allocation87_spill] sm:$0xff] %v6510_v50  ;;  %v1652_v26 = vmul.f32 %v6506_v38, %v6506_v38  ;;  %v1653_v9 = vmul.f32 %v6510_v50, %v6510_v50  ;;  %v1336_v39 = vadd.f32 %v8390_v13, %v8389_v40  ;;  %v8116_v57 = vunpack.c.l.bf16 %v6532_v12 }
 0x733   :  { %v1630_v36 = vmul.f32 %v6514_v18, %v6514_v18  ;;  %v1631_v45 = vmul.f32 %v6518_v48, %v6518_v48  ;;  %v8392_v38 = vunpack.c.l.bf16 %v8391_v42  ;;  %v8393_v13 = vunpack.c.h.bf16 %v8391_v42 }
 0x734   :  { %1817 = vadd.xlane.f32.xlu1 %v1816_v11  ;;  %1790 = vadd.xlane.f32.xlu0 %v1789_v59  ;;  %v1828_v29 = vadd.f32 %v1653_v9, %v1652_v26  ;;  %v8115_v11 = vunpack.c.h.bf16 %v6532_v12  ;;  %v8113_v26 = vunpack.c.h.bf16 %v6552_v6 }
 0x735   :  { %v6537_v40 = vsub.f32 %v8392_v38, %v1403_v14  ;;  %v6541_v50 = vsub.f32 %v8393_v13, %v1403_v14  ;;  %v1795_v47 = vadd.f32 %v1631_v45, %v1630_v36  ;;  %v8114_v38 = vunpack.c.l.bf16 %v6552_v6 }
 0x736   :  { %v1342_v31 = vadd.f32 %v8115_v11, %v8116_v57  ;;  %v1898_v36 = vmul.f32 0.00390625, %v6210_v44  ;;  %v6584_v57 = vld [vmem:[#allocation6 + $0x1f8] sm:$0xff] }
 0x737   :  { %v1634_v61 = vmul.f32 %v6537_v40, %v6537_v40  ;;  %v1635_v59 = vmul.f32 %v6541_v50, %v6541_v50  ;;  %v1348_v9 = vadd.f32 %v8113_v26, %v8114_v38 }
 0x738   :  { %1823 = vadd.xlane.f32.xlu1 %v1822_v27  ;;  %1337 = vadd.xlane.f32.xlu0 %v1336_v39  ;;  %v1962_v45 = vadd.f32 1e-05, %v1898_v36 }
 0x739   :  { %v1801_v42 = vadd.f32 %v1635_v59, %v1634_v61  ;;  %v6562_v59 = vld [vmem:[#allocation6 + $0x1e8] sm:$0xff] }
 0x73c   :  { %1829 = vadd.xlane.f32.xlu1 %v1828_v29  ;;  %1796 = vadd.xlane.f32.xlu0 %v1795_v47  ;;  %v1896_v47 = vmul.f32 0.00390625, %v6145_v46 }
 0x73e   :  { %v1960_v39 = vadd.f32 1e-05, %v1896_v47 }
 0x740   :  { %1343 = vadd.xlane.f32.xlu0 %v1342_v31  ;;  %4760 = vrsqrt.f32 %v1960_v39  ;;  %v1900_v31 = vmul.f32 0.00390625, %v6267_v2  ;;  %v8119_v39 = vunpack.c.l.bf16 %v6562_v59  ;;  %v8118_v2 = vunpack.c.h.bf16 %v6562_v59 }
 0x741   :  { %4762 = vrsqrt.f32 %v1962_v45 }
 0x742   :  { %v1354_v11 = vadd.f32 %v8118_v2, %v8119_v39 }
 0x744   :  { %1802 = vadd.xlane.f32.xlu0 %v1801_v42  ;;  %v8394_v42 = vld [vmem:[#allocation65_spill] sm:$0xff] }
 0x745   :  { %v8397_v46 = vunpack.c.h.bf16 %v8394_v42 }
 0x748   :  { %1349 = vadd.xlane.f32.xlu0 %v1348_v9  ;;  %v8395_v9 = vunpack.c.l.bf16 %v8394_v42  ;;  %v8398_v42 = vld [vmem:[#allocation44_spill] sm:$0xff] }
 0x74d   :  { %v4761_v36 = vpop.eup %4760 }
 0x75b   :  { %v1749_v27 = vpop.xlane.xlu1 %1748 }
 0x75c   :  { %v1897_v14 = vmul.f32 0.00390625, %v1749_v27 }
 0x75e   :  { %v1961_v29 = vadd.f32 1e-05, %v1897_v14 }
 0x75f   :  { %v1296_v13 = vpop.xlane.xlu1 %1295 }
 0x760   :  { %4764 = vrsqrt.f32 %v1961_v29  ;;  %v1405_v61 = vmul.f32 0.00390625, %v1296_v13  ;;  %v1964_v29 = vadd.f32 1e-05, %v1900_v31  ;;  %v1902_v31 = vmul.f32 0.00390625, %v6342_v41 }
 0x761   :  { %v8126_v41 = vunpack.c.l.bf16 %v6584_v57 }
 0x762   :  { %v6567_v26 = vsub.f32 %v8395_v9, %v1405_v61  ;;  %v6571_v47 = vsub.f32 %v8397_v46, %v1405_v61  ;;  %v2109_v61 = vmul.f32 %v4761_v36, %v8398_v42 }
 0x763   :  { %v1755_v44 = vpop.xlane.xlu1 %1754 }
 0x764   :  { %8396 = vst [vmem:[#allocation61_spill] sm:$0xff] %v6567_v26  ;;  %v1638_v45 = vmul.f32 %v6567_v26, %v6567_v26  ;;  %v1639_v27 = vmul.f32 %v6571_v47, %v6571_v47  ;;  %v1899_v14 = vmul.f32 0.00390625, %v1755_v44  ;;  %v2108_v44 = vmul.f32 %v4761_v36, %v8399_v58 }
 0x766   :  { %v1963_v13 = vadd.f32 1e-05, %v1899_v14  ;;  %v1807_v9 = vadd.f32 %v1639_v27, %v1638_v45  ;;  %v8400_v45 = vunpack.c.l.bf16 %v5953_v35  ;;  %v8402_v14 = vunpack.c.h.bf16 %v5953_v35 }
 0x767   :  { %v1302_v38 = vpop.xlane.xlu1 %1301  ;;  %v2247_v35 = vmul.f32 %v5947_v43, %v2108_v44 }
 0x768   :  { %4766 = vrsqrt.f32 %v1963_v13  ;;  %v1407_v46 = vmul.f32 0.00390625, %v1302_v38  ;;  %1808 = vadd.xlane.f32.xlu0 %v1807_v9  ;;  %v2248_v13 = vmul.f32 %v5956_v34, %v2109_v61  ;;  %v4763_v9 = vpop.eup %4762  ;;  %v8404_v61 = vld [vmem:[#allocation67_spill] sm:$0xff] }
 0x769   :  { %4768 = vrsqrt.f32 %v1964_v29  ;;  %v8125_v29 = vunpack.c.h.bf16 %v6584_v57 }
 0x76a   :  { %v6590_v27 = vsub.f32 %v8400_v45, %v1407_v46  ;;  %v6594_v38 = vsub.f32 %v8402_v14, %v1407_v46  ;;  %v1966_v46 = vadd.f32 1e-05, %v1902_v31  ;;  %v2387_v26 = vadd.f32 %v5980_v32, %v2248_v13  ;;  %v8406_v31 = vld [vmem:[#allocation47_spill] sm:$0xff] }
 0x76b   :  { %v1904_v13 = vmul.f32 0.00390625, %v6432_v56 }
 0x76c   :  { %8401 = vst [vmem:[#allocation64_spill] sm:$0xff] %v6590_v27  ;;  %8403 = vst [vmem:[#allocation65_spill] sm:$0xff] %v6594_v38  ;;  %v1642_v42 = vmul.f32 %v6590_v27, %v6590_v27  ;;  %v1643_v58 = vmul.f32 %v6594_v38, %v6594_v38  ;;  %v1761_v36 = vpop.xlane.xlu1 %1760  ;;  %1355 = vadd.xlane.f32.xlu0 %v1354_v11  ;;  %v1360_v11 = vadd.f32 %v8125_v29, %v8126_v41 }
 0x76d   :  { %v4765_v45 = vpop.eup %4764  ;;  %v1901_v2 = vmul.f32 0.00390625, %v1761_v36  ;;  %v8408_v29 = vunpack.c.l.bf16 %v6009_v30 }
 0x76e   :  { %v1813_v14 = vadd.f32 %v1643_v58, %v1642_v42  ;;  %v2111_v39 = vmul.f32 %v4765_v45, %v8404_v61  ;;  %v2110_v33 = vmul.f32 %v4765_v45, %v8405_v3  ;;  %v2113_v42 = vmul.f32 %v4763_v9, %v8406_v31 }
 0x76f   :  { %v1965_v27 = vadd.f32 1e-05, %v1901_v2  ;;  %v2386_v3 = vadd.f32 %v5973_v28, %v2247_v35  ;;  %v8407_v2 = vld [vmem:[#allocation46_spill] sm:$0xff] }
 0x770   :  { %v1308_v38 = vpop.xlane.xlu1 %1307  ;;  %1814 = vadd.xlane.f32.xlu0 %v1813_v14  ;;  %v2250_v36 = vmul.f32 %v5956_v34, %v2111_v39  ;;  %v2249_v44 = vmul.f32 %v5947_v43, %v2110_v33  ;;  %v2112_v45 = vmul.f32 %v4763_v9, %v8407_v2  ;;  %v8409_v33 = vunpack.c.h.bf16 %v6009_v30 }
 0x771   :  { %4770 = vrsqrt.f32 %v1965_v27  ;;  %v1409_v58 = vmul.f32 0.00390625, %v1308_v38  ;;  %v2252_v56 = vmul.f32 %v5956_v34, %v2113_v42 }
 0x772   :  { %4772 = vrsqrt.f32 %v1966_v46  ;;  %v2389_v14 = vadd.f32 %v5980_v32, %v2250_v36  ;;  %v2388_v61 = vadd.f32 %v5973_v28, %v2249_v44  ;;  %v2251_v30 = vmul.f32 %v5947_v43, %v2112_v45 }
 0x773   :  { %v6621_v39 = vsub.f32 %v8408_v29, %v1409_v58  ;;  %v6625_v31 = vsub.f32 %v8409_v33, %v1409_v58  ;;  %v1968_v44 = vadd.f32 1e-05, %v1904_v13  ;;  %v8413_v58 = vld [vmem:[#allocation68_spill] sm:$0xff]  ;;  %v2391_v45 = vadd.f32 %v5980_v32, %v2252_v56 }
 0x774   :  { %v1767_v27 = vpop.xlane.xlu1 %1766  ;;  %1361 = vadd.xlane.f32.xlu0 %v1360_v11  ;;  %v6627_v38 = vpack.c.bf16 %v2389_v14, %v2387_v26  ;;  %v6629_v9 = vpack.c.bf16 %v2388_v61, %v2386_v3  ;;  %v8412_v11 = vld [vmem:[#allocation69_spill] sm:$0xff]  ;;  %v2390_v13 = vadd.f32 %v5973_v28, %v2251_v30 }
 0x775   :  { %v4767_v35 = vpop.eup %4766  ;;  %v1646_v46 = vmul.f32 %v6621_v39, %v6621_v39  ;;  %v1647_v29 = vmul.f32 %v6625_v31, %v6625_v31  ;;  %v1903_v36 = vmul.f32 0.00390625, %v1767_v27  ;;  %v8421_v30 = vld [vmem:[#allocation49_spill] sm:$0xff] }
 0x776   :  { %8410 = vst [vmem:[#allocation44_spill] sm:$0xff] %v6627_v38  ;;  %8411 = vst [vmem:[#allocation43_spill] sm:$0xff] %v6629_v9  ;;  %2862 = vmatprep.mubr.bf16.mxu1 %v6627_v38  ;;  %v2115_v26 = vmul.f32 %v4767_v35, %v8412_v11  ;;  %v2114_v3 = vmul.f32 %v4767_v35, %v8413_v58  ;;  %v4769_v2 = vpop.eup %4768  ;;  %v8414_v11 = vld [vmem:[#allocation50_spill] sm:$0xff] }
 0x777   :  { %v1967_v14 = vadd.f32 1e-05, %v1903_v36  ;;  %2863 = vmatmul.mubr.bf16.gmra.mxu1 %v6629_v9  ;;  %v1819_v42 = vadd.f32 %v1647_v29, %v1646_v46  ;;  %v2117_v58 = vmul.f32 %v4769_v2, %v8414_v11  ;;  %v8415_v46 = vunpack.c.l.bf16 %v6050_v20 }
 0x778   :  { %v1314_v61 = vpop.xlane.xlu1 %1313  ;;  %v2254_v33 = vmul.f32 %v5956_v34, %v2115_v26  ;;  %v2253_v41 = vmul.f32 %v5947_v43, %v2114_v3  ;;  %v8417_v26 = vunpack.c.h.bf16 %v6050_v20 }
 0x779   :  { %4774 = vrsqrt.f32 %v1967_v14  ;;  %v1411_v27 = vmul.f32 0.00390625, %v1314_v61  ;;  %1820 = vadd.xlane.f32.xlu0 %v1819_v42  ;;  %v2256_v20 = vmul.f32 %v5956_v34, %v2117_v58 }
 0x77a   :  { %4776 = vrsqrt.f32 %v1968_v44  ;;  %v2393_v35 = vadd.f32 %v5980_v32, %v2254_v33  ;;  %v2392_v36 = vadd.f32 %v5973_v28, %v2253_v41  ;;  %v2116_v44 = vmul.f32 %v4769_v2, %v8421_v30 }
 0x77b   :  { %v6650_v29 = vsub.f32 %v8415_v46, %v1411_v27  ;;  %v6654_v3 = vsub.f32 %v8417_v26, %v1411_v27  ;;  %v2395_v58 = vadd.f32 %v5980_v32, %v2256_v20 }
 0x77c   :  { %v1773_v14 = vpop.xlane.xlu1 %1772  ;;  %v6656_v42 = vpack.c.bf16 %v2393_v35, %v2391_v45  ;;  %v6658_v56 = vpack.c.bf16 %v2392_v36, %v2390_v13  ;;  %v2255_v36 = vmul.f32 %v5947_v43, %v2116_v44 }
 0x77d   :  { %8416 = vst [vmem:[#allocation67_spill] sm:$0xff] %v6650_v29  ;;  %8418 = vst [vmem:[#allocation66_spill] sm:$0xff] %v6654_v3  ;;  %v1650_v41 = vmul.f32 %v6650_v29, %v6650_v29  ;;  %v1651_v61 = vmul.f32 %v6654_v3, %v6654_v3  ;;  %v1905_v33 = vmul.f32 0.00390625, %v1773_v14  ;;  %v804_v29 = vld [vmem:[#allocation12 + $0x800] sm:$0xff] }
 0x77e   :  { %8419 = vst [vmem:[#allocation47_spill] sm:$0xff] %v6656_v42  ;;  %8420 = vst [vmem:[#allocation46_spill] sm:$0xff] %v6658_v56  ;;  %v4771_v11 = vpop.eup %4770  ;;  %2872 = vmatprep.mubr.bf16.mxu1 %v6656_v42 }
 0x77f   :  { %v4773_v27 = vpop.eup %4772  ;;  %v1969_v46 = vadd.f32 1e-05, %v1905_v33  ;;  %2873 = vmatmul.mubr.bf16.gmra.mxu1 %v6658_v56  ;;  %v1825_v45 = vadd.f32 %v1651_v61, %v1650_v41  ;;  %v2119_v13 = vmul.f32 %v4771_v11, %v6005_v1  ;;  %v2118_v2 = vmul.f32 %v4771_v11, %v6001_v0  ;;  %v8422_v33 = vld [vmem:[#allocation53_spill] sm:$0xff]  ;;  %v820_v56 = vld [vmem:[#allocation12 + $0x880] sm:$0xff] }
 0x780   :  { %v1320_v35 = vpop.xlane.xlu1 %1319  ;;  %v2121_v42 = vmul.f32 %v4773_v27, %v8422_v33  ;;  %v8423_v41 = vunpack.c.l.bf16 %v6094_v16  ;;  %v8425_v0 = vunpack.c.h.bf16 %v6094_v16 }
 0x781   :  { %4778 = vrsqrt.f32 %v1969_v46  ;;  %v1413_v26 = vmul.f32 0.00390625, %v1320_v35  ;;  %1826 = vadd.xlane.f32.xlu0 %v1825_v45  ;;  %v2258_v14 = vmul.f32 %v5956_v34, %v2119_v13  ;;  %v2257_v30 = vmul.f32 %v5947_v43, %v2118_v2  ;;  %v8427_v13 = vld [vmem:[#allocation52_spill] sm:$0xff] }
 0x782   :  { %v2394_v45 = vadd.f32 %v5973_v28, %v2255_v36  ;;  %v2120_v20 = vmul.f32 %v4773_v27, %v8427_v13 }
 0x783   :  { %v6677_v61 = vsub.f32 %v8423_v41, %v1413_v26  ;;  %v6681_v1 = vsub.f32 %v8425_v0, %v1413_v26  ;;  %v2397_v44 = vadd.f32 %v5980_v32, %v2258_v14  ;;  %v2396_v11 = vadd.f32 %v5973_v28, %v2257_v30 }
 0x784   :  { %v6685_v46 = vpop.xlane.xlu1 %1775  ;;  %v2260_v14 = vmul.f32 %v5956_v34, %v2121_v42  ;;  %v2259_v13 = vmul.f32 %v5947_v43, %v2120_v20 }
 0x785   :  { %8424 = vst [vmem:[#allocation69_spill] sm:$0xff] %v6677_v61  ;;  %8426 = vst [vmem:[#allocation68_spill] sm:$0xff] %v6681_v1  ;;  %v1654_v2 = vmul.f32 %v6677_v61, %v6677_v61  ;;  %v1655_v35 = vmul.f32 %v6681_v1, %v6681_v1  ;;  %v6693_v33 = vpack.c.bf16 %v2397_v44, %v2395_v58 }
 0x786   :  { %v4775_v16 = vpop.eup %4774  ;;  %v6695_v26 = vpack.c.bf16 %v2396_v11, %v2394_v45  ;;  %v2399_v42 = vadd.f32 %v5980_v32, %v2260_v14  ;;  %v8430_v45 = vld [vmem:[#allocation56_spill] sm:$0xff] }
 0x787   :  { %8428 = vst [vmem:[#allocation50_spill] sm:$0xff] %v6693_v33  ;;  %v4777_v30 = vpop.eup %4776  ;;  %2882 = vmatprep.mubr.bf16.mxu1 %v6693_v33  ;;  %v1831_v41 = vadd.f32 %v1655_v35, %v1654_v2  ;;  %v2123_v36 = vmul.f32 %v4775_v16, %v6046_v21  ;;  %v2122_v27 = vmul.f32 %v4775_v16, %v6042_v19  ;;  %v8431_v2 = vunpack.c.l.bf16 %v6141_v51 }
 0x788   :  { %8429 = vst [vmem:[#allocation49_spill] sm:$0xff] %v6695_v26  ;;  %v1323_v0 = vpop.xlane.xlu1 %1322  ;;  %2883 = vmatmul.mubr.bf16.gmra.mxu1 %v6695_v26  ;;  %v2125_v33 = vmul.f32 %v4777_v30, %v8430_v45  ;;  %v8433_v19 = vunpack.c.h.bf16 %v6141_v51 }
 0x789   :  { %v1414_v58 = vmul.f32 0.00390625, %v1323_v0  ;;  %1832 = vadd.xlane.f32.xlu0 %v1831_v41  ;;  %v2262_v44 = vmul.f32 %v5956_v34, %v2123_v36  ;;  %v2261_v11 = vmul.f32 %v5947_v43, %v2122_v27  ;;  %v2398_v36 = vadd.f32 %v5973_v28, %v2259_v13  ;;  %v8435_v27 = vld [vmem:[#allocation55_spill] sm:$0xff] }
 0x78a   :  { %v2124_v14 = vmul.f32 %v4777_v30, %v8435_v27 }
 0x78b   :  { %v6709_v21 = vsub.f32 %v8431_v2, %v1414_v58  ;;  %v6713_v35 = vsub.f32 %v8433_v19, %v1414_v58  ;;  %v2401_v20 = vadd.f32 %v5980_v32, %v2262_v44  ;;  %v2400_v16 = vadd.f32 %v5973_v28, %v2261_v11 }
 0x78c   :  { %v6717_v41 = vpop.xlane.xlu1 %1781  ;;  %v2264_v44 = vmul.f32 %v5956_v34, %v2125_v33  ;;  %v2263_v27 = vmul.f32 %v5947_v43, %v2124_v14 }
 0x78d   :  { %8432 = vst [vmem:[#allocation53_spill] sm:$0xff] %v6709_v21  ;;  %8434 = vst [vmem:[#allocation52_spill] sm:$0xff] %v6713_v35  ;;  %v1656_v0 = vmul.f32 %v6709_v21, %v6709_v21  ;;  %v1657_v45 = vmul.f32 %v6713_v35, %v6713_v35  ;;  %v6725_v2 = vpack.c.bf16 %v2401_v20, %v2399_v42 }
 0x78e   :  { %v4779_v51 = vpop.eup %4778  ;;  %v6727_v58 = vpack.c.bf16 %v2400_v16, %v2398_v36  ;;  %v2403_v33 = vadd.f32 %v5980_v32, %v2264_v44  ;;  %v8438_v16 = vunpack.c.l.bf16 %v6188_v60 }
 0x78f   :  { %8436 = vst [vmem:[#allocation56_spill] sm:$0xff] %v6725_v2  ;;  %2892 = vmatprep.mubr.bf16.mxu1 %v6725_v2  ;;  %v1834_v11 = vadd.f32 %v1657_v45, %v1656_v0  ;;  %v2127_v13 = vmul.f32 %v4779_v51, %v6090_v62  ;;  %v2126_v30 = vmul.f32 %v4779_v51, %v6086_v37  ;;  %v8440_v62 = vunpack.c.h.bf16 %v6188_v60  ;;  %v821_v2 = vld [vmem:[#allocation12 + $0x888] sm:$0xff] }
 0x790   :  { %8437 = vst [vmem:[#allocation55_spill] sm:$0xff] %v6727_v58  ;;  %v1329_v19 = vpop.xlane.xlu1 %1328  ;;  %2893 = vmatmul.mubr.bf16.gmra.mxu1 %v6727_v58  ;;  %v2402_v51 = vadd.f32 %v5973_v28, %v2263_v27  ;;  %v832_v27 = vld [vmem:[#allocation12 + $0x8e0] sm:$0xff] }
 0x791   :  { %v1416_v26 = vmul.f32 0.00390625, %v1329_v19  ;;  %1835 = vadd.xlane.f32.xlu0 %v1834_v11  ;;  %v2266_v42 = vmul.f32 %v5956_v34, %v2127_v13  ;;  %v2265_v20 = vmul.f32 %v5947_v43, %v2126_v30  ;;  %v834_v19 = vld [vmem:[#allocation12 + $0x8f0] sm:$0xff] }
 0x793   :  { %v6740_v36 = vsub.f32 %v8438_v16, %v1416_v26  ;;  %v6744_v37 = vsub.f32 %v8440_v62, %v1416_v26  ;;  %v2405_v0 = vadd.f32 %v5980_v32, %v2266_v42  ;;  %v2404_v14 = vadd.f32 %v5973_v28, %v2265_v20  ;;  %v835_v26 = vld [vmem:[#allocation12 + $0x8f8] sm:$0xff]  ;;  %v833_v42 = vld [vmem:[#allocation12 + $0x8e8] sm:$0xff] }
 0x794   :  { %v6748_v45 = vpop.xlane.xlu1 %1787  ;;  %881 = vmatprep.subr.mxu0 %v835_v26  ;;  %v831_v62 = vld [vmem:[#allocation12 + $0x8d8] sm:$0xff] }
 0x795   :  { %8439 = vst [vmem:[#allocation88_spill] sm:$0xff] %v6740_v36  ;;  %8441 = vst [vmem:[#allocation89_spill] sm:$0xff] %v6744_v37  ;;  %v1660_v11 = vmul.f32 %v6740_v36, %v6740_v36  ;;  %v1661_v44 = vmul.f32 %v6744_v37, %v6744_v37  ;;  %v6755_v13 = vpack.c.bf16 %v2405_v0, %v2403_v33  ;;  %882 = vmatpush1.msra.mxu0 %v834_v19  ;;  %v830_v19 = vld [vmem:[#allocation12 + $0x8d0] sm:$0xff] }
 0x796   :  { %v6757_v30 = vpack.c.bf16 %v2404_v14, %v2402_v51  ;;  %883 = vmatprep.subr.mxu0 %v833_v42  ;;  %v8444_v33 = vunpack.c.l.bf16 %v6231_v22  ;;  %v8446_v14 = vunpack.c.h.bf16 %v6231_v22  ;;  %v829_v42 = vld [vmem:[#allocation12 + $0x8c8] sm:$0xff] }
 0x797   :  { %8442 = vst [vmem:[#allocation90_spill] sm:$0xff] %v6755_v13  ;;  %2902 = vmatprep.mubr.bf16.mxu1 %v6755_v13  ;;  %v1840_v60 = vadd.f32 %v1661_v44, %v1660_v11  ;;  %884 = vmatpush1.msra.mxu0 %v832_v27  ;;  %v826_v27 = vld [vmem:[#allocation12 + $0x8b0] sm:$0xff]  ;;  %v8449_v13 = vunpack.c.l.bf16 %v6276_v23 }
 0x798   :  { %8443 = vst [vmem:[#allocation91_spill] sm:$0xff] %v6757_v30  ;;  %v1335_v20 = vpop.xlane.xlu1 %1334  ;;  %2903 = vmatmul.mubr.bf16.gmra.mxu1 %v6757_v30  ;;  %885 = vmatprep.subr.mxu0 %v831_v62  ;;  %v827_v30 = vld [vmem:[#allocation12 + $0x8b8] sm:$0xff]  ;;  %v1906_v62 = vmul.f32 0.00390625, %v6685_v46 }
 0x799   :  { %v1418_v16 = vmul.f32 0.00390625, %v1335_v20  ;;  %1841 = vadd.xlane.f32.xlu0 %v1840_v60  ;;  %v828_v20 = vld [vmem:[#allocation12 + $0x8c0] sm:$0xff]  ;;  %886 = vmatpush1.msra.mxu0 %v830_v19 }
 0x79a   :  { %887 = vmatprep.subr.mxu0 %v829_v42  ;;  %v823_v42 = vld [vmem:[#allocation12 + $0x898] sm:$0xff] }
 0x79b   :  { %v6763_v0 = vsub.f32 %v8444_v33, %v1418_v16  ;;  %v6767_v51 = vsub.f32 %v8446_v14, %v1418_v16  ;;  %888 = vmatpush1.msra.mxu0 %v828_v20  ;;  %v825_v14 = vld [vmem:[#allocation12 + $0x8a8] sm:$0xff] }
 0x79c   :  { %v6769_v11 = vpop.xlane.xlu1 %1793  ;;  %889 = vmatprep.subr.mxu0 %v827_v30 }
 0x79d   :  { %8445 = vst [vmem:[#allocation92_spill] sm:$0xff] %v6763_v0  ;;  %8447 = vst [vmem:[#allocation93_spill] sm:$0xff] %v6767_v51  ;;  %v1664_v44 = vmul.f32 %v6763_v0, %v6763_v0  ;;  %v1665_v60 = vmul.f32 %v6767_v51, %v6767_v51  ;;  %890 = vmatpush1.msra.mxu0 %v826_v27  ;;  %v822_v27 = vld [vmem:[#allocation12 + $0x890] sm:$0xff]  ;;  %v813_v51 = vld [vmem:[#allocation12 + $0x848] sm:$0xff] }
 0x79e   :  { %891 = vmatprep.subr.mxu0 %v825_v14 }
 0x79f   :  { %v1846_v26 = vadd.f32 %v1665_v60, %v1664_v44  ;;  %v8451_v44 = vunpack.c.h.bf16 %v6276_v23  ;;  %v1970_v23 = vadd.f32 1e-05, %v1906_v62  ;;  %v818_v62 = vld [vmem:[#allocation12 + $0x870] sm:$0xff] }
 0x7a0   :  { %v1341_v33 = vpop.xlane.xlu1 %1340 }
 0x7a1   :  { %v1420_v22 = vmul.f32 0.00390625, %v1341_v33  ;;  %1847 = vadd.xlane.f32.xlu0 %v1846_v26  ;;  %v6775_v16 = vpop.f32.mrf.mxu1  ;;  %v824_v26 = vld [vmem:[#allocation12 + $0x8a0] sm:$0xff]  ;;  %4780 = vrsqrt.f32 %v1970_v23 }
 0x7a2   :  { %8448 = vst [vmem:[#allocation94_spill] sm:$0xff] %v6775_v16  ;;  %892 = vmatpush1.msra.mxu0 %v824_v26  ;;  %v817_v26 = vld [vmem:[#allocation12 + $0x868] sm:$0xff] }
 0x7a3   :  { %v6780_v58 = vsub.f32 %v8449_v13, %v1420_v22  ;;  %v6784_v60 = vsub.f32 %v8451_v44, %v1420_v22  ;;  %v6786_v19 = vpop.f32.mrf.mxu1  ;;  %893 = vmatprep.subr.mxu0 %v823_v42 }
 0x7a4   :  { %v6788_v33 = vpop.xlane.xlu1 %1799  ;;  %894 = vmatpush1.msra.mxu0 %v822_v27 }
 0x7a5   :  { %8450 = vst [vmem:[#allocation95_spill] sm:$0xff] %v6780_v58  ;;  %8452 = vst [vmem:[#allocation96_spill] sm:$0xff] %v6784_v60  ;;  %v1668_v46 = vmul.f32 %v6780_v58, %v6780_v58  ;;  %v1669_v20 = vmul.f32 %v6784_v60, %v6784_v60  ;;  %v6794_v13 = vpop.f32.mrf.mxu1  ;;  %v819_v58 = vld [vmem:[#allocation12 + $0x878] sm:$0xff]  ;;  %895 = vmatprep.subr.mxu0 %v821_v2  ;;  %v816_v2 = vld [vmem:[#allocation12 + $0x860] sm:$0xff] }
 0x7a6   :  { %896 = vmatpush1.msra.mxu0 %v820_v56  ;;  %v1908_v56 = vmul.f32 0.00390625, %v6717_v41 }
 0x7a7   :  { %v6798_v30 = vpop.f32.mrf.mxu1  ;;  %v1852_v44 = vadd.f32 %v1669_v20, %v1668_v46  ;;  %v8453_v46 = vunpack.c.l.bf16 %v6308_v54  ;;  %v8455_v20 = vunpack.c.h.bf16 %v6308_v54  ;;  %897 = vmatprep.subr.mxu0 %v819_v58 }
 0x7a8   :  { %v1347_v9 = vpop.xlane.xlu1 %1346  ;;  %898 = vmatpush1.msra.mxu0 %v818_v62  ;;  %v1972_v36 = vadd.f32 1e-05, %v1908_v56  ;;  %v8461_v56 = vunpack.c.h.bf16 %v6364_v8 }
 0x7a9   :  { %v761_v38 = vpop.xlane.xlu0 %760  ;;  %v1422_v60 = vmul.f32 0.00390625, %v1347_v9  ;;  %1853 = vadd.xlane.f32.xlu0 %v1852_v44  ;;  %v6800_v14 = vpop.f32.mrf.mxu1  ;;  %899 = vmatprep.subr.mxu0 %v817_v26 }
 0x7aa   :  { %v762_v0 = vmul.f32 0.00390625, %v761_v38  ;;  %900 = vmatpush1.msra.mxu0 %v816_v2  ;;  %v811_v2 = vld [vmem:[#allocation12 + $0x838] sm:$0xff] }
 0x7ab   :  { %v6804_v42 = vsub.f32 %v8453_v46, %v1422_v60  ;;  %v6808_v22 = vsub.f32 %v8455_v20, %v1422_v60  ;;  %v6816_v9 = vpop.f32.mrf.mxu1  ;;  %v815_v46 = vld [vmem:[#allocation12 + $0x858] sm:$0xff]  ;;  %v810_v60 = vld [vmem:[#allocation12 + $0x830] sm:$0xff] }
 0x7ac   :  { %v6811_v27 = vsub.f32 %v6375_v52, %v762_v0  ;;  %v6814_v38 = vsub.f32 %v6377_v25, %v762_v0  ;;  %901 = vmatprep.subr.mxu0 %v815_v46  ;;  %v8459_v46 = vunpack.c.l.bf16 %v6364_v8 }
 0x7ad   :  { %8454 = vst [vmem:[#allocation97_spill] sm:$0xff] %v6804_v42  ;;  %8456 = vst [vmem:[#allocation98_spill] sm:$0xff] %v6808_v22  ;;  %v6819_v23 = vpop.xlane.xlu1 %1805  ;;  %v1779_v44 = vpop.xlane.xlu0 %1778  ;;  %v1672_v54 = vmul.f32 %v6804_v42, %v6804_v42  ;;  %v1673_v52 = vmul.f32 %v6808_v22, %v6808_v22  ;;  %v814_v22 = vld [vmem:[#allocation12 + $0x850] sm:$0xff] }
 0x7ae   :  { %8457 = vst [vmem:[#allocation99_spill] sm:$0xff] %v6811_v27  ;;  %8458 = vst [vmem:[#allocation100_spill] sm:$0xff] %v6814_v38  ;;  %v765_v25 = vmul.f32 %v6811_v27, %v6811_v27  ;;  %v766_v58 = vmul.f32 %v6814_v38, %v6814_v38  ;;  %v6829_v0 = vpop.f32.mrf.mxu1  ;;  %v1907_v41 = vmul.f32 0.00390625, %v1779_v44  ;;  %902 = vmatpush1.msra.mxu0 %v814_v22  ;;  %v812_v27 = vld [vmem:[#allocation12 + $0x840] sm:$0xff]  ;;  %v8463_v22 = vunpack.c.l.bf16 %v6372_v24 }
 0x7af   :  { %v1858_v20 = vadd.f32 %v1673_v52, %v1672_v54  ;;  %903 = vmatprep.subr.mxu0 %v813_v51  ;;  %v1910_v51 = vmul.f32 0.00390625, %v6748_v45 }
 0x7b0   :  { %v6833_v62 = vpop.f32.mrf.mxu1  ;;  %v767_v42 = vadd.f32 %v766_v58, %v765_v25  ;;  %v1971_v37 = vadd.f32 1e-05, %v1907_v41  ;;  %904 = vmatpush1.msra.mxu0 %v812_v27 }
 0x7b1   :  { %v1353_v21 = vpop.xlane.xlu1 %1352  ;;  %v1326_v35 = vpop.xlane.xlu0 %1325  ;;  %1859 = vadd.xlane.f32.xlu0 %v1858_v20  ;;  %905 = vmatprep.subr.mxu0 %v811_v2 }
 0x7b2   :  { %v1424_v38 = vmul.f32 0.00390625, %v1353_v21  ;;  %v1415_v26 = vmul.f32 0.00390625, %v1326_v35  ;;  %v6835_v44 = vpop.f32.mrf.mxu1  ;;  %768 = vadd.xlane.f32.xlu1 %v767_v42  ;;  %4782 = vrsqrt.f32 %v1971_v37  ;;  %v809_v42 = vld [vmem:[#allocation12 + $0x828] sm:$0xff]  ;;  %v8465_v37 = vunpack.c.h.bf16 %v6372_v24  ;;  %906 = vmatpush1.msra.mxu0 %v810_v60  ;;  %v807_v24 = vld [vmem:[#allocation12 + $0x818] sm:$0xff] }
 0x7b3   :  { %4784 = vrsqrt.f32 %v1972_v36  ;;  %907 = vmatprep.subr.mxu0 %v809_v42  ;;  %v867_v42 = vld [vmem:[#allocation12 + $0x9f8] sm:$0xff] }
 0x7b4   :  { %v6839_v54 = vsub.f32 %v8459_v46, %v1424_v38  ;;  %v6843_v52 = vsub.f32 %v8461_v56, %v1424_v38  ;;  %v6847_v21 = vsub.f32 %v8463_v22, %v1415_v26  ;;  %v6849_v35 = vpop.f32.mrf.mxu1  ;;  %v6854_v25 = vsub.f32 %v8465_v37, %v1415_v26  ;;  %v808_v38 = vld [vmem:[#allocation12 + $0x820] sm:$0xff]  ;;  %v4781_v46 = vpop.eup %4780  ;;  %v806_v37 = vld [vmem:[#allocation12 + $0x810] sm:$0xff] }
 0x7b5   :  { %v6856_v58 = vpop.xlane.xlu1 %1811  ;;  %v1785_v8 = vpop.xlane.xlu0 %1784  ;;  %908 = vmatpush1.msra.mxu0 %v808_v38  ;;  %v2129_v38 = vmul.f32 %v4781_v46, %v6109_v55  ;;  %v865_v55 = vld [vmem:[#allocation12 + $0x9e8] sm:$0xff] }
 0x7b6   :  { %8460 = vst [vmem:[#allocation101_spill] sm:$0xff] %v6839_v54  ;;  %8462 = vst [vmem:[#allocation102_spill] sm:$0xff] %v6843_v52  ;;  %v1676_v41 = vmul.f32 %v6839_v54, %v6839_v54  ;;  %v1677_v20 = vmul.f32 %v6843_v52, %v6843_v52  ;;  %v1658_v36 = vmul.f32 %v6847_v21, %v6847_v21  ;;  %v6864_v27 = vpop.f32.mrf.mxu1  ;;  %v1909_v26 = vmul.f32 0.00390625, %v1785_v8  ;;  %v805_v54 = vld [vmem:[#allocation12 + $0x808] sm:$0xff] }
 0x7b7   :  { %8464 = vst [vmem:[#allocation103_spill] sm:$0xff] %v6847_v21  ;;  %8466 = vst [vmem:[#allocation104_spill] sm:$0xff] %v6854_v25  ;;  %v1659_v45 = vmul.f32 %v6854_v25, %v6854_v25  ;;  %v1974_v52 = vadd.f32 1e-05, %v1910_v51  ;;  %909 = vmatprep.subr.mxu0 %v807_v24  ;;  %v8467_v51 = vunpack.c.l.bf16 %v6421_v4 }
 0x7b8   :  { %v6870_v56 = vpop.f32.mrf.mxu1  ;;  %v1864_v22 = vadd.f32 %v1677_v20, %v1676_v41  ;;  %v1973_v21 = vadd.f32 1e-05, %v1909_v26  ;;  %910 = vmatpush1.msra.mxu0 %v806_v37  ;;  %v866_v41 = vld [vmem:[#allocation12 + $0x9f0] sm:$0xff]  ;;  %v8473_v26 = vunpack.c.h.bf16 %v6429_v53 }
 0x7b9   :  { %v1359_v61 = vpop.xlane.xlu1 %1358  ;;  %v1332_v60 = vpop.xlane.xlu0 %1331  ;;  %v1837_v1 = vadd.f32 %v1659_v45, %v1658_v36  ;;  %911 = vmatprep.subr.mxu0 %v805_v54  ;;  %v8469_v36 = vunpack.c.h.bf16 %v6421_v4  ;;  %v1912_v54 = vmul.f32 0.00390625, %v6769_v11  ;;  %v2128_v4 = vmul.f32 %v4781_v46, %v6098_v5  ;;  %v863_v11 = vld [vmem:[#allocation12 + $0x9d8] sm:$0xff] }
 0x7ba   :  { %v1426_v25 = vmul.f32 0.00390625, %v1359_v61  ;;  %1865 = vadd.xlane.f32.xlu0 %v1864_v22  ;;  %v1417_v8 = vmul.f32 0.00390625, %v1332_v60  ;;  %v6872_v3 = vpop.f32.mrf.mxu1  ;;  %4786 = vrsqrt.f32 %v1973_v21  ;;  %v8471_v61 = vunpack.c.l.bf16 %v6429_v53  ;;  %912 = vmatpush1.msra.mxu0 %v804_v29 }
 0x7bb   :  { %1838 = vadd.xlane.f32.xlu1 %v1837_v1  ;;  %4788 = vrsqrt.f32 %v1974_v52  ;;  %913 = vmatprep.subr.mxu0 %v867_v42  ;;  %v1976_v2 = vadd.f32 1e-05, %v1912_v54  ;;  %v1914_v5 = vmul.f32 0.00390625, %v6788_v33  ;;  %v859_v54 = vld [vmem:[#allocation12 + $0x9b8] sm:$0xff] }
 0x7bc   :  { %v6877_v20 = vsub.f32 %v8467_v51, %v1426_v25  ;;  %v6881_v24 = vsub.f32 %v8469_v36, %v1426_v25  ;;  %v6885_v45 = vsub.f32 %v8471_v61, %v1417_v8  ;;  %v6889_v21 = vsub.f32 %v8473_v26, %v1417_v8  ;;  %v6891_v1 = vpop.f32.mrf.mxu1  ;;  %v864_v25 = vld [vmem:[#allocation12 + $0x9e0] sm:$0xff]  ;;  %914 = vmatpush2.msra.mxu0 %v866_v41  ;;  %v862_v61 = vld [vmem:[#allocation12 + $0x9d0] sm:$0xff] }
 0x7bd   :  { %v1791_v22 = vpop.xlane.xlu0 %1790  ;;  %915 = vmatprep.subr.mxu0 %v865_v55  ;;  %v2268_v36 = vmul.f32 %v5956_v34, %v2129_v38  ;;  %v2267_v41 = vmul.f32 %v5947_v43, %v2128_v4  ;;  %v8475_v4 = vunpack.c.l.bf16 %v6487_v17 }
 0x7be   :  { %8468 = vst [vmem:[#allocation105_spill] sm:$0xff] %v6877_v20  ;;  %8470 = vst [vmem:[#allocation106_spill] sm:$0xff] %v6881_v24  ;;  %v1680_v37 = vmul.f32 %v6877_v20, %v6877_v20  ;;  %v1681_v53 = vmul.f32 %v6881_v24, %v6881_v24  ;;  %v1662_v60 = vmul.f32 %v6885_v45, %v6885_v45  ;;  %v6903_v52 = vpop.f32.mrf.mxu1  ;;  %v1911_v8 = vmul.f32 0.00390625, %v1791_v22  ;;  %v861_v22 = vld [vmem:[#allocation12 + $0x9c8] sm:$0xff] }
 0x7bf   :  { %8472 = vst [vmem:[#allocation107_spill] sm:$0xff] %v6885_v45  ;;  %8474 = vst [vmem:[#allocation108_spill] sm:$0xff] %v6889_v21  ;;  %v1663_v29 = vmul.f32 %v6889_v21, %v6889_v21  ;;  %916 = vmatpush2.msra.mxu0 %v864_v25  ;;  %v4783_v26 = vpop.eup %4782 }
 0x7c0   :  { %v6907_v46 = vpop.f32.mrf.mxu1  ;;  %v1870_v42 = vadd.f32 %v1681_v53, %v1680_v37  ;;  %v1975_v20 = vadd.f32 1e-05, %v1911_v8  ;;  %917 = vmatprep.subr.mxu0 %v863_v11  ;;  %v4785_v45 = vpop.eup %4784  ;;  %v2131_v38 = vmul.f32 %v4783_v26, %v6346_v7  ;;  %v2130_v25 = vmul.f32 %v4783_v26, %v6335_v49  ;;  %v860_v37 = vld [vmem:[#allocation12 + $0x9c0] sm:$0xff]  ;;  %v858_v7 = vld [vmem:[#allocation12 + $0x9b0] sm:$0xff] }
 0x7c1   :  { %v1843_v51 = vadd.f32 %v1663_v29, %v1662_v60  ;;  %v1338_v24 = vpop.xlane.xlu0 %1337  ;;  %918 = vmatpush2.msra.mxu0 %v862_v61  ;;  %v8477_v60 = vunpack.c.h.bf16 %v6487_v17  ;;  %v2407_v29 = vadd.f32 %v5980_v32, %v2268_v36  ;;  %v2133_v8 = vmul.f32 %v4785_v45, %v6158_v10  ;;  %v856_v26 = vld [vmem:[#allocation12 + $0x9a0] sm:$0xff] }
 0x7c2   :  { %1871 = vadd.xlane.f32.xlu0 %v1870_v42  ;;  %v1419_v55 = vmul.f32 0.00390625, %v1338_v24  ;;  %v6912_v21 = vpop.f32.mrf.mxu1  ;;  %4790 = vrsqrt.f32 %v1975_v20  ;;  %919 = vmatprep.subr.mxu0 %v861_v22  ;;  %v2270_v11 = vmul.f32 %v5956_v34, %v2131_v38  ;;  %v2269_v20 = vmul.f32 %v5947_v43, %v2130_v25  ;;  %v857_v42 = vld [vmem:[#allocation12 + $0x9a8] sm:$0xff]  ;;  %v8479_v38 = vld [vmem:[#allocation76_spill] sm:$0xff] }
 0x7c3   :  { %1844 = vadd.xlane.f32.xlu1 %v1843_v51  ;;  %4792 = vrsqrt.f32 %v1976_v2  ;;  %920 = vmatpush2.msra.mxu0 %v860_v37  ;;  %v1978_v51 = vadd.f32 1e-05, %v1914_v5  ;;  %v2406_v2 = vadd.f32 %v5973_v28, %v2267_v41  ;;  %v2132_v25 = vmul.f32 %v4785_v45, %v8479_v38  ;;  %v855_v5 = vld [vmem:[#allocation12 + $0x998] sm:$0xff] }
 0x7c4   :  { %v6918_v53 = vsub.f32 %v8475_v4, %v1419_v55  ;;  %v6922_v33 = vsub.f32 %v8477_v60, %v1419_v55  ;;  %v6924_v24 = vpop.f32.mrf.mxu1  ;;  %921 = vmatprep.subr.mxu0 %v859_v54  ;;  %v2409_v55 = vadd.f32 %v5980_v32, %v2270_v11  ;;  %v2408_v10 = vadd.f32 %v5973_v28, %v2269_v20  ;;  %v8482_v20 = vld [vmem:[#allocation57_spill] sm:$0xff] }
 0x7c5   :  { %v1797_v49 = vpop.xlane.xlu0 %1796  ;;  %922 = vmatpush2.msra.mxu0 %v858_v7  ;;  %4794 = vrsqrt.f32 %v1978_v51  ;;  %v8484_v51 = vunpack.c.l.bf16 %v6532_v12 }
 0x7c6   :  { %8476 = vst [vmem:[#allocation109_spill] sm:$0xff] %v6918_v53  ;;  %8478 = vst [vmem:[#allocation110_spill] sm:$0xff] %v6922_v33  ;;  %v1666_v17 = vmul.f32 %v6918_v53, %v6918_v53  ;;  %v1667_v61 = vmul.f32 %v6922_v33, %v6922_v33  ;;  %v6934_v36 = vpop.f32.mrf.mxu1  ;;  %v1913_v22 = vmul.f32 0.00390625, %v1797_v49  ;;  %923 = vmatprep.subr.mxu0 %v857_v42  ;;  %v854_v53 = vld [vmem:[#allocation12 + $0x990] sm:$0xff] }
 0x7c7   :  { %v4787_v37 = vpop.eup %4786  ;;  %v6942_v16 = vpack.c.bf16 %v2409_v55, %v2407_v29  ;;  %v6944_v41 = vpack.c.bf16 %v2408_v10, %v2406_v2  ;;  %v2272_v49 = vmul.f32 %v5956_v34, %v2133_v8  ;;  %924 = vmatpush2.msra.mxu0 %v856_v26  ;;  %v2271_v29 = vmul.f32 %v5947_v43, %v2132_v25  ;;  %v852_v8 = vld [vmem:[#allocation12 + $0x980] sm:$0xff] }
 0x7c8   :  { %v6940_v4 = vpop.f32.mrf.mxu1  ;;  %v1849_v60 = vadd.f32 %v1667_v61, %v1666_v17  ;;  %v1977_v33 = vadd.f32 1e-05, %v1913_v22  ;;  %v4789_v11 = vpop.eup %4788  ;;  %v2135_v38 = vmul.f32 %v4787_v37, %v8482_v20  ;;  %v8483_v17 = vld [vmem:[#allocation45_spill] sm:$0xff]  ;;  %925 = vmatprep.subr.mxu0 %v855_v5  ;;  %v853_v61 = vld [vmem:[#allocation12 + $0x988] sm:$0xff]  ;;  %v8486_v26 = vunpack.c.h.bf16 %v6532_v12 }
 0x7c9   :  { %8480 = vst [vmem:[#allocation76_spill] sm:$0xff] %v6942_v16  ;;  %8481 = vst [vmem:[#allocation111_spill] sm:$0xff] %v6944_v41  ;;  %v1344_v54 = vpop.xlane.xlu0 %1343  ;;  %v2134_v42 = vmul.f32 %v4787_v37, %v8483_v17  ;;  %2912 = vmatprep.mubr.bf16.mxu1 %v6942_v16  ;;  %926 = vmatpush2.msra.mxu0 %v854_v53  ;;  %v851_v5 = vld [vmem:[#allocation12 + $0x978] sm:$0xff]  ;;  %v2411_v53 = vadd.f32 %v5980_v32, %v2272_v49  ;;  %v8488_v37 = vld [vmem:[#allocation82_spill] sm:$0xff] }
 0x7ca   :  { %v1421_v45 = vmul.f32 0.00390625, %v1344_v54  ;;  %v6947_v7 = vpop.f32.mrf.mxu1  ;;  %1850 = vadd.xlane.f32.xlu1 %v1849_v60  ;;  %4796 = vrsqrt.f32 %v1977_v33  ;;  %2913 = vmatmul.mubr.bf16.gmra.mxu1 %v6944_v41  ;;  %v2274_v33 = vmul.f32 %v5956_v34, %v2135_v38  ;;  %v2137_v60 = vmul.f32 %v4789_v11, %v8488_v37  ;;  %v8489_v54 = vld [vmem:[#allocation79_spill] sm:$0xff]  ;;  %v850_v17 = vld [vmem:[#allocation12 + $0x970] sm:$0xff]  ;;  %v848_v16 = vld [vmem:[#allocation12 + $0x960] sm:$0xff] }
 0x7cb   :  { %v2273_v10 = vmul.f32 %v5947_v43, %v2134_v42  ;;  %v2136_v20 = vmul.f32 %v4789_v11, %v8489_v54  ;;  %927 = vmatprep.subr.mxu0 %v853_v61  ;;  %v2410_v49 = vadd.f32 %v5973_v28, %v2271_v29 }
 0x7cc   :  { %v6956_v2 = vsub.f32 %v8484_v51, %v1421_v45  ;;  %v6960_v22 = vsub.f32 %v8486_v26, %v1421_v45  ;;  %v6962_v55 = vpop.f32.mrf.mxu1  ;;  %v2413_v42 = vadd.f32 %v5980_v32, %v2274_v33  ;;  %928 = vmatpush2.msra.mxu0 %v852_v8  ;;  %v849_v26 = vld [vmem:[#allocation12 + $0x968] sm:$0xff]  ;;  %v2276_v8 = vmul.f32 %v5956_v34, %v2137_v60 }
 0x7cd   :  { %v1803_v25 = vpop.xlane.xlu0 %1802  ;;  %v2412_v37 = vadd.f32 %v5973_v28, %v2273_v10  ;;  %929 = vmatprep.subr.mxu0 %v851_v5  ;;  %v2275_v33 = vmul.f32 %v5947_v43, %v2136_v20  ;;  %v8492_v60 = vunpack.c.l.bf16 %v6552_v6 }
 0x7ce   :  { %8485 = vst [vmem:[#allocation57_spill] sm:$0xff] %v6956_v2  ;;  %8487 = vst [vmem:[#allocation45_spill] sm:$0xff] %v6960_v22  ;;  %v1670_v12 = vmul.f32 %v6956_v2, %v6956_v2  ;;  %v1671_v45 = vmul.f32 %v6960_v22, %v6960_v22  ;;  %v1915_v51 = vmul.f32 0.00390625, %v1803_v25  ;;  %v6973_v38 = vpop.f32.mrf.mxu1  ;;  %v6980_v54 = vpack.c.bf16 %v2413_v42, %v2411_v53 }
 0x7cf   :  { %930 = vmatpush2.msra.mxu0 %v850_v17  ;;  %v4791_v25 = vpop.eup %4790  ;;  %v6982_v2 = vpack.c.bf16 %v2412_v37, %v2410_v49  ;;  %v8496_v49 = vld [vmem:[#allocation83_spill] sm:$0xff] }
 0x7d0   :  { %v1979_v11 = vadd.f32 1e-05, %v1915_v51  ;;  %v6978_v61 = vpop.f32.mrf.mxu1  ;;  %8490 = vst [vmem:[#allocation82_spill] sm:$0xff] %v6980_v54  ;;  %v1855_v41 = vadd.f32 %v1671_v45, %v1670_v12  ;;  %931 = vmatprep.subr.mxu0 %v849_v26  ;;  %v4793_v29 = vpop.eup %4792  ;;  %2922 = vmatprep.mubr.bf16.mxu1 %v6980_v54  ;;  %v2139_v53 = vmul.f32 %v4791_v25, %v6466_v15  ;;  %v847_v12 = vld [vmem:[#allocation12 + $0x958] sm:$0xff]  ;;  %v846_v45 = vld [vmem:[#allocation12 + $0x950] sm:$0xff]  ;;  %v8494_v51 = vunpack.c.h.bf16 %v6552_v6 }
 0x7d1   :  { %8491 = vst [vmem:[#allocation79_spill] sm:$0xff] %v6982_v2  ;;  %v1350_v22 = vpop.xlane.xlu0 %1349  ;;  %v2138_v17 = vmul.f32 %v4791_v25, %v6462_v63  ;;  %932 = vmatpush2.msra.mxu0 %v848_v16  ;;  %v845_v63 = vld [vmem:[#allocation12 + $0x948] sm:$0xff]  ;;  %v2415_v16 = vadd.f32 %v5980_v32, %v2276_v8  ;;  %v2414_v26 = vadd.f32 %v5973_v28, %v2275_v33  ;;  %v843_v33 = vld [vmem:[#allocation12 + $0x938] sm:$0xff]  ;;  %v842_v54 = vld [vmem:[#allocation12 + $0x930] sm:$0xff] }
 0x7d2   :  { %4798 = vrsqrt.f32 %v1979_v11  ;;  %v1423_v10 = vmul.f32 0.00390625, %v1350_v22  ;;  %v6987_v5 = vpop.f32.mrf.mxu1  ;;  %1856 = vadd.xlane.f32.xlu1 %v1855_v41  ;;  %2923 = vmatmul.mubr.bf16.gmra.mxu1 %v6982_v2  ;;  %v2278_v41 = vmul.f32 %v5956_v34, %v2139_v53  ;;  %v2141_v37 = vmul.f32 %v4793_v29, %v8496_v49  ;;  %v8497_v11 = vld [vmem:[#allocation33_spill] sm:$0xff] }
 0x7d3   :  { %v2277_v15 = vmul.f32 %v5947_v43, %v2138_v17  ;;  %v2140_v25 = vmul.f32 %v4793_v29, %v8497_v11  ;;  %933 = vmatprep.subr.mxu0 %v847_v12 }
 0x7d4   :  { %v6994_v20 = vsub.f32 %v8492_v60, %v1423_v10  ;;  %v6998_v42 = vsub.f32 %v8494_v51, %v1423_v10  ;;  %v7000_v22 = vpop.f32.mrf.mxu1  ;;  %v844_v60 = vld [vmem:[#allocation12 + $0x940] sm:$0xff]  ;;  %v2417_v17 = vadd.f32 %v5980_v32, %v2278_v41  ;;  %934 = vmatpush2.msra.mxu0 %v846_v45  ;;  %v4795_v51 = vpop.eup %4794  ;;  %v841_v45 = vld [vmem:[#allocation12 + $0x928] sm:$0xff] }
 0x7d5   :  { %v2416_v8 = vadd.f32 %v5973_v28, %v2277_v15  ;;  %935 = vmatprep.subr.mxu0 %v845_v63  ;;  %v2279_v63 = vmul.f32 %v5947_v43, %v2140_v25 }
 0x7d6   :  { %8493 = vst [vmem:[#allocation112_spill] sm:$0xff] %v6994_v20  ;;  %8495 = vst [vmem:[#allocation113_spill] sm:$0xff] %v6998_v42  ;;  %v1674_v6 = vmul.f32 %v6994_v20, %v6994_v20  ;;  %v1675_v10 = vmul.f32 %v6998_v42, %v6998_v42  ;;  %v7012_v53 = vpop.f32.mrf.mxu1  ;;  %v7016_v12 = vpack.c.bf16 %v2417_v17, %v2415_v16  ;;  %936 = vmatpush2.msra.mxu0 %v844_v60  ;;  %v840_v16 = vld [vmem:[#allocation12 + $0x920] sm:$0xff] }
 0x7d7   :  { %v4797_v49 = vpop.eup %4796  ;;  %v7018_v11 = vpack.c.bf16 %v2416_v8, %v2414_v26  ;;  %v2280_v42 = vmul.f32 %v5956_v34, %v2141_v37  ;;  %937 = vmatprep.subr.mxu0 %v843_v33  ;;  %v8500_v37 = vld [vmem:[#allocation34_spill] sm:$0xff]  ;;  %v837_v8 = vld [vmem:[#allocation12 + $0x908] sm:$0xff]  ;;  %v2418_v33 = vadd.f32 %v5973_v28, %v2279_v63 }
 0x7d8   :  { %v2830_v29 = vpop.f32.mrf.mxu1  ;;  %8498 = vst [vmem:[#allocation83_spill] sm:$0xff] %v7016_v12  ;;  %v1861_v2 = vadd.f32 %v1675_v10, %v1674_v6  ;;  %v2143_v20 = vmul.f32 %v4797_v49, %v6518_v48  ;;  %v2142_v41 = vmul.f32 %v4797_v49, %v6514_v18  ;;  %2932 = vmatprep.mubr.bf16.mxu1 %v7016_v12  ;;  %v839_v6 = vld [vmem:[#allocation12 + $0x918] sm:$0xff]  ;;  %v838_v10 = vld [vmem:[#allocation12 + $0x910] sm:$0xff] }
 0x7d9   :  { %8499 = vst [vmem:[#allocation33_spill] sm:$0xff] %v7018_v11  ;;  %938 = vmatpush2.msra.mxu0 %v842_v54  ;;  %v2145_v18 = vmul.f32 %v4795_v51, %v8500_v37  ;;  %v2419_v17 = vadd.f32 %v5980_v32, %v2280_v42  ;;  %v8501_v54 = vld [vmem:[#allocation35_spill] sm:$0xff] }
 0x7da   :  { %v2834_v15 = vpop.f32.mrf.mxu1  ;;  %1862 = vadd.xlane.f32.xlu1 %v1861_v2  ;;  %v2282_v26 = vmul.f32 %v5956_v34, %v2143_v20  ;;  %v2281_v60 = vmul.f32 %v5947_v43, %v2142_v41  ;;  %2933 = vmatmul.mubr.bf16.gmra.mxu1 %v7018_v11  ;;  %v2144_v49 = vmul.f32 %v4795_v51, %v8501_v54  ;;  %v836_v41 = vld [vmem:[#allocation12 + $0x900] sm:$0xff]  ;;  %v4668_v11 = vld [vmem:[#allocation11 + $0x174] ss:$8 sps:$4 sm:$0xff]  }
 0x7db   :  { %939 = vmatprep.subr.mxu0 %v841_v45 }
 0x7dc   :  { %v2836_v48 = vpop.f32.mrf.mxu1  ;;  %v2421_v2 = vadd.f32 %v5980_v32, %v2282_v26  ;;  %v2420_v25 = vadd.f32 %v5973_v28, %v2281_v60  ;;  %940 = vmatpush2.msra.mxu0 %v840_v16  ;;  %v2284_v16 = vmul.f32 %v5956_v34, %v2145_v18 }
 0x7dd   :  { %941 = vmatprep.subr.mxu0 %v839_v6 }
 0x7de   :  { %v2838_v20 = vpop.f32.mrf.mxu1  ;;  %v7034_v37 = vpack.c.bf16 %v2421_v2, %v2419_v17  ;;  %942 = vmatpush2.msra.mxu0 %v838_v10  ;;  %v7036_v42 = vpack.c.bf16 %v2420_v25, %v2418_v33  ;;  %v2283_v10 = vmul.f32 %v5947_v43, %v2144_v49  ;;  %v3095_v49 = vpack.c.bf16 %v7012_v53, %v6987_v5 }
 0x7df   :  { %v4799_v12 = vpop.eup %4798  ;;  %943 = vmatprep.subr.mxu0 %v837_v8  ;;  %v3097_v2 = vpack.c.bf16 %v2838_v20, %v2834_v15  ;;  %v3093_v5 = vpack.c.bf16 %v6973_v38, %v6947_v7  ;;  %v8503_v7 = vunpack.c.h.bf16 %v6562_v59 }
 0x7e0   :  { %v2840_v45 = vpop.f32.mrf.mxu1  ;;  %v2147_v26 = vmul.f32 %v4799_v12, %v6541_v50  ;;  %v2146_v60 = vmul.f32 %v4799_v12, %v6537_v40  ;;  %2942 = vmatprep.mubr.bf16.mxu1 %v7034_v37  ;;  %944 = vmatpush2.msra.mxu0 %v836_v41  ;;  %v3096_v50 = vpack.c.bf16 %v2830_v29, %v7000_v22  ;;  %v1916_v29 = vmul.f32 0.00390625, %v6819_v23  ;;  %v8539_v22 = vld [vmem:[#allocation52_spill] sm:$0xff] }
 0x7e1   :  { %v3098_v63 = vpack.c.bf16 %v2840_v45, %v2836_v48  ;;  %3340 = vmatprep.subr.bf16.mxu0 %v4668_v11  ;;  %v2423_v12 = vadd.f32 %v5980_v32, %v2284_v16  ;;  %v2422_v11 = vadd.f32 %v5973_v28, %v2283_v10  ;;  %v3094_v45 = vpack.c.bf16 %v6978_v61, %v6962_v55  ;;  %v1818_v10 = vpop.xlane.xlu1 %1817 }
 0x7e2   :  { %v7042_v51 = vpop.f32.mrf.mxu1  ;;  %v2286_v6 = vmul.f32 %v5956_v34, %v2147_v26  ;;  %v2285_v17 = vmul.f32 %v5947_v43, %v2146_v60  ;;  %2943 = vmatmul.mubr.bf16.gmra.mxu1 %v7036_v42  ;;  %v1980_v41 = vadd.f32 1e-05, %v1916_v29  ;;  %v1918_v60 = vmul.f32 0.00390625, %v6856_v58 }
 0x7e3   :  { %3786 = vmatprep.subr.bf16.mxu1 %v3098_v63  ;;  %v3092_v61 = vpack.c.bf16 %v6940_v4, %v6924_v24  ;;  %v8502_v58 = vunpack.c.l.bf16 %v6562_v59  ;;  %v3091_v24 = vpack.c.bf16 %v6934_v36, %v6912_v21  ;;  %v3090_v29 = vpack.c.bf16 %v6907_v46, %v6891_v1  ;;  %v8504_v36 = vld [vmem:[#allocation42_spill] sm:$0xff] }
 0x7e4   :  { %v7049_v40 = vpop.f32.mrf.mxu1  ;;  %v2425_v48 = vadd.f32 %v5980_v32, %v2286_v6  ;;  %v2424_v18 = vadd.f32 %v5973_v28, %v2285_v17  ;;  %3787 = vmatpush1.bf16.xpose.msra.mxu1 %v3097_v2  ;;  %4800 = vrsqrt.f32 %v1980_v41  ;;  %v1982_v55 = vadd.f32 1e-05, %v1918_v60 }
 0x7e5   :  { %3788 = vmatprep.subr.bf16.mxu1 %v3096_v50  ;;  %v1920_v50 = vmul.f32 0.00390625, %v1818_v10  ;;  %v8506_v1 = vunpack.c.h.bf16 %v6584_v57 }
 0x7e6   :  { %v7054_v25 = vpop.f32.mrf.mxu1  ;;  %v7056_v8 = vpack.c.bf16 %v2425_v48, %v2423_v12  ;;  %v7065_v20 = vpack.c.bf16 %v2424_v18, %v2422_v11 }
 0x7e8   :  { %v7062_v15 = vpop.f32.mrf.mxu1  ;;  %2952 = vmatprep.mubr.bf16.mxu1 %v7056_v8 }
 0x7ea   :  { %v7069_v54 = vpop.f32.mrf.mxu1  ;;  %2953 = vmatmul.mubr.bf16.gmra.mxu1 %v7065_v20 }
 0x7ec   :  { %v7076_v23 = vpop.f32.mrf.mxu1  ;;  %3789 = vmatpush1.bf16.xpose.msra.mxu1 %v3095_v49  ;;  %v1824_v49 = vpop.xlane.xlu1 %1823 }
 0x7ed   :  { %3790 = vmatprep.subr.bf16.mxu1 %v3094_v45  ;;  %v1984_v45 = vadd.f32 1e-05, %v1920_v50 }
 0x7ee   :  { %v7078_v26 = vpop.f32.mrf.mxu1 }
 0x7f1   :  { %v1809_v63 = vpop.xlane.xlu0 %1808  ;;  %v4801_v41 = vpop.eup %4800 }
 0x7f2   :  { %v1917_v53 = vmul.f32 0.00390625, %v1809_v63 }
 0x7f4   :  { %v1981_v6 = vadd.f32 1e-05, %v1917_v53  ;;  %3791 = vmatpush1.bf16.xpose.msra.mxu1 %v3093_v5  ;;  %v1922_v5 = vmul.f32 0.00390625, %v1824_v49  ;;  %v2149_v53 = vmul.f32 %v4801_v41, %v8504_v36 }
 0x7f5   :  { %3792 = vmatprep.subr.bf16.mxu1 %v3092_v61  ;;  %v1356_v17 = vpop.xlane.xlu0 %1355 }
 0x7f6   :  { %4802 = vrsqrt.f32 %v1981_v6  ;;  %v1425_v2 = vmul.f32 0.00390625, %v1356_v17  ;;  %v8507_v6 = vld [vmem:[#allocation36_spill] sm:$0xff]  ;;  %v1986_v17 = vadd.f32 1e-05, %v1922_v5 }
 0x7f7   :  { %4804 = vrsqrt.f32 %v1982_v55  ;;  %v8505_v55 = vunpack.c.l.bf16 %v6584_v57  ;;  %v2148_v10 = vmul.f32 %v4801_v41, %v8507_v6  ;;  %v2288_v57 = vmul.f32 %v5956_v34, %v2149_v53  ;;  %v8509_v41 = vld [vmem:[#allocation61_spill] sm:$0xff]  ;;  %v8511_v53 = vld [vmem:[#allocation60_spill] sm:$0xff] }
 0x7f8   :  { %v7089_v12 = vsub.f32 %v8502_v58, %v1425_v2  ;;  %v7093_v38 = vsub.f32 %v8503_v7, %v1425_v2 }
 0x7f9   :  { %v1815_v48 = vpop.xlane.xlu0 %1814 }
 0x7fa   :  { %v1678_v4 = vmul.f32 %v7089_v12, %v7089_v12  ;;  %v1679_v18 = vmul.f32 %v7093_v38, %v7093_v38  ;;  %v1919_v11 = vmul.f32 0.00390625, %v1815_v48  ;;  %v3088_v48 = vpack.c.bf16 %v6870_v56, %v6849_v35 }
 0x7fc   :  { %v1983_v59 = vadd.f32 1e-05, %v1919_v11  ;;  %3793 = vmatpush1.bf16.xpose.msra.mxu1 %v3091_v24  ;;  %v1867_v60 = vadd.f32 %v1679_v18, %v1678_v4  ;;  %v1830_v24 = vpop.xlane.xlu1 %1829  ;;  %v8508_v11 = vpack.c.bf16 %v6903_v52, %v6872_v3  ;;  %v2427_v3 = vadd.f32 %v5980_v32, %v2288_v57  ;;  %v8510_v52 = vld [vmem:[#allocation59_spill] sm:$0xff]  ;;  %v8514_v57 = vld [vmem:[#allocation64_spill] sm:$0xff] }
 0x7fd   :  { %3794 = vmatprep.subr.bf16.mxu1 %v3090_v29  ;;  %v1362_v63 = vpop.xlane.xlu0 %1361  ;;  %v1924_v35 = vmul.f32 0.00390625, %v1830_v24  ;;  %v8513_v24 = vld [vmem:[#allocation65_spill] sm:$0xff] }
 0x7fe   :  { %4806 = vrsqrt.f32 %v1983_v59  ;;  %v1427_v21 = vmul.f32 0.00390625, %v1362_v63  ;;  %1868 = vadd.xlane.f32.xlu1 %v1867_v60  ;;  %v2287_v59 = vmul.f32 %v5947_v43, %v2148_v10 }
 0x7ff   :  { %4808 = vrsqrt.f32 %v1984_v45 }
 0x800   :  { %v7106_v61 = vsub.f32 %v8505_v55, %v1427_v21  ;;  %v7110_v46 = vsub.f32 %v8506_v1, %v1427_v21  ;;  %4810 = vrsqrt.f32 %v1986_v17  ;;  %v2426_v21 = vadd.f32 %v5973_v28, %v2287_v59  ;;  %v8515_v59 = vld [vmem:[#allocation62_spill] sm:$0xff] }
 0x801   :  { %v1988_v1 = vadd.f32 1e-05, %v1924_v35  ;;  %v8516_v35 = vld [vmem:[#allocation63_spill] sm:$0xff] }
 0x802   :  { %v1682_v2 = vmul.f32 %v7106_v61, %v7106_v61  ;;  %v1683_v50 = vmul.f32 %v7110_v46, %v7110_v46  ;;  %v1821_v58 = vpop.xlane.xlu0 %1820 }
 0x803   :  { %v4803_v7 = vpop.eup %4802  ;;  %v1921_v4 = vmul.f32 0.00390625, %v1821_v58 }
 0x804   :  { %v4805_v18 = vpop.eup %4804  ;;  %3795 = vmatpush1.bf16.xpose.msra.mxu1 %v8508_v11  ;;  %v1873_v29 = vadd.f32 %v1683_v50, %v1682_v2  ;;  %v2151_v49 = vmul.f32 %v4803_v7, %v6571_v47  ;;  %v2150_v45 = vmul.f32 %v4803_v7, %v8509_v41  ;;  %v3086_v50 = vpack.c.bf16 %v6833_v62, %v6816_v9 }
 0x805   :  { %v1985_v60 = vadd.f32 1e-05, %v1921_v4  ;;  %3796 = vmatprep.subr.bf16.mxu1 %v3088_v48  ;;  %v2153_v5 = vmul.f32 %v4805_v18, %v8510_v52  ;;  %v2152_v55 = vmul.f32 %v4805_v18, %v8511_v53  ;;  %v8512_v48 = vpack.c.bf16 %v6864_v27, %v6835_v44 }
 0x806   :  { %1874 = vadd.xlane.f32.xlu1 %v1873_v29  ;;  %v2290_v56 = vmul.f32 %v5956_v34, %v2151_v49  ;;  %v2289_v63 = vmul.f32 %v5947_v43, %v2150_v45  ;;  %v8518_v53 = vpack.c.bf16 %v6829_v0, %v6800_v14 }
 0x807   :  { %4812 = vrsqrt.f32 %v1985_v60  ;;  %v2292_v7 = vmul.f32 %v5956_v34, %v2153_v5  ;;  %v2291_v11 = vmul.f32 %v5947_v43, %v2152_v55 }
 0x808   :  { %v2429_v47 = vadd.f32 %v5980_v32, %v2290_v56  ;;  %v2428_v36 = vadd.f32 %v5973_v28, %v2289_v63  ;;  %4814 = vrsqrt.f32 %v1988_v1 }
 0x809   :  { %v2431_v44 = vadd.f32 %v5980_v32, %v2292_v7  ;;  %v2430_v41 = vadd.f32 %v5973_v28, %v2291_v11 }
 0x80a   :  { %v1827_v6 = vpop.xlane.xlu0 %1826  ;;  %v7134_v10 = vpack.c.bf16 %v2429_v47, %v2427_v3  ;;  %v7136_v17 = vpack.c.bf16 %v2428_v36, %v2426_v21  ;;  %v3084_v47 = vpack.c.bf16 %v6798_v30, %v6786_v19 }
 0x80b   :  { %v4807_v2 = vpop.eup %4806  ;;  %v1923_v58 = vmul.f32 0.00390625, %v1827_v6 }
 0x80c   :  { %3797 = vmatpush1.bf16.xpose.msra.mxu1 %v8512_v48  ;;  %2962 = vmatprep.mubr.bf16.mxu1 %v7134_v10  ;;  %v2155_v4 = vmul.f32 %v4807_v2, %v8513_v24  ;;  %v2154_v18 = vmul.f32 %v4807_v2, %v8514_v57  ;;  %v4809_v29 = vpop.eup %4808 }
 0x80d   :  { %v1987_v49 = vadd.f32 1e-05, %v1923_v58  ;;  %3798 = vmatprep.subr.bf16.mxu1 %v3086_v50  ;;  %2963 = vmatmul.mubr.bf16.gmra.mxu1 %v7136_v17  ;;  %v2157_v60 = vmul.f32 %v4809_v29, %v8515_v59  ;;  %v2156_v56 = vmul.f32 %v4809_v29, %v8516_v35  ;;  %v4811_v5 = vpop.eup %4810  ;;  %v8519_v50 = vld [vmem:[#allocation51_spill] sm:$0xff]  ;;  %v8523_v29 = vld [vmem:[#allocation94_spill] sm:$0xff] }
 0x80e   :  { %v2294_v9 = vmul.f32 %v5956_v34, %v2155_v4  ;;  %v2293_v62 = vmul.f32 %v5947_v43, %v2154_v18  ;;  %v2161_v58 = vmul.f32 %v4811_v5, %v8519_v50 }
 0x80f   :  { %4816 = vrsqrt.f32 %v1987_v49  ;;  %v2296_v55 = vmul.f32 %v5956_v34, %v2157_v60  ;;  %v2295_v19 = vmul.f32 %v5947_v43, %v2156_v56  ;;  %v8524_v49 = vpack.c.bf16 %v6794_v13, %v8523_v29  ;;  %v8527_v13 = vld [vmem:[#allocation87_spill] sm:$0xff] }
 0x810   :  { %v2433_v27 = vadd.f32 %v5980_v32, %v2294_v9  ;;  %v2432_v45 = vadd.f32 %v5973_v28, %v2293_v62  ;;  %v2300_v9 = vmul.f32 %v5956_v34, %v2161_v58  ;;  %v8525_v62 = vld [vmem:[#allocation66_spill] sm:$0xff] }
 0x811   :  { %v2435_v0 = vadd.f32 %v5980_v32, %v2296_v55  ;;  %v2434_v48 = vadd.f32 %v5973_v28, %v2295_v19 }
 0x812   :  { %v1833_v63 = vpop.xlane.xlu0 %1832  ;;  %v7157_v3 = vpack.c.bf16 %v2433_v27, %v2431_v44  ;;  %v7159_v52 = vpack.c.bf16 %v2432_v45, %v2430_v41  ;;  %v8526_v27 = vld [vmem:[#allocation67_spill] sm:$0xff]  ;;  %v2439_v35 = vadd.f32 %v5980_v32, %v2300_v9 }
 0x813   :  { %v1925_v21 = vmul.f32 0.00390625, %v1833_v63 }
 0x814   :  { %8517 = vst [vmem:[#allocation34_spill] sm:$0xff] %v7159_v52  ;;  %v4813_v36 = vpop.eup %4812  ;;  %3799 = vmatpush1.bf16.xpose.msra.mxu1 %v8518_v53  ;;  %2972 = vmatprep.mubr.bf16.mxu1 %v7157_v3 }
 0x815   :  { %v1989_v1 = vadd.f32 1e-05, %v1925_v21  ;;  %3800 = vmatprep.subr.bf16.mxu1 %v3084_v47  ;;  %2973 = vmatmul.mubr.bf16.gmra.mxu1 %v7159_v52  ;;  %v2159_v6 = vmul.f32 %v4813_v36, %v6625_v31  ;;  %v2158_v2 = vmul.f32 %v4813_v36, %v6621_v39  ;;  %v8520_v31 = vld [vmem:[#allocation58_spill] sm:$0xff]  ;;  %v4815_v39 = vpop.eup %4814 }
 0x816   :  { %v2160_v4 = vmul.f32 %v4811_v5, %v8520_v31  ;;  %v2165_v56 = vmul.f32 %v4815_v39, %v8527_v13  ;;  %v8528_v21 = vld [vmem:[#allocation54_spill] sm:$0xff] }
 0x817   :  { %4818 = vrsqrt.f32 %v1989_v1  ;;  %v2298_v30 = vmul.f32 %v5956_v34, %v2159_v6  ;;  %v2297_v14 = vmul.f32 %v5947_v43, %v2158_v2  ;;  %v2164_v36 = vmul.f32 %v4815_v39, %v8528_v21  ;;  %v8531_v6 = vld [vmem:[#allocation68_spill] sm:$0xff] }
 0x818   :  { %v2299_v45 = vmul.f32 %v5947_v43, %v2160_v4  ;;  %v2304_v19 = vmul.f32 %v5956_v34, %v2165_v56 }
 0x819   :  { %v2437_v7 = vadd.f32 %v5980_v32, %v2298_v30  ;;  %v2436_v24 = vadd.f32 %v5973_v28, %v2297_v14  ;;  %v8532_v30 = vld [vmem:[#allocation69_spill] sm:$0xff] }
 0x81a   :  { %v2438_v5 = vadd.f32 %v5973_v28, %v2299_v45  ;;  %v1836_v29 = vpop.xlane.xlu0 %1835 }
 0x81b   :  { %v7180_v57 = vpack.c.bf16 %v2437_v7, %v2435_v0  ;;  %v7182_v18 = vpack.c.bf16 %v2436_v24, %v2434_v48  ;;  %v2303_v0 = vmul.f32 %v5947_v43, %v2164_v36  ;;  %v2443_v7 = vadd.f32 %v5980_v32, %v2304_v19 }
 0x81c   :  { %v4817_v11 = vpop.eup %4816  ;;  %3801 = vmatpush1.bf16.xpose.msra.mxu1 %v8524_v49  ;;  %v1926_v9 = vmul.f32 0.00390625, %v1836_v29  ;;  %v8536_v29 = vld [vmem:[#allocation29_spill] sm:$0xff] }
 0x81d   :  { %8521 = vst [vmem:[#allocation35_spill] sm:$0xff] %v7180_v57  ;;  %8522 = vst [vmem:[#allocation42_spill] sm:$0xff] %v7182_v18  ;;  %2982 = vmatprep.mubr.bf16.mxu1 %v7180_v57  ;;  %v2163_v44 = vmul.f32 %v4817_v11, %v8525_v62  ;;  %v2162_v41 = vmul.f32 %v4817_v11, %v8526_v27  ;;  %v2442_v24 = vadd.f32 %v5973_v28, %v2303_v0  ;;  %v7223_v11 = vpop.f32.mrf.mxu1  ;;  %v756_v0 = vld [vmem:[#allocation17 + $0x15] ss:$8 sm:$0x3] }
 0x81e   :  { %2983 = vmatmul.mubr.bf16.gmra.mxu1 %v7182_v18 }
 0x81f   :  { %v2302_v59 = vmul.f32 %v5956_v34, %v2163_v44  ;;  %v2301_v60 = vmul.f32 %v5947_v43, %v2162_v41 }
 0x821   :  { %v2441_v63 = vadd.f32 %v5980_v32, %v2302_v59  ;;  %v2440_v47 = vadd.f32 %v5973_v28, %v2301_v60  ;;  %v1990_v59 = vadd.f32 1e-05, %v1926_v9  ;;  %v783_v9 = vrot.slane %v756_v0, %v8536_v29 }
 0x822   :  { %v1842_v56 = vpop.xlane.xlu0 %1841 }
 0x823   :  { %v7201_v53 = vpack.c.bf16 %v2441_v63, %v2439_v35  ;;  %v7203_v55 = vpack.c.bf16 %v2440_v47, %v2438_v5  ;;  %v1928_v47 = vmul.f32 0.00390625, %v1842_v56 }
 0x824   :  { %v4819_v1 = vpop.eup %4818 }
 0x825   :  { %8529 = vst [vmem:[#allocation36_spill] sm:$0xff] %v7201_v53  ;;  %8530 = vst [vmem:[#allocation61_spill] sm:$0xff] %v7203_v55  ;;  %2992 = vmatprep.mubr.bf16.mxu1 %v7201_v53  ;;  %v2167_v2 = vmul.f32 %v4819_v1, %v8531_v6  ;;  %v2166_v14 = vmul.f32 %v4819_v1, %v8532_v30  ;;  %v1992_v19 = vadd.f32 1e-05, %v1928_v47  ;;  %v8537_v47 = vld [vmem:[#allocation100_spill] sm:$0xff] }
 0x826   :  { %2993 = vmatmul.mubr.bf16.gmra.mxu1 %v7203_v55 }
 0x827   :  { %v2306_v50 = vmul.f32 %v5956_v34, %v2167_v2  ;;  %v2305_v58 = vmul.f32 %v5947_v43, %v2166_v14 }
 0x829   :  { %v2445_v48 = vadd.f32 %v5980_v32, %v2306_v50  ;;  %v2444_v31 = vadd.f32 %v5973_v28, %v2305_v58  ;;  %v758_v50 = vld [vmem:[#allocation17 + $0x16] ss:$8 sm:$0x3] }
 0x82a   :  { %v1848_v1 = vpop.xlane.xlu0 %1847 }
 0x82b   :  { %v7217_v4 = vpack.c.bf16 %v2445_v48, %v2443_v7  ;;  %v7219_v39 = vpack.c.bf16 %v2444_v31, %v2442_v24  ;;  %v1930_v14 = vmul.f32 0.00390625, %v1848_v1  ;;  %v8535_v24 = vld [vmem:[#allocation28_spill] sm:$0xff]  ;;  %v796_v1 = vrot.slane %v758_v50, %v8536_v29 }
 0x82c   :  { %v779_v31 = vrot.slane %v756_v0, %v8535_v24  ;;  %v8540_v0 = vld [vmem:[#allocation53_spill] sm:$0xff] }
 0x82d   :  { %8533 = vst [vmem:[#allocation59_spill] sm:$0xff] %v7217_v4  ;;  %8534 = vst [vmem:[#allocation60_spill] sm:$0xff] %v7219_v39  ;;  %3002 = vmatprep.mubr.bf16.mxu1 %v7217_v4  ;;  %v1994_v58 = vadd.f32 1e-05, %v1930_v14 }
 0x82e   :  { %3003 = vmatmul.mubr.bf16.gmra.mxu1 %v7219_v39 }
 0x837   :  { %v7225_v49 = vpop.f32.mrf.mxu1 }
 0x839   :  { %v7227_v62 = vpop.f32.mrf.mxu1 }
 0x83b   :  { %v769_v44 = vpop.xlane.xlu1 %768  ;;  %v7229_v41 = vpop.f32.mrf.mxu1 }
 0x83c   :  { %v770_v27 = vmul.f32 0.00390625, %v769_v44 }
 0x83d   :  { %v7233_v35 = vpop.f32.mrf.mxu1 }
 0x83e   :  { %v771_v60 = vadd.f32 1e-05, %v770_v27  ;;  %v1854_v27 = vpop.xlane.xlu0 %1853 }
 0x83f   :  { %v7237_v63 = vpop.f32.mrf.mxu1 }
 0x840   :  { %4820 = vrsqrt.f32 %v771_v60 }
 0x841   :  { %4822 = vrsqrt.f32 %v1990_v59  ;;  %v7239_v5 = vpop.f32.mrf.mxu1  ;;  %v792_v59 = vrot.slane %v758_v50, %v8535_v24 }
 0x842   :  { %v1860_v53 = vpop.xlane.xlu0 %1859 }
 0x843   :  { %v7241_v36 = vpop.f32.mrf.mxu1 }
 0x844   :  { %v1839_v21 = vpop.xlane.xlu1 %1838 }
 0x845   :  { %v1927_v6 = vmul.f32 0.00390625, %v1839_v21 }
 0x847   :  { %v1991_v30 = vadd.f32 1e-05, %v1927_v6  ;;  %v8538_v6 = vld [vmem:[#allocation99_spill] sm:$0xff] }
 0x849   :  { %4824 = vrsqrt.f32 %v1991_v30  ;;  %v1932_v30 = vmul.f32 0.00390625, %v1854_v27 }
 0x84a   :  { %4826 = vrsqrt.f32 %v1992_v19 }
 0x84b   :  { %4828 = vrsqrt.f32 %v1994_v58  ;;  %v4671_v58 = vld [vmem:[#allocation11 + $0x164] ss:$8 sps:$4 sm:$0xff]  }
 0x84c   :  { %v1845_v7 = vpop.xlane.xlu1 %1844 }
 0x84d   :  { %v1929_v48 = vmul.f32 0.00390625, %v1845_v7  ;;  %v4821_v44 = vpop.eup %4820 }
 0x84e   :  { %v4823_v60 = vpop.eup %4822  ;;  %v774_v21 = vmul.f32 %v4821_v44, %v8537_v47  ;;  %v773_v19 = vmul.f32 %v4821_v44, %v8538_v6  ;;  %v4666_v47 = vld [vmem:[#allocation11 + $0x170] ss:$8 sps:$4 sm:$0xff]  }
 0x84f   :  { %v1993_v56 = vadd.f32 1e-05, %v1929_v48  ;;  %v2169_v33 = vmul.f32 %v4823_v60, %v8539_v22  ;;  %v2168_v16 = vmul.f32 %v4823_v60, %v8540_v0  ;;  %v1996_v48 = vadd.f32 1e-05, %v1932_v30  ;;  %v8541_v22 = vld [vmem:[#allocation104_spill] sm:$0xff]  ;;  %v8542_v60 = vld [vmem:[#allocation103_spill] sm:$0xff] }
 0x850   :  { %v787_v14 = vmul.f32 %v783_v9, %v774_v21  ;;  %v786_v7 = vmul.f32 %v779_v31, %v773_v19  ;;  %v8544_v19 = vld [vmem:[#allocation89_spill] sm:$0xff] }
 0x851   :  { %4830 = vrsqrt.f32 %v1993_v56  ;;  %v2308_v27 = vmul.f32 %v5956_v34, %v2169_v33  ;;  %v2307_v31 = vmul.f32 %v5947_v43, %v2168_v16 }
 0x852   :  { %v800_v13 = vadd.f32 %v796_v1, %v787_v14  ;;  %v799_v2 = vadd.f32 %v792_v59, %v786_v7  ;;  %v7260_v59 = vpop.f32.mrf.mxu1  ;;  %v8545_v14 = vld [vmem:[#allocation88_spill] sm:$0xff] }
 0x853   :  { %v1851_v45 = vpop.xlane.xlu1 %1850  ;;  %v2447_v16 = vadd.f32 %v5980_v32, %v2308_v27  ;;  %v2446_v1 = vadd.f32 %v5973_v28, %v2307_v31 }
 0x854   :  { %v1931_v39 = vmul.f32 0.00390625, %v1851_v45  ;;  %v802_v4 = vmax.f32 %v800_v13, 0.0  ;;  %v801_v55 = vmax.f32 %v799_v2, 0.0  ;;  %v1934_v45 = vmul.f32 0.00390625, %v1860_v53  ;;  %v8543_v13 = vld [vmem:[#allocation70_spill] sm:$0xff]  ;;  %v7272_v31 = vpop.f32.mrf.mxu1 }
 0x855   :  { %v4669_v2 = vld [vmem:[#allocation11 + $0x160] ss:$8 sps:$4 sm:$0xff]  }
 0x856   :  { %v4825_v50 = vpop.eup %4824  ;;  %v1995_v44 = vadd.f32 1e-05, %v1931_v39  ;;  %945 = vmatprep.mubr.f32.mxu0 %v802_v4  ;;  %v4674_v4 = vld [vmem:[#allocation11 + $0x154] ss:$8 sps:$4 sm:$0xff]  }
 0x857   :  { %v2171_v9 = vmul.f32 %v4825_v50, %v8541_v22  ;;  %v2170_v56 = vmul.f32 %v4825_v50, %v8542_v60  ;;  %v4827_v21 = vpop.eup %4826  ;;  %946 = vmatmul.mubr.f32.vlgmr.msra.gmra.mxu0 %v801_v55  ;;  %v8548_v60 = vld [vmem:[#allocation108_spill] sm:$0xff] }
 0x858   :  { %4832 = vrsqrt.f32 %v1995_v44  ;;  %3341 = vmatpush1.bf16.msra.mxu0 %v4666_v47  ;;  %3372 = vmatprep.mubr.bf16.mxu0 %v8543_v13  ;;  %v2173_v30 = vmul.f32 %v4827_v21, %v8544_v19  ;;  %v2172_v7 = vmul.f32 %v4827_v21, %v8545_v14  ;;  %v1998_v47 = vadd.f32 1e-05, %v1934_v45  ;;  %v4672_v44 = vld [vmem:[#allocation11 + $0x150] ss:$8 sps:$4 sm:$0xff]   ;;  %v8549_v13 = vld [vmem:[#allocation107_spill] sm:$0xff] }
 0x859   :  { %4834 = vrsqrt.f32 %v1996_v48  ;;  %v2310_v39 = vmul.f32 %v5956_v34, %v2171_v9  ;;  %v2309_v33 = vmul.f32 %v5947_v43, %v2170_v56  ;;  %3342 = vmatprep.subr.bf16.mxu0 %v4671_v58  ;;  %v4829_v48 = vpop.eup %4828  ;;  %v4677_v9 = vld [vmem:[#allocation11 + $0x144] ss:$8 sps:$4 sm:$0xff]  }
 0x85a   :  { %v2312_v21 = vmul.f32 %v5956_v34, %v2173_v30 }
 0x85b   :  { %v1857_v6 = vpop.xlane.xlu1 %1856  ;;  %v2449_v55 = vadd.f32 %v5980_v32, %v2310_v39  ;;  %v2448_v53 = vadd.f32 %v5973_v28, %v2309_v33  ;;  %v4675_v39 = vld [vmem:[#allocation11 + $0x140] ss:$8 sps:$4 sm:$0xff]  }
 0x85c   :  { %v1933_v0 = vmul.f32 0.00390625, %v1857_v6  ;;  %3343 = vmatpush1.bf16.msra.mxu0 %v4669_v2  ;;  %v2311_v2 = vmul.f32 %v5947_v43, %v2172_v7  ;;  %v7283_v6 = vpop.f32.mrf.mxu1  ;;  %v2451_v14 = vadd.f32 %v5980_v32, %v2312_v21 }
 0x85d   :  { %v7268_v50 = vpack.c.bf16 %v2449_v55, %v2447_v16  ;;  %v7270_v58 = vpack.c.bf16 %v2448_v53, %v2446_v1  ;;  %3344 = vmatprep.subr.bf16.mxu0 %v4674_v4  ;;  %v8550_v4 = vld [vmem:[#allocation93_spill] sm:$0xff]  ;;  %v8551_v53 = vld [vmem:[#allocation92_spill] sm:$0xff] }
 0x85e   :  { %v4831_v27 = vpop.eup %4830  ;;  %v1997_v22 = vadd.f32 1e-05, %v1933_v0  ;;  %v2177_v1 = vmul.f32 %v4829_v48, %v8550_v4  ;;  %v4680_v55 = vld [vmem:[#allocation11 + $0x134] ss:$8 sps:$4 sm:$0xff]   ;;  %v2176_v19 = vmul.f32 %v4829_v48, %v8551_v53  ;;  %v2450_v0 = vadd.f32 %v5973_v28, %v2311_v2 }
 0x85f   :  { %8546 = vst [vmem:[#allocation65_spill] sm:$0xff] %v7268_v50  ;;  %8547 = vst [vmem:[#allocation64_spill] sm:$0xff] %v7270_v58  ;;  %3012 = vmatprep.mubr.bf16.mxu1 %v7268_v50  ;;  %v2175_v56 = vmul.f32 %v4831_v27, %v8548_v60  ;;  %v2174_v45 = vmul.f32 %v4831_v27, %v8549_v13  ;;  %v4678_v60 = vld [vmem:[#allocation11 + $0x130] ss:$8 sps:$4 sm:$0xff]   ;;  %v7295_v13 = vpop.f32.mrf.mxu1 }
 0x860   :  { %4836 = vrsqrt.f32 %v1997_v22  ;;  %3013 = vmatmul.mubr.bf16.gmra.mxu1 %v7270_v58  ;;  %3345 = vmatpush1.bf16.msra.mxu0 %v4672_v44  ;;  %v8555_v4 = vld [vmem:[#allocation109_spill] sm:$0xff]  ;;  %v2315_v53 = vmul.f32 %v5947_v43, %v2176_v19 }
 0x861   :  { %4838 = vrsqrt.f32 %v1998_v47  ;;  %v2314_v33 = vmul.f32 %v5956_v34, %v2175_v56  ;;  %v2313_v16 = vmul.f32 %v5947_v43, %v2174_v45  ;;  %3346 = vmatprep.subr.bf16.mxu0 %v4677_v9  ;;  %v2316_v9 = vmul.f32 %v5956_v34, %v2177_v1  ;;  %v4683_v45 = vld [vmem:[#allocation11 + $0x124] ss:$8 sps:$4 sm:$0xff]  }
 0x863   :  { %v1863_v30 = vpop.xlane.xlu1 %1862  ;;  %v2453_v7 = vadd.f32 %v5980_v32, %v2314_v33  ;;  %v2452_v47 = vadd.f32 %v5973_v28, %v2313_v16  ;;  %v8554_v33 = vld [vmem:[#allocation110_spill] sm:$0xff] }
 0x864   :  { %v1935_v44 = vmul.f32 0.00390625, %v1863_v30  ;;  %3347 = vmatpush1.bf16.msra.mxu0 %v4675_v39  ;;  %v4681_v30 = vld [vmem:[#allocation11 + $0x120] ss:$8 sps:$4 sm:$0xff]  }
 0x865   :  { %v4833_v27 = vpop.eup %4832  ;;  %v7290_v22 = vpack.c.bf16 %v2453_v7, %v2451_v14  ;;  %v7292_v56 = vpack.c.bf16 %v2452_v47, %v2450_v0  ;;  %3348 = vmatprep.subr.bf16.mxu0 %v4680_v55  ;;  %v2455_v55 = vadd.f32 %v5980_v32, %v2316_v9  ;;  %v8556_v14 = vld [vmem:[#allocation96_spill] sm:$0xff]  ;;  %v7306_v0 = vpop.f32.mrf.mxu1 }
 0x866   :  { %v4835_v48 = vpop.eup %4834  ;;  %v1999_v21 = vadd.f32 1e-05, %v1935_v44  ;;  %v2179_v2 = vmul.f32 %v4833_v27, %v8554_v33  ;;  %v2178_v16 = vmul.f32 %v4833_v27, %v8555_v4  ;;  %v4686_v47 = vld [vmem:[#allocation11 + $0x114] ss:$8 sps:$4 sm:$0xff]   ;;  %v2454_v44 = vadd.f32 %v5973_v28, %v2315_v53  ;;  %v4684_v9 = vld [vmem:[#allocation11 + $0x110] ss:$8 sps:$4 sm:$0xff]  }
 0x867   :  { %8552 = vst [vmem:[#allocation62_spill] sm:$0xff] %v7290_v22  ;;  %8553 = vst [vmem:[#allocation63_spill] sm:$0xff] %v7292_v56  ;;  %3022 = vmatprep.mubr.bf16.mxu1 %v7290_v22  ;;  %v2181_v7 = vmul.f32 %v4835_v48, %v8556_v14  ;;  %v4689_v53 = vld [vmem:[#allocation11 + $0x104] ss:$8 sps:$4 sm:$0xff]  }
 0x868   :  { %4840 = vrsqrt.f32 %v1999_v21  ;;  %3023 = vmatmul.mubr.bf16.gmra.mxu1 %v7292_v56  ;;  %v2318_v39 = vmul.f32 %v5956_v34, %v2179_v2  ;;  %v2317_v1 = vmul.f32 %v5947_v43, %v2178_v16  ;;  %3349 = vmatpush1.bf16.msra.mxu0 %v4678_v60  ;;  %v8557_v21 = vld [vmem:[#allocation95_spill] sm:$0xff]  ;;  %v8561_v56 = vld [vmem:[#allocation57_spill] sm:$0xff] }
 0x869   :  { %3350 = vmatprep.subr.bf16.mxu0 %v4683_v45  ;;  %v2180_v33 = vmul.f32 %v4835_v48, %v8557_v21  ;;  %v2320_v16 = vmul.f32 %v5956_v34, %v2181_v7  ;;  %v7317_v45 = vpop.f32.mrf.mxu1  ;;  %v4687_v7 = vld [vmem:[#allocation11 + $0x100] ss:$8 sps:$4 sm:$0xff]  }
 0x86a   :  { %v2457_v19 = vadd.f32 %v5980_v32, %v2318_v39  ;;  %v2456_v27 = vadd.f32 %v5973_v28, %v2317_v1  ;;  %v8560_v39 = vld [vmem:[#allocation45_spill] sm:$0xff] }
 0x86c   :  { %v7312_v2 = vpack.c.bf16 %v2457_v19, %v2455_v55  ;;  %v7314_v60 = vpack.c.bf16 %v2456_v27, %v2454_v44  ;;  %3351 = vmatpush1.bf16.msra.mxu0 %v4681_v30  ;;  %v2319_v55 = vmul.f32 %v5947_v43, %v2180_v33  ;;  %v2459_v44 = vadd.f32 %v5980_v32, %v2320_v16  ;;  %v8562_v27 = vld [vmem:[#allocation98_spill] sm:$0xff]  ;;  %v4690_v16 = vld [vmem:[#allocation11 + $0x1f0] ss:$8 sps:$4 sm:$0xff]  }
 0x86d   :  { %v4837_v4 = vpop.eup %4836  ;;  %3352 = vmatprep.subr.bf16.mxu0 %v4686_v47  ;;  %v7328_v47 = vpop.f32.mrf.mxu1 }
 0x86e   :  { %8558 = vst [vmem:[#allocation51_spill] sm:$0xff] %v7312_v2  ;;  %8559 = vst [vmem:[#allocation58_spill] sm:$0xff] %v7314_v60  ;;  %v4839_v14 = vpop.eup %4838  ;;  %3032 = vmatprep.mubr.bf16.mxu1 %v7312_v2  ;;  %v2183_v1 = vmul.f32 %v4837_v4, %v8560_v39  ;;  %v2182_v48 = vmul.f32 %v4837_v4, %v8561_v56  ;;  %v4692_v56 = vld [vmem:[#allocation11 + $0x1f4] ss:$8 sps:$4 sm:$0xff]   ;;  %v2458_v33 = vadd.f32 %v5973_v28, %v2319_v55 }
 0x86f   :  { %v2185_v21 = vmul.f32 %v4839_v14, %v8562_v27  ;;  %v7339_v22 = vpop.f32.mrf.mxu1  ;;  %v8566_v55 = vld [vmem:[#allocation113_spill] sm:$0xff] }
 0x870   :  { %3033 = vmatmul.mubr.bf16.gmra.mxu1 %v7314_v60  ;;  %v2322_v30 = vmul.f32 %v5956_v34, %v2183_v1  ;;  %v2321_v19 = vmul.f32 %v5947_v43, %v2182_v48  ;;  %3353 = vmatpush1.bf16.msra.mxu0 %v4684_v9  ;;  %v8563_v60 = vld [vmem:[#allocation97_spill] sm:$0xff] }
 0x871   :  { %3354 = vmatprep.subr.bf16.mxu0 %v4689_v53  ;;  %v2184_v1 = vmul.f32 %v4839_v14, %v8563_v60  ;;  %v2324_v27 = vmul.f32 %v5956_v34, %v2185_v21  ;;  %v4695_v53 = vld [vmem:[#allocation11 + $0x1e4] ss:$8 sps:$4 sm:$0xff]   ;;  %v7348_v21 = vpop.f32.mrf.mxu1 }
 0x872   :  { %v2461_v39 = vadd.f32 %v5980_v32, %v2322_v30  ;;  %v2460_v4 = vadd.f32 %v5973_v28, %v2321_v19  ;;  %v8567_v19 = vld [vmem:[#allocation112_spill] sm:$0xff] }
 0x873   :  { %v2323_v60 = vmul.f32 %v5947_v43, %v2184_v1 }
 0x874   :  { %v7334_v2 = vpack.c.bf16 %v2461_v39, %v2459_v44  ;;  %v7336_v9 = vpack.c.bf16 %v2460_v4, %v2458_v33  ;;  %3355 = vmatpush1.bf16.msra.mxu0 %v4687_v7  ;;  %v4693_v44 = vld [vmem:[#allocation11 + $0x1e0] ss:$8 sps:$4 sm:$0xff]   ;;  %v2463_v39 = vadd.f32 %v5980_v32, %v2324_v27  ;;  %v4698_v33 = vld [vmem:[#allocation11 + $0x1d4] ss:$8 sps:$4 sm:$0xff]   ;;  %v4701_v27 = vld [vmem:[#allocation11 + $0x1c4] ss:$8 sps:$4 sm:$0xff]  }
 0x875   :  { %v4841_v48 = vpop.eup %4840  ;;  %3356 = vmatprep.subr.bf16.mxu0 %v4692_v56  ;;  %v2462_v4 = vadd.f32 %v5973_v28, %v2323_v60 }
 0x876   :  { %8564 = vst [vmem:[#allocation94_spill] sm:$0xff] %v7334_v2  ;;  %8565 = vst [vmem:[#allocation66_spill] sm:$0xff] %v7336_v9  ;;  %3042 = vmatprep.mubr.bf16.mxu1 %v7334_v2  ;;  %v2187_v30 = vmul.f32 %v4841_v48, %v8566_v55  ;;  %v2186_v58 = vmul.f32 %v4841_v48, %v8567_v19  ;;  %v1866_v48 = vpop.xlane.xlu0 %1865  ;;  %v7358_v19 = vpop.f32.mrf.mxu1 }
 0x878   :  { %3043 = vmatmul.mubr.bf16.gmra.mxu1 %v7336_v9  ;;  %v2326_v14 = vmul.f32 %v5956_v34, %v2187_v30  ;;  %v2325_v7 = vmul.f32 %v5947_v43, %v2186_v58  ;;  %3357 = vmatpush2.bf16.msra.mxu0 %v4690_v16  ;;  %v4696_v58 = vld [vmem:[#allocation11 + $0x1d0] ss:$8 sps:$4 sm:$0xff]   ;;  %v1936_v16 = vmul.f32 0.00390625, %v1866_v48 }
 0x879   :  { %3358 = vmatprep.subr.bf16.mxu0 %v4695_v53  ;;  %v4699_v53 = vld [vmem:[#allocation11 + $0x1c0] ss:$8 sps:$4 sm:$0xff]  }
 0x87a   :  { %v2465_v56 = vadd.f32 %v5980_v32, %v2326_v14  ;;  %v2464_v1 = vadd.f32 %v5973_v28, %v2325_v7  ;;  %v2000_v60 = vadd.f32 1e-05, %v1936_v16  ;;  %v2906_v14 = vpop.f32.mrf.mxu1  ;;  %v4704_v7 = vld [vmem:[#allocation11 + $0x1b4] ss:$8 sps:$4 sm:$0xff]  }
 0x87c   :  { %v7354_v55 = vpack.c.bf16 %v2465_v56, %v2463_v39  ;;  %v7356_v30 = vpack.c.bf16 %v2464_v1, %v2462_v4  ;;  %3359 = vmatpush2.bf16.msra.mxu0 %v4693_v44  ;;  %v1872_v39 = vpop.xlane.xlu0 %1871  ;;  %v4702_v56 = vld [vmem:[#allocation11 + $0x1b0] ss:$8 sps:$4 sm:$0xff]   ;;  %4842 = vrsqrt.f32 %v2000_v60  ;;  %v2908_v4 = vpop.f32.mrf.mxu1  ;;  %v4707_v1 = vld [vmem:[#allocation11 + $0x1a4] ss:$8 sps:$4 sm:$0xff]  }
 0x87d   :  { %3360 = vmatprep.subr.bf16.mxu0 %v4698_v33  ;;  %v1938_v44 = vmul.f32 0.00390625, %v1872_v39  ;;  %v4713_v60 = vld [vmem:[#allocation11 + $0x184] ss:$8 sps:$4 sm:$0xff]  }
 0x87e   :  { %8568 = vst [vmem:[#allocation67_spill] sm:$0xff] %v7354_v55  ;;  %8569 = vst [vmem:[#allocation87_spill] sm:$0xff] %v7356_v30  ;;  %3052 = vmatprep.mubr.bf16.mxu1 %v7354_v55  ;;  %v4705_v55 = vld [vmem:[#allocation11 + $0x1a0] ss:$8 sps:$4 sm:$0xff]  }
 0x87f   :  { %v2002_v9 = vadd.f32 1e-05, %v1938_v44 }
 0x880   :  { %3053 = vmatmul.mubr.bf16.gmra.mxu1 %v7356_v30  ;;  %3361 = vmatpush2.bf16.msra.mxu0 %v4696_v58  ;;  %v2910_v30 = vpop.f32.mrf.mxu1  ;;  %v4710_v58 = vld [vmem:[#allocation11 + $0x194] ss:$8 sps:$4 sm:$0xff]  }
 0x881   :  { %3362 = vmatprep.subr.bf16.mxu0 %v4701_v27  ;;  %v4708_v27 = vld [vmem:[#allocation11 + $0x190] ss:$8 sps:$4 sm:$0xff]  }
 0x884   :  { %3363 = vmatpush2.bf16.msra.mxu0 %v4699_v53 }
 0x885   :  { %3364 = vmatprep.subr.bf16.mxu0 %v4704_v7 }
 0x887   :  { %v1869_v48 = vpop.xlane.xlu1 %1868 }
 0x888   :  { %3365 = vmatpush2.bf16.msra.mxu0 %v4702_v56  ;;  %v1937_v33 = vmul.f32 0.00390625, %v1869_v48  ;;  %v4711_v56 = vld [vmem:[#allocation11 + $0x180] ss:$8 sps:$4 sm:$0xff]  }
 0x889   :  { %3366 = vmatprep.subr.bf16.mxu0 %v4707_v1  ;;  %v4843_v44 = vpop.eup %4842 }
 0x88a   :  { %v2001_v16 = vadd.f32 1e-05, %v1937_v33  ;;  %v2914_v2 = vpop.f32.mrf.mxu1 }
 0x88c   :  { %4844 = vrsqrt.f32 %v2001_v16  ;;  %3367 = vmatpush2.bf16.msra.mxu0 %v4705_v55  ;;  %v2916_v53 = vpop.f32.mrf.mxu1  ;;  %v3112_v16 = vpack.c.bf16 %v2910_v30, %v2906_v14  ;;  %v8570_v55 = vld [vmem:[#allocation102_spill] sm:$0xff] }
 0x88d   :  { %4846 = vrsqrt.f32 %v2002_v9  ;;  %3368 = vmatprep.subr.bf16.mxu0 %v4710_v58  ;;  %v2189_v58 = vmul.f32 %v4843_v44, %v8570_v55 }
 0x88e   :  { %v2918_v39 = vpop.f32.mrf.mxu1 }
 0x88f   :  { %v1875_v7 = vpop.xlane.xlu1 %1874  ;;  %v3113_v57 = vpack.c.bf16 %v2918_v39, %v2914_v2  ;;  %v8573_v2 = vld [vmem:[#allocation72_spill] sm:$0xff]  ;;  %v2328_v14 = vmul.f32 %v5956_v34, %v2189_v58 }
 0x890   :  { %3369 = vmatpush2.bf16.msra.mxu0 %v4708_v27  ;;  %v1939_v50 = vmul.f32 0.00390625, %v1875_v7  ;;  %v2920_v48 = vpop.f32.mrf.mxu1  ;;  %v8571_v27 = vld [vmem:[#allocation101_spill] sm:$0xff] }
 0x891   :  { %3370 = vmatprep.subr.bf16.mxu0 %v4713_v60  ;;  %v3114_v18 = vpack.c.bf16 %v2920_v48, %v2916_v53  ;;  %v2188_v7 = vmul.f32 %v4843_v44, %v8571_v27  ;;  %v8572_v60 = vld [vmem:[#allocation71_spill] sm:$0xff]  ;;  %v3111_v44 = vpack.c.bf16 %v2908_v4, %v7358_v19 }
 0x892   :  { %v2003_v1 = vadd.f32 1e-05, %v1939_v50  ;;  %v7362_v33 = vpop.f32.mrf.mxu1 }
 0x893   :  { %3802 = vmatprep.subr.bf16.mxu1 %v3114_v18  ;;  %v2327_v48 = vmul.f32 %v5947_v43, %v2188_v7 }
 0x894   :  { %4848 = vrsqrt.f32 %v2003_v1  ;;  %3371 = vmatpush2.bf16.msra.mxu0 %v4711_v56  ;;  %v7364_v9 = vpop.f32.mrf.mxu1  ;;  %3803 = vmatpush2.bf16.xpose.msra.mxu1 %v3113_v57 }
 0x895   :  { %3804 = vmatprep.subr.bf16.mxu1 %v3112_v16  ;;  %v3110_v16 = vpack.c.bf16 %v7348_v21, %v7328_v47  ;;  %v2466_v19 = vadd.f32 %v5973_v28, %v2327_v48 }
 0x896   :  { %v7368_v52 = vpop.f32.mrf.mxu1 }
 0x897   :  { %3373 = vmatmul.mubr.bf16.vlgmr.msra.gmra.mxu0 %v8572_v60  ;;  %v3115_v50 = vpack.c.bf16 %v7368_v52, %v7362_v33  ;;  %v8574_v60 = vld [vmem:[#allocation106_spill] sm:$0xff] }
 0x898   :  { %3382 = vmatprep.mubr.bf16.mxu0 %v8573_v2  ;;  %v7374_v18 = vpop.f32.mrf.mxu1  ;;  %v8575_v2 = vld [vmem:[#allocation105_spill] sm:$0xff] }
 0x899   :  { %v4845_v30 = vpop.eup %4844  ;;  %v3116_v53 = vpack.c.bf16 %v7374_v18, %v7364_v9 }
 0x89a   :  { %v4847_v57 = vpop.eup %4846  ;;  %v2191_v39 = vmul.f32 %v4845_v30, %v7093_v38  ;;  %v2190_v56 = vmul.f32 %v4845_v30, %v7089_v12  ;;  %v7383_v1 = vpop.f32.mrf.mxu1  ;;  %v2467_v38 = vadd.f32 %v5980_v32, %v2328_v14  ;;  %v8576_v30 = vld [vmem:[#allocation73_spill] sm:$0xff] }
 0x89b   :  { %v2193_v12 = vmul.f32 %v4847_v57, %v8574_v60  ;;  %v2192_v47 = vmul.f32 %v4847_v57, %v8575_v2 }
 0x89c   :  { %v2330_v55 = vmul.f32 %v5956_v34, %v2191_v39  ;;  %v2329_v58 = vmul.f32 %v5947_v43, %v2190_v56  ;;  %v7389_v27 = vpop.f32.mrf.mxu1  ;;  %3805 = vmatpush2.bf16.xpose.msra.mxu1 %v3111_v44  ;;  %v8577_v56 = vld [vmem:[#allocation74_spill] sm:$0xff] }
 0x89d   :  { %3806 = vmatprep.subr.bf16.mxu1 %v3110_v16  ;;  %v2332_v48 = vmul.f32 %v5956_v34, %v2193_v12  ;;  %v2331_v2 = vmul.f32 %v5947_v43, %v2192_v47  ;;  %v3108_v12 = vpack.c.bf16 %v7306_v0, %v7283_v6 }
 0x89e   :  { %v2469_v7 = vadd.f32 %v5980_v32, %v2330_v55  ;;  %v2468_v4 = vadd.f32 %v5973_v28, %v2329_v58  ;;  %v7397_v21 = vpop.f32.mrf.mxu1 }
 0x89f   :  { %3383 = vmatmul.mubr.bf16.gmra.mxu0 %v8576_v30  ;;  %v3117_v39 = vpack.c.bf16 %v7397_v21, %v7383_v1 }
 0x8a0   :  { %3392 = vmatprep.mubr.bf16.mxu0 %v8577_v56  ;;  %v7403_v14 = vpack.c.bf16 %v2469_v7, %v2467_v38  ;;  %v7405_v44 = vpack.c.bf16 %v2468_v4, %v2466_v19  ;;  %v7407_v55 = vpop.f32.mrf.mxu1  ;;  %v3109_v38 = vpack.c.bf16 %v7339_v22, %v7317_v45  ;;  %v2470_v22 = vadd.f32 %v5973_v28, %v2331_v2  ;;  %v8578_v56 = vld [vmem:[#allocation75_spill] sm:$0xff] }
 0x8a1   :  { %v4849_v16 = vpop.eup %4848  ;;  %v3118_v57 = vpack.c.bf16 %v7407_v55, %v7389_v27 }
 0x8a2   :  { %3062 = vmatprep.mubr.bf16.mxu1 %v7403_v14  ;;  %v2195_v58 = vmul.f32 %v4849_v16, %v7110_v46  ;;  %v2194_v60 = vmul.f32 %v4849_v16, %v7106_v61  ;;  %v7418_v7 = vpop.f32.mrf.mxu1  ;;  %v2471_v61 = vadd.f32 %v5980_v32, %v2332_v48 }
 0x8a3   :  { %3063 = vmatmul.mubr.bf16.gmra.mxu1 %v7405_v44 }
 0x8a4   :  { %v2334_v19 = vmul.f32 %v5956_v34, %v2195_v58  ;;  %v2333_v4 = vmul.f32 %v5947_v43, %v2194_v60  ;;  %v7425_v30 = vpop.f32.mrf.mxu1  ;;  %3807 = vmatpush2.bf16.xpose.msra.mxu1 %v3109_v38  ;;  %v8579_v43 = vld [vmem:[#allocation77_spill] sm:$0xff]  ;;  %v3106_v58 = vpack.c.bf16 %v7260_v59, %v7239_v5  ;;  %v8580_v38 = vld [vmem:[#allocation78_spill] sm:$0xff]  ;;  %v8583_v5 = vpack.c.bf16 %v7233_v35, %v7227_v62 }
 0x8a5   :  { %3808 = vmatprep.subr.bf16.mxu1 %v3108_v12  ;;  %v8584_v59 = vld [vmem:[#allocation81_spill] sm:$0xff]  ;;  %v8589_v62 = vpack.c.bf16 %v7078_v26, %v7069_v54  ;;  %v8590_v35 = vpack.c.bf16 %v7062_v15, %v7049_v40  ;;  %v8596_v40 = vld [vmem:[#allocation39_spill] sm:$0xff] }
 0x8a6   :  { %v2473_v46 = vadd.f32 %v5980_v32, %v2334_v19  ;;  %v2472_v45 = vadd.f32 %v5973_v28, %v2333_v4  ;;  %v7431_v47 = vpop.f32.mrf.mxu1  ;;  %v3107_v28 = vpack.c.bf16 %v7295_v13, %v7272_v31  ;;  %v8581_v19 = vld [vmem:[#allocation80_spill] sm:$0xff]  ;;  %v8582_v31 = vpack.c.bf16 %v7241_v36, %v7237_v63  ;;  %v8588_v63 = vld [vmem:[#allocation37_spill] sm:$0xff] }
 0x8a7   :  { %3393 = vmatmul.mubr.bf16.gmra.mxu0 %v8578_v56  ;;  %v3119_v34 = vpack.c.bf16 %v7431_v47, %v7418_v7  ;;  %v8585_v13 = vld [vmem:[#allocation32_spill] sm:$0xff]  ;;  %v3102_v4 = vpack.c.bf16 %v7223_v11, %v7076_v23  ;;  %v8591_v36 = vld [vmem:[#allocation41_spill] sm:$0xff] }
 0x8a8   :  { %3402 = vmatprep.mubr.bf16.mxu0 %v8579_v43  ;;  %v7437_v6 = vpack.c.bf16 %v2473_v46, %v2471_v61  ;;  %v7439_v0 = vpack.c.bf16 %v2472_v45, %v2470_v22  ;;  %v7441_v16 = vpop.f32.mrf.mxu1  ;;  %v8586_v61 = vpack.c.bf16 %v7229_v41, %v7225_v49  ;;  %v8587_v46 = vld [vmem:[#allocation38_spill] sm:$0xff]  ;;  %v8592_v23 = vld [vmem:[#allocation84_spill] sm:$0xff]  ;;  %v8593_v49 = vpack.c.bf16 %v7054_v25, %v7042_v51  ;;  %v8594_v22 = vld [vmem:[#allocation85_spill] sm:$0xff] }
 0x8a9   :  { %v3120_v32 = vpack.c.bf16 %v7441_v16, %v7425_v30  ;;  %v8595_v56 = vld [vmem:[#allocation40_spill] sm:$0xff]  ;;  %v8616_v7 = vld [vmem:[#allocation33_spill] sm:$0xff] }
 0x8aa   :  { %3072 = vmatprep.mubr.bf16.mxu1 %v7437_v6  ;;  %v7448_v48 = vpop.f32.mrf.mxu1  ;;  %v8599_v51 = vld [vmem:[#allocation44_spill] sm:$0xff] }
 0x8ab   :  { %3073 = vmatmul.mubr.bf16.gmra.mxu1 %v7439_v0 }
 0x8ac   :  { %v7453_v60 = vpop.f32.mrf.mxu1  ;;  %3809 = vmatpush2.bf16.xpose.msra.mxu1 %v3107_v28  ;;  %v8597_v28 = vld [vmem:[#allocation48_spill] sm:$0xff] }
 0x8ad   :  { %3810 = vmatprep.subr.bf16.mxu1 %v3106_v58 }
 0x8ae   :  { %v7455_v2 = vpop.f32.mrf.mxu1 }
 0x8af   :  { %3403 = vmatmul.mubr.bf16.gmra.mxu0 %v8580_v38  ;;  %v3121_v12 = vpack.c.bf16 %v7455_v2, %v7448_v48 }
 0x8b0   :  { %3412 = vmatprep.mubr.bf16.mxu0 %v8581_v19  ;;  %v2960_v11 = vpop.f32.mrf.mxu1 }
 0x8b4   :  { %3811 = vmatpush2.bf16.xpose.msra.mxu1 %v8582_v31  ;;  %v8598_v31 = vld [vmem:[#allocation86_spill] sm:$0xff] }
 0x8b5   :  { %3812 = vmatprep.subr.bf16.mxu1 %v8583_v5 }
 0x8b7   :  { %3413 = vmatmul.mubr.bf16.gmra.mxu0 %v8584_v59 }
 0x8b8   :  { %3422 = vmatprep.mubr.bf16.mxu0 %v8585_v13 }
 0x8bc   :  { %3813 = vmatpush2.bf16.xpose.msra.mxu1 %v8586_v61  ;;  %v8601_v61 = vld [vmem:[#allocation47_spill] sm:$0xff] }
 0x8bd   :  { %3814 = vmatprep.subr.bf16.mxu1 %v3102_v4  ;;  %v8600_v4 = vld [vmem:[#allocation43_spill] sm:$0xff] }
 0x8bf   :  { %3423 = vmatmul.mubr.bf16.gmra.mxu0 %v8587_v46 }
 0x8c0   :  { %3432 = vmatprep.mubr.bf16.mxu0 %v8588_v63 }
 0x8c4   :  { %3815 = vmatpush2.bf16.xpose.msra.mxu1 %v8589_v62 }
 0x8c5   :  { %3816 = vmatprep.subr.bf16.mxu1 %v8590_v35 }
 0x8c7   :  { %3433 = vmatmul.mubr.bf16.gmra.mxu0 %v8591_v36 }
 0x8c8   :  { %3442 = vmatprep.mubr.bf16.mxu0 %v8592_v23 }
 0x8cc   :  { %3817 = vmatpush2.bf16.xpose.msra.mxu1 %v8593_v49 }
 0x8cd   :  { %v2964_v41 = vpop.f32.mrf.mxu1 }
 0x8cf   :  { %3443 = vmatmul.mubr.bf16.gmra.mxu0 %v8594_v22  ;;  %v2966_v45 = vpop.f32.mrf.mxu1  ;;  %v8602_v22 = vld [vmem:[#allocation46_spill] sm:$0xff] }
 0x8d0   :  { %3452 = vmatprep.mubr.bf16.mxu0 %v8595_v56  ;;  %v8603_v56 = vld [vmem:[#allocation50_spill] sm:$0xff] }
 0x8d1   :  { %v2968_v54 = vpop.f32.mrf.mxu1 }
 0x8d3   :  { %v2970_v26 = vpop.f32.mrf.mxu1 }
 0x8d5   :  { %v2974_v43 = vpop.f32.mrf.mxu1 }
 0x8d7   :  { %3453 = vmatmul.mubr.bf16.gmra.mxu0 %v8596_v40  ;;  %v2976_v15 = vpop.f32.mrf.mxu1 }
 0x8d8   :  { %3462 = vmatprep.mubr.bf16.mxu0 %v8597_v28 }
 0x8d9   :  { %v2978_v58 = vpop.f32.mrf.mxu1 }
 0x8db   :  { %v2980_v38 = vpop.f32.mrf.mxu1 }
 0x8de   :  { %v2984_v19 = vpop.f32.mrf.mxu1 }
 0x8df   :  { %3463 = vmatmul.mubr.bf16.gmra.mxu0 %v8598_v31 }
 0x8e0   :  { %3472 = vmatprep.mubr.bf16.mxu0 %v8599_v51  ;;  %v2986_v25 = vpop.f32.mrf.mxu1 }
 0x8e2   :  { %v2988_v5 = vpop.f32.mrf.mxu1 }
 0x8e4   :  { %v2990_v59 = vpop.f32.mrf.mxu1 }
 0x8e5   :  { %v3128_v49 = vpack.c.bf16 %v2990_v59, %v2986_v25  ;;  %v3127_v25 = vpack.c.bf16 %v2988_v5, %v2984_v19  ;;  %v3126_v59 = vpack.c.bf16 %v2980_v38, %v2976_v15  ;;  %v8609_v15 = vld [vmem:[#allocation76_spill] sm:$0xff]  ;;  %v8610_v38 = vld [vmem:[#allocation111_spill] sm:$0xff]  ;;  %v8611_v19 = vld [vmem:[#allocation82_spill] sm:$0xff] }
 0x8e6   :  { %v2994_v13 = vpop.f32.mrf.mxu1 }
 0x8e7   :  { %3473 = vmatmul.mubr.bf16.gmra.mxu0 %v8600_v4  ;;  %v8604_v4 = vld [vmem:[#allocation49_spill] sm:$0xff] }
 0x8e8   :  { %3482 = vmatprep.mubr.bf16.mxu0 %v8601_v61  ;;  %v2996_v46 = vpop.f32.mrf.mxu1  ;;  %v8605_v61 = vld [vmem:[#allocation56_spill] sm:$0xff] }
 0x8ea   :  { %v2998_v63 = vpop.f32.mrf.mxu1 }
 0x8eb   :  { %v3129_v36 = vpack.c.bf16 %v2998_v63, %v2994_v13  ;;  %v3124_v63 = vpack.c.bf16 %v2970_v26, %v2966_v45  ;;  %v8612_v45 = vld [vmem:[#allocation79_spill] sm:$0xff] }
 0x8ec   :  { %v3000_v62 = vpop.f32.mrf.mxu1 }
 0x8ed   :  { %v3130_v35 = vpack.c.bf16 %v3000_v62, %v2996_v46  ;;  %v3125_v46 = vpack.c.bf16 %v2978_v58, %v2974_v43  ;;  %v8606_v62 = vld [vmem:[#allocation55_spill] sm:$0xff]  ;;  %v8615_v58 = vld [vmem:[#allocation30_spill] sm:$0xff] }
 0x8ee   :  { %v7495_v23 = vpop.f32.mrf.mxu1  ;;  %v8613_v43 = vld [vmem:[#allocation83_spill] sm:$0xff]  ;;  %v954_v5 = vmul.f32 0.00390625, %v8615_v58 }
 0x8ef   :  { %3483 = vmatmul.mubr.bf16.gmra.mxu0 %v8602_v22  ;;  %3829 = vmatprep.subr.bf16.mxu0 %v3130_v35  ;;  %v8607_v35 = vld [vmem:[#allocation90_spill] sm:$0xff]  ;;  %v8608_v22 = vld [vmem:[#allocation91_spill] sm:$0xff] }
 0x8f0   :  { %3492 = vmatprep.mubr.bf16.mxu0 %v8603_v56  ;;  %v7499_v40 = vpop.f32.mrf.mxu1  ;;  %3830 = vmatpush1.bf16.xpose.msra.mxu0 %v3129_v36  ;;  %v3123_v36 = vpack.c.bf16 %v2968_v54, %v2964_v41  ;;  %v869_v41 = vld [vmem:[#allocation17 + $0x17] ss:$8 sm:$0x3] }
 0x8f1   :  { %3831 = vmatprep.subr.bf16.mxu0 %v3128_v49  ;;  %v3122_v49 = vpack.c.bf16 %v2960_v11, %v7453_v60  ;;  %v874_v60 = vrot.slane %v869_v41, %v8535_v24  ;;  %v878_v11 = vrot.slane %v869_v41, %v8536_v29  ;;  %v8629_v41 = vld [vmem:[#allocation58_spill] sm:$0xff] }
 0x8f2   :  { %v7501_v28 = vpop.f32.mrf.mxu1 }
 0x8f4   :  { %v7505_v51 = vpop.f32.mrf.mxu1 }
 0x8f7   :  { %3493 = vmatmul.mubr.bf16.gmra.mxu0 %v8604_v4 }
 0x8f8   :  { %3502 = vmatprep.mubr.bf16.mxu0 %v8605_v61  ;;  %3832 = vmatpush1.bf16.xpose.msra.mxu0 %v3127_v25  ;;  %v8620_v61 = vld [vmem:[#allocation36_spill] sm:$0xff] }
 0x8f9   :  { %3833 = vmatprep.subr.bf16.mxu0 %v3126_v59  ;;  %v8618_v59 = vld [vmem:[#allocation35_spill] sm:$0xff] }
 0x8ff   :  { %3503 = vmatmul.mubr.bf16.gmra.mxu0 %v8606_v62  ;;  %v8621_v62 = vld [vmem:[#allocation61_spill] sm:$0xff] }
 0x900   :  { %3512 = vmatprep.mubr.bf16.mxu0 %v8607_v35  ;;  %3834 = vmatpush1.bf16.xpose.msra.mxu0 %v3125_v46 }
 0x901   :  { %3835 = vmatprep.subr.bf16.mxu0 %v3124_v63 }
 0x907   :  { %3513 = vmatmul.mubr.bf16.gmra.mxu0 %v8608_v22  ;;  %v8624_v22 = vld [vmem:[#allocation65_spill] sm:$0xff] }
 0x908   :  { %3522 = vmatprep.mubr.bf16.mxu0 %v8609_v15  ;;  %3836 = vmatpush1.bf16.xpose.msra.mxu0 %v3123_v36 }
 0x909   :  { %3837 = vmatprep.subr.bf16.mxu0 %v3122_v49  ;;  %v8623_v49 = vld [vmem:[#allocation60_spill] sm:$0xff] }
 0x90f   :  { %3523 = vmatmul.mubr.bf16.gmra.mxu0 %v8610_v38 }
 0x910   :  { %3532 = vmatprep.mubr.bf16.mxu0 %v8611_v19  ;;  %3838 = vmatpush1.bf16.xpose.msra.mxu0 %v3121_v12 }
 0x911   :  { %3839 = vmatprep.subr.bf16.mxu0 %v3120_v32  ;;  %v8614_v32 = vld [vmem:[#allocation31_spill] sm:$0xff] }
 0x912   :  { %v955_v2 = vmul.f32 0.00390625, %v8614_v32 }
 0x917   :  { %3533 = vmatmul.mubr.bf16.gmra.mxu0 %v8612_v45  ;;  %v947_v54 = vpop.f32.mrf.mxu0 }
 0x918   :  { %v948_v26 = vadd.f32 %v947_v54, %v874_v60  ;;  %3542 = vmatprep.mubr.bf16.mxu0 %v8613_v43  ;;  %3840 = vmatpush1.bf16.xpose.msra.mxu0 %v3119_v34  ;;  %v8626_v43 = vld [vmem:[#allocation62_spill] sm:$0xff] }
 0x919   :  { %v949_v48 = vpop.f32.mrf.mxu0  ;;  %3841 = vmatprep.subr.bf16.mxu0 %v3118_v57 }
 0x91a   :  { %952 = vst [vmem:[#allocation21] sm:$0xff] %v948_v26  ;;  %v950_v30 = vadd.f32 %v949_v48, %v878_v11  ;;  %v956_v16 = vmul.f32 0.00390625, %v948_v26  ;;  %v8625_v26 = vld [vmem:[#allocation64_spill] sm:$0xff] }
 0x91c   :  { %953 = vst [vmem:[#allocation21 + $0x8] sm:$0xff] %v950_v30  ;;  %v957_v12 = vmul.f32 0.00390625, %v950_v30  ;;  %v7538_v25 = vpack.c.bf16 %v956_v16, %v954_v5 }
 0x91e   :  { %v7536_v56 = vpack.c.bf16 %v957_v12, %v955_v2  ;;  %v8630_v2 = vld [vmem:[#allocation94_spill] sm:$0xff] }
 0x91f   :  { %3543 = vmatmul.mubr.bf16.gmra.mxu0 %v8616_v7 }
 0x920   :  { %v7541_v47 = vpop.f32.mrf.mxu1  ;;  %3552 = vmatprep.mubr.bf16.mxu0 %v7034_v37  ;;  %3818 = vmatprep.mubr.bf16.mxu1 %v7536_v56 }
 0x921   :  { %3842 = vmatpush1.bf16.xpose.msra.mxu0 %v3117_v39  ;;  %3819 = vmatmul.mubr.bf16.vlgmr.msra.gmra.mxu1 %v7538_v25 }
 0x922   :  { %v7548_v27 = vpop.f32.mrf.mxu1  ;;  %3843 = vmatprep.subr.bf16.mxu0 %v3116_v53 }
 0x924   :  { %v7554_v55 = vpop.f32.mrf.mxu1 }
 0x926   :  { %v7558_v37 = vpop.f32.mrf.mxu1 }
 0x927   :  { %3553 = vmatmul.mubr.bf16.gmra.mxu0 %v7036_v42  ;;  %v8631_v42 = vld [vmem:[#allocation66_spill] sm:$0xff] }
 0x928   :  { %v7563_v1 = vpop.f32.mrf.mxu1  ;;  %3562 = vmatprep.mubr.bf16.mxu0 %v7056_v8 }
 0x929   :  { %3844 = vmatpush1.bf16.xpose.msra.mxu0 %v3115_v50  ;;  %v8617_v50 = vld [vmem:[#allocation34_spill] sm:$0xff] }
 0x92a   :  { %v7569_v9 = vpop.f32.mrf.mxu1 }
 0x92c   :  { %v7571_v18 = vpop.f32.mrf.mxu1 }
 0x92e   :  { %v7575_v21 = vpop.f32.mrf.mxu1 }
 0x92f   :  { %3563 = vmatmul.mubr.bf16.gmra.mxu0 %v7065_v20 }
 0x930   :  { %v7580_v39 = vpop.f32.mrf.mxu1  ;;  %3572 = vmatprep.mubr.bf16.mxu0 %v7134_v10  ;;  %v8619_v10 = vld [vmem:[#allocation42_spill] sm:$0xff] }
 0x932   :  { %v7583_v8 = vpop.f32.mrf.mxu1 }
 0x934   :  { %v7585_v52 = vpop.f32.mrf.mxu1 }
 0x936   :  { %v7593_v20 = vpop.f32.mrf.mxu1 }
 0x937   :  { %3573 = vmatmul.mubr.bf16.gmra.mxu0 %v7136_v17  ;;  %v8622_v17 = vld [vmem:[#allocation59_spill] sm:$0xff] }
 0x938   :  { %3582 = vmatprep.mubr.bf16.mxu0 %v7157_v3  ;;  %v7595_v4 = vpop.f32.mrf.mxu1 }
 0x93a   :  { %v7599_v46 = vpop.f32.mrf.mxu1 }
 0x93c   :  { %v7601_v63 = vpop.f32.mrf.mxu1 }
 0x93e   :  { %v7605_v3 = vpop.f32.mrf.mxu1 }
 0x93f   :  { %3583 = vmatmul.mubr.bf16.gmra.mxu0 %v8617_v50  ;;  %v8627_v50 = vld [vmem:[#allocation63_spill] sm:$0xff] }
 0x940   :  { %3592 = vmatprep.mubr.bf16.mxu0 %v8618_v59  ;;  %v7607_v35 = vpop.f32.mrf.mxu1 }
 0x942   :  { %v3056_v15 = vpop.f32.mrf.mxu1 }
 0x944   :  { %v3058_v60 = vpop.f32.mrf.mxu1 }
 0x946   :  { %v3060_v48 = vpop.f32.mrf.mxu1 }
 0x947   :  { %3593 = vmatmul.mubr.bf16.gmra.mxu0 %v8619_v10  ;;  %v8628_v10 = vld [vmem:[#allocation51_spill] sm:$0xff]  ;;  %v3142_v24 = vpack.c.bf16 %v3060_v48, %v3056_v15 }
 0x948   :  { %3602 = vmatprep.mubr.bf16.mxu0 %v8620_v61 }
 0x94f   :  { %3603 = vmatmul.mubr.bf16.gmra.mxu0 %v8621_v62 }
 0x950   :  { %3612 = vmatprep.mubr.bf16.mxu0 %v8622_v17 }
 0x957   :  { %v7609_v36 = vpop.f32.mrf.mxu0  ;;  %3613 = vmatmul.mubr.bf16.gmra.mxu0 %v8623_v49 }
 0x958   :  { %3622 = vmatprep.mubr.bf16.mxu0 %v8624_v22 }
 0x959   :  { %v7613_v38 = vpop.f32.mrf.mxu0 }
 0x95b   :  { %v7615_v19 = vpop.f32.mrf.mxu0 }
 0x95d   :  { %v7619_v11 = vpop.f32.mrf.mxu0 }
 0x95f   :  { %v7623_v54 = vpop.f32.mrf.mxu0  ;;  %3623 = vmatmul.mubr.bf16.gmra.mxu0 %v8625_v26 }
 0x960   :  { %3632 = vmatprep.mubr.bf16.mxu0 %v8626_v43 }
 0x961   :  { %v7627_v30 = vpop.f32.mrf.mxu0 }
 0x963   :  { %v7629_v16 = vpop.f32.mrf.mxu0  ;;  %v3064_v32 = vpop.f32.mrf.mxu1 }
 0x965   :  { %v7633_v12 = vpop.f32.mrf.mxu0  ;;  %v3066_v58 = vpop.f32.mrf.mxu1 }
 0x967   :  { %v7637_v7 = vpop.f32.mrf.mxu0  ;;  %3633 = vmatmul.mubr.bf16.gmra.mxu0 %v8627_v50  ;;  %v3068_v59 = vpop.f32.mrf.mxu1 }
 0x968   :  { %3642 = vmatprep.mubr.bf16.mxu0 %v8628_v10  ;;  %v3143_v33 = vpack.c.bf16 %v3068_v59, %v3064_v32 }
 0x969   :  { %v7641_v61 = vpop.f32.mrf.mxu0  ;;  %v3070_v62 = vpop.f32.mrf.mxu1 }
 0x96a   :  { %v3144_v57 = vpack.c.bf16 %v3070_v62, %v3066_v58  ;;  %v8633_v58 = vld [vmem:[#allocation87_spill] sm:$0xff] }
 0x96b   :  { %v7643_v17 = vpop.f32.mrf.mxu0  ;;  %v3074_v49 = vpop.f32.mrf.mxu1 }
 0x96d   :  { %v7645_v22 = vpop.f32.mrf.mxu0  ;;  %v3076_v26 = vpop.f32.mrf.mxu1 }
 0x96f   :  { %v7647_v43 = vpop.f32.mrf.mxu0  ;;  %3643 = vmatmul.mubr.bf16.gmra.mxu0 %v8629_v41  ;;  %v3078_v45 = vpop.f32.mrf.mxu1  ;;  %v8632_v41 = vld [vmem:[#allocation67_spill] sm:$0xff] }
 0x970   :  { %3652 = vmatprep.mubr.bf16.mxu0 %v8630_v2  ;;  %v3145_v31 = vpack.c.bf16 %v3078_v45, %v3074_v49 }
 0x971   :  { %v7651_v50 = vpop.f32.mrf.mxu0  ;;  %v3080_v5 = vpop.f32.mrf.mxu1 }
 0x972   :  { %v3146_v10 = vpack.c.bf16 %v3080_v5, %v3076_v26 }
 0x973   :  { %v7653_v13 = vpop.f32.mrf.mxu0 }
 0x974   :  { %3845 = vmatprep.subr.bf16.mxu0 %v3146_v10  ;;  %v8637_v10 = vpack.c.bf16 %v7558_v37, %v7548_v27  ;;  %v8638_v37 = vpack.c.bf16 %v7554_v55, %v7541_v47  ;;  %v3697_v47 = vpack.c.bf16 %v7643_v17, %v7637_v7  ;;  %v8643_v7 = vpack.c.bf16 %v7619_v11, %v7613_v38 }
 0x975   :  { %v7655_v34 = vpop.f32.mrf.mxu0  ;;  %3846 = vmatpush2.bf16.xpose.msra.mxu0 %v3145_v31 }
 0x976   :  { %3847 = vmatprep.subr.bf16.mxu0 %v3144_v57  ;;  %v3141_v57 = vpack.c.bf16 %v3058_v60, %v7607_v35  ;;  %v3138_v35 = vpack.c.bf16 %v7593_v20, %v7583_v8 }
 0x977   :  { %v7657_v53 = vpop.f32.mrf.mxu0  ;;  %3653 = vmatmul.mubr.bf16.gmra.mxu0 %v8631_v42  ;;  %v3140_v42 = vpack.c.bf16 %v7605_v3, %v7599_v46 }
 0x978   :  { %3662 = vmatprep.mubr.bf16.mxu0 %v8632_v41 }
 0x979   :  { %v3416_v2 = vpop.f32.mrf.mxu0 }
 0x97b   :  { %v3418_v29 = vpop.f32.mrf.mxu0 }
 0x97d   :  { %v3420_v5 = vpop.f32.mrf.mxu0  ;;  %3848 = vmatpush2.bf16.xpose.msra.mxu0 %v3143_v33  ;;  %v3139_v33 = vpack.c.bf16 %v7601_v63, %v7595_v4  ;;  %v8635_v63 = vpack.c.bf16 %v7575_v21, %v7569_v9  ;;  %v8636_v9 = vpack.c.bf16 %v7571_v18, %v7563_v1  ;;  %v3700_v18 = vpack.c.bf16 %v7655_v34, %v7651_v50 }
 0x97e   :  { %3849 = vmatprep.subr.bf16.mxu0 %v3142_v24  ;;  %v3699_v34 = vpack.c.bf16 %v7653_v13, %v7647_v43  ;;  %v3698_v50 = vpack.c.bf16 %v7645_v22, %v7641_v61  ;;  %v8642_v22 = vpack.c.bf16 %v7629_v16, %v7623_v54 }
 0x97f   :  { %v3424_v45 = vpop.f32.mrf.mxu0  ;;  %3663 = vmatmul.mubr.bf16.gmra.mxu0 %v8633_v58 }
 0x980   :  { %3672 = vmatprep.mubr.bf16.mxu0 %v7403_v14 }
 0x981   :  { %v3426_v31 = vpop.f32.mrf.mxu0 }
 0x983   :  { %v3428_v62 = vpop.f32.mrf.mxu0 }
 0x984   :  { %v3703_v41 = vpack.c.bf16 %v3428_v62, %v3424_v45 }
 0x985   :  { %v3430_v49 = vpop.f32.mrf.mxu0  ;;  %3850 = vmatpush2.bf16.xpose.msra.mxu0 %v3141_v57 }
 0x986   :  { %3851 = vmatprep.subr.bf16.mxu0 %v3140_v42  ;;  %v3704_v26 = vpack.c.bf16 %v3430_v49, %v3426_v31  ;;  %v3702_v31 = vpack.c.bf16 %v3420_v5, %v3416_v2  ;;  %v3701_v42 = vpack.c.bf16 %v3418_v29, %v7657_v53  ;;  %v8639_v29 = vpack.c.bf16 %v7505_v51, %v7499_v40 }
 0x987   :  { %v3434_v32 = vpop.f32.mrf.mxu0  ;;  %3673 = vmatmul.mubr.bf16.gmra.mxu0 %v7405_v44  ;;  %v8640_v40 = vpack.c.bf16 %v7501_v28, %v7495_v23  ;;  %v8641_v51 = vpack.c.bf16 %v7633_v12, %v7627_v30  ;;  %v8644_v28 = vpack.c.bf16 %v7615_v19, %v7609_v36 }
 0x988   :  { %3682 = vmatprep.mubr.bf16.mxu0 %v7437_v6  ;;  %v8634_v6 = vpack.c.bf16 %v7585_v52, %v7580_v39 }
 0x989   :  { %v3436_v24 = vpop.f32.mrf.mxu0 }
 0x98b   :  { %v3438_v14 = vpop.f32.mrf.mxu0 }
 0x98d   :  { %v3440_v15 = vpop.f32.mrf.mxu0  ;;  %3852 = vmatpush2.bf16.xpose.msra.mxu0 %v3139_v33 }
 0x98e   :  { %3853 = vmatprep.subr.bf16.mxu0 %v3138_v35  ;;  %v3706_v48 = vpack.c.bf16 %v3440_v15, %v3436_v24 }
 0x98f   :  { %v3444_v46 = vpop.f32.mrf.mxu0  ;;  %3683 = vmatmul.mubr.bf16.gmra.mxu0 %v7439_v0 }
 0x990   :  { %3861 = vmatprep.mubr.bf16.mxu0 %v7536_v56  ;;  %v3705_v56 = vpack.c.bf16 %v3438_v14, %v3434_v32 }
 0x991   :  { %v3446_v3 = vpop.f32.mrf.mxu0 }
 0x993   :  { %v3448_v44 = vpop.f32.mrf.mxu0 }
 0x994   :  { %v3707_v8 = vpack.c.bf16 %v3448_v44, %v3444_v46 }
 0x995   :  { %v3450_v60 = vpop.f32.mrf.mxu0  ;;  %3854 = vmatpush2.bf16.xpose.msra.mxu0 %v8634_v6 }
 0x996   :  { %v3708_v4 = vpack.c.bf16 %v3450_v60, %v3446_v3  ;;  %3855 = vmatprep.subr.bf16.mxu0 %v8635_v63 }
 0x997   :  { %v7680_v20 = vpop.f32.mrf.mxu0 }
 0x998   :  { %4032 = vmatprep.subr.bf16.mxu1 %v3708_v4 }
 0x999   :  { %v7682_v0 = vpop.f32.mrf.mxu0  ;;  %4033 = vmatpush1.bf16.msra.mxu1 %v3707_v8 }
 0x99a   :  { %4034 = vmatprep.subr.bf16.mxu1 %v3706_v48 }
 0x99b   :  { %v7684_v59 = vpop.f32.mrf.mxu0 }
 0x99c   :  { %v3709_v39 = vpack.c.bf16 %v7684_v59, %v7680_v20 }
 0x99d   :  { %v7688_v52 = vpop.f32.mrf.mxu0  ;;  %4035 = vmatpush1.bf16.msra.mxu1 %v3705_v56  ;;  %3856 = vmatpush2.bf16.xpose.msra.mxu0 %v8636_v9 }
 0x99e   :  { %v3710_v21 = vpack.c.bf16 %v7688_v52, %v7682_v0  ;;  %4036 = vmatprep.subr.bf16.mxu1 %v3704_v26  ;;  %3857 = vmatprep.subr.bf16.mxu0 %v8637_v10 }
 0x99f   :  { %v7698_v58 = vpop.f32.mrf.mxu0 }
 0x9a1   :  { %v7700_v57 = vpop.f32.mrf.mxu0  ;;  %4037 = vmatpush1.bf16.msra.mxu1 %v3703_v41 }
 0x9a2   :  { %4038 = vmatprep.subr.bf16.mxu1 %v3702_v31 }
 0x9a3   :  { %v7703_v1 = vpop.f32.mrf.mxu0 }
 0x9a4   :  { %v3711_v49 = vpack.c.bf16 %v7703_v1, %v7698_v58 }
 0x9a5   :  { %v7709_v27 = vpop.f32.mrf.mxu0  ;;  %4039 = vmatpush1.bf16.msra.mxu1 %v3701_v42  ;;  %3858 = vmatpush2.bf16.xpose.msra.mxu0 %v8638_v37 }
 0x9a6   :  { %v3712_v2 = vpack.c.bf16 %v7709_v27, %v7700_v57  ;;  %4040 = vmatprep.subr.bf16.mxu1 %v3700_v18  ;;  %3859 = vmatprep.subr.bf16.mxu0 %v8639_v29 }
 0x9a7   :  { %v7721_v53 = vpop.f32.mrf.mxu0 }
 0x9a9   :  { %v7725_v5 = vpop.f32.mrf.mxu0  ;;  %4041 = vmatpush1.bf16.msra.mxu1 %v3699_v34 }
 0x9aa   :  { %4042 = vmatprep.subr.bf16.mxu1 %v3698_v50 }
 0x9ab   :  { %v7729_v55 = vpop.f32.mrf.mxu0 }
 0x9ad   :  { %v7731_v45 = vpop.f32.mrf.mxu0  ;;  %4043 = vmatpush1.bf16.msra.mxu1 %v3697_v47  ;;  %3860 = vmatpush2.bf16.xpose.msra.mxu0 %v8640_v40 }
 0x9ae   :  { %4044 = vmatprep.subr.bf16.mxu1 %v8641_v51 }
 0x9af   :  { %v7739_v13 = vpop.f32.mrf.mxu0 }
 0x9b1   :  { %v3486_v61 = vpop.f32.mrf.mxu0  ;;  %4045 = vmatpush1.bf16.msra.mxu1 %v8642_v22 }
 0x9b2   :  { %4046 = vmatprep.subr.bf16.mxu1 %v8643_v7 }
 0x9b3   :  { %v7747_v17 = vpop.f32.mrf.mxu0 }
 0x9b4   :  { %3862 = vmatmul.mubr.bf16.vlgmr.msra.gmra.mxu0 %v7538_v25 }
 0x9b5   :  { %v3490_v23 = vpop.f32.mrf.mxu0  ;;  %4047 = vmatpush1.bf16.msra.mxu1 %v8644_v28 }
 0x9b6   :  { %v3716_v34 = vpack.c.bf16 %v3490_v23, %v3486_v61  ;;  %v3715_v61 = vpack.c.bf16 %v7747_v17, %v7739_v13 }
 0x9b7   :  { %v3494_v30 = vpop.f32.mrf.mxu0 }
 0x9b9   :  { %v3496_v12 = vpop.f32.mrf.mxu0 }
 0x9bb   :  { %v3498_v43 = vpop.f32.mrf.mxu0 }
 0x9bc   :  { %v3717_v18 = vpack.c.bf16 %v3498_v43, %v3494_v30  ;;  %v3714_v30 = vpack.c.bf16 %v7731_v45, %v7725_v5  ;;  %v3713_v5 = vpack.c.bf16 %v7729_v55, %v7721_v53 }
 0x9bd   :  { %v3500_v62 = vpop.f32.mrf.mxu0 }
 0x9be   :  { %v3718_v10 = vpack.c.bf16 %v3500_v62, %v3496_v12 }
 0x9bf   :  { %v3504_v32 = vpop.f32.mrf.mxu0 }
 0x9c1   :  { %v3506_v54 = vpop.f32.mrf.mxu0 }
 0x9c3   :  { %v3508_v16 = vpop.f32.mrf.mxu0 }
 0x9c4   :  { %v3719_v26 = vpack.c.bf16 %v3508_v16, %v3504_v32 }
 0x9c5   :  { %v3510_v24 = vpop.f32.mrf.mxu0 }
 0x9c6   :  { %v3720_v63 = vpack.c.bf16 %v3510_v24, %v3506_v54 }
 0x9c7   :  { %v3514_v33 = vpop.f32.mrf.mxu0 }
 0x9c9   :  { %v3516_v38 = vpop.f32.mrf.mxu0 }
 0x9cb   :  { %v3518_v11 = vpop.f32.mrf.mxu0 }
 0x9cc   :  { %v3721_v6 = vpack.c.bf16 %v3518_v11, %v3514_v33 }
 0x9cd   :  { %v3520_v14 = vpop.f32.mrf.mxu0 }
 0x9ce   :  { %v3722_v19 = vpack.c.bf16 %v3520_v14, %v3516_v38 }
 0x9cf   :  { %v3524_v35 = vpop.f32.mrf.mxu0 }
 0x9d1   :  { %v3526_v15 = vpop.f32.mrf.mxu0 }
 0x9d3   :  { %v3528_v25 = vpop.f32.mrf.mxu0 }
 0x9d4   :  { %v3723_v44 = vpack.c.bf16 %v3528_v25, %v3524_v35 }
 0x9d5   :  { %v3530_v46 = vpop.f32.mrf.mxu0 }
 0x9d6   :  { %v3724_v3 = vpack.c.bf16 %v3530_v46, %v3526_v15 }
 0x9d7   :  { %v7753_v36 = vpop.f32.mrf.mxu0 }
 0x9d8   :  { %4048 = vmatprep.subr.bf16.mxu1 %v3724_v3 }
 0x9d9   :  { %v7755_v60 = vpop.f32.mrf.mxu0  ;;  %4049 = vmatpush2.bf16.msra.mxu1 %v3723_v44 }
 0x9da   :  { %4050 = vmatprep.subr.bf16.mxu1 %v3722_v19 }
 0x9db   :  { %v7757_v4 = vpop.f32.mrf.mxu0 }
 0x9dc   :  { %v3725_v8 = vpack.c.bf16 %v7757_v4, %v7753_v36 }
 0x9dd   :  { %v7761_v48 = vpop.f32.mrf.mxu0  ;;  %4051 = vmatpush2.bf16.msra.mxu1 %v3721_v6 }
 0x9de   :  { %v3726_v56 = vpack.c.bf16 %v7761_v48, %v7755_v60  ;;  %4052 = vmatprep.subr.bf16.mxu1 %v3720_v63 }
 0x9df   :  { %v7765_v9 = vpop.f32.mrf.mxu0 }
 0x9e1   :  { %v7767_v41 = vpop.f32.mrf.mxu0  ;;  %4053 = vmatpush2.bf16.msra.mxu1 %v3719_v26  ;;  %v3820_v31 = vpop.f32.mrf.mxu1 }
 0x9e2   :  { %v3872_v42 = vrot.slane %v3820_v31, 4  ;;  %4054 = vmatprep.subr.bf16.mxu1 %v3718_v10 }
 0x9e3   :  { %v7769_v37 = vpop.f32.mrf.mxu0  ;;  %v3822_v29 = vpop.f32.mrf.mxu1 }
 0x9e4   :  { %v3873_v50 = vmax.f32 %v3820_v31, %v3872_v42  ;;  %v3727_v47 = vpack.c.bf16 %v7769_v37, %v7765_v9  ;;  %v3878_v40 = vrot.slane %v3822_v29, 4 }
 0x9e5   :  { %v7773_v51 = vpop.f32.mrf.mxu0  ;;  %4055 = vmatpush2.bf16.msra.mxu1 %v3717_v18  ;;  %v3824_v22 = vpop.f32.mrf.mxu1 }
 0x9e6   :  { %v3874_v7 = vrot.slane %v3873_v50, 2  ;;  %v3879_v28 = vmax.f32 %v3822_v29, %v3878_v40  ;;  %v3728_v12 = vpack.c.bf16 %v7773_v51, %v7767_v41  ;;  %v3940_v62 = vrot.slane %v3824_v22, 4  ;;  %4056 = vmatprep.subr.bf16.mxu1 %v3716_v34 }
 0x9e7   :  { %v7781_v23 = vpop.f32.mrf.mxu0  ;;  %v3826_v43 = vpop.f32.mrf.mxu1 }
 0x9e8   :  { %v3875_v32 = vmax.f32 %v3873_v50, %v3874_v7  ;;  %v3880_v54 = vrot.slane %v3879_v28, 2  ;;  %v3941_v16 = vmax.f32 %v3824_v22, %v3940_v62  ;;  %v3946_v24 = vrot.slane %v3826_v43, 4 }
 0x9e9   :  { %v7783_v33 = vpop.f32.mrf.mxu0  ;;  %4057 = vmatpush2.bf16.msra.mxu1 %v3715_v61 }
 0x9ea   :  { %v3876_v38 = vrot.slane %v3875_v32, 1  ;;  %v3881_v11 = vmax.f32 %v3879_v28, %v3880_v54  ;;  %v3942_v14 = vrot.slane %v3941_v16, 2  ;;  %v3947_v35 = vmax.f32 %v3826_v43, %v3946_v24  ;;  %4058 = vmatprep.subr.bf16.mxu1 %v3714_v30 }
 0x9eb   :  { %v7787_v45 = vpop.f32.mrf.mxu0 }
 0x9ec   :  { %v3877_v13 = vmax.f32 %v3875_v32, %v3876_v38  ;;  %v3882_v17 = vrot.slane %v3881_v11, 1  ;;  %v3943_v15 = vmax.f32 %v3941_v16, %v3942_v14  ;;  %v3948_v25 = vrot.slane %v3947_v35, 2 }
 0x9ed   :  { %v7789_v46 = vpop.f32.mrf.mxu0  ;;  %4059 = vmatpush2.bf16.msra.mxu1 %v3713_v5 }
 0x9ee   :  { %v3896_v3 = vsub.f32 %v3820_v31, %v3877_v13  ;;  %v3883_v44 = vmax.f32 %v3881_v11, %v3882_v17  ;;  %v3944_v19 = vrot.slane %v3943_v15, 1  ;;  %v3949_v6 = vmax.f32 %v3947_v35, %v3948_v25  ;;  %4060 = vmatprep.subr.bf16.mxu1 %v3712_v2 }
 0x9ef   :  { %v7794_v63 = vpop.f32.mrf.mxu0 }
 0x9f0   :  { %v3900_v53 = vmul.f32 1.442695, %v3896_v3  ;;  %v3897_v55 = vsub.f32 %v3822_v29, %v3883_v44  ;;  %v3945_v26 = vmax.f32 %v3943_v15, %v3944_v19  ;;  %v3950_v10 = vrot.slane %v3949_v6, 1 }
 0x9f1   :  { %v7796_v42 = vpop.f32.mrf.mxu0  ;;  %4061 = vmatpush2.bf16.msra.mxu1 %v3711_v49 }
 0x9f2   :  { %4850 = vpow2.f32 %v3900_v53  ;;  %v3902_v31 = vmul.f32 1.442695, %v3897_v55  ;;  %v3964_v18 = vsub.f32 %v3824_v22, %v3945_v26  ;;  %v3951_v34 = vmax.f32 %v3949_v6, %v3950_v10  ;;  %4062 = vmatprep.subr.bf16.mxu1 %v3710_v21 }
 0x9f3   :  { %v7804_v57 = vpop.f32.mrf.mxu0 }
 0x9f4   :  { %4852 = vpow2.f32 %v3902_v31  ;;  %v3968_v27 = vmul.f32 1.442695, %v3964_v18  ;;  %v3965_v2 = vsub.f32 %v3826_v43, %v3951_v34 }
 0x9f5   :  { %v7806_v29 = vpop.f32.mrf.mxu0  ;;  %4063 = vmatpush2.bf16.msra.mxu1 %v3709_v39 }
 0x9f6   :  { %4854 = vpow2.f32 %v3968_v27  ;;  %v3970_v58 = vmul.f32 1.442695, %v3965_v2 }
 0x9f7   :  { %v7811_v1 = vpop.f32.mrf.mxu0 }
 0x9f8   :  { %4856 = vpow2.f32 %v3970_v58 }
 0x9f9   :  { %v7813_v49 = vpop.f32.mrf.mxu0 }
 0x9fb   :  { %v7815_v0 = vpop.f32.mrf.mxu0 }
 0x9fd   :  { %v7817_v52 = vpop.f32.mrf.mxu0 }
 0x9ff   :  { %v7819_v21 = vpop.eup %4850  ;;  %v7821_v50 = vpop.f32.mrf.mxu0 }
 0xa00   :  { %v3908_v40 = vrot.slane %v7819_v21, 4 }
 0xa01   :  { %v7824_v22 = vpop.eup %4852  ;;  %v3586_v20 = vpop.f32.mrf.mxu0 }
 0xa02   :  { %v3909_v59 = vadd.f32 %v7819_v21, %v3908_v40  ;;  %v3914_v39 = vrot.slane %v7824_v22, 4 }
 0xa03   :  { %v7828_v7 = vpop.eup %4854  ;;  %v7830_v28 = vpop.f32.mrf.mxu0 }
 0xa04   :  { %v3976_v62 = vrot.slane %v7828_v7, 4  ;;  %v3915_v30 = vadd.f32 %v7824_v22, %v3914_v39  ;;  %v3910_v61 = vrot.slane %v3909_v59, 2 }
 0xa05   :  { %v4857_v43 = vpop.eup %4856  ;;  %v3590_v32 = vpop.f32.mrf.mxu0 }
 0xa06   :  { %v3977_v54 = vadd.f32 %v7828_v7, %v3976_v62  ;;  %v3916_v16 = vrot.slane %v3915_v30, 2  ;;  %v3982_v24 = vrot.slane %v4857_v43, 4  ;;  %v3911_v11 = vadd.f32 %v3910_v61, %v3909_v59 }
 0xa07   :  { %v3594_v38 = vpop.f32.mrf.mxu0  ;;  %v8645_v59 = vlaneseq }
 0xa08   :  { %v3917_v14 = vadd.f32 %v3916_v16, %v3915_v30  ;;  %v3983_v35 = vadd.f32 %v4857_v43, %v3982_v24  ;;  %v3978_v5 = vrot.slane %v3977_v54, 2  ;;  %v3912_v17 = vrot.slane %v3911_v11, 1 }
 0xa09   :  { %v3596_v13 = vpop.f32.mrf.mxu0  ;;  %v7836_v39 = vand.u32 127, %v8645_v59 }
 0xa0a   :  { %v3918_v15 = vrot.slane %v3917_v14, 1  ;;  %v3984_v25 = vrot.slane %v3983_v35, 2  ;;  %v3979_v3 = vadd.f32 %v3978_v5, %v3977_v54  ;;  %v3913_v26 = vadd.f32 %v3912_v17, %v3911_v11 }
 0xa0b   :  { %v3598_v44 = vpop.f32.mrf.mxu0  ;;  %v3760_v16 = vadd.s32 128, %v7836_v39  ;;  %v3736_v5 = vpack.c.bf16 %v3590_v32, %v3586_v20  ;;  %v3734_v32 = vpack.c.bf16 %v7817_v52, %v7813_v49  ;;  %v3732_v49 = vpack.c.bf16 %v7806_v29, %v7796_v42 }
 0xa0c   :  { %v3919_v19 = vadd.f32 %v3918_v15, %v3917_v14  ;;  %v3985_v6 = vadd.f32 %v3984_v25, %v3983_v35  ;;  %v3980_v53 = vrot.slane %v3979_v3, 1  ;;  %v3737_v24 = vpack.c.bf16 %v3598_v44, %v3594_v38 }
 0xa0d   :  { %v3600_v55 = vpop.f32.mrf.mxu0  ;;  %v7848_v14 = vstv %s7939_s0  ;;  %v3735_v44 = vpack.c.bf16 %v7830_v28, %v7821_v50  ;;  %v3733_v28 = vpack.c.bf16 %v7815_v0, %v7811_v1  ;;  %v3731_v1 = vpack.c.bf16 %v7804_v57, %v7794_v63  ;;  %s5106_s0 = smov [#allocation18]  }
 0xa0e   :  { %v3986_v10 = vrot.slane %v3985_v6, 1  ;;  %v3981_v31 = vadd.f32 %v3980_v53, %v3979_v3  ;;  %4858 = vrcp.f32 %v3919_v19  ;;  %v3738_v61 = vpack.c.bf16 %v3600_v55, %v3596_v13  ;;  %s4445_s21 = sshll.u32 %s5106_s0, 4  ;;  %s4446_s21 = int_to_ptr.vmem [resolvable:$true] %s4445_s21 }
 0xa0f   :  { %v3604_v18 = vpop.f32.mrf.mxu0  ;;  %vm3771_vm0 = vcmp.lt.s32.totalorder %v3760_v16, %v7848_v14  ;;  %vm3770_vm1 = vcmp.lt.s32.totalorder %v7836_v39, %v7848_v14  ;;  %v3729_v29 = vpack.c.bf16 %v7787_v45, %v7781_v23  ;;  %s5022_s4 = scalar_lea.vmem %s4446_s21, 256  ;;  %p5027_p8 = scmp.lt.s32.totalorder %s4446_s21, %s4446_s21 }
 0xa10   :  { %v3987_v34 = vadd.f32 %v3986_v10, %v3985_v6  ;;  %4860 = vrcp.f32 %v3981_v31  ;;  %vm4552_vm2 = vmpackc.low %vm3771_vm0, %vm3771_vm0  ;;  %p5023_p7 = scmp.ne.s32.totalorder %s4446_s21, %s5022_s4  ;;  %p5028_p9 = scmp.lt.s32.totalorder %s5022_s4, %s5022_s4 }
 0xa11   :  { %v3606_v27 = vpop.f32.mrf.mxu0  ;;  %4862 = vrcp.f32 %v3913_v26  ;;  %vm4555_vm3 = vmpackc.low %vm3770_vm1, %vm3770_vm1 }
 0xa12   :  { %4864 = vrcp.f32 %v3987_v34  ;;  %p5029_p10 = por %p5028_p9, %p5027_p8 }
 0xa13   :  { %v3608_v2 = vpop.f32.mrf.mxu0 }
 0xa14   :  { %v3739_v62 = vpack.c.bf16 %v3608_v2, %v3604_v18  ;;  %p5030_p11 = pnand %p5029_p10, %p5023_p7 }
 0xa15   :  { %v3610_v58 = vpop.f32.mrf.mxu0 }
 0xa16   :  { %v3740_v40 = vpack.c.bf16 %v3610_v58, %v3606_v27 }
 0xa17   :  { %v7838_v30 = vpop.f32.mrf.mxu0 }
 0xa18   :  { %4075 = vmatprep.subr.bf16.mxu0 %v3740_v40 }
 0xa19   :  { %v7840_v54 = vpop.f32.mrf.mxu0  ;;  %4076 = vmatpush1.bf16.msra.mxu0 %v3739_v62 }
 0xa1a   :  { %4077 = vmatprep.subr.bf16.mxu0 %v3738_v61 }
 0xa1b   :  { %v7843_v11 = vpop.f32.mrf.mxu0  ;;  %v4859_v35 = vpop.eup %4858 }
 0xa1c   :  { %v3741_v13 = vpack.c.bf16 %v7843_v11, %v7838_v30  ;;  %v3937_v6 = vmul.f32 %v4859_v35, %v7824_v22  ;;  %v4153_v30 = vld [vmem:[#allocation12 + $0x278] sm:$0xff] }
 0xa1d   :  { %v4861_v17 = vpop.eup %4860  ;;  %v7852_v15 = vpop.f32.mrf.mxu0  ;;  %4078 = vmatpush1.bf16.msra.mxu0 %v3737_v24 }
 0xa1e   :  { %v4863_v25 = vpop.eup %4862  ;;  %v3742_v38 = vpack.c.bf16 %v7852_v15, %v7840_v54  ;;  %4079 = vmatprep.subr.bf16.mxu0 %v3736_v5  ;;  %v4004_v20 = vmul.f32 %v4861_v17, %v7828_v7  ;;  %v4156_v54 = vld [vmem:[#allocation12 + $0x290] sm:$0xff] }
 0xa1f   :  { %v4865_v3 = vpop.eup %4864  ;;  %v7859_v19 = vpop.f32.mrf.mxu0  ;;  %v3936_v26 = vmul.f32 %v4863_v25, %v7819_v21 }
 0xa20   :  { %v4005_v53 = vmul.f32 %v4865_v3, %v4857_v43  ;;  %v3730_v43 = vpack.c.bf16 %v7789_v46, %v7783_v33  ;;  %v4169_v3 = vld [vmem:[#allocation12 + $0x2f8] sm:$0xff] }
 0xa21   :  { %v7867_v55 = vpop.f32.mrf.mxu0  ;;  %4080 = vmatpush1.bf16.msra.mxu0 %v3735_v44  ;;  %v4556_v7 = vpack.c.bf16 %v4004_v20, %v3936_v26  ;;  %v4168_v44 = vld [vmem:[#allocation12 + $0x2f0] sm:$0xff]  ;;  %v4167_v20 = vld [vmem:[#allocation12 + $0x2e8] sm:$0xff]  ;;  %4215 = vmatprep.subr.mxu1 %v4169_v3  ;;  %v4141_v3 = vld [vmem:[#allocation12 + $0x218] sm:$0xff] }
 0xa22   :  { %4081 = vmatprep.subr.bf16.mxu0 %v3734_v32  ;;  %v4553_v50 = vpack.c.bf16 %v4005_v53, %v3937_v6  ;;  %v4166_v32 = vld [vmem:[#allocation12 + $0x2e0] sm:$0xff]  ;;  %v4165_v6 = vld [vmem:[#allocation12 + $0x2d8] sm:$0xff]  ;;  %v4164_v53 = vld [vmem:[#allocation12 + $0x2d0] sm:$0xff] }
 0xa23   :  { %v7872_v10 = vpop.f32.mrf.mxu0  ;;  %v4163_v26 = vld [vmem:[#allocation12 + $0x2c8] sm:$0xff] }
 0xa24   :  { %v3743_v52 = vpack.c.bf16 %v7872_v10, %v7859_v19  ;;  %4554 = vmatprep.mubr.msk.bf16.mxu1 %vm4552_vm2, %v4553_v50  ;;  %v4162_v50 = vld [vmem:[#allocation12 + $0x2c0] sm:$0xff]  ;;  %v4157_v10 = vld [vmem:[#allocation12 + $0x298] sm:$0xff] }
 0xa25   :  { %v7878_v22 = vpop.f32.mrf.mxu0  ;;  %4082 = vmatpush1.bf16.msra.mxu0 %v3733_v28  ;;  %4557 = vmatmul.mubr.msk.bf16.vlgmr.msra.gmra.mxu1 %vm4555_vm3, %v4556_v7  ;;  %v4161_v28 = vld [vmem:[#allocation12 + $0x2b8] sm:$0xff]  ;;  %v4160_v7 = vld [vmem:[#allocation12 + $0x2b0] sm:$0xff] }
 0xa26   :  { %v3744_v21 = vpack.c.bf16 %v7878_v22, %v7867_v55  ;;  %4083 = vmatprep.subr.bf16.mxu0 %v3732_v49  ;;  %4216 = vmatpush1.msra.mxu1 %v4168_v44  ;;  %v4320_v55 = vld [vmem:[#allocation12 + $0x4f8] sm:$0xff]  ;;  %v4159_v49 = vld [vmem:[#allocation12 + $0x2a8] sm:$0xff]  ;;  %v4140_v44 = vld [vmem:[#allocation12 + $0x210] sm:$0xff] }
 0xa27   :  { %v3634_v0 = vpop.f32.mrf.mxu0  ;;  %4217 = vmatprep.subr.mxu1 %v4167_v20 }
 0xa28   :  { %4218 = vmatpush1.msra.mxu1 %v4166_v32 }
 0xa29   :  { %v3636_v42 = vpop.f32.mrf.mxu0  ;;  %4084 = vmatpush1.bf16.msra.mxu0 %v3731_v1  ;;  %4219 = vmatprep.subr.mxu1 %v4165_v6  ;;  %v4155_v1 = vld [vmem:[#allocation12 + $0x288] sm:$0xff] }
 0xa2a   :  { %4085 = vmatprep.subr.bf16.mxu0 %v3730_v43  ;;  %4220 = vmatpush1.msra.mxu1 %v4164_v53  ;;  %v4154_v43 = vld [vmem:[#allocation12 + $0x280] sm:$0xff]  ;;  %v4139_v6 = vld [vmem:[#allocation12 + $0x208] sm:$0xff] }
 0xa2b   :  { %v3638_v31 = vpop.f32.mrf.mxu0  ;;  %4221 = vmatprep.subr.mxu1 %v4163_v26  ;;  %v4138_v53 = vld [vmem:[#allocation12 + $0x200] sm:$0xff] }
 0xa2c   :  { %v3745_v25 = vpack.c.bf16 %v3638_v31, %v3634_v0  ;;  %4222 = vmatpush1.msra.mxu1 %v4162_v50  ;;  %v4201_v50 = vld [vmem:[#allocation12 + $0x3f8] sm:$0xff] }
 0xa2d   :  { %v3640_v18 = vpop.f32.mrf.mxu0  ;;  %4086 = vmatpush1.bf16.msra.mxu0 %v3729_v29  ;;  %4223 = vmatprep.subr.mxu1 %v4161_v28  ;;  %v4200_v28 = vld [vmem:[#allocation12 + $0x3f0] sm:$0xff] }
 0xa2e   :  { %4087 = vmatprep.subr.bf16.mxu0 %v3728_v12  ;;  %v3746_v17 = vpack.c.bf16 %v3640_v18, %v3636_v42  ;;  %4224 = vmatpush1.msra.mxu1 %v4160_v7  ;;  %v4199_v7 = vld [vmem:[#allocation12 + $0x3e8] sm:$0xff] }
 0xa2f   :  { %v3644_v34 = vpop.f32.mrf.mxu0  ;;  %4225 = vmatprep.subr.mxu1 %v4159_v49  ;;  %v4197_v49 = vld [vmem:[#allocation12 + $0x3d8] sm:$0xff] }
 0xa31   :  { %v3646_v27 = vpop.f32.mrf.mxu0  ;;  %4088 = vmatpush1.bf16.msra.mxu0 %v3727_v47 }
 0xa32   :  { %4089 = vmatprep.subr.bf16.mxu0 %v3726_v56 }
 0xa33   :  { %v3648_v33 = vpop.f32.mrf.mxu0 }
 0xa34   :  { %v3747_v5 = vpack.c.bf16 %v3648_v33, %v3644_v34 }
 0xa35   :  { %v3650_v46 = vpop.f32.mrf.mxu0  ;;  %4090 = vmatpush1.bf16.msra.mxu0 %v3725_v8 }
 0xa36   :  { %v3748_v35 = vpack.c.bf16 %v3650_v46, %v3646_v27  ;;  %v4151_v46 = vld [vmem:[#allocation12 + $0x268] sm:$0xff] }
 0xa37   :  { %v3654_v23 = vpop.f32.mrf.mxu0 }
 0xa39   :  { %v3656_v45 = vpop.f32.mrf.mxu0 }
 0xa3b   :  { %v3658_v41 = vpop.f32.mrf.mxu0 }
 0xa3c   :  { %v3749_v24 = vpack.c.bf16 %v3658_v41, %v3654_v23  ;;  %v4150_v23 = vld [vmem:[#allocation12 + $0x260] sm:$0xff] }
 0xa3d   :  { %v3660_v51 = vpop.f32.mrf.mxu0 }
 0xa3e   :  { %v3750_v16 = vpack.c.bf16 %v3660_v51, %v3656_v45 }
 0xa3f   :  { %v3664_v12 = vpop.f32.mrf.mxu0 }
 0xa41   :  { %v3666_v63 = vpop.f32.mrf.mxu0 }
 0xa43   :  { %v3668_v57 = vpop.f32.mrf.mxu0 }
 0xa44   :  { %v3751_v61 = vpack.c.bf16 %v3668_v57, %v3664_v12  ;;  %v4148_v57 = vld [vmem:[#allocation12 + $0x250] sm:$0xff] }
 0xa45   :  { %v3670_v2 = vpop.f32.mrf.mxu0 }
 0xa46   :  { %v3752_v8 = vpack.c.bf16 %v3670_v2, %v3666_v63  ;;  %v4149_v63 = vld [vmem:[#allocation12 + $0x258] sm:$0xff] }
 0xa47   :  { %v3674_v9 = vpop.f32.mrf.mxu0 }
 0xa49   :  { %v3676_v37 = vpop.f32.mrf.mxu0 }
 0xa4b   :  { %v3678_v47 = vpop.f32.mrf.mxu0 }
 0xa4c   :  { %v3753_v4 = vpack.c.bf16 %v3678_v47, %v3674_v9 }
 0xa4d   :  { %v3680_v58 = vpop.f32.mrf.mxu0 }
 0xa4e   :  { %v3754_v36 = vpack.c.bf16 %v3680_v58, %v3676_v37  ;;  %v4147_v58 = vld [vmem:[#allocation12 + $0x248] sm:$0xff] }
 0xa4f   :  { %v3684_v60 = vpop.f32.mrf.mxu0 }
 0xa51   :  { %v3686_v48 = vpop.f32.mrf.mxu0 }
 0xa53   :  { %v3688_v56 = vpop.f32.mrf.mxu0 }
 0xa54   :  { %v3755_v62 = vpack.c.bf16 %v3688_v56, %v3684_v60  ;;  %v4146_v60 = vld [vmem:[#allocation12 + $0x240] sm:$0xff] }
 0xa55   :  { %v3690_v40 = vpop.f32.mrf.mxu0 }
 0xa56   :  { %v3756_v59 = vpack.c.bf16 %v3690_v40, %v3686_v48 }
 0xa58   :  { %4091 = vmatprep.subr.bf16.mxu0 %v3756_v59 }
 0xa59   :  { %4092 = vmatpush2.bf16.msra.mxu0 %v3755_v62  ;;  %v4145_v62 = vld [vmem:[#allocation12 + $0x238] sm:$0xff] }
 0xa5a   :  { %4093 = vmatprep.subr.bf16.mxu0 %v3754_v36  ;;  %v4144_v36 = vld [vmem:[#allocation12 + $0x230] sm:$0xff] }
 0xa5d   :  { %4094 = vmatpush2.bf16.msra.mxu0 %v3753_v4 }
 0xa5e   :  { %4095 = vmatprep.subr.bf16.mxu0 %v3752_v8 }
 0xa61   :  { %4096 = vmatpush2.bf16.msra.mxu0 %v3751_v61 }
 0xa62   :  { %4097 = vmatprep.subr.bf16.mxu0 %v3750_v16 }
 0xa65   :  { %4098 = vmatpush2.bf16.msra.mxu0 %v3749_v24  ;;  %v4143_v24 = vld [vmem:[#allocation12 + $0x228] sm:$0xff] }
 0xa66   :  { %4099 = vmatprep.subr.bf16.mxu0 %v3748_v35  ;;  %v4142_v35 = vld [vmem:[#allocation12 + $0x220] sm:$0xff] }
 0xa69   :  { %4100 = vmatpush2.bf16.msra.mxu0 %v3747_v5 }
 0xa6a   :  { %4101 = vmatprep.subr.bf16.mxu0 %v3746_v17 }
 0xa6d   :  { %4102 = vmatpush2.bf16.msra.mxu0 %v3745_v25 }
 0xa6e   :  { %4103 = vmatprep.subr.bf16.mxu0 %v3744_v21  ;;  %v4158_v21 = vld [vmem:[#allocation12 + $0x2a0] sm:$0xff] }
 0xa6f   :  { %4226 = vmatpush1.msra.mxu1 %v4158_v21  ;;  %v4195_v21 = vld [vmem:[#allocation12 + $0x3c8] sm:$0xff] }
 0xa70   :  { %4227 = vmatprep.subr.mxu1 %v4157_v10  ;;  %v4193_v10 = vld [vmem:[#allocation12 + $0x3b8] sm:$0xff] }
 0xa71   :  { %4104 = vmatpush2.bf16.msra.mxu0 %v3743_v52  ;;  %4228 = vmatpush1.msra.mxu1 %v4156_v54  ;;  %v4192_v54 = vld [vmem:[#allocation12 + $0x3b0] sm:$0xff] }
 0xa72   :  { %4105 = vmatprep.subr.bf16.mxu0 %v3742_v38  ;;  %4229 = vmatprep.subr.mxu1 %v4155_v1 }
 0xa73   :  { %4230 = vmatpush1.msra.mxu1 %v4154_v43 }
 0xa74   :  { %v3863_v22 = vpop.f32.mrf.mxu0  ;;  %4231 = vmatprep.subr.mxu1 %v4153_v30  ;;  %v4188_v30 = vld [vmem:[#allocation12 + $0x390] sm:$0xff] }
 0xa75   :  { %4106 = vmatpush2.bf16.msra.mxu0 %v3741_v13  ;;  %v3884_v19 = vrot.slane %v3863_v22, 4  ;;  %v4152_v13 = vld [vmem:[#allocation12 + $0x270] sm:$0xff] }
 0xa76   :  { %v3865_v52 = vpop.f32.mrf.mxu0  ;;  %4366 = vmatprep.subr.mxu0 %v4320_v55  ;;  %4232 = vmatpush1.msra.mxu1 %v4152_v13  ;;  %v4198_v55 = vld [vmem:[#allocation12 + $0x3e0] sm:$0xff] }
 0xa77   :  { %v3885_v15 = vmax.f32 %v3863_v22, %v3884_v19  ;;  %v3890_v38 = vrot.slane %v3865_v52, 4  ;;  %4233 = vmatprep.subr.mxu1 %v4151_v46  ;;  %v4194_v19 = vld [vmem:[#allocation12 + $0x3c0] sm:$0xff] }
 0xa78   :  { %v3867_v0 = vpop.f32.mrf.mxu0  ;;  %4234 = vmatpush1.msra.mxu1 %v4150_v23 }
 0xa79   :  { %v3886_v42 = vrot.slane %v3885_v15, 2  ;;  %v3891_v29 = vmax.f32 %v3865_v52, %v3890_v38  ;;  %v3952_v31 = vrot.slane %v3867_v0, 4  ;;  %4235 = vmatprep.subr.mxu1 %v4149_v63  ;;  %v4191_v38 = vld [vmem:[#allocation12 + $0x3a8] sm:$0xff] }
 0xa7a   :  { %v3869_v11 = vpop.f32.mrf.mxu0  ;;  %4236 = vmatpush1.msra.mxu1 %v4148_v57 }
 0xa7b   :  { %v3887_v18 = vmax.f32 %v3885_v15, %v3886_v42  ;;  %v3892_v34 = vrot.slane %v3891_v29, 2  ;;  %v3953_v27 = vmax.f32 %v3867_v0, %v3952_v31  ;;  %v3958_v33 = vrot.slane %v3869_v11, 4  ;;  %4237 = vmatprep.subr.mxu1 %v4147_v58 }
 0xa7c   :  { %4238 = vmatpush1.msra.mxu1 %v4146_v60 }
 0xa7d   :  { %v3888_v45 = vrot.slane %v3887_v18, 1  ;;  %v3893_v41 = vmax.f32 %v3891_v29, %v3892_v34  ;;  %v3954_v51 = vrot.slane %v3953_v27, 2  ;;  %v3959_v12 = vmax.f32 %v3869_v11, %v3958_v33  ;;  %4239 = vmatprep.subr.mxu1 %v4145_v62  ;;  %v4189_v29 = vld [vmem:[#allocation12 + $0x398] sm:$0xff]  ;;  %v4187_v34 = vld [vmem:[#allocation12 + $0x388] sm:$0xff]  ;;  %v4186_v33 = vld [vmem:[#allocation12 + $0x380] sm:$0xff] }
 0xa7e   :  { %4240 = vmatpush1.msra.mxu1 %v4144_v36 }
 0xa7f   :  { %v3889_v2 = vmax.f32 %v3887_v18, %v3888_v45  ;;  %v3894_v9 = vrot.slane %v3893_v41, 1  ;;  %v3955_v37 = vmax.f32 %v3953_v27, %v3954_v51  ;;  %v3960_v47 = vrot.slane %v3959_v12, 2  ;;  %4241 = vmatprep.subr.mxu1 %v4143_v24  ;;  %v4185_v51 = vld [vmem:[#allocation12 + $0x378] sm:$0xff] }
 0xa80   :  { %4242 = vmatpush1.msra.mxu1 %v4142_v35 }
 0xa81   :  { %v3898_v48 = vsub.f32 %v3863_v22, %v3889_v2  ;;  %v3895_v56 = vmax.f32 %v3893_v41, %v3894_v9  ;;  %v3956_v40 = vrot.slane %v3955_v37, 1  ;;  %v3961_v59 = vmax.f32 %v3959_v12, %v3960_v47  ;;  %4243 = vmatprep.subr.mxu1 %v4141_v3  ;;  %v4196_v22 = vld [vmem:[#allocation12 + $0x3d0] sm:$0xff]  ;;  %v4183_v9 = vld [vmem:[#allocation12 + $0x368] sm:$0xff]  ;;  %v4182_v47 = vld [vmem:[#allocation12 + $0x360] sm:$0xff] }
 0xa82   :  { %4244 = vmatpush1.msra.mxu1 %v4140_v44  ;;  %v4184_v12 = vld [vmem:[#allocation12 + $0x370] sm:$0xff] }
 0xa83   :  { %v3904_v4 = vmul.f32 1.442695, %v3898_v48  ;;  %v3899_v8 = vsub.f32 %v3865_v52, %v3895_v56  ;;  %v3957_v61 = vmax.f32 %v3955_v37, %v3956_v40  ;;  %v3962_v16 = vrot.slane %v3961_v59, 1  ;;  %4245 = vmatprep.subr.mxu1 %v4139_v6  ;;  %v4181_v56 = vld [vmem:[#allocation12 + $0x358] sm:$0xff]  ;;  %v4180_v40 = vld [vmem:[#allocation12 + $0x350] sm:$0xff] }
 0xa84   :  { %4246 = vmatpush1.msra.mxu1 %v4138_v53 }
 0xa85   :  { %4866 = vpow2.f32 %v3904_v4  ;;  %v3906_v5 = vmul.f32 1.442695, %v3899_v8  ;;  %v3966_v17 = vsub.f32 %v3867_v0, %v3957_v61  ;;  %v3963_v25 = vmax.f32 %v3961_v59, %v3962_v16  ;;  %4247 = vmatprep.subr.mxu1 %v4201_v50  ;;  %v4190_v0 = vld [vmem:[#allocation12 + $0x3a0] sm:$0xff]  ;;  %v4179_v4 = vld [vmem:[#allocation12 + $0x348] sm:$0xff] }
 0xa86   :  { %4248 = vmatpush2.msra.mxu1 %v4200_v28  ;;  %v4178_v61 = vld [vmem:[#allocation12 + $0x340] sm:$0xff] }
 0xa87   :  { %4868 = vpow2.f32 %v3906_v5  ;;  %v3972_v20 = vmul.f32 1.442695, %v3966_v17  ;;  %v3967_v32 = vsub.f32 %v3869_v11, %v3963_v25  ;;  %4249 = vmatprep.subr.mxu1 %v4199_v7  ;;  %v3762_v5 = vadd.s32 384, %v7836_v39  ;;  %v4319_v7 = vld [vmem:[#allocation12 + $0x4f0] sm:$0xff] }
 0xa88   :  { %4250 = vmatpush2.msra.mxu1 %v4198_v55  ;;  %v3761_v17 = vadd.s32 256, %v7836_v39  ;;  %v4318_v39 = vld [vmem:[#allocation12 + $0x4e8] sm:$0xff]  ;;  %v4317_v55 = vld [vmem:[#allocation12 + $0x4e0] sm:$0xff] }
 0xa89   :  { %4870 = vpow2.f32 %v3972_v20  ;;  %v3974_v26 = vmul.f32 1.442695, %v3967_v32  ;;  %4251 = vmatprep.subr.mxu1 %v4197_v49  ;;  %vm3773_vm4 = vcmp.lt.s32.totalorder %v3762_v5, %v7848_v14  ;;  %v4316_v49 = vld [vmem:[#allocation12 + $0x4d8] sm:$0xff] }
 0xa8a   :  { %4252 = vmatpush2.msra.mxu1 %v4196_v22  ;;  %vm3772_vm5 = vcmp.lt.s32.totalorder %v3761_v17, %v7848_v14  ;;  %vm4558_vm6 = vmpackc.low %vm3773_vm4, %vm3773_vm4  ;;  %v4315_v22 = vld [vmem:[#allocation12 + $0x4d0] sm:$0xff]  ;;  %v4314_v14 = vld [vmem:[#allocation12 + $0x4c8] sm:$0xff] }
 0xa8b   :  { %4872 = vpow2.f32 %v3974_v26  ;;  %4253 = vmatprep.subr.mxu1 %v4195_v21  ;;  %vm4561_vm7 = vmpackc.low %vm3772_vm5, %vm3772_vm5  ;;  %v4313_v21 = vld [vmem:[#allocation12 + $0x4c0] sm:$0xff]  ;;  %v4332_v5 = vld [vmem:[#allocation12 + $0x558] sm:$0xff] }
 0xa8c   :  { %4254 = vmatpush2.msra.mxu1 %v4194_v19  ;;  %v4312_v19 = vld [vmem:[#allocation12 + $0x4b8] sm:$0xff]  ;;  %v4176_v17 = vld [vmem:[#allocation12 + $0x330] sm:$0xff] }
 0xa8d   :  { %4255 = vmatprep.subr.mxu1 %v4193_v10  ;;  %v4311_v10 = vld [vmem:[#allocation12 + $0x4b0] sm:$0xff] }
 0xa8e   :  { %4256 = vmatpush2.msra.mxu1 %v4192_v54  ;;  %v4309_v54 = vld [vmem:[#allocation12 + $0x4a0] sm:$0xff] }
 0xa8f   :  { %4257 = vmatprep.subr.mxu1 %v4191_v38  ;;  %v4307_v38 = vld [vmem:[#allocation12 + $0x490] sm:$0xff] }
 0xa90   :  { %4258 = vmatpush2.msra.mxu1 %v4190_v0  ;;  %v4305_v0 = vld [vmem:[#allocation12 + $0x480] sm:$0xff] }
 0xa91   :  { %4259 = vmatprep.subr.mxu1 %v4189_v29  ;;  %v4302_v29 = vld [vmem:[#allocation12 + $0x468] sm:$0xff] }
 0xa92   :  { %v7912_v52 = vpop.eup %4866  ;;  %4260 = vmatpush2.msra.mxu1 %v4188_v30  ;;  %v4300_v30 = vld [vmem:[#allocation12 + $0x458] sm:$0xff] }
 0xa93   :  { %v3920_v15 = vrot.slane %v7912_v52, 4  ;;  %4261 = vmatprep.subr.mxu1 %v4187_v34  ;;  %v4296_v34 = vld [vmem:[#allocation12 + $0x438] sm:$0xff] }
 0xa94   :  { %v7915_v1 = vpop.eup %4868  ;;  %4262 = vmatpush2.msra.mxu1 %v4186_v33  ;;  %v4294_v33 = vld [vmem:[#allocation12 + $0x428] sm:$0xff] }
 0xa95   :  { %v3921_v43 = vadd.f32 %v7912_v52, %v3920_v15  ;;  %v3926_v42 = vrot.slane %v7915_v1, 4  ;;  %4263 = vmatprep.subr.mxu1 %v4185_v51  ;;  %v4308_v15 = vld [vmem:[#allocation12 + $0x498] sm:$0xff]  ;;  %v4289_v51 = vld [vmem:[#allocation12 + $0x400] sm:$0xff] }
 0xa96   :  { %v4871_v31 = vpop.eup %4870  ;;  %4264 = vmatpush2.msra.mxu1 %v4184_v12  ;;  %v4352_v12 = vld [vmem:[#allocation12 + $0x5f8] sm:$0xff] }
 0xa97   :  { %v3988_v11 = vrot.slane %v4871_v31, 4  ;;  %v3927_v13 = vadd.f32 %v7915_v1, %v3926_v42  ;;  %v3922_v18 = vrot.slane %v3921_v43, 2  ;;  %4265 = vmatprep.subr.mxu1 %v4183_v9  ;;  %v4303_v42 = vld [vmem:[#allocation12 + $0x470] sm:$0xff]  ;;  %v4348_v9 = vld [vmem:[#allocation12 + $0x5d8] sm:$0xff] }
 0xa98   :  { %v4873_v27 = vpop.eup %4872  ;;  %4266 = vmatpush2.msra.mxu1 %v4182_v47  ;;  %v4346_v47 = vld [vmem:[#allocation12 + $0x5c8] sm:$0xff] }
 0xa99   :  { %v3989_v46 = vadd.f32 %v4871_v31, %v3988_v11  ;;  %v3928_v23 = vrot.slane %v3927_v13, 2  ;;  %v3994_v45 = vrot.slane %v4873_v27, 4  ;;  %v3923_v41 = vadd.f32 %v3922_v18, %v3921_v43  ;;  %4267 = vmatprep.subr.mxu1 %v4181_v56  ;;  %v4304_v43 = vld [vmem:[#allocation12 + $0x478] sm:$0xff]  ;;  %v4299_v11 = vld [vmem:[#allocation12 + $0x450] sm:$0xff]  ;;  %v4297_v18 = vld [vmem:[#allocation12 + $0x440] sm:$0xff] }
 0xa9a   :  { %4268 = vmatpush2.msra.mxu1 %v4180_v40  ;;  %v4342_v56 = vld [vmem:[#allocation12 + $0x5a8] sm:$0xff]  ;;  %v4341_v40 = vld [vmem:[#allocation12 + $0x5a0] sm:$0xff] }
 0xa9b   :  { %v3929_v63 = vadd.f32 %v3928_v23, %v3927_v13  ;;  %v3995_v57 = vadd.f32 %v4873_v27, %v3994_v45  ;;  %v3990_v2 = vrot.slane %v3989_v46, 2  ;;  %v3924_v37 = vrot.slane %v3923_v41, 1  ;;  %4269 = vmatprep.subr.mxu1 %v4179_v4  ;;  %v4298_v13 = vld [vmem:[#allocation12 + $0x448] sm:$0xff]  ;;  %v4292_v23 = vld [vmem:[#allocation12 + $0x418] sm:$0xff]  ;;  %v4291_v45 = vld [vmem:[#allocation12 + $0x410] sm:$0xff] }
 0xa9c   :  { %4270 = vmatpush2.msra.mxu1 %v4178_v61  ;;  %v4337_v4 = vld [vmem:[#allocation12 + $0x580] sm:$0xff]  ;;  %v4335_v61 = vld [vmem:[#allocation12 + $0x570] sm:$0xff] }
 0xa9d   :  { %v3930_v58 = vrot.slane %v3929_v63, 1  ;;  %v3996_v60 = vrot.slane %v3995_v57, 2  ;;  %v3991_v48 = vadd.f32 %v3990_v2, %v3989_v46  ;;  %v3925_v8 = vadd.f32 %v3924_v37, %v3923_v41  ;;  %v4293_v46 = vld [vmem:[#allocation12 + $0x420] sm:$0xff]  ;;  %v4290_v41 = vld [vmem:[#allocation12 + $0x408] sm:$0xff]  ;;  %v4347_v37 = vld [vmem:[#allocation12 + $0x5d0] sm:$0xff] }
 0xa9e   :  { %v4349_v2 = vld [vmem:[#allocation12 + $0x5e0] sm:$0xff] }
 0xa9f   :  { %v3931_v59 = vadd.f32 %v3930_v58, %v3929_v63  ;;  %v3997_v62 = vadd.f32 %v3996_v60, %v3995_v57  ;;  %v3992_v36 = vrot.slane %v3991_v48, 1  ;;  %v4351_v63 = vld [vmem:[#allocation12 + $0x5f0] sm:$0xff]  ;;  %v4350_v57 = vld [vmem:[#allocation12 + $0x5e8] sm:$0xff]  ;;  %v4345_v58 = vld [vmem:[#allocation12 + $0x5c0] sm:$0xff] }
 0xaa0   :  { %v4344_v60 = vld [vmem:[#allocation12 + $0x5b8] sm:$0xff] }
 0xaa1   :  { %v3998_v16 = vrot.slane %v3997_v62, 1  ;;  %v3993_v24 = vadd.f32 %v3992_v36, %v3991_v48  ;;  %4874 = vrcp.f32 %v3931_v59  ;;  %v4343_v48 = vld [vmem:[#allocation12 + $0x5b0] sm:$0xff]  ;;  %v4340_v59 = vld [vmem:[#allocation12 + $0x598] sm:$0xff]  ;;  %v4338_v36 = vld [vmem:[#allocation12 + $0x588] sm:$0xff] }
 0xaa3   :  { %v3999_v35 = vadd.f32 %v3998_v16, %v3997_v62  ;;  %4876 = vrcp.f32 %v3993_v24  ;;  %v4339_v62 = vld [vmem:[#allocation12 + $0x590] sm:$0xff]  ;;  %v4334_v16 = vld [vmem:[#allocation12 + $0x568] sm:$0xff]  ;;  %v4333_v24 = vld [vmem:[#allocation12 + $0x560] sm:$0xff] }
 0xaa4   :  { %4878 = vrcp.f32 %v3925_v8  ;;  %v4336_v8 = vld [vmem:[#allocation12 + $0x578] sm:$0xff] }
 0xaa5   :  { %4880 = vrcp.f32 %v3999_v35  ;;  %v4177_v35 = vld [vmem:[#allocation12 + $0x338] sm:$0xff] }
 0xaa6   :  { %4271 = vmatprep.subr.mxu1 %v4177_v35 }
 0xaa7   :  { %4272 = vmatpush2.msra.mxu1 %v4176_v17 }
 0xaae   :  { %v4875_v25 = vpop.eup %4874 }
 0xaaf   :  { %v3939_v6 = vmul.f32 %v4875_v25, %v7915_v1  ;;  %v4306_v1 = vld [vmem:[#allocation12 + $0x488] sm:$0xff]  ;;  %v4331_v25 = vld [vmem:[#allocation12 + $0x550] sm:$0xff] }
 0xab0   :  { %v4877_v3 = vpop.eup %4876 }
 0xab1   :  { %v4879_v44 = vpop.eup %4878  ;;  %v4006_v32 = vmul.f32 %v4877_v3, %v4871_v31  ;;  %v4301_v31 = vld [vmem:[#allocation12 + $0x460] sm:$0xff]  ;;  %v4175_v3 = vld [vmem:[#allocation12 + $0x328] sm:$0xff] }
 0xab2   :  { %v4881_v20 = vpop.eup %4880  ;;  %v3938_v26 = vmul.f32 %v4879_v44, %v7912_v52  ;;  %v4310_v52 = vld [vmem:[#allocation12 + $0x4a8] sm:$0xff]  ;;  %4273 = vmatprep.subr.mxu1 %v4175_v3 }
 0xab3   :  { %v4007_v53 = vmul.f32 %v4881_v20, %v4873_v27  ;;  %v4295_v27 = vld [vmem:[#allocation12 + $0x430] sm:$0xff]  ;;  %v4330_v44 = vld [vmem:[#allocation12 + $0x548] sm:$0xff]  ;;  %v4174_v20 = vld [vmem:[#allocation12 + $0x320] sm:$0xff] }
 0xab4   :  { %v4562_v28 = vpack.c.bf16 %v4006_v32, %v3938_v26  ;;  %v4329_v32 = vld [vmem:[#allocation12 + $0x540] sm:$0xff]  ;;  %4274 = vmatpush2.msra.mxu1 %v4174_v20  ;;  %v4172_v26 = vld [vmem:[#allocation12 + $0x310] sm:$0xff] }
 0xab5   :  { %v4559_v50 = vpack.c.bf16 %v4007_v53, %v3939_v6  ;;  %v4173_v6 = vld [vmem:[#allocation12 + $0x318] sm:$0xff] }
 0xab6   :  { %v4328_v53 = vld [vmem:[#allocation12 + $0x538] sm:$0xff]  ;;  %4275 = vmatprep.subr.mxu1 %v4173_v6 }
 0xab7   :  { %4560 = vmatprep.mubr.msk.bf16.mxu0 %vm4558_vm6, %v4559_v50  ;;  %v4327_v50 = vld [vmem:[#allocation12 + $0x530] sm:$0xff]  ;;  %4276 = vmatpush2.msra.mxu1 %v4172_v26 }
 0xab8   :  { %4563 = vmatmul.mubr.msk.bf16.vlgmr.msra.gmra.mxu0 %vm4561_vm7, %v4562_v28  ;;  %v4171_v28 = vld [vmem:[#allocation12 + $0x308] sm:$0xff] }
 0xab9   :  { %4367 = vmatpush1.msra.mxu0 %v4319_v7  ;;  %v4326_v7 = vld [vmem:[#allocation12 + $0x528] sm:$0xff]  ;;  %4277 = vmatprep.subr.mxu1 %v4171_v28 }
 0xaba   :  { %4368 = vmatprep.subr.mxu0 %v4318_v39  ;;  %v4170_v39 = vld [vmem:[#allocation12 + $0x300] sm:$0xff] }
 0xabb   :  { %4369 = vmatpush1.msra.mxu0 %v4317_v55  ;;  %v4325_v55 = vld [vmem:[#allocation12 + $0x520] sm:$0xff]  ;;  %4278 = vmatpush2.msra.mxu1 %v4170_v39 }
 0xabc   :  { %4370 = vmatprep.subr.mxu0 %v4316_v49  ;;  %v4324_v49 = vld [vmem:[#allocation12 + $0x518] sm:$0xff] }
 0xabd   :  { %4371 = vmatpush1.msra.mxu0 %v4315_v22  ;;  %v4323_v22 = vld [vmem:[#allocation12 + $0x510] sm:$0xff] }
 0xabe   :  { %4372 = vmatprep.subr.mxu0 %v4314_v14  ;;  %v4322_v14 = vld [vmem:[#allocation12 + $0x508] sm:$0xff] }
 0xabf   :  { %4373 = vmatpush1.msra.mxu0 %v4313_v21  ;;  %v4321_v21 = vld [vmem:[#allocation12 + $0x500] sm:$0xff] }
 0xac0   :  { %4374 = vmatprep.subr.mxu0 %v4312_v19 }
 0xac1   :  { %4375 = vmatpush1.msra.mxu0 %v4311_v10 }
 0xac2   :  { %4376 = vmatprep.subr.mxu0 %v4310_v52 }
 0xac3   :  { %4377 = vmatpush1.msra.mxu0 %v4309_v54 }
 0xac4   :  { %4378 = vmatprep.subr.mxu0 %v4308_v15 }
 0xac5   :  { %4379 = vmatpush1.msra.mxu0 %v4307_v38 }
 0xac6   :  { %4380 = vmatprep.subr.mxu0 %v4306_v1 }
 0xac7   :  { %4381 = vmatpush1.msra.mxu0 %v4305_v0 }
 0xac8   :  { %4382 = vmatprep.subr.mxu0 %v4304_v43 }
 0xac9   :  { %4383 = vmatpush1.msra.mxu0 %v4303_v42 }
 0xaca   :  { %4384 = vmatprep.subr.mxu0 %v4302_v29 }
 0xacb   :  { %4385 = vmatpush1.msra.mxu0 %v4301_v31 }
 0xacc   :  { %4386 = vmatprep.subr.mxu0 %v4300_v30 }
 0xacd   :  { %4387 = vmatpush1.msra.mxu0 %v4299_v11 }
 0xace   :  { %4388 = vmatprep.subr.mxu0 %v4298_v13 }
 0xacf   :  { %4389 = vmatpush1.msra.mxu0 %v4297_v18 }
 0xad0   :  { %4390 = vmatprep.subr.mxu0 %v4296_v34  ;;  %v4203_v34 = vld [vmem:[#allocation17 + $0x4] ss:$8 sm:$0x3] }
 0xad1   :  { %4391 = vmatpush1.msra.mxu0 %v4295_v27  ;;  %v8646_v27 = vld [vmem:[#allocation28_spill] sm:$0xff] }
 0xad2   :  { %4392 = vmatprep.subr.mxu0 %v4294_v33  ;;  %v4208_v33 = vrot.slane %v4203_v34, %v8646_v27 }
 0xad3   :  { %4393 = vmatpush1.msra.mxu0 %v4293_v46  ;;  %v4354_v46 = vld [vmem:[#allocation17 + $0x5] ss:$8 sm:$0x3] }
 0xad4   :  { %4394 = vmatprep.subr.mxu0 %v4292_v23  ;;  %v8647_v23 = vld [vmem:[#allocation29_spill] sm:$0xff] }
 0xad5   :  { %4395 = vmatpush1.msra.mxu0 %v4291_v45  ;;  %v4212_v45 = vrot.slane %v4203_v34, %v8647_v23 }
 0xad6   :  { %4396 = vmatprep.subr.mxu0 %v4290_v41 }
 0xad7   :  { %4397 = vmatpush1.msra.mxu0 %v4289_v51 }
 0xad8   :  { %4398 = vmatprep.subr.mxu0 %v4352_v12  ;;  %v4359_v12 = vrot.slane %v4354_v46, %v8646_v27 }
 0xad9   :  { %4399 = vmatpush2.msra.mxu0 %v4351_v63 }
 0xada   :  { %4400 = vmatprep.subr.mxu0 %v4350_v57 }
 0xadb   :  { %4401 = vmatpush2.msra.mxu0 %v4349_v2  ;;  %v4363_v2 = vrot.slane %v4354_v46, %v8647_v23 }
 0xadc   :  { %4402 = vmatprep.subr.mxu0 %v4348_v9 }
 0xadd   :  { %4403 = vmatpush2.msra.mxu0 %v4347_v37 }
 0xade   :  { %4404 = vmatprep.subr.mxu0 %v4346_v47 }
 0xadf   :  { %4405 = vmatpush2.msra.mxu0 %v4345_v58 }
 0xae0   :  { %4406 = vmatprep.subr.mxu0 %v4344_v60 }
 0xae1   :  { %4407 = vmatpush2.msra.mxu0 %v4343_v48 }
 0xae2   :  { %4408 = vmatprep.subr.mxu0 %v4342_v56 }
 0xae3   :  { %4409 = vmatpush2.msra.mxu0 %v4341_v40 }
 0xae4   :  { %4410 = vmatprep.subr.mxu0 %v4340_v59 }
 0xae5   :  { %4411 = vmatpush2.msra.mxu0 %v4339_v62  ;;  %v4066_v19 = vpop.f32.mrf.mxu1 }
 0xae6   :  { %4412 = vmatprep.subr.mxu0 %v4338_v36 }
 0xae7   :  { %4413 = vmatpush2.msra.mxu0 %v4337_v4  ;;  %v4068_v10 = vpop.f32.mrf.mxu1 }
 0xae8   :  { %4414 = vmatprep.subr.mxu0 %v4336_v8 }
 0xae9   :  { %4415 = vmatpush2.msra.mxu0 %v4335_v61  ;;  %v4070_v54 = vpop.f32.mrf.mxu1 }
 0xaea   :  { %4416 = vmatprep.subr.mxu0 %v4334_v16 }
 0xaeb   :  { %4417 = vmatpush2.msra.mxu0 %v4333_v24  ;;  %v4072_v42 = vpop.f32.mrf.mxu1 }
 0xaec   :  { %4418 = vmatprep.subr.mxu0 %v4332_v5 }
 0xaed   :  { %4419 = vmatpush2.msra.mxu0 %v4331_v25 }
 0xaee   :  { %4420 = vmatprep.subr.mxu0 %v4330_v44 }
 0xaef   :  { %4421 = vmatpush2.msra.mxu0 %v4329_v32 }
 0xaf0   :  { %4422 = vmatprep.subr.mxu0 %v4328_v53 }
 0xaf1   :  { %4423 = vmatpush2.msra.mxu0 %v4327_v50 }
 0xaf2   :  { %4424 = vmatprep.subr.mxu0 %v4326_v7 }
 0xaf3   :  { %4425 = vmatpush2.msra.mxu0 %v4325_v55 }
 0xaf4   :  { %4426 = vmatprep.subr.mxu0 %v4324_v49 }
 0xaf5   :  { %4427 = vmatpush2.msra.mxu0 %v4323_v22 }
 0xaf6   :  { %4428 = vmatprep.subr.mxu0 %v4322_v14 }
 0xaf7   :  { %4429 = vmatpush2.msra.mxu0 %v4321_v21 }
 0xb78   :  { %v4109_v52 = vpop.f32.mrf.mxu0 }
 0xb79   :  { %v4110_v15 = vadd.f32 %v4109_v52, %v4066_v19 }
 0xb7a   :  { %v4111_v38 = vpop.f32.mrf.mxu0 }
 0xb7b   :  { %v4112_v1 = vadd.f32 %v4111_v38, %v4068_v10  ;;  %v4133_v29 = vmul.f32 0.00390625, %v4110_v15 }
 0xb7c   :  { %v4113_v0 = vpop.f32.mrf.mxu0 }
 0xb7d   :  { %v4134_v43 = vmul.f32 0.00390625, %v4112_v1  ;;  %v4114_v31 = vadd.f32 %v4113_v0, %v4070_v54 }
 0xb7e   :  { %v4115_v30 = vpop.f32.mrf.mxu0 }
 0xb7f   :  { %v4116_v11 = vadd.f32 %v4115_v30, %v4072_v42  ;;  %4279 = vmatprep.mubr.f32.mxu1 %v4134_v43  ;;  %v4135_v18 = vmul.f32 0.00390625, %v4114_v31 }
 0xb80   :  { %4280 = vmatmul.mubr.f32.vlgmr.msra.gmra.mxu1 %v4133_v29 }
 0xb81   :  { %v4136_v13 = vmul.f32 0.00390625, %v4116_v11 }
 0xb83   :  { %4430 = vmatprep.mubr.f32.mxu0 %v4136_v13 }
 0xb84   :  { %4431 = vmatmul.mubr.f32.vlgmr.msra.gmra.mxu0 %v4135_v18 }
 0xc40   :  { %v4281_v41 = vpop.f32.mrf.mxu1 }
 0xc41   :  { %v4282_v51 = vadd.f32 %v4281_v41, %v4208_v33 }
 0xc42   :  { %v4283_v63 = vpop.f32.mrf.mxu1 }
 0xc43   :  { %4286 = vst [vmem:[#allocation18] sm:$0xff] %v4282_v51  ;;  %v4284_v57 = vadd.f32 %v4283_v63, %v4212_v45 }
 0xc44   :  { %v4432_v9 = vpop.f32.mrf.mxu0 }
 0xc45   :  { %4287 = vst [vmem:[#allocation18 + $0x8] sm:$0xff] %v4284_v57  ;;  %v4433_v37 = vadd.f32 %v4432_v9, %v4359_v12 }
 0xc46   :  { %v4434_v47 = vpop.f32.mrf.mxu0 }
 0xc47   :  { %5033 = shalt.err (!%p5030_p11)
}
 0xc48   :  { %4448 = dma.vmem_to_hbm [thread:$0]  %s4446_s21, 256, %s7947_s8, [#allocation8]   ;;  %4437 = vst [vmem:[#allocation19] sm:$0xff] %v4433_v37  ;;  %v4435_v58 = vadd.f32 %v4434_v47, %v4363_v2 }
 0xc49   :  { %s5042_s13 = scalar_lea.vmem %s4456_s28, 256  ;;  %p5047_p13 = scmp.lt.s32.totalorder %s4456_s28, %s4456_s28 }
 0xc4a   :  { %4438 = vst [vmem:[#allocation19 + $0x8] sm:$0xff] %v4435_v58  ;;  %p5043_p12 = scmp.ne.s32.totalorder %s4456_s28, %s5042_s13  ;;  %p5048_p0 = scmp.lt.s32.totalorder %s5042_s13, %s5042_s13 }
 0xc4c   :  { %p5049_p1 = por %p5048_p0, %p5047_p13 }
 0xc4e   :  { %p5050_p2 = pnand %p5049_p1, %p5043_p12 }
 0xc50   :  { %5053 = shalt.err (!%p5050_p2)
}
 0xc51   :  { %4458 = dma.vmem_to_hbm [thread:$0]  %s4456_s28, 256, %s7948_s9, [#allocation20]  }
 0xc52   :  { %s5062_s16 = scalar_lea.vmem %s4466_s30, 256  ;;  %p5067_p4 = scmp.lt.s32.totalorder %s4466_s30, %s4466_s30 }
 0xc53   :  { %p5063_p3 = scmp.ne.s32.totalorder %s4466_s30, %s5062_s16  ;;  %p5068_p5 = scmp.lt.s32.totalorder %s5062_s16, %s5062_s16 }
 0xc55   :  { %p5069_p6 = por %p5068_p5, %p5067_p4 }
 0xc57   :  { %p5070_p7 = pnand %p5069_p6, %p5063_p3 }
 0xc59   :  { %5073 = shalt.err (!%p5070_p7)
}
 0xc5a   :  { %4468 = dma.vmem_to_hbm [thread:$0]  %s4466_s30, 256, %s7949_s10, [#allocation20]  }
 0xc5b   :  { %5090 = dma.done.wait [#allocation8], 256  }
 0xc5c   :  { %5091 = vsyncadd [#allocation8], 4294967040 }
 0xc5d   :  { %5092 = dma.done.wait [#allocation20], 512  }
 0xc5e   :  { %5093 = vsyncadd [#allocation20], 4294966784 }
 0xc5f   :  { %4478 = vsyncpa [#allocation7], 1 }
 0xc60   :  { %4479 = vsyncpa [#allocation10], 1 }
 0xc61   :  { %4480 = vsyncpa [#allocation13], 1 }
 0xc62   :  { %4481 = vsyncpa [#allocation16], 1 }
 0xc63   :  { %4482 = vsyncpa [#allocation8], 1 }
 0xc64   :  { %4483 = vsyncpa [#allocation20], 1 }

</bundles_post_ra>
